<compile_context>
chip_gen: v7x
topology: tpu7x:2x2x1
jax: 0.10.0
libtpu: 0.0.40
codegen_flags: <defaults>
</compile_context>

<pallas_src>
import functools

import jax
import jax.numpy as jnp
from jax.experimental import pallas as pl
from jax.experimental.pallas import tpu as pltpu

EPS = 1e-5
VMEM_LIMIT = 48 * 1024 * 1024  # explicit scoped-VMEM budget (safe on v5e/v6e/v7x)


def _channel_tile(cin, max_t=512):
    """Channel tile for the fused separable branch: full Cin if small, else the
    largest divisor of Cin that is a multiple of 128 and <= max_t."""
    if cin <= max_t:
        return cin
    for t in range(max_t, 127, -1):
        if cin % t == 0 and t % 128 == 0:
            return t
    return cin


# ---------------------------------------------------------------------------
# Kernel 1: aspp0 (1x1 conv + BN + ReLU) fused with the image-pooling branch
#           (GAP reduction + 1x1 conv + BN + ReLU).  x is read from HBM once.
# ---------------------------------------------------------------------------
def _aspp0_pool_kernel(x_ref, w0_ref, b0_ref, wp_ref, bp_ref,
                       x0_ref, pool_ref, sum_ref, *, HW):
    t = pl.program_id(1)
    tm = x_ref.shape[1]

    @pl.when(t == 0)
    def _():
        sum_ref[...] = jnp.zeros_like(sum_ref)

    xs = x_ref[0]                                             # (tm, Cin) f32

    # Masked GAP accumulation (handles a ragged last row-tile).
    row = jax.lax.broadcasted_iota(jnp.int32, (tm, 1), 0)
    valid = row < (HW - t * tm)
    sum_ref[...] += jnp.sum(jnp.where(valid, xs, 0.0), axis=0, keepdims=True)

    # aspp0: 1x1 conv (BN scale pre-folded into w0) + shift + ReLU, bf16 MXU.
    y = jnp.dot(xs.astype(jnp.bfloat16), w0_ref[...],
                preferred_element_type=jnp.float32)
    x0_ref[0] = jnp.maximum(y + b0_ref[...], 0.0).astype(x0_ref.dtype)

    @pl.when(t == pl.num_programs(1) - 1)
    def _():
        mean = sum_ref[...] * (1.0 / HW)                      # (1, Cin)
        p = jnp.dot(mean.astype(jnp.bfloat16), wp_ref[...],
                    preferred_element_type=jnp.float32)
        pool_ref[0] = jnp.maximum(p + bp_ref[...], 0.0)


def aspp0_and_pool(x3d, w0, b0, wp, bp, *, tm=512):
    N, HW, Cin = x3d.shape
    Cout = w0.shape[1]
    tm = min(tm, HW)
    grid = (N, pl.cdiv(HW, tm))
    kern = functools.partial(_aspp0_pool_kernel, HW=HW)
    return pl.pallas_call(
        kern,
        out_shape=(jax.ShapeDtypeStruct((N, HW, Cout), jnp.bfloat16),
                   jax.ShapeDtypeStruct((N, 1, Cout), jnp.float32)),
        grid=grid,
        in_specs=[
            pl.BlockSpec((1, tm, Cin), lambda n, t: (n, t, 0)),
            pl.BlockSpec((Cin, Cout), lambda n, t: (0, 0)),
            pl.BlockSpec((1, Cout), lambda n, t: (0, 0)),
            pl.BlockSpec((Cin, Cout), lambda n, t: (0, 0)),
            pl.BlockSpec((1, Cout), lambda n, t: (0, 0)),
        ],
        out_specs=(
            pl.BlockSpec((1, tm, Cout), lambda n, t: (n, t, 0)),
            pl.BlockSpec((1, 1, Cout), lambda n, t: (n, 0, 0)),
        ),
        scratch_shapes=[pltpu.VMEM((1, Cin), jnp.float32)],
        compiler_params=pltpu.CompilerParams(
            dimension_semantics=("parallel", "arbitrary"),
            vmem_limit_bytes=VMEM_LIMIT),
    )(x3d, w0, b0, wp, bp)


# ---------------------------------------------------------------------------
# Kernel 2: fused separable branch.
#   depthwise dilated 3x3 (BN scale folded) + shift + ReLU -> stays in VMEM
#   -> 1x1 conv (bf16 MXU) accumulated over channel tiles + shift + ReLU.
# Grid: (N, Cin // tc); the padded input is shared across dilations, taps are
# read at static offset (dmax - d) + k*d.
# ---------------------------------------------------------------------------
def _sep_branch_kernel(xp_ref, dw_ref, bdw_ref, pw_ref, bpw_ref,
                       o_ref, acc_ref, *, H, W, d, off):
    c = pl.program_id(1)

    @pl.when(c == 0)
    def _():
        acc_ref[...] = jnp.zeros_like(acc_ref)

    tc = xp_ref.shape[-1]
    dwa = jnp.zeros((H, W, tc), jnp.float32)
    for ky in range(3):
        for kx in range(3):
            tap = xp_ref[0,
                         off + ky * d: off + ky * d + H,
                         off + kx * d: off + kx * d + W, :]
            dwa = dwa + tap * dw_ref[ky, kx, :]
    dwa = jnp.maximum(dwa + bdw_ref[0], 0.0)                  # (H, W, tc)

    lhs = dwa.reshape(H * W, tc).astype(jnp.bfloat16)
    acc_ref[...] += jnp.dot(lhs, pw_ref[...],
                            preferred_element_type=jnp.float32)

    @pl.when(c == pl.num_programs(1) - 1)
    def _():
        y = jnp.maximum(acc_ref[...] + bpw_ref[...], 0.0)
        o_ref[0] = y.reshape(H, W, -1).astype(o_ref.dtype)


def sep_branch(xp, dw, bdw, pw, bpw, *, H, W, dilation, dmax):
    N, Hp, Wp, Cin = xp.shape
    Cout = pw.shape[1]
    tc = _channel_tile(Cin)
    off = dmax - dilation
    kern = functools.partial(_sep_branch_kernel, H=H, W=W, d=dilation, off=off)
    return pl.pallas_call(
        kern,
        out_shape=jax.ShapeDtypeStruct((N, H, W, Cout), jnp.bfloat16),
        grid=(N, Cin // tc),
        in_specs=[
            pl.BlockSpec((1, Hp, Wp, tc), lambda n, c: (n, 0, 0, c)),
            pl.BlockSpec((3, 3, tc), lambda n, c: (0, 0, c)),
            pl.BlockSpec((1, tc), lambda n, c: (0, c)),
            pl.BlockSpec((tc, Cout), lambda n, c: (c, 0)),
            pl.BlockSpec((1, Cout), lambda n, c: (0, 0)),
        ],
        out_specs=pl.BlockSpec((1, H, W, Cout), lambda n, c: (n, 0, 0, 0)),
        scratch_shapes=[pltpu.VMEM((H * W, Cout), jnp.float32)],
        compiler_params=pltpu.CompilerParams(
            dimension_semantics=("parallel", "arbitrary"),
            vmem_limit_bytes=VMEM_LIMIT),
    )(xp, dw, bdw, pw, bpw)


# ---------------------------------------------------------------------------
# Kernel 3: concat-free final projection.
#   out = relu( pool @ wf[0:C] + x0 @ wf[C:2C] + x1 @ wf[2C:3C]
#             + x2 @ wf[3C:4C] + x3 @ wf[4C:5C] + shift )
# No (N,H,W,5C) concat and no broadcast pool tensor ever hit HBM.
# ---------------------------------------------------------------------------
def _final_kernel(pool_ref, x0_ref, x1_ref, x2_ref, x3_ref,
                  wfp_ref, wf0_ref, wf1_ref, wf2_ref, wf3_ref,
                  bf_ref, o_ref):
    bias = jnp.dot(pool_ref[0].astype(jnp.bfloat16), wfp_ref[...],
                   preferred_element_type=jnp.float32)        # (1, Cout)
    y = jnp.dot(x0_ref[0], wf0_ref[...], preferred_element_type=jnp.float32)
    y = y + jnp.dot(x1_ref[0], wf1_ref[...], preferred_element_type=jnp.float32)
    y = y + jnp.dot(x2_ref[0], wf2_ref[...], preferred_element_type=jnp.float32)
    y = y + jnp.dot(x3_ref[0], wf3_ref[...], preferred_element_type=jnp.float32)
    o_ref[0] = jnp.maximum(y + bias + bf_ref[...], 0.0)


def final_projection(pool, x0, x1, x2, x3,
                     wfp, wf0, wf1, wf2, wf3, bf, *, tm=512):
    N, HW, Cout = x0.shape
    tm = min(tm, HW)
    grid = (N, pl.cdiv(HW, tm))
    row_spec = pl.BlockSpec((1, tm, Cout), lambda n, t: (n, t, 0))
    w_spec = pl.BlockSpec((Cout, Cout), lambda n, t: (0, 0))
    return pl.pallas_call(
        _final_kernel,
        out_shape=jax.ShapeDtypeStruct((N, HW, Cout), jnp.float32),
        grid=grid,
        in_specs=[
            pl.BlockSpec((1, 1, Cout), lambda n, t: (n, 0, 0)),
            row_spec, row_spec, row_spec, row_spec,
            w_spec, w_spec, w_spec, w_spec, w_spec,
            pl.BlockSpec((1, Cout), lambda n, t: (0, 0)),
        ],
        out_specs=row_spec,
        compiler_params=pltpu.CompilerParams(
            dimension_semantics=("parallel", "parallel"),
            vmem_limit_bytes=VMEM_LIMIT),
    )(pool, x0, x1, x2, x3, wfp, wf0, wf1, wf2, wf3, bf)


# ---------------------------------------------------------------------------
# Parameter construction (deterministic, synthetic) + BN folding
# ---------------------------------------------------------------------------
def fold_bn(gamma, beta, mean, var):
    scale = gamma / jnp.sqrt(var + EPS)
    shift = beta - mean * scale
    return scale, shift


def make_bn_params(key, c):
    k1, k2, k3, k4 = jax.random.split(key, 4)
    gamma = jax.random.uniform(k1, (c,), jnp.float32, 0.5, 1.5)
    beta = 0.1 * jax.random.normal(k2, (c,), jnp.float32)
    mean = 0.1 * jax.random.normal(k3, (c,), jnp.float32)
    var = jax.random.uniform(k4, (c,), jnp.float32, 0.5, 1.5)
    return fold_bn(gamma, beta, mean, var)


def init_params(key, cin, cout):
    ks = jax.random.split(key, 16)
    p = {}
    p["w0"] = 0.05 * jax.random.normal(ks[0], (cin, cout), jnp.float32)
    p["bn0"] = make_bn_params(ks[1], cout)
    for i, kw in enumerate(range(2, 11, 3)):
        p[f"dw{i+1}"] = 0.05 * jax.random.normal(ks[kw], (3, 3, cin), jnp.float32)
        p[f"bn_dw{i+1}"] = make_bn_params(ks[kw + 1], cin)
        p[f"pw{i+1}"] = 0.05 * jax.random.normal(ks[kw + 2], (cin, cout), jnp.float32)
        p[f"bn_pw{i+1}"] = make_bn_params(jax.random.fold_in(ks[kw + 2], 7), cout)
    p["wp"] = 0.05 * jax.random.normal(ks[11], (cin, cout), jnp.float32)
    p["bnp"] = make_bn_params(ks[12], cout)
    p["wf"] = 0.05 * jax.random.normal(ks[13], (5 * cout, cout), jnp.float32)
    p["bnf"] = make_bn_params(ks[14], cout)
    return p


def prepare_kernel_params(params):
    """Fold BN scale into conv weights (bf16 for MXU operands); keep shifts f32."""
    kp = {}
    s0, b0 = params["bn0"]
    kp["w0"] = (params["w0"] * s0[None, :]).astype(jnp.bfloat16)
    kp["b0"] = b0.reshape(1, -1)
    sp, bp = params["bnp"]
    kp["wp"] = (params["wp"] * sp[None, :]).astype(jnp.bfloat16)
    kp["bp"] = bp.reshape(1, -1)
    for i in (1, 2, 3):
        sd, bd = params[f"bn_dw{i}"]
        kp[f"dw{i}"] = params[f"dw{i}"] * sd[None, None, :]          # f32 (VPU)
        kp[f"bdw{i}"] = bd.reshape(1, -1)
        spw, bpw = params[f"bn_pw{i}"]
        kp[f"pw{i}"] = (params[f"pw{i}"] * spw[None, :]).astype(jnp.bfloat16)
        kp[f"bpw{i}"] = bpw.reshape(1, -1)
    sf, bf = params["bnf"]
    wf = (params["wf"] * sf[None, :]).astype(jnp.bfloat16)
    cout = wf.shape[1]
    kp["wf_pool"] = wf[0:cout]
    kp["wf0"] = wf[cout:2 * cout]
    kp["wf1"] = wf[2 * cout:3 * cout]
    kp["wf2"] = wf[3 * cout:4 * cout]
    kp["wf3"] = wf[4 * cout:5 * cout]
    kp["bf"] = bf.reshape(1, -1)
    return kp


# ---------------------------------------------------------------------------
# Full _ASPP forward
# ---------------------------------------------------------------------------
def aspp_forward(x, params, *, dilations=(6, 12, 18)):
    N, H, W, Cin = x.shape
    kp = prepare_kernel_params(params)
    Cout = kp["b0"].shape[1]
    HW = H * W
    dmax = max(dilations)

    # single shared zero-pad (max dilation), reused by all three branches
    xp = jnp.pad(x, ((0, 0), (dmax, dmax), (dmax, dmax), (0, 0)))
    x3d = x.reshape(N, HW, Cin)

    # aspp0 + image pooling (GAP fused into the same pass over x)
    x0, pool = aspp0_and_pool(x3d, kp["w0"], kp["b0"], kp["wp"], kp["bp"])

    # aspp1..3: fused depthwise-dilated 3x3 + 1x1 (intermediate never hits HBM)
    branch_outs = []
    for i, d in enumerate(dilations, start=1):
        b = sep_branch(xp, kp[f"dw{i}"], kp[f"bdw{i}"], kp[f"pw{i}"], kp[f"bpw{i}"],
                       H=H, W=W, dilation=d, dmax=dmax)
        branch_outs.append(b.reshape(N, HW, Cout))

    # concat-free final projection (pool enters as a per-image bias)
    out = final_projection(pool, x0, branch_outs[0], branch_outs[1], branch_outs[2],
                           kp["wf_pool"], kp["wf0"], kp["wf1"], kp["wf2"], kp["wf3"],
                           kp["bf"])
    # TODO(synk): Dropout2d(p=0.1) is identity in eval mode; training-mode channel dropout not applied.
    return out.reshape(N, H, W, Cout)


# ---------------------------------------------------------------------------
# Pure-JAX f32 reference (module semantics), for correctness check
# ---------------------------------------------------------------------------
def aspp_reference(x, params, *, dilations=(6, 12, 18)):
    N, H, W, Cin = x.shape
    Cout = params["w0"].shape[1]

    def pw_ref(z, w, sc, sh):
        y = jnp.einsum("nhwc,cd->nhwd", z, w) * sc + sh
        return jnp.maximum(y, 0.0)

    def dw_ref(z, w, sc, sh, d):
        wf = w.reshape(3, 3, 1, Cin)
        y = jax.lax.conv_general_dilated(
            z, wf, window_strides=(1, 1), padding=[(d, d), (d, d)],
            rhs_dilation=(d, d), dimension_numbers=("NHWC", "HWIO", "NHWC"),
            feature_group_count=Cin)
        return jnp.maximum(y * sc + sh, 0.0)

    pool = jnp.mean(x, axis=(1, 2), keepdims=True)
    pool = pw_ref(pool, params["wp"], *params["bnp"])
    pool = jnp.broadcast_to(pool, (N, H, W, Cout))
    x0 = pw_ref(x, params["w0"], *params["bn0"])
    branches = []
    for i, d in enumerate(dilations, start=1):
        z = dw_ref(x, params[f"dw{i}"], *params[f"bn_dw{i}"], d)
        branches.append(pw_ref(z, params[f"pw{i}"], *params[f"bn_pw{i}"]))
    cat = jnp.concatenate([pool, x0] + branches, axis=-1)
    return pw_ref(cat, params["wf"], *params["bnf"])


if __name__ == "__main__":
    key = jax.random.PRNGKey(0)
    kx, kp = jax.random.split(key)

    N, H, W = 2, 16, 16
    Cin, Cout = 64, 32   # scaled-down stand-ins for 2048 / 256

    x = jax.random.normal(kx, (N, H, W, Cin), jnp.float32)
    params = init_params(kp, Cin, Cout)

    fwd = jax.jit(aspp_forward)
    out = jax.block_until_ready(fwd(x, params))
    ref = jax.block_until_ready(aspp_reference(x, params))

    assert out.shape == (N, H, W, Cout)
    # bf16 MXU operands => compare against the f32 reference with a bf16 tolerance
    err = float(jnp.max(jnp.abs(out - ref)))
    assert err < 5e-2, err
    print("KERNEL_OK")
</pallas_src>

<mosaic_0001>
module attributes {stable_mosaic.version = 11 : i64} {
  func.func @_aspp0_pool_kernel(%arg0: i32, %arg1: i32, %arg2: memref<1x256x64xf32, #tpu.memory_space<vmem>>, %arg3: memref<64x32xbf16, #tpu.memory_space<vmem>>, %arg4: memref<1x32xf32, #tpu.memory_space<vmem>>, %arg5: memref<64x32xbf16, #tpu.memory_space<vmem>>, %arg6: memref<1x32xf32, #tpu.memory_space<vmem>>, %arg7: memref<1x256x32xbf16, #tpu.memory_space<vmem>>, %arg8: memref<1x1x32xf32, #tpu.memory_space<vmem>>, %arg9: memref<1x64xf32, #tpu.memory_space<vmem>>) attributes {dimension_semantics = [#tpu.dimension_semantics<parallel>, #tpu.dimension_semantics<arbitrary>], iteration_bounds = array<i64: 2, 1>, scalar_prefetch = 0 : i64, scratch_operands = 1 : i64, tpu.core_type = #tpu.core_type<tc>, window_params = [{transform_indices = @transform_0, window_bounds = array<i64: 1, 256, 64>}, {pipeline_mode = #tpu.pipeline_mode<synchronous>, transform_indices = @transform_1, window_bounds = array<i64: 64, 32>}, {pipeline_mode = #tpu.pipeline_mode<synchronous>, transform_indices = @transform_2, window_bounds = array<i64: 1, 32>}, {pipeline_mode = #tpu.pipeline_mode<synchronous>, transform_indices = @transform_3, window_bounds = array<i64: 64, 32>}, {pipeline_mode = #tpu.pipeline_mode<synchronous>, transform_indices = @transform_4, window_bounds = array<i64: 1, 32>}, {transform_indices = @transform_5, window_bounds = array<i64: 1, 256, 32>}, {transform_indices = @transform_6, window_bounds = array<i64: 1, 1, 32>}]} {
    %c0_i32 = arith.constant 0 : i32
    %0 = arith.cmpi eq, %arg1, %c0_i32 : i32
    %1 = arith.extui %0 : i1 to i32
    %c0_i32_0 = arith.constant 0 : i32
    %2 = arith.cmpi ne, %1, %c0_i32_0 : i32
    scf.if %2 {
      %cst_20 = arith.constant 0.000000e+00 : f32
      %34 = vector.broadcast %cst_20 : f32 to vector<1x64xf32>
      %c0_21 = arith.constant 0 : index
      %c0_22 = arith.constant 0 : index
      %35 = vector.load %arg9[%c0_21, %c0_22] : memref<1x64xf32, #tpu.memory_space<vmem>>, vector<1x64xf32>
      tpu.vector_store %arg9[%c0_21, %c0_22], %34 {strides = array<i32>} : memref<1x64xf32, #tpu.memory_space<vmem>>, vector<1x64xf32>,
    } else {
    }
    %c0 = arith.constant 0 : index
    %c0_1 = arith.constant 0 : index
    %c0_2 = arith.constant 0 : index
    %3 = vector.load %arg2[%c0, %c0_1, %c0_2] : memref<1x256x64xf32, #tpu.memory_space<vmem>>, vector<1x256x64xf32>
    %4 = vector.shape_cast %3 : vector<1x256x64xf32> to vector<256x64xf32>
    %5 = tpu.iota {dimensions = array<i32: 0>} : vector<256x1xi32>
    %c256_i32 = arith.constant 256 : i32
    %6 = arith.muli %arg1, %c256_i32 : i32
    %c256_i32_3 = arith.constant 256 : i32
    %7 = arith.subi %c256_i32_3, %6 : i32
    %8 = vector.broadcast %7 : i32 to vector<256x1xi32>
    %9 = arith.cmpi slt, %5, %8 : vector<256x1xi32>
    %c0_4 = arith.constant 0 : index
    %c0_5 = arith.constant 0 : index
    %10 = vector.load %arg9[%c0_4, %c0_5] : memref<1x64xf32, #tpu.memory_space<vmem>>, vector<1x64xf32>
    %cst = arith.constant 0.000000e+00 : f32
    %11 = vector.shape_cast %9 : vector<256x1xi1> to vector<256x1xi1>
    %12 = vector.broadcast %11 : vector<256x1xi1> to vector<256x64xi1>
    %13 = vector.broadcast %cst : f32 to vector<256x64xf32>
    %14 = arith.select %12, %4, %13 : vector<256x64xi1>, vector<256x64xf32>
    %cst_6 = arith.constant dense<0.000000e+00> : vector<64xf32>
    %15 = vector.multi_reduction <add>, %14, %cst_6 [0] : vector<256x64xf32> to vector<64xf32>
    %16 = vector.shape_cast %15 : vector<64xf32> to vector<1x64xf32>
    %17 = arith.addf %10, %16 : vector<1x64xf32>
    %c0_7 = arith.constant 0 : index
    %c0_8 = arith.constant 0 : index
    %18 = vector.load %arg9[%c0_7, %c0_8] : memref<1x64xf32, #tpu.memory_space<vmem>>, vector<1x64xf32>
    tpu.vector_store %arg9[%c0_7, %c0_8], %17 {strides = array<i32>} : memref<1x64xf32, #tpu.memory_space<vmem>>, vector<1x64xf32>,
    %19 = arith.truncf %4 : vector<256x64xf32> to vector<256x64xbf16>
    %c0_9 = arith.constant 0 : index
    %c0_10 = arith.constant 0 : index
    %20 = vector.load %arg3[%c0_9, %c0_10] : memref<64x32xbf16, #tpu.memory_space<vmem>>, vector<64x32xbf16>
    %cst_11 = arith.constant dense<0.000000e+00> : vector<256x32xf32>
    %21 = tpu.matmul %19, %20, %cst_11 {dimension_numbers = #tpu.dot_dimension_numbers<[1], [0], [0], [1], [0, 0, 1, 1], [], []>} : vector<256x64xbf16>, vector<64x32xbf16>, vector<256x32xf32> -> vector<256x32xf32>
    %c0_12 = arith.constant 0 : index
    %c0_13 = arith.constant 0 : index
    %22 = vector.load %arg4[%c0_12, %c0_13] : memref<1x32xf32, #tpu.memory_space<vmem>>, vector<1x32xf32>
    %23 = vector.broadcast %22 : vector<1x32xf32> to vector<256x32xf32>
    %24 = arith.addf %21, %23 : vector<256x32xf32>
    %cst_14 = arith.constant 0.000000e+00 : f32
    %25 = vector.broadcast %cst_14 : f32 to vector<256x32xf32>
    %26 = arith.maximumf %24, %25 : vector<256x32xf32>
    %27 = arith.truncf %26 : vector<256x32xf32> to vector<256x32xbf16>
    %c0_15 = arith.constant 0 : index
    %c0_16 = arith.constant 0 : index
    %c0_17 = arith.constant 0 : index
    %28 = vector.load %arg7[%c0_15, %c0_16, %c0_17] : memref<1x256x32xbf16, #tpu.memory_space<vmem>>, vector<1x256x32xbf16>
    %29 = vector.shape_cast %28 : vector<1x256x32xbf16> to vector<256x32xbf16>
    %30 = vector.shape_cast %27 : vector<256x32xbf16> to vector<1x256x32xbf16>
    tpu.vector_store %arg7[%c0_15, %c0_16, %c0_17], %30 {strides = array<i32>} : memref<1x256x32xbf16, #tpu.memory_space<vmem>>, vector<1x256x32xbf16>,
    %c0_i32_18 = arith.constant 0 : i32
    %31 = arith.cmpi eq, %arg1, %c0_i32_18 : i32
    %32 = arith.extui %31 : i1 to i32
    %c0_i32_19 = arith.constant 0 : i32
    %33 = arith.cmpi ne, %32, %c0_i32_19 : i32
    scf.if %33 {
      %c0_20 = arith.constant 0 : index
      %c0_21 = arith.constant 0 : index
      %34 = vector.load %arg9[%c0_20, %c0_21] : memref<1x64xf32, #tpu.memory_space<vmem>>, vector<1x64xf32>
      %cst_22 = arith.constant 3.906250e-03 : f32
      %35 = vector.broadcast %cst_22 : f32 to vector<1x64xf32>
      %36 = arith.mulf %34, %35 : vector<1x64xf32>
      %37 = arith.truncf %36 : vector<1x64xf32> to vector<1x64xbf16>
      %c0_23 = arith.constant 0 : index
      %c0_24 = arith.constant 0 : index
      %38 = vector.load %arg5[%c0_23, %c0_24] : memref<64x32xbf16, #tpu.memory_space<vmem>>, vector<64x32xbf16>
      %cst_25 = arith.constant dense<0.000000e+00> : vector<1x32xf32>
      %39 = tpu.matmul %37, %38, %cst_25 {dimension_numbers = #tpu.dot_dimension_numbers<[1], [0], [0], [1], [0, 0, 1, 1], [], []>} : vector<1x64xbf16>, vector<64x32xbf16>, vector<1x32xf32> -> vector<1x32xf32>
      %c0_26 = arith.constant 0 : index
      %c0_27 = arith.constant 0 : index
      %40 = vector.load %arg6[%c0_26, %c0_27] : memref<1x32xf32, #tpu.memory_space<vmem>>, vector<1x32xf32>
      %41 = arith.addf %39, %40 : vector<1x32xf32>
      %cst_28 = arith.constant 0.000000e+00 : f32
      %42 = vector.broadcast %cst_28 : f32 to vector<1x32xf32>
      %43 = arith.maximumf %41, %42 : vector<1x32xf32>
      %c0_29 = arith.constant 0 : index
      %c0_30 = arith.constant 0 : index
      %c0_31 = arith.constant 0 : index
      %44 = vector.load %arg8[%c0_29, %c0_30, %c0_31] : memref<1x1x32xf32, #tpu.memory_space<vmem>>, vector<1x1x32xf32>
      %45 = vector.shape_cast %44 : vector<1x1x32xf32> to vector<1x32xf32>
      %46 = vector.shape_cast %43 : vector<1x32xf32> to vector<1x1x32xf32>
      tpu.vector_store %arg8[%c0_29, %c0_30, %c0_31], %46 {strides = array<i32>} : memref<1x1x32xf32, #tpu.memory_space<vmem>>, vector<1x1x32xf32>,
    } else {
    }
    return
  }
  func.func @transform_0(%arg0: i32, %arg1: i32) -> (i32, i32, i32) {
    %c0_i32 = arith.constant 0 : i32
    %c0_i32_0 = arith.constant 0 : i32
    return %arg0, %arg1, %c0_i32 : i32, i32, i32
  }
  func.func @transform_1(%arg0: i32, %arg1: i32) -> (i32, i32) {
    %c0_i32 = arith.constant 0 : i32
    %c0_i32_0 = arith.constant 0 : i32
    %c0_i32_1 = arith.constant 0 : i32
    return %c0_i32, %c0_i32_0 : i32, i32
  }
  func.func @transform_2(%arg0: i32, %arg1: i32) -> (i32, i32) {
    %c0_i32 = arith.constant 0 : i32
    %c0_i32_0 = arith.constant 0 : i32
    %c0_i32_1 = arith.constant 0 : i32
    return %c0_i32, %c0_i32_0 : i32, i32
  }
  func.func @transform_3(%arg0: i32, %arg1: i32) -> (i32, i32) {
    %c0_i32 = arith.constant 0 : i32
    %c0_i32_0 = arith.constant 0 : i32
    %c0_i32_1 = arith.constant 0 : i32
    return %c0_i32, %c0_i32_0 : i32, i32
  }
  func.func @transform_4(%arg0: i32, %arg1: i32) -> (i32, i32) {
    %c0_i32 = arith.constant 0 : i32
    %c0_i32_0 = arith.constant 0 : i32
    %c0_i32_1 = arith.constant 0 : i32
    return %c0_i32, %c0_i32_0 : i32, i32
  }
  func.func @transform_5(%arg0: i32, %arg1: i32) -> (i32, i32, i32) {
    %c0_i32 = arith.constant 0 : i32
    %c0_i32_0 = arith.constant 0 : i32
    return %arg0, %arg1, %c0_i32 : i32, i32, i32
  }
  func.func @transform_6(%arg0: i32, %arg1: i32) -> (i32, i32, i32) {
    %c0_i32 = arith.constant 0 : i32
    %c0_i32_0 = arith.constant 0 : i32
    %c0_i32_1 = arith.constant 0 : i32
    return %arg0, %c0_i32, %c0_i32_0 : i32, i32, i32
  }
}

module attributes {stable_mosaic.version = 11 : i64} {
  func.func @_sep_branch_kernel(%arg0: i32, %arg1: i32, %arg2: memref<1x52x52x64xf32, #tpu.memory_space<vmem>>, %arg3: memref<3x3x64xf32, #tpu.memory_space<vmem>>, %arg4: memref<1x64xf32, #tpu.memory_space<vmem>>, %arg5: memref<64x32xbf16, #tpu.memory_space<vmem>>, %arg6: memref<1x32xf32, #tpu.memory_space<vmem>>, %arg7: memref<1x16x16x32xbf16, #tpu.memory_space<vmem>>, %arg8: memref<256x32xf32, #tpu.memory_space<vmem>>) attributes {dimension_semantics = [#tpu.dimension_semantics<parallel>, #tpu.dimension_semantics<arbitrary>], iteration_bounds = array<i64: 2, 1>, scalar_prefetch = 0 : i64, scratch_operands = 1 : i64, tpu.core_type = #tpu.core_type<tc>, window_params = [{transform_indices = @transform_0, window_bounds = array<i64: 1, 52, 52, 64>}, {transform_indices = @transform_1, window_bounds = array<i64: 3, 3, 64>}, {transform_indices = @transform_2, window_bounds = array<i64: 1, 64>}, {transform_indices = @transform_3, window_bounds = array<i64: 64, 32>}, {pipeline_mode = #tpu.pipeline_mode<synchronous>, transform_indices = @transform_4, window_bounds = array<i64: 1, 32>}, {transform_indices = @transform_5, window_bounds = array<i64: 1, 16, 16, 32>}]} {
    %c0_i32 = arith.constant 0 : i32
    %0 = arith.cmpi eq, %arg1, %c0_i32 : i32
    %1 = arith.extui %0 : i1 to i32
    %c0_i32_0 = arith.constant 0 : i32
    %2 = arith.cmpi ne, %1, %c0_i32_0 : i32
    scf.if %2 {
      %cst_70 = arith.constant 0.000000e+00 : f32
      %93 = vector.broadcast %cst_70 : f32 to vector<256x32xf32>
      %c0_71 = arith.constant 0 : index
      %c0_72 = arith.constant 0 : index
      %94 = vector.load %arg8[%c0_71, %c0_72] : memref<256x32xf32, #tpu.memory_space<vmem>>, vector<256x32xf32>
      tpu.vector_store %arg8[%c0_71, %c0_72], %93 {strides = array<i32>} : memref<256x32xf32, #tpu.memory_space<vmem>>, vector<256x32xf32>,
    } else {
    }
    %cst = arith.constant 0.000000e+00 : f32
    %3 = vector.broadcast %cst : f32 to vector<16x16x64xf32>
    %c0 = arith.constant 0 : index
    %c12 = arith.constant 12 : index
    %c12_1 = arith.constant 12 : index
    %c0_2 = arith.constant 0 : index
    %4 = vector.load %arg2[%c0, %c12, %c12_1, %c0_2] : memref<1x52x52x64xf32, #tpu.memory_space<vmem>>, vector<1x16x16x64xf32>
    %5 = vector.shape_cast %4 : vector<1x16x16x64xf32> to vector<16x16x64xf32>
    %c0_3 = arith.constant 0 : index
    %c0_4 = arith.constant 0 : index
    %c0_5 = arith.constant 0 : index
    %6 = vector.load %arg3[%c0_3, %c0_4, %c0_5] : memref<3x3x64xf32, #tpu.memory_space<vmem>>, vector<1x1x64xf32>
    %7 = vector.shape_cast %6 : vector<1x1x64xf32> to vector<64xf32>
    %8 = vector.shape_cast %7 : vector<64xf32> to vector<1x1x64xf32>
    %9 = vector.broadcast %8 : vector<1x1x64xf32> to vector<16x16x64xf32>
    %10 = arith.mulf %5, %9 : vector<16x16x64xf32>
    %11 = arith.addf %3, %10 : vector<16x16x64xf32>
    %c0_6 = arith.constant 0 : index
    %c12_7 = arith.constant 12 : index
    %c18 = arith.constant 18 : index
    %c0_8 = arith.constant 0 : index
    %12 = vector.load %arg2[%c0_6, %c12_7, %c18, %c0_8] : memref<1x52x52x64xf32, #tpu.memory_space<vmem>>, vector<1x16x16x64xf32>
    %13 = vector.shape_cast %12 : vector<1x16x16x64xf32> to vector<16x16x64xf32>
    %c0_9 = arith.constant 0 : index
    %c1 = arith.constant 1 : index
    %c0_10 = arith.constant 0 : index
    %14 = vector.load %arg3[%c0_9, %c1, %c0_10] : memref<3x3x64xf32, #tpu.memory_space<vmem>>, vector<1x1x64xf32>
    %15 = vector.shape_cast %14 : vector<1x1x64xf32> to vector<64xf32>
    %16 = vector.shape_cast %15 : vector<64xf32> to vector<1x1x64xf32>
    %17 = vector.broadcast %16 : vector<1x1x64xf32> to vector<16x16x64xf32>
    %18 = arith.mulf %13, %17 : vector<16x16x64xf32>
    %19 = arith.addf %11, %18 : vector<16x16x64xf32>
    %c0_11 = arith.constant 0 : index
    %c12_12 = arith.constant 12 : index
    %c24 = arith.constant 24 : index
    %c0_13 = arith.constant 0 : index
    %20 = vector.load %arg2[%c0_11, %c12_12, %c24, %c0_13] : memref<1x52x52x64xf32, #tpu.memory_space<vmem>>, vector<1x16x16x64xf32>
    %21 = vector.shape_cast %20 : vector<1x16x16x64xf32> to vector<16x16x64xf32>
    %c0_14 = arith.constant 0 : index
    %c2 = arith.constant 2 : index
    %c0_15 = arith.constant 0 : index
    %22 = vector.load %arg3[%c0_14, %c2, %c0_15] : memref<3x3x64xf32, #tpu.memory_space<vmem>>, vector<1x1x64xf32>
    %23 = vector.shape_cast %22 : vector<1x1x64xf32> to vector<64xf32>
    %24 = vector.shape_cast %23 : vector<64xf32> to vector<1x1x64xf32>
    %25 = vector.broadcast %24 : vector<1x1x64xf32> to vector<16x16x64xf32>
    %26 = arith.mulf %21, %25 : vector<16x16x64xf32>
    %27 = arith.addf %19, %26 : vector<16x16x64xf32>
    %c0_16 = arith.constant 0 : index
    %c18_17 = arith.constant 18 : index
    %c12_18 = arith.constant 12 : index
    %c0_19 = arith.constant 0 : index
    %28 = vector.load %arg2[%c0_16, %c18_17, %c12_18, %c0_19] : memref<1x52x52x64xf32, #tpu.memory_space<vmem>>, vector<1x16x16x64xf32>
    %29 = vector.shape_cast %28 : vector<1x16x16x64xf32> to vector<16x16x64xf32>
    %c1_20 = arith.constant 1 : index
    %c0_21 = arith.constant 0 : index
    %c0_22 = arith.constant 0 : index
    %30 = vector.load %arg3[%c1_20, %c0_21, %c0_22] : memref<3x3x64xf32, #tpu.memory_space<vmem>>, vector<1x1x64xf32>
    %31 = vector.shape_cast %30 : vector<1x1x64xf32> to vector<64xf32>
    %32 = vector.shape_cast %31 : vector<64xf32> to vector<1x1x64xf32>
    %33 = vector.broadcast %32 : vector<1x1x64xf32> to vector<16x16x64xf32>
    %34 = arith.mulf %29, %33 : vector<16x16x64xf32>
    %35 = arith.addf %27, %34 : vector<16x16x64xf32>
    %c0_23 = arith.constant 0 : index
    %c18_24 = arith.constant 18 : index
    %c18_25 = arith.constant 18 : index
    %c0_26 = arith.constant 0 : index
    %36 = vector.load %arg2[%c0_23, %c18_24, %c18_25, %c0_26] : memref<1x52x52x64xf32, #tpu.memory_space<vmem>>, vector<1x16x16x64xf32>
    %37 = vector.shape_cast %36 : vector<1x16x16x64xf32> to vector<16x16x64xf32>
    %c1_27 = arith.constant 1 : index
    %c1_28 = arith.constant 1 : index
    %c0_29 = arith.constant 0 : index
    %38 = vector.load %arg3[%c1_27, %c1_28, %c0_29] : memref<3x3x64xf32, #tpu.memory_space<vmem>>, vector<1x1x64xf32>
    %39 = vector.shape_cast %38 : vector<1x1x64xf32> to vector<64xf32>
    %40 = vector.shape_cast %39 : vector<64xf32> to vector<1x1x64xf32>
    %41 = vector.broadcast %40 : vector<1x1x64xf32> to vector<16x16x64xf32>
    %42 = arith.mulf %37, %41 : vector<16x16x64xf32>
    %43 = arith.addf %35, %42 : vector<16x16x64xf32>
    %c0_30 = arith.constant 0 : index
    %c18_31 = arith.constant 18 : index
    %c24_32 = arith.constant 24 : index
    %c0_33 = arith.constant 0 : index
    %44 = vector.load %arg2[%c0_30, %c18_31, %c24_32, %c0_33] : memref<1x52x52x64xf32, #tpu.memory_space<vmem>>, vector<1x16x16x64xf32>
    %45 = vector.shape_cast %44 : vector<1x16x16x64xf32> to vector<16x16x64xf32>
    %c1_34 = arith.constant 1 : index
    %c2_35 = arith.constant 2 : index
    %c0_36 = arith.constant 0 : index
    %46 = vector.load %arg3[%c1_34, %c2_35, %c0_36] : memref<3x3x64xf32, #tpu.memory_space<vmem>>, vector<1x1x64xf32>
    %47 = vector.shape_cast %46 : vector<1x1x64xf32> to vector<64xf32>
    %48 = vector.shape_cast %47 : vector<64xf32> to vector<1x1x64xf32>
    %49 = vector.broadcast %48 : vector<1x1x64xf32> to vector<16x16x64xf32>
    %50 = arith.mulf %45, %49 : vector<16x16x64xf32>
    %51 = arith.addf %43, %50 : vector<16x16x64xf32>
    %c0_37 = arith.constant 0 : index
    %c24_38 = arith.constant 24 : index
    %c12_39 = arith.constant 12 : index
    %c0_40 = arith.constant 0 : index
    %52 = vector.load %arg2[%c0_37, %c24_38, %c12_39, %c0_40] : memref<1x52x52x64xf32, #tpu.memory_space<vmem>>, vector<1x16x16x64xf32>
    %53 = vector.shape_cast %52 : vector<1x16x16x64xf32> to vector<16x16x64xf32>
    %c2_41 = arith.constant 2 : index
    %c0_42 = arith.constant 0 : index
    %c0_43 = arith.constant 0 : index
    %54 = vector.load %arg3[%c2_41, %c0_42, %c0_43] : memref<3x3x64xf32, #tpu.memory_space<vmem>>, vector<1x1x64xf32>
    %55 = vector.shape_cast %54 : vector<1x1x64xf32> to vector<64xf32>
    %56 = vector.shape_cast %55 : vector<64xf32> to vector<1x1x64xf32>
    %57 = vector.broadcast %56 : vector<1x1x64xf32> to vector<16x16x64xf32>
    %58 = arith.mulf %53, %57 : vector<16x16x64xf32>
    %59 = arith.addf %51, %58 : vector<16x16x64xf32>
    %c0_44 = arith.constant 0 : index
    %c24_45 = arith.constant 24 : index
    %c18_46 = arith.constant 18 : index
    %c0_47 = arith.constant 0 : index
    %60 = vector.load %arg2[%c0_44, %c24_45, %c18_46, %c0_47] : memref<1x52x52x64xf32, #tpu.memory_space<vmem>>, vector<1x16x16x64xf32>
    %61 = vector.shape_cast %60 : vector<1x16x16x64xf32> to vector<16x16x64xf32>
    %c2_48 = arith.constant 2 : index
    %c1_49 = arith.constant 1 : index
    %c0_50 = arith.constant 0 : index
    %62 = vector.load %arg3[%c2_48, %c1_49, %c0_50] : memref<3x3x64xf32, #tpu.memory_space<vmem>>, vector<1x1x64xf32>
    %63 = vector.shape_cast %62 : vector<1x1x64xf32> to vector<64xf32>
    %64 = vector.shape_cast %63 : vector<64xf32> to vector<1x1x64xf32>
    %65 = vector.broadcast %64 : vector<1x1x64xf32> to vector<16x16x64xf32>
    %66 = arith.mulf %61, %65 : vector<16x16x64xf32>
    %67 = arith.addf %59, %66 : vector<16x16x64xf32>
    %c0_51 = arith.constant 0 : index
    %c24_52 = arith.constant 24 : index
    %c24_53 = arith.constant 24 : index
    %c0_54 = arith.constant 0 : index
    %68 = vector.load %arg2[%c0_51, %c24_52, %c24_53, %c0_54] : memref<1x52x52x64xf32, #tpu.memory_space<vmem>>, vector<1x16x16x64xf32>
    %69 = vector.shape_cast %68 : vector<1x16x16x64xf32> to vector<16x16x64xf32>
    %c2_55 = arith.constant 2 : index
    %c2_56 = arith.constant 2 : index
    %c0_57 = arith.constant 0 : index
    %70 = vector.load %arg3[%c2_55, %c2_56, %c0_57] : memref<3x3x64xf32, #tpu.memory_space<vmem>>, vector<1x1x64xf32>
    %71 = vector.shape_cast %70 : vector<1x1x64xf32> to vector<64xf32>
    %72 = vector.shape_cast %71 : vector<64xf32> to vector<1x1x64xf32>
    %73 = vector.broadcast %72 : vector<1x1x64xf32> to vector<16x16x64xf32>
    %74 = arith.mulf %69, %73 : vector<16x16x64xf32>
    %75 = arith.addf %67, %74 : vector<16x16x64xf32>
    %c0_58 = arith.constant 0 : index
    %c0_59 = arith.constant 0 : index
    %76 = vector.load %arg4[%c0_58, %c0_59] : memref<1x64xf32, #tpu.memory_space<vmem>>, vector<1x64xf32>
    %77 = vector.shape_cast %76 : vector<1x64xf32> to vector<64xf32>
    %78 = vector.shape_cast %77 : vector<64xf32> to vector<1x1x64xf32>
    %79 = vector.broadcast %78 : vector<1x1x64xf32> to vector<16x16x64xf32>
    %80 = arith.addf %75, %79 : vector<16x16x64xf32>
    %cst_60 = arith.constant 0.000000e+00 : f32
    %81 = vector.broadcast %cst_60 : f32 to vector<16x16x64xf32>
    %82 = arith.maximumf %80, %81 : vector<16x16x64xf32>
    %83 = vector.shape_cast %82 : vector<16x16x64xf32> to vector<256x64xf32>
    %84 = arith.truncf %83 : vector<256x64xf32> to vector<256x64xbf16>
    %c0_61 = arith.constant 0 : index
    %c0_62 = arith.constant 0 : index
    %85 = vector.load %arg8[%c0_61, %c0_62] : memref<256x32xf32, #tpu.memory_space<vmem>>, vector<256x32xf32>
    %c0_63 = arith.constant 0 : index
    %c0_64 = arith.constant 0 : index
    %86 = vector.load %arg5[%c0_63, %c0_64] : memref<64x32xbf16, #tpu.memory_space<vmem>>, vector<64x32xbf16>
    %cst_65 = arith.constant dense<0.000000e+00> : vector<256x32xf32>
    %87 = tpu.matmul %84, %86, %cst_65 {dimension_numbers = #tpu.dot_dimension_numbers<[1], [0], [0], [1], [0, 0, 1, 1], [], []>} : vector<256x64xbf16>, vector<64x32xbf16>, vector<256x32xf32> -> vector<256x32xf32>
    %88 = arith.addf %85, %87 : vector<256x32xf32>
    %c0_66 = arith.constant 0 : index
    %c0_67 = arith.constant 0 : index
    %89 = vector.load %arg8[%c0_66, %c0_67] : memref<256x32xf32, #tpu.memory_space<vmem>>, vector<256x32xf32>
    tpu.vector_store %arg8[%c0_66, %c0_67], %88 {strides = array<i32>} : memref<256x32xf32, #tpu.memory_space<vmem>>, vector<256x32xf32>,
    %c0_i32_68 = arith.constant 0 : i32
    %90 = arith.cmpi eq, %arg1, %c0_i32_68 : i32
    %91 = arith.extui %90 : i1 to i32
    %c0_i32_69 = arith.constant 0 : i32
    %92 = arith.cmpi ne, %91, %c0_i32_69 : i32
    scf.if %92 {
      %c0_70 = arith.constant 0 : index
      %c0_71 = arith.constant 0 : index
      %93 = vector.load %arg8[%c0_70, %c0_71] : memref<256x32xf32, #tpu.memory_space<vmem>>, vector<256x32xf32>
      %c0_72 = arith.constant 0 : index
      %c0_73 = arith.constant 0 : index
      %94 = vector.load %arg6[%c0_72, %c0_73] : memref<1x32xf32, #tpu.memory_space<vmem>>, vector<1x32xf32>
      %95 = vector.broadcast %94 : vector<1x32xf32> to vector<256x32xf32>
      %96 = arith.addf %93, %95 : vector<256x32xf32>
      %cst_74 = arith.constant 0.000000e+00 : f32
      %97 = vector.broadcast %cst_74 : f32 to vector<256x32xf32>
      %98 = arith.maximumf %96, %97 : vector<256x32xf32>
      %99 = vector.shape_cast %98 : vector<256x32xf32> to vector<16x16x32xf32>
      %100 = arith.truncf %99 : vector<16x16x32xf32> to vector<16x16x32xbf16>
      %c0_75 = arith.constant 0 : index
      %c0_76 = arith.constant 0 : index
      %c0_77 = arith.constant 0 : index
      %c0_78 = arith.constant 0 : index
      %101 = vector.load %arg7[%c0_75, %c0_76, %c0_77, %c0_78] : memref<1x16x16x32xbf16, #tpu.memory_space<vmem>>, vector<1x16x16x32xbf16>
      %102 = vector.shape_cast %101 : vector<1x16x16x32xbf16> to vector<16x16x32xbf16>
      %103 = vector.shape_cast %100 : vector<16x16x32xbf16> to vector<1x16x16x32xbf16>
      tpu.vector_store %arg7[%c0_75, %c0_76, %c0_77, %c0_78], %103 {strides = array<i32>} : memref<1x16x16x32xbf16, #tpu.memory_space<vmem>>, vector<1x16x16x32xbf16>,
    } else {
    }
    return
  }
  func.func @transform_0(%arg0: i32, %arg1: i32) -> (i32, i32, i32, i32) {
    %c0_i32 = arith.constant 0 : i32
    %c0_i32_0 = arith.constant 0 : i32
    %c0_i32_1 = arith.constant 0 : i32
    return %arg0, %c0_i32, %c0_i32_0, %arg1 : i32, i32, i32, i32
  }
  func.func @transform_1(%arg0: i32, %arg1: i32) -> (i32, i32, i32) {
    %c0_i32 = arith.constant 0 : i32
    %c0_i32_0 = arith.constant 0 : i32
    %c0_i32_1 = arith.constant 0 : i32
    return %c0_i32, %c0_i32_0, %arg1 : i32, i32, i32
  }
  func.func @transform_2(%arg0: i32, %arg1: i32) -> (i32, i32) {
    %c0_i32 = arith.constant 0 : i32
    %c0_i32_0 = arith.constant 0 : i32
    return %c0_i32, %arg1 : i32, i32
  }
  func.func @transform_3(%arg0: i32, %arg1: i32) -> (i32, i32) {
    %c0_i32 = arith.constant 0 : i32
    %c0_i32_0 = arith.constant 0 : i32
    return %arg1, %c0_i32 : i32, i32
  }
  func.func @transform_4(%arg0: i32, %arg1: i32) -> (i32, i32) {
    %c0_i32 = arith.constant 0 : i32
    %c0_i32_0 = arith.constant 0 : i32
    %c0_i32_1 = arith.constant 0 : i32
    return %c0_i32, %c0_i32_0 : i32, i32
  }
  func.func @transform_5(%arg0: i32, %arg1: i32) -> (i32, i32, i32, i32) {
    %c0_i32 = arith.constant 0 : i32
    %c0_i32_0 = arith.constant 0 : i32
    %c0_i32_1 = arith.constant 0 : i32
    %c0_i32_2 = arith.constant 0 : i32
    return %arg0, %c0_i32, %c0_i32_0, %c0_i32_1 : i32, i32, i32, i32
  }
}

module attributes {stable_mosaic.version = 11 : i64} {
  func.func @_sep_branch_kernel(%arg0: i32, %arg1: i32, %arg2: memref<1x52x52x64xf32, #tpu.memory_space<vmem>>, %arg3: memref<3x3x64xf32, #tpu.memory_space<vmem>>, %arg4: memref<1x64xf32, #tpu.memory_space<vmem>>, %arg5: memref<64x32xbf16, #tpu.memory_space<vmem>>, %arg6: memref<1x32xf32, #tpu.memory_space<vmem>>, %arg7: memref<1x16x16x32xbf16, #tpu.memory_space<vmem>>, %arg8: memref<256x32xf32, #tpu.memory_space<vmem>>) attributes {dimension_semantics = [#tpu.dimension_semantics<parallel>, #tpu.dimension_semantics<arbitrary>], iteration_bounds = array<i64: 2, 1>, scalar_prefetch = 0 : i64, scratch_operands = 1 : i64, tpu.core_type = #tpu.core_type<tc>, window_params = [{transform_indices = @transform_0, window_bounds = array<i64: 1, 52, 52, 64>}, {transform_indices = @transform_1, window_bounds = array<i64: 3, 3, 64>}, {transform_indices = @transform_2, window_bounds = array<i64: 1, 64>}, {transform_indices = @transform_3, window_bounds = array<i64: 64, 32>}, {pipeline_mode = #tpu.pipeline_mode<synchronous>, transform_indices = @transform_4, window_bounds = array<i64: 1, 32>}, {transform_indices = @transform_5, window_bounds = array<i64: 1, 16, 16, 32>}]} {
    %c0_i32 = arith.constant 0 : i32
    %0 = arith.cmpi eq, %arg1, %c0_i32 : i32
    %1 = arith.extui %0 : i1 to i32
    %c0_i32_0 = arith.constant 0 : i32
    %2 = arith.cmpi ne, %1, %c0_i32_0 : i32
    scf.if %2 {
      %cst_70 = arith.constant 0.000000e+00 : f32
      %93 = vector.broadcast %cst_70 : f32 to vector<256x32xf32>
      %c0_71 = arith.constant 0 : index
      %c0_72 = arith.constant 0 : index
      %94 = vector.load %arg8[%c0_71, %c0_72] : memref<256x32xf32, #tpu.memory_space<vmem>>, vector<256x32xf32>
      tpu.vector_store %arg8[%c0_71, %c0_72], %93 {strides = array<i32>} : memref<256x32xf32, #tpu.memory_space<vmem>>, vector<256x32xf32>,
    } else {
    }
    %cst = arith.constant 0.000000e+00 : f32
    %3 = vector.broadcast %cst : f32 to vector<16x16x64xf32>
    %c0 = arith.constant 0 : index
    %c6 = arith.constant 6 : index
    %c6_1 = arith.constant 6 : index
    %c0_2 = arith.constant 0 : index
    %4 = vector.load %arg2[%c0, %c6, %c6_1, %c0_2] : memref<1x52x52x64xf32, #tpu.memory_space<vmem>>, vector<1x16x16x64xf32>
    %5 = vector.shape_cast %4 : vector<1x16x16x64xf32> to vector<16x16x64xf32>
    %c0_3 = arith.constant 0 : index
    %c0_4 = arith.constant 0 : index
    %c0_5 = arith.constant 0 : index
    %6 = vector.load %arg3[%c0_3, %c0_4, %c0_5] : memref<3x3x64xf32, #tpu.memory_space<vmem>>, vector<1x1x64xf32>
    %7 = vector.shape_cast %6 : vector<1x1x64xf32> to vector<64xf32>
    %8 = vector.shape_cast %7 : vector<64xf32> to vector<1x1x64xf32>
    %9 = vector.broadcast %8 : vector<1x1x64xf32> to vector<16x16x64xf32>
    %10 = arith.mulf %5, %9 : vector<16x16x64xf32>
    %11 = arith.addf %3, %10 : vector<16x16x64xf32>
    %c0_6 = arith.constant 0 : index
    %c6_7 = arith.constant 6 : index
    %c18 = arith.constant 18 : index
    %c0_8 = arith.constant 0 : index
    %12 = vector.load %arg2[%c0_6, %c6_7, %c18, %c0_8] : memref<1x52x52x64xf32, #tpu.memory_space<vmem>>, vector<1x16x16x64xf32>
    %13 = vector.shape_cast %12 : vector<1x16x16x64xf32> to vector<16x16x64xf32>
    %c0_9 = arith.constant 0 : index
    %c1 = arith.constant 1 : index
    %c0_10 = arith.constant 0 : index
    %14 = vector.load %arg3[%c0_9, %c1, %c0_10] : memref<3x3x64xf32, #tpu.memory_space<vmem>>, vector<1x1x64xf32>
    %15 = vector.shape_cast %14 : vector<1x1x64xf32> to vector<64xf32>
    %16 = vector.shape_cast %15 : vector<64xf32> to vector<1x1x64xf32>
    %17 = vector.broadcast %16 : vector<1x1x64xf32> to vector<16x16x64xf32>
    %18 = arith.mulf %13, %17 : vector<16x16x64xf32>
    %19 = arith.addf %11, %18 : vector<16x16x64xf32>
    %c0_11 = arith.constant 0 : index
    %c6_12 = arith.constant 6 : index
    %c30 = arith.constant 30 : index
    %c0_13 = arith.constant 0 : index
    %20 = vector.load %arg2[%c0_11, %c6_12, %c30, %c0_13] : memref<1x52x52x64xf32, #tpu.memory_space<vmem>>, vector<1x16x16x64xf32>
    %21 = vector.shape_cast %20 : vector<1x16x16x64xf32> to vector<16x16x64xf32>
    %c0_14 = arith.constant 0 : index
    %c2 = arith.constant 2 : index
    %c0_15 = arith.constant 0 : index
    %22 = vector.load %arg3[%c0_14, %c2, %c0_15] : memref<3x3x64xf32, #tpu.memory_space<vmem>>, vector<1x1x64xf32>
    %23 = vector.shape_cast %22 : vector<1x1x64xf32> to vector<64xf32>
    %24 = vector.shape_cast %23 : vector<64xf32> to vector<1x1x64xf32>
    %25 = vector.broadcast %24 : vector<1x1x64xf32> to vector<16x16x64xf32>
    %26 = arith.mulf %21, %25 : vector<16x16x64xf32>
    %27 = arith.addf %19, %26 : vector<16x16x64xf32>
    %c0_16 = arith.constant 0 : index
    %c18_17 = arith.constant 18 : index
    %c6_18 = arith.constant 6 : index
    %c0_19 = arith.constant 0 : index
    %28 = vector.load %arg2[%c0_16, %c18_17, %c6_18, %c0_19] : memref<1x52x52x64xf32, #tpu.memory_space<vmem>>, vector<1x16x16x64xf32>
    %29 = vector.shape_cast %28 : vector<1x16x16x64xf32> to vector<16x16x64xf32>
    %c1_20 = arith.constant 1 : index
    %c0_21 = arith.constant 0 : index
    %c0_22 = arith.constant 0 : index
    %30 = vector.load %arg3[%c1_20, %c0_21, %c0_22] : memref<3x3x64xf32, #tpu.memory_space<vmem>>, vector<1x1x64xf32>
    %31 = vector.shape_cast %30 : vector<1x1x64xf32> to vector<64xf32>
    %32 = vector.shape_cast %31 : vector<64xf32> to vector<1x1x64xf32>
    %33 = vector.broadcast %32 : vector<1x1x64xf32> to vector<16x16x64xf32>
    %34 = arith.mulf %29, %33 : vector<16x16x64xf32>
    %35 = arith.addf %27, %34 : vector<16x16x64xf32>
    %c0_23 = arith.constant 0 : index
    %c18_24 = arith.constant 18 : index
    %c18_25 = arith.constant 18 : index
    %c0_26 = arith.constant 0 : index
    %36 = vector.load %arg2[%c0_23, %c18_24, %c18_25, %c0_26] : memref<1x52x52x64xf32, #tpu.memory_space<vmem>>, vector<1x16x16x64xf32>
    %37 = vector.shape_cast %36 : vector<1x16x16x64xf32> to vector<16x16x64xf32>
    %c1_27 = arith.constant 1 : index
    %c1_28 = arith.constant 1 : index
    %c0_29 = arith.constant 0 : index
    %38 = vector.load %arg3[%c1_27, %c1_28, %c0_29] : memref<3x3x64xf32, #tpu.memory_space<vmem>>, vector<1x1x64xf32>
    %39 = vector.shape_cast %38 : vector<1x1x64xf32> to vector<64xf32>
    %40 = vector.shape_cast %39 : vector<64xf32> to vector<1x1x64xf32>
    %41 = vector.broadcast %40 : vector<1x1x64xf32> to vector<16x16x64xf32>
    %42 = arith.mulf %37, %41 : vector<16x16x64xf32>
    %43 = arith.addf %35, %42 : vector<16x16x64xf32>
    %c0_30 = arith.constant 0 : index
    %c18_31 = arith.constant 18 : index
    %c30_32 = arith.constant 30 : index
    %c0_33 = arith.constant 0 : index
    %44 = vector.load %arg2[%c0_30, %c18_31, %c30_32, %c0_33] : memref<1x52x52x64xf32, #tpu.memory_space<vmem>>, vector<1x16x16x64xf32>
    %45 = vector.shape_cast %44 : vector<1x16x16x64xf32> to vector<16x16x64xf32>
    %c1_34 = arith.constant 1 : index
    %c2_35 = arith.constant 2 : index
    %c0_36 = arith.constant 0 : index
    %46 = vector.load %arg3[%c1_34, %c2_35, %c0_36] : memref<3x3x64xf32, #tpu.memory_space<vmem>>, vector<1x1x64xf32>
    %47 = vector.shape_cast %46 : vector<1x1x64xf32> to vector<64xf32>
    %48 = vector.shape_cast %47 : vector<64xf32> to vector<1x1x64xf32>
    %49 = vector.broadcast %48 : vector<1x1x64xf32> to vector<16x16x64xf32>
    %50 = arith.mulf %45, %49 : vector<16x16x64xf32>
    %51 = arith.addf %43, %50 : vector<16x16x64xf32>
    %c0_37 = arith.constant 0 : index
    %c30_38 = arith.constant 30 : index
    %c6_39 = arith.constant 6 : index
    %c0_40 = arith.constant 0 : index
    %52 = vector.load %arg2[%c0_37, %c30_38, %c6_39, %c0_40] : memref<1x52x52x64xf32, #tpu.memory_space<vmem>>, vector<1x16x16x64xf32>
    %53 = vector.shape_cast %52 : vector<1x16x16x64xf32> to vector<16x16x64xf32>
    %c2_41 = arith.constant 2 : index
    %c0_42 = arith.constant 0 : index
    %c0_43 = arith.constant 0 : index
    %54 = vector.load %arg3[%c2_41, %c0_42, %c0_43] : memref<3x3x64xf32, #tpu.memory_space<vmem>>, vector<1x1x64xf32>
    %55 = vector.shape_cast %54 : vector<1x1x64xf32> to vector<64xf32>
    %56 = vector.shape_cast %55 : vector<64xf32> to vector<1x1x64xf32>
    %57 = vector.broadcast %56 : vector<1x1x64xf32> to vector<16x16x64xf32>
    %58 = arith.mulf %53, %57 : vector<16x16x64xf32>
    %59 = arith.addf %51, %58 : vector<16x16x64xf32>
    %c0_44 = arith.constant 0 : index
    %c30_45 = arith.constant 30 : index
    %c18_46 = arith.constant 18 : index
    %c0_47 = arith.constant 0 : index
    %60 = vector.load %arg2[%c0_44, %c30_45, %c18_46, %c0_47] : memref<1x52x52x64xf32, #tpu.memory_space<vmem>>, vector<1x16x16x64xf32>
    %61 = vector.shape_cast %60 : vector<1x16x16x64xf32> to vector<16x16x64xf32>
    %c2_48 = arith.constant 2 : index
    %c1_49 = arith.constant 1 : index
    %c0_50 = arith.constant 0 : index
    %62 = vector.load %arg3[%c2_48, %c1_49, %c0_50] : memref<3x3x64xf32, #tpu.memory_space<vmem>>, vector<1x1x64xf32>
    %63 = vector.shape_cast %62 : vector<1x1x64xf32> to vector<64xf32>
    %64 = vector.shape_cast %63 : vector<64xf32> to vector<1x1x64xf32>
    %65 = vector.broadcast %64 : vector<1x1x64xf32> to vector<16x16x64xf32>
    %66 = arith.mulf %61, %65 : vector<16x16x64xf32>
    %67 = arith.addf %59, %66 : vector<16x16x64xf32>
    %c0_51 = arith.constant 0 : index
    %c30_52 = arith.constant 30 : index
    %c30_53 = arith.constant 30 : index
    %c0_54 = arith.constant 0 : index
    %68 = vector.load %arg2[%c0_51, %c30_52, %c30_53, %c0_54] : memref<1x52x52x64xf32, #tpu.memory_space<vmem>>, vector<1x16x16x64xf32>
    %69 = vector.shape_cast %68 : vector<1x16x16x64xf32> to vector<16x16x64xf32>
    %c2_55 = arith.constant 2 : index
    %c2_56 = arith.constant 2 : index
    %c0_57 = arith.constant 0 : index
    %70 = vector.load %arg3[%c2_55, %c2_56, %c0_57] : memref<3x3x64xf32, #tpu.memory_space<vmem>>, vector<1x1x64xf32>
    %71 = vector.shape_cast %70 : vector<1x1x64xf32> to vector<64xf32>
    %72 = vector.shape_cast %71 : vector<64xf32> to vector<1x1x64xf32>
    %73 = vector.broadcast %72 : vector<1x1x64xf32> to vector<16x16x64xf32>
    %74 = arith.mulf %69, %73 : vector<16x16x64xf32>
    %75 = arith.addf %67, %74 : vector<16x16x64xf32>
    %c0_58 = arith.constant 0 : index
    %c0_59 = arith.constant 0 : index
    %76 = vector.load %arg4[%c0_58, %c0_59] : memref<1x64xf32, #tpu.memory_space<vmem>>, vector<1x64xf32>
    %77 = vector.shape_cast %76 : vector<1x64xf32> to vector<64xf32>
    %78 = vector.shape_cast %77 : vector<64xf32> to vector<1x1x64xf32>
    %79 = vector.broadcast %78 : vector<1x1x64xf32> to vector<16x16x64xf32>
    %80 = arith.addf %75, %79 : vector<16x16x64xf32>
    %cst_60 = arith.constant 0.000000e+00 : f32
    %81 = vector.broadcast %cst_60 : f32 to vector<16x16x64xf32>
    %82 = arith.maximumf %80, %81 : vector<16x16x64xf32>
    %83 = vector.shape_cast %82 : vector<16x16x64xf32> to vector<256x64xf32>
    %84 = arith.truncf %83 : vector<256x64xf32> to vector<256x64xbf16>
    %c0_61 = arith.constant 0 : index
    %c0_62 = arith.constant 0 : index
    %85 = vector.load %arg8[%c0_61, %c0_62] : memref<256x32xf32, #tpu.memory_space<vmem>>, vector<256x32xf32>
    %c0_63 = arith.constant 0 : index
    %c0_64 = arith.constant 0 : index
    %86 = vector.load %arg5[%c0_63, %c0_64] : memref<64x32xbf16, #tpu.memory_space<vmem>>, vector<64x32xbf16>
    %cst_65 = arith.constant dense<0.000000e+00> : vector<256x32xf32>
    %87 = tpu.matmul %84, %86, %cst_65 {dimension_numbers = #tpu.dot_dimension_numbers<[1], [0], [0], [1], [0, 0, 1, 1], [], []>} : vector<256x64xbf16>, vector<64x32xbf16>, vector<256x32xf32> -> vector<256x32xf32>
    %88 = arith.addf %85, %87 : vector<256x32xf32>
    %c0_66 = arith.constant 0 : index
    %c0_67 = arith.constant 0 : index
    %89 = vector.load %arg8[%c0_66, %c0_67] : memref<256x32xf32, #tpu.memory_space<vmem>>, vector<256x32xf32>
    tpu.vector_store %arg8[%c0_66, %c0_67], %88 {strides = array<i32>} : memref<256x32xf32, #tpu.memory_space<vmem>>, vector<256x32xf32>,
    %c0_i32_68 = arith.constant 0 : i32
    %90 = arith.cmpi eq, %arg1, %c0_i32_68 : i32
    %91 = arith.extui %90 : i1 to i32
    %c0_i32_69 = arith.constant 0 : i32
    %92 = arith.cmpi ne, %91, %c0_i32_69 : i32
    scf.if %92 {
      %c0_70 = arith.constant 0 : index
      %c0_71 = arith.constant 0 : index
      %93 = vector.load %arg8[%c0_70, %c0_71] : memref<256x32xf32, #tpu.memory_space<vmem>>, vector<256x32xf32>
      %c0_72 = arith.constant 0 : index
      %c0_73 = arith.constant 0 : index
      %94 = vector.load %arg6[%c0_72, %c0_73] : memref<1x32xf32, #tpu.memory_space<vmem>>, vector<1x32xf32>
      %95 = vector.broadcast %94 : vector<1x32xf32> to vector<256x32xf32>
      %96 = arith.addf %93, %95 : vector<256x32xf32>
      %cst_74 = arith.constant 0.000000e+00 : f32
      %97 = vector.broadcast %cst_74 : f32 to vector<256x32xf32>
      %98 = arith.maximumf %96, %97 : vector<256x32xf32>
      %99 = vector.shape_cast %98 : vector<256x32xf32> to vector<16x16x32xf32>
      %100 = arith.truncf %99 : vector<16x16x32xf32> to vector<16x16x32xbf16>
      %c0_75 = arith.constant 0 : index
      %c0_76 = arith.constant 0 : index
      %c0_77 = arith.constant 0 : index
      %c0_78 = arith.constant 0 : index
      %101 = vector.load %arg7[%c0_75, %c0_76, %c0_77, %c0_78] : memref<1x16x16x32xbf16, #tpu.memory_space<vmem>>, vector<1x16x16x32xbf16>
      %102 = vector.shape_cast %101 : vector<1x16x16x32xbf16> to vector<16x16x32xbf16>
      %103 = vector.shape_cast %100 : vector<16x16x32xbf16> to vector<1x16x16x32xbf16>
      tpu.vector_store %arg7[%c0_75, %c0_76, %c0_77, %c0_78], %103 {strides = array<i32>} : memref<1x16x16x32xbf16, #tpu.memory_space<vmem>>, vector<1x16x16x32xbf16>,
    } else {
    }
    return
  }
  func.func @transform_0(%arg0: i32, %arg1: i32) -> (i32, i32, i32, i32) {
    %c0_i32 = arith.constant 0 : i32
    %c0_i32_0 = arith.constant 0 : i32
    %c0_i32_1 = arith.constant 0 : i32
    return %arg0, %c0_i32, %c0_i32_0, %arg1 : i32, i32, i32, i32
  }
  func.func @transform_1(%arg0: i32, %arg1: i32) -> (i32, i32, i32) {
    %c0_i32 = arith.constant 0 : i32
    %c0_i32_0 = arith.constant 0 : i32
    %c0_i32_1 = arith.constant 0 : i32
    return %c0_i32, %c0_i32_0, %arg1 : i32, i32, i32
  }
  func.func @transform_2(%arg0: i32, %arg1: i32) -> (i32, i32) {
    %c0_i32 = arith.constant 0 : i32
    %c0_i32_0 = arith.constant 0 : i32
    return %c0_i32, %arg1 : i32, i32
  }
  func.func @transform_3(%arg0: i32, %arg1: i32) -> (i32, i32) {
    %c0_i32 = arith.constant 0 : i32
    %c0_i32_0 = arith.constant 0 : i32
    return %arg1, %c0_i32 : i32, i32
  }
  func.func @transform_4(%arg0: i32, %arg1: i32) -> (i32, i32) {
    %c0_i32 = arith.constant 0 : i32
    %c0_i32_0 = arith.constant 0 : i32
    %c0_i32_1 = arith.constant 0 : i32
    return %c0_i32, %c0_i32_0 : i32, i32
  }
  func.func @transform_5(%arg0: i32, %arg1: i32) -> (i32, i32, i32, i32) {
    %c0_i32 = arith.constant 0 : i32
    %c0_i32_0 = arith.constant 0 : i32
    %c0_i32_1 = arith.constant 0 : i32
    %c0_i32_2 = arith.constant 0 : i32
    return %arg0, %c0_i32, %c0_i32_0, %c0_i32_1 : i32, i32, i32, i32
  }
}

module attributes {stable_mosaic.version = 11 : i64} {
  func.func @_sep_branch_kernel(%arg0: i32, %arg1: i32, %arg2: memref<1x52x52x64xf32, #tpu.memory_space<vmem>>, %arg3: memref<3x3x64xf32, #tpu.memory_space<vmem>>, %arg4: memref<1x64xf32, #tpu.memory_space<vmem>>, %arg5: memref<64x32xbf16, #tpu.memory_space<vmem>>, %arg6: memref<1x32xf32, #tpu.memory_space<vmem>>, %arg7: memref<1x16x16x32xbf16, #tpu.memory_space<vmem>>, %arg8: memref<256x32xf32, #tpu.memory_space<vmem>>) attributes {dimension_semantics = [#tpu.dimension_semantics<parallel>, #tpu.dimension_semantics<arbitrary>], iteration_bounds = array<i64: 2, 1>, scalar_prefetch = 0 : i64, scratch_operands = 1 : i64, tpu.core_type = #tpu.core_type<tc>, window_params = [{transform_indices = @transform_0, window_bounds = array<i64: 1, 52, 52, 64>}, {transform_indices = @transform_1, window_bounds = array<i64: 3, 3, 64>}, {transform_indices = @transform_2, window_bounds = array<i64: 1, 64>}, {transform_indices = @transform_3, window_bounds = array<i64: 64, 32>}, {pipeline_mode = #tpu.pipeline_mode<synchronous>, transform_indices = @transform_4, window_bounds = array<i64: 1, 32>}, {transform_indices = @transform_5, window_bounds = array<i64: 1, 16, 16, 32>}]} {
    %c0_i32 = arith.constant 0 : i32
    %0 = arith.cmpi eq, %arg1, %c0_i32 : i32
    %1 = arith.extui %0 : i1 to i32
    %c0_i32_0 = arith.constant 0 : i32
    %2 = arith.cmpi ne, %1, %c0_i32_0 : i32
    scf.if %2 {
      %cst_71 = arith.constant 0.000000e+00 : f32
      %93 = vector.broadcast %cst_71 : f32 to vector<256x32xf32>
      %c0_72 = arith.constant 0 : index
      %c0_73 = arith.constant 0 : index
      %94 = vector.load %arg8[%c0_72, %c0_73] : memref<256x32xf32, #tpu.memory_space<vmem>>, vector<256x32xf32>
      tpu.vector_store %arg8[%c0_72, %c0_73], %93 {strides = array<i32>} : memref<256x32xf32, #tpu.memory_space<vmem>>, vector<256x32xf32>,
    } else {
    }
    %cst = arith.constant 0.000000e+00 : f32
    %3 = vector.broadcast %cst : f32 to vector<16x16x64xf32>
    %c0 = arith.constant 0 : index
    %c0_1 = arith.constant 0 : index
    %c0_2 = arith.constant 0 : index
    %c0_3 = arith.constant 0 : index
    %4 = vector.load %arg2[%c0, %c0_1, %c0_2, %c0_3] : memref<1x52x52x64xf32, #tpu.memory_space<vmem>>, vector<1x16x16x64xf32>
    %5 = vector.shape_cast %4 : vector<1x16x16x64xf32> to vector<16x16x64xf32>
    %c0_4 = arith.constant 0 : index
    %c0_5 = arith.constant 0 : index
    %c0_6 = arith.constant 0 : index
    %6 = vector.load %arg3[%c0_4, %c0_5, %c0_6] : memref<3x3x64xf32, #tpu.memory_space<vmem>>, vector<1x1x64xf32>
    %7 = vector.shape_cast %6 : vector<1x1x64xf32> to vector<64xf32>
    %8 = vector.shape_cast %7 : vector<64xf32> to vector<1x1x64xf32>
    %9 = vector.broadcast %8 : vector<1x1x64xf32> to vector<16x16x64xf32>
    %10 = arith.mulf %5, %9 : vector<16x16x64xf32>
    %11 = arith.addf %3, %10 : vector<16x16x64xf32>
    %c0_7 = arith.constant 0 : index
    %c0_8 = arith.constant 0 : index
    %c18 = arith.constant 18 : index
    %c0_9 = arith.constant 0 : index
    %12 = vector.load %arg2[%c0_7, %c0_8, %c18, %c0_9] : memref<1x52x52x64xf32, #tpu.memory_space<vmem>>, vector<1x16x16x64xf32>
    %13 = vector.shape_cast %12 : vector<1x16x16x64xf32> to vector<16x16x64xf32>
    %c0_10 = arith.constant 0 : index
    %c1 = arith.constant 1 : index
    %c0_11 = arith.constant 0 : index
    %14 = vector.load %arg3[%c0_10, %c1, %c0_11] : memref<3x3x64xf32, #tpu.memory_space<vmem>>, vector<1x1x64xf32>
    %15 = vector.shape_cast %14 : vector<1x1x64xf32> to vector<64xf32>
    %16 = vector.shape_cast %15 : vector<64xf32> to vector<1x1x64xf32>
    %17 = vector.broadcast %16 : vector<1x1x64xf32> to vector<16x16x64xf32>
    %18 = arith.mulf %13, %17 : vector<16x16x64xf32>
    %19 = arith.addf %11, %18 : vector<16x16x64xf32>
    %c0_12 = arith.constant 0 : index
    %c0_13 = arith.constant 0 : index
    %c36 = arith.constant 36 : index
    %c0_14 = arith.constant 0 : index
    %20 = vector.load %arg2[%c0_12, %c0_13, %c36, %c0_14] : memref<1x52x52x64xf32, #tpu.memory_space<vmem>>, vector<1x16x16x64xf32>
    %21 = vector.shape_cast %20 : vector<1x16x16x64xf32> to vector<16x16x64xf32>
    %c0_15 = arith.constant 0 : index
    %c2 = arith.constant 2 : index
    %c0_16 = arith.constant 0 : index
    %22 = vector.load %arg3[%c0_15, %c2, %c0_16] : memref<3x3x64xf32, #tpu.memory_space<vmem>>, vector<1x1x64xf32>
    %23 = vector.shape_cast %22 : vector<1x1x64xf32> to vector<64xf32>
    %24 = vector.shape_cast %23 : vector<64xf32> to vector<1x1x64xf32>
    %25 = vector.broadcast %24 : vector<1x1x64xf32> to vector<16x16x64xf32>
    %26 = arith.mulf %21, %25 : vector<16x16x64xf32>
    %27 = arith.addf %19, %26 : vector<16x16x64xf32>
    %c0_17 = arith.constant 0 : index
    %c18_18 = arith.constant 18 : index
    %c0_19 = arith.constant 0 : index
    %c0_20 = arith.constant 0 : index
    %28 = vector.load %arg2[%c0_17, %c18_18, %c0_19, %c0_20] : memref<1x52x52x64xf32, #tpu.memory_space<vmem>>, vector<1x16x16x64xf32>
    %29 = vector.shape_cast %28 : vector<1x16x16x64xf32> to vector<16x16x64xf32>
    %c1_21 = arith.constant 1 : index
    %c0_22 = arith.constant 0 : index
    %c0_23 = arith.constant 0 : index
    %30 = vector.load %arg3[%c1_21, %c0_22, %c0_23] : memref<3x3x64xf32, #tpu.memory_space<vmem>>, vector<1x1x64xf32>
    %31 = vector.shape_cast %30 : vector<1x1x64xf32> to vector<64xf32>
    %32 = vector.shape_cast %31 : vector<64xf32> to vector<1x1x64xf32>
    %33 = vector.broadcast %32 : vector<1x1x64xf32> to vector<16x16x64xf32>
    %34 = arith.mulf %29, %33 : vector<16x16x64xf32>
    %35 = arith.addf %27, %34 : vector<16x16x64xf32>
    %c0_24 = arith.constant 0 : index
    %c18_25 = arith.constant 18 : index
    %c18_26 = arith.constant 18 : index
    %c0_27 = arith.constant 0 : index
    %36 = vector.load %arg2[%c0_24, %c18_25, %c18_26, %c0_27] : memref<1x52x52x64xf32, #tpu.memory_space<vmem>>, vector<1x16x16x64xf32>
    %37 = vector.shape_cast %36 : vector<1x16x16x64xf32> to vector<16x16x64xf32>
    %c1_28 = arith.constant 1 : index
    %c1_29 = arith.constant 1 : index
    %c0_30 = arith.constant 0 : index
    %38 = vector.load %arg3[%c1_28, %c1_29, %c0_30] : memref<3x3x64xf32, #tpu.memory_space<vmem>>, vector<1x1x64xf32>
    %39 = vector.shape_cast %38 : vector<1x1x64xf32> to vector<64xf32>
    %40 = vector.shape_cast %39 : vector<64xf32> to vector<1x1x64xf32>
    %41 = vector.broadcast %40 : vector<1x1x64xf32> to vector<16x16x64xf32>
    %42 = arith.mulf %37, %41 : vector<16x16x64xf32>
    %43 = arith.addf %35, %42 : vector<16x16x64xf32>
    %c0_31 = arith.constant 0 : index
    %c18_32 = arith.constant 18 : index
    %c36_33 = arith.constant 36 : index
    %c0_34 = arith.constant 0 : index
    %44 = vector.load %arg2[%c0_31, %c18_32, %c36_33, %c0_34] : memref<1x52x52x64xf32, #tpu.memory_space<vmem>>, vector<1x16x16x64xf32>
    %45 = vector.shape_cast %44 : vector<1x16x16x64xf32> to vector<16x16x64xf32>
    %c1_35 = arith.constant 1 : index
    %c2_36 = arith.constant 2 : index
    %c0_37 = arith.constant 0 : index
    %46 = vector.load %arg3[%c1_35, %c2_36, %c0_37] : memref<3x3x64xf32, #tpu.memory_space<vmem>>, vector<1x1x64xf32>
    %47 = vector.shape_cast %46 : vector<1x1x64xf32> to vector<64xf32>
    %48 = vector.shape_cast %47 : vector<64xf32> to vector<1x1x64xf32>
    %49 = vector.broadcast %48 : vector<1x1x64xf32> to vector<16x16x64xf32>
    %50 = arith.mulf %45, %49 : vector<16x16x64xf32>
    %51 = arith.addf %43, %50 : vector<16x16x64xf32>
    %c0_38 = arith.constant 0 : index
    %c36_39 = arith.constant 36 : index
    %c0_40 = arith.constant 0 : index
    %c0_41 = arith.constant 0 : index
    %52 = vector.load %arg2[%c0_38, %c36_39, %c0_40, %c0_41] : memref<1x52x52x64xf32, #tpu.memory_space<vmem>>, vector<1x16x16x64xf32>
    %53 = vector.shape_cast %52 : vector<1x16x16x64xf32> to vector<16x16x64xf32>
    %c2_42 = arith.constant 2 : index
    %c0_43 = arith.constant 0 : index
    %c0_44 = arith.constant 0 : index
    %54 = vector.load %arg3[%c2_42, %c0_43, %c0_44] : memref<3x3x64xf32, #tpu.memory_space<vmem>>, vector<1x1x64xf32>
    %55 = vector.shape_cast %54 : vector<1x1x64xf32> to vector<64xf32>
    %56 = vector.shape_cast %55 : vector<64xf32> to vector<1x1x64xf32>
    %57 = vector.broadcast %56 : vector<1x1x64xf32> to vector<16x16x64xf32>
    %58 = arith.mulf %53, %57 : vector<16x16x64xf32>
    %59 = arith.addf %51, %58 : vector<16x16x64xf32>
    %c0_45 = arith.constant 0 : index
    %c36_46 = arith.constant 36 : index
    %c18_47 = arith.constant 18 : index
    %c0_48 = arith.constant 0 : index
    %60 = vector.load %arg2[%c0_45, %c36_46, %c18_47, %c0_48] : memref<1x52x52x64xf32, #tpu.memory_space<vmem>>, vector<1x16x16x64xf32>
    %61 = vector.shape_cast %60 : vector<1x16x16x64xf32> to vector<16x16x64xf32>
    %c2_49 = arith.constant 2 : index
    %c1_50 = arith.constant 1 : index
    %c0_51 = arith.constant 0 : index
    %62 = vector.load %arg3[%c2_49, %c1_50, %c0_51] : memref<3x3x64xf32, #tpu.memory_space<vmem>>, vector<1x1x64xf32>
    %63 = vector.shape_cast %62 : vector<1x1x64xf32> to vector<64xf32>
    %64 = vector.shape_cast %63 : vector<64xf32> to vector<1x1x64xf32>
    %65 = vector.broadcast %64 : vector<1x1x64xf32> to vector<16x16x64xf32>
    %66 = arith.mulf %61, %65 : vector<16x16x64xf32>
    %67 = arith.addf %59, %66 : vector<16x16x64xf32>
    %c0_52 = arith.constant 0 : index
    %c36_53 = arith.constant 36 : index
    %c36_54 = arith.constant 36 : index
    %c0_55 = arith.constant 0 : index
    %68 = vector.load %arg2[%c0_52, %c36_53, %c36_54, %c0_55] : memref<1x52x52x64xf32, #tpu.memory_space<vmem>>, vector<1x16x16x64xf32>
    %69 = vector.shape_cast %68 : vector<1x16x16x64xf32> to vector<16x16x64xf32>
    %c2_56 = arith.constant 2 : index
    %c2_57 = arith.constant 2 : index
    %c0_58 = arith.constant 0 : index
    %70 = vector.load %arg3[%c2_56, %c2_57, %c0_58] : memref<3x3x64xf32, #tpu.memory_space<vmem>>, vector<1x1x64xf32>
    %71 = vector.shape_cast %70 : vector<1x1x64xf32> to vector<64xf32>
    %72 = vector.shape_cast %71 : vector<64xf32> to vector<1x1x64xf32>
    %73 = vector.broadcast %72 : vector<1x1x64xf32> to vector<16x16x64xf32>
    %74 = arith.mulf %69, %73 : vector<16x16x64xf32>
    %75 = arith.addf %67, %74 : vector<16x16x64xf32>
    %c0_59 = arith.constant 0 : index
    %c0_60 = arith.constant 0 : index
    %76 = vector.load %arg4[%c0_59, %c0_60] : memref<1x64xf32, #tpu.memory_space<vmem>>, vector<1x64xf32>
    %77 = vector.shape_cast %76 : vector<1x64xf32> to vector<64xf32>
    %78 = vector.shape_cast %77 : vector<64xf32> to vector<1x1x64xf32>
    %79 = vector.broadcast %78 : vector<1x1x64xf32> to vector<16x16x64xf32>
    %80 = arith.addf %75, %79 : vector<16x16x64xf32>
    %cst_61 = arith.constant 0.000000e+00 : f32
    %81 = vector.broadcast %cst_61 : f32 to vector<16x16x64xf32>
    %82 = arith.maximumf %80, %81 : vector<16x16x64xf32>
    %83 = vector.shape_cast %82 : vector<16x16x64xf32> to vector<256x64xf32>
    %84 = arith.truncf %83 : vector<256x64xf32> to vector<256x64xbf16>
    %c0_62 = arith.constant 0 : index
    %c0_63 = arith.constant 0 : index
    %85 = vector.load %arg8[%c0_62, %c0_63] : memref<256x32xf32, #tpu.memory_space<vmem>>, vector<256x32xf32>
    %c0_64 = arith.constant 0 : index
    %c0_65 = arith.constant 0 : index
    %86 = vector.load %arg5[%c0_64, %c0_65] : memref<64x32xbf16, #tpu.memory_space<vmem>>, vector<64x32xbf16>
    %cst_66 = arith.constant dense<0.000000e+00> : vector<256x32xf32>
    %87 = tpu.matmul %84, %86, %cst_66 {dimension_numbers = #tpu.dot_dimension_numbers<[1], [0], [0], [1], [0, 0, 1, 1], [], []>} : vector<256x64xbf16>, vector<64x32xbf16>, vector<256x32xf32> -> vector<256x32xf32>
    %88 = arith.addf %85, %87 : vector<256x32xf32>
    %c0_67 = arith.constant 0 : index
    %c0_68 = arith.constant 0 : index
    %89 = vector.load %arg8[%c0_67, %c0_68] : memref<256x32xf32, #tpu.memory_space<vmem>>, vector<256x32xf32>
    tpu.vector_store %arg8[%c0_67, %c0_68], %88 {strides = array<i32>} : memref<256x32xf32, #tpu.memory_space<vmem>>, vector<256x32xf32>,
    %c0_i32_69 = arith.constant 0 : i32
    %90 = arith.cmpi eq, %arg1, %c0_i32_69 : i32
    %91 = arith.extui %90 : i1 to i32
    %c0_i32_70 = arith.constant 0 : i32
    %92 = arith.cmpi ne, %91, %c0_i32_70 : i32
    scf.if %92 {
      %c0_71 = arith.constant 0 : index
      %c0_72 = arith.constant 0 : index
      %93 = vector.load %arg8[%c0_71, %c0_72] : memref<256x32xf32, #tpu.memory_space<vmem>>, vector<256x32xf32>
      %c0_73 = arith.constant 0 : index
      %c0_74 = arith.constant 0 : index
      %94 = vector.load %arg6[%c0_73, %c0_74] : memref<1x32xf32, #tpu.memory_space<vmem>>, vector<1x32xf32>
      %95 = vector.broadcast %94 : vector<1x32xf32> to vector<256x32xf32>
      %96 = arith.addf %93, %95 : vector<256x32xf32>
      %cst_75 = arith.constant 0.000000e+00 : f32
      %97 = vector.broadcast %cst_75 : f32 to vector<256x32xf32>
      %98 = arith.maximumf %96, %97 : vector<256x32xf32>
      %99 = vector.shape_cast %98 : vector<256x32xf32> to vector<16x16x32xf32>
      %100 = arith.truncf %99 : vector<16x16x32xf32> to vector<16x16x32xbf16>
      %c0_76 = arith.constant 0 : index
      %c0_77 = arith.constant 0 : index
      %c0_78 = arith.constant 0 : index
      %c0_79 = arith.constant 0 : index
      %101 = vector.load %arg7[%c0_76, %c0_77, %c0_78, %c0_79] : memref<1x16x16x32xbf16, #tpu.memory_space<vmem>>, vector<1x16x16x32xbf16>
      %102 = vector.shape_cast %101 : vector<1x16x16x32xbf16> to vector<16x16x32xbf16>
      %103 = vector.shape_cast %100 : vector<16x16x32xbf16> to vector<1x16x16x32xbf16>
      tpu.vector_store %arg7[%c0_76, %c0_77, %c0_78, %c0_79], %103 {strides = array<i32>} : memref<1x16x16x32xbf16, #tpu.memory_space<vmem>>, vector<1x16x16x32xbf16>,
    } else {
    }
    return
  }
  func.func @transform_0(%arg0: i32, %arg1: i32) -> (i32, i32, i32, i32) {
    %c0_i32 = arith.constant 0 : i32
    %c0_i32_0 = arith.constant 0 : i32
    %c0_i32_1 = arith.constant 0 : i32
    return %arg0, %c0_i32, %c0_i32_0, %arg1 : i32, i32, i32, i32
  }
  func.func @transform_1(%arg0: i32, %arg1: i32) -> (i32, i32, i32) {
    %c0_i32 = arith.constant 0 : i32
    %c0_i32_0 = arith.constant 0 : i32
    %c0_i32_1 = arith.constant 0 : i32
    return %c0_i32, %c0_i32_0, %arg1 : i32, i32, i32
  }
  func.func @transform_2(%arg0: i32, %arg1: i32) -> (i32, i32) {
    %c0_i32 = arith.constant 0 : i32
    %c0_i32_0 = arith.constant 0 : i32
    return %c0_i32, %arg1 : i32, i32
  }
  func.func @transform_3(%arg0: i32, %arg1: i32) -> (i32, i32) {
    %c0_i32 = arith.constant 0 : i32
    %c0_i32_0 = arith.constant 0 : i32
    return %arg1, %c0_i32 : i32, i32
  }
  func.func @transform_4(%arg0: i32, %arg1: i32) -> (i32, i32) {
    %c0_i32 = arith.constant 0 : i32
    %c0_i32_0 = arith.constant 0 : i32
    %c0_i32_1 = arith.constant 0 : i32
    return %c0_i32, %c0_i32_0 : i32, i32
  }
  func.func @transform_5(%arg0: i32, %arg1: i32) -> (i32, i32, i32, i32) {
    %c0_i32 = arith.constant 0 : i32
    %c0_i32_0 = arith.constant 0 : i32
    %c0_i32_1 = arith.constant 0 : i32
    %c0_i32_2 = arith.constant 0 : i32
    return %arg0, %c0_i32, %c0_i32_0, %c0_i32_1 : i32, i32, i32, i32
  }
}

module attributes {stable_mosaic.version = 11 : i64} {
  func.func @_final_kernel(%arg0: i32, %arg1: i32, %arg2: memref<1x1x32xf32, #tpu.memory_space<vmem>>, %arg3: memref<1x256x32xbf16, #tpu.memory_space<vmem>>, %arg4: memref<1x256x32xbf16, #tpu.memory_space<vmem>>, %arg5: memref<1x256x32xbf16, #tpu.memory_space<vmem>>, %arg6: memref<1x256x32xbf16, #tpu.memory_space<vmem>>, %arg7: memref<32x32xbf16, #tpu.memory_space<vmem>>, %arg8: memref<32x32xbf16, #tpu.memory_space<vmem>>, %arg9: memref<32x32xbf16, #tpu.memory_space<vmem>>, %arg10: memref<32x32xbf16, #tpu.memory_space<vmem>>, %arg11: memref<32x32xbf16, #tpu.memory_space<vmem>>, %arg12: memref<1x32xf32, #tpu.memory_space<vmem>>, %arg13: memref<1x256x32xf32, #tpu.memory_space<vmem>>) attributes {dimension_semantics = [#tpu.dimension_semantics<parallel>, #tpu.dimension_semantics<parallel>], iteration_bounds = array<i64: 2, 1>, scalar_prefetch = 0 : i64, scratch_operands = 0 : i64, tpu.core_type = #tpu.core_type<tc>, window_params = [{transform_indices = @transform_0, window_bounds = array<i64: 1, 1, 32>}, {transform_indices = @transform_1, window_bounds = array<i64: 1, 256, 32>}, {transform_indices = @transform_2, window_bounds = array<i64: 1, 256, 32>}, {transform_indices = @transform_3, window_bounds = array<i64: 1, 256, 32>}, {transform_indices = @transform_4, window_bounds = array<i64: 1, 256, 32>}, {pipeline_mode = #tpu.pipeline_mode<synchronous>, transform_indices = @transform_5, window_bounds = array<i64: 32, 32>}, {pipeline_mode = #tpu.pipeline_mode<synchronous>, transform_indices = @transform_6, window_bounds = array<i64: 32, 32>}, {pipeline_mode = #tpu.pipeline_mode<synchronous>, transform_indices = @transform_7, window_bounds = array<i64: 32, 32>}, {pipeline_mode = #tpu.pipeline_mode<synchronous>, transform_indices = @transform_8, window_bounds = array<i64: 32, 32>}, {pipeline_mode = #tpu.pipeline_mode<synchronous>, transform_indices = @transform_9, window_bounds = array<i64: 32, 32>}, {pipeline_mode = #tpu.pipeline_mode<synchronous>, transform_indices = @transform_10, window_bounds = array<i64: 1, 32>}, {transform_indices = @transform_11, window_bounds = array<i64: 1, 256, 32>}]} {
    %c0 = arith.constant 0 : index
    %c0_0 = arith.constant 0 : index
    %c0_1 = arith.constant 0 : index
    %0 = vector.load %arg2[%c0, %c0_0, %c0_1] : memref<1x1x32xf32, #tpu.memory_space<vmem>>, vector<1x1x32xf32>
    %1 = vector.shape_cast %0 : vector<1x1x32xf32> to vector<1x32xf32>
    %2 = arith.truncf %1 : vector<1x32xf32> to vector<1x32xbf16>
    %c0_2 = arith.constant 0 : index
    %c0_3 = arith.constant 0 : index
    %3 = vector.load %arg7[%c0_2, %c0_3] : memref<32x32xbf16, #tpu.memory_space<vmem>>, vector<32x32xbf16>
    %cst = arith.constant dense<0.000000e+00> : vector<1x32xf32>
    %4 = tpu.matmul %2, %3, %cst {dimension_numbers = #tpu.dot_dimension_numbers<[1], [0], [0], [1], [0, 0, 1, 1], [], []>} : vector<1x32xbf16>, vector<32x32xbf16>, vector<1x32xf32> -> vector<1x32xf32>
    %c0_4 = arith.constant 0 : index
    %c0_5 = arith.constant 0 : index
    %c0_6 = arith.constant 0 : index
    %5 = vector.load %arg3[%c0_4, %c0_5, %c0_6] : memref<1x256x32xbf16, #tpu.memory_space<vmem>>, vector<1x256x32xbf16>
    %6 = vector.shape_cast %5 : vector<1x256x32xbf16> to vector<256x32xbf16>
    %c0_7 = arith.constant 0 : index
    %c0_8 = arith.constant 0 : index
    %7 = vector.load %arg8[%c0_7, %c0_8] : memref<32x32xbf16, #tpu.memory_space<vmem>>, vector<32x32xbf16>
    %cst_9 = arith.constant dense<0.000000e+00> : vector<256x32xf32>
    %8 = tpu.matmul %6, %7, %cst_9 {dimension_numbers = #tpu.dot_dimension_numbers<[1], [0], [0], [1], [0, 0, 1, 1], [], []>} : vector<256x32xbf16>, vector<32x32xbf16>, vector<256x32xf32> -> vector<256x32xf32>
    %c0_10 = arith.constant 0 : index
    %c0_11 = arith.constant 0 : index
    %c0_12 = arith.constant 0 : index
    %9 = vector.load %arg4[%c0_10, %c0_11, %c0_12] : memref<1x256x32xbf16, #tpu.memory_space<vmem>>, vector<1x256x32xbf16>
    %10 = vector.shape_cast %9 : vector<1x256x32xbf16> to vector<256x32xbf16>
    %c0_13 = arith.constant 0 : index
    %c0_14 = arith.constant 0 : index
    %11 = vector.load %arg9[%c0_13, %c0_14] : memref<32x32xbf16, #tpu.memory_space<vmem>>, vector<32x32xbf16>
    %cst_15 = arith.constant dense<0.000000e+00> : vector<256x32xf32>
    %12 = tpu.matmul %10, %11, %cst_15 {dimension_numbers = #tpu.dot_dimension_numbers<[1], [0], [0], [1], [0, 0, 1, 1], [], []>} : vector<256x32xbf16>, vector<32x32xbf16>, vector<256x32xf32> -> vector<256x32xf32>
    %13 = arith.addf %8, %12 : vector<256x32xf32>
    %c0_16 = arith.constant 0 : index
    %c0_17 = arith.constant 0 : index
    %c0_18 = arith.constant 0 : index
    %14 = vector.load %arg5[%c0_16, %c0_17, %c0_18] : memref<1x256x32xbf16, #tpu.memory_space<vmem>>, vector<1x256x32xbf16>
    %15 = vector.shape_cast %14 : vector<1x256x32xbf16> to vector<256x32xbf16>
    %c0_19 = arith.constant 0 : index
    %c0_20 = arith.constant 0 : index
    %16 = vector.load %arg10[%c0_19, %c0_20] : memref<32x32xbf16, #tpu.memory_space<vmem>>, vector<32x32xbf16>
    %cst_21 = arith.constant dense<0.000000e+00> : vector<256x32xf32>
    %17 = tpu.matmul %15, %16, %cst_21 {dimension_numbers = #tpu.dot_dimension_numbers<[1], [0], [0], [1], [0, 0, 1, 1], [], []>} : vector<256x32xbf16>, vector<32x32xbf16>, vector<256x32xf32> -> vector<256x32xf32>
    %18 = arith.addf %13, %17 : vector<256x32xf32>
    %c0_22 = arith.constant 0 : index
    %c0_23 = arith.constant 0 : index
    %c0_24 = arith.constant 0 : index
    %19 = vector.load %arg6[%c0_22, %c0_23, %c0_24] : memref<1x256x32xbf16, #tpu.memory_space<vmem>>, vector<1x256x32xbf16>
    %20 = vector.shape_cast %19 : vector<1x256x32xbf16> to vector<256x32xbf16>
    %c0_25 = arith.constant 0 : index
    %c0_26 = arith.constant 0 : index
    %21 = vector.load %arg11[%c0_25, %c0_26] : memref<32x32xbf16, #tpu.memory_space<vmem>>, vector<32x32xbf16>
    %cst_27 = arith.constant dense<0.000000e+00> : vector<256x32xf32>
    %22 = tpu.matmul %20, %21, %cst_27 {dimension_numbers = #tpu.dot_dimension_numbers<[1], [0], [0], [1], [0, 0, 1, 1], [], []>} : vector<256x32xbf16>, vector<32x32xbf16>, vector<256x32xf32> -> vector<256x32xf32>
    %23 = arith.addf %18, %22 : vector<256x32xf32>
    %24 = vector.broadcast %4 : vector<1x32xf32> to vector<256x32xf32>
    %25 = arith.addf %23, %24 : vector<256x32xf32>
    %c0_28 = arith.constant 0 : index
    %c0_29 = arith.constant 0 : index
    %26 = vector.load %arg12[%c0_28, %c0_29] : memref<1x32xf32, #tpu.memory_space<vmem>>, vector<1x32xf32>
    %27 = vector.broadcast %26 : vector<1x32xf32> to vector<256x32xf32>
    %28 = arith.addf %25, %27 : vector<256x32xf32>
    %cst_30 = arith.constant 0.000000e+00 : f32
    %29 = vector.broadcast %cst_30 : f32 to vector<256x32xf32>
    %30 = arith.maximumf %28, %29 : vector<256x32xf32>
    %c0_31 = arith.constant 0 : index
    %c0_32 = arith.constant 0 : index
    %c0_33 = arith.constant 0 : index
    %31 = vector.load %arg13[%c0_31, %c0_32, %c0_33] : memref<1x256x32xf32, #tpu.memory_space<vmem>>, vector<1x256x32xf32>
    %32 = vector.shape_cast %31 : vector<1x256x32xf32> to vector<256x32xf32>
    %33 = vector.shape_cast %30 : vector<256x32xf32> to vector<1x256x32xf32>
    tpu.vector_store %arg13[%c0_31, %c0_32, %c0_33], %33 {strides = array<i32>} : memref<1x256x32xf32, #tpu.memory_space<vmem>>, vector<1x256x32xf32>,
    return
  }
  func.func @transform_0(%arg0: i32, %arg1: i32) -> (i32, i32, i32) {
    %c0_i32 = arith.constant 0 : i32
    %c0_i32_0 = arith.constant 0 : i32
    %c0_i32_1 = arith.constant 0 : i32
    return %arg0, %c0_i32, %c0_i32_0 : i32, i32, i32
  }
  func.func @transform_1(%arg0: i32, %arg1: i32) -> (i32, i32, i32) {
    %c0_i32 = arith.constant 0 : i32
    %c0_i32_0 = arith.constant 0 : i32
    return %arg0, %arg1, %c0_i32 : i32, i32, i32
  }
  func.func @transform_2(%arg0: i32, %arg1: i32) -> (i32, i32, i32) {
    %c0_i32 = arith.constant 0 : i32
    %c0_i32_0 = arith.constant 0 : i32
    return %arg0, %arg1, %c0_i32 : i32, i32, i32
  }
  func.func @transform_3(%arg0: i32, %arg1: i32) -> (i32, i32, i32) {
    %c0_i32 = arith.constant 0 : i32
    %c0_i32_0 = arith.constant 0 : i32
    return %arg0, %arg1, %c0_i32 : i32, i32, i32
  }
  func.func @transform_4(%arg0: i32, %arg1: i32) -> (i32, i32, i32) {
    %c0_i32 = arith.constant 0 : i32
    %c0_i32_0 = arith.constant 0 : i32
    return %arg0, %arg1, %c0_i32 : i32, i32, i32
  }
  func.func @transform_5(%arg0: i32, %arg1: i32) -> (i32, i32) {
    %c0_i32 = arith.constant 0 : i32
    %c0_i32_0 = arith.constant 0 : i32
    %c0_i32_1 = arith.constant 0 : i32
    return %c0_i32, %c0_i32_0 : i32, i32
  }
  func.func @transform_6(%arg0: i32, %arg1: i32) -> (i32, i32) {
    %c0_i32 = arith.constant 0 : i32
    %c0_i32_0 = arith.constant 0 : i32
    %c0_i32_1 = arith.constant 0 : i32
    return %c0_i32, %c0_i32_0 : i32, i32
  }
  func.func @transform_7(%arg0: i32, %arg1: i32) -> (i32, i32) {
    %c0_i32 = arith.constant 0 : i32
    %c0_i32_0 = arith.constant 0 : i32
    %c0_i32_1 = arith.constant 0 : i32
    return %c0_i32, %c0_i32_0 : i32, i32
  }
  func.func @transform_8(%arg0: i32, %arg1: i32) -> (i32, i32) {
    %c0_i32 = arith.constant 0 : i32
    %c0_i32_0 = arith.constant 0 : i32
    %c0_i32_1 = arith.constant 0 : i32
    return %c0_i32, %c0_i32_0 : i32, i32
  }
  func.func @transform_9(%arg0: i32, %arg1: i32) -> (i32, i32) {
    %c0_i32 = arith.constant 0 : i32
    %c0_i32_0 = arith.constant 0 : i32
    %c0_i32_1 = arith.constant 0 : i32
    return %c0_i32, %c0_i32_0 : i32, i32
  }
  func.func @transform_10(%arg0: i32, %arg1: i32) -> (i32, i32) {
    %c0_i32 = arith.constant 0 : i32
    %c0_i32_0 = arith.constant 0 : i32
    %c0_i32_1 = arith.constant 0 : i32
    return %c0_i32, %c0_i32_0 : i32, i32
  }
  func.func @transform_11(%arg0: i32, %arg1: i32) -> (i32, i32, i32) {
    %c0_i32 = arith.constant 0 : i32
    %c0_i32_0 = arith.constant 0 : i32
    return %arg0, %arg1, %c0_i32 : i32, i32, i32
  }
}

</mosaic_0001>

<bundles_post_ra>
// kernel: aspp_forward.5
= control target key start
LH: loop header
LB: loop body
LE: loop exit
PB: predicated region body
PF: predicated region fallthrough
CT: control target
= control target key end

     0   :  { %12 = vsyncpa [#allocation4], 0  ;;  %s2206_s0 = inlined_call_operand.hbm [shape: f32[2,256,64], index: 0, kind: input, shape index: {}]   ;;  %s2207_s1 = inlined_call_operand.vmem [shape: bf16[64,32], index: 1, kind: input, shape index: {}]   ;;  %s2208_s2 = inlined_call_operand.hbm [shape: f32[1,32], index: 2, kind: input, shape index: {}]   ;;  %s2209_s3 = inlined_call_operand.vmem [shape: bf16[64,32], index: 3, kind: input, shape index: {}]   ;;  %s2210_s4 = inlined_call_operand.hbm [shape: f32[1,32], index: 4, kind: input, shape index: {}]   ;;  %s2211_s5 = inlined_call_operand.vmem [shape: bf16[2,256,32], index: 5, kind: output, shape index: {0}]   ;;  %s2212_s6 = inlined_call_operand.vmem [shape: f32[2,1,32], index: 6, kind: output, shape index: {1}]  }
   0x1   :  { %14 = vsyncpa [#allocation4 + $0x1], 0 }
   0x2   :  { %15 = vsyncpa [#allocation6], 0  ;;  %s1758_s21 = smov 0   ;;  %s1760_s22 = smov 0  }
   0x3   :  { %s1762_s23 = smov 0   ;;  %s1764_s24 = smov 0  }
   0x4   :  { %s1766_s25 = smov 0   ;;  %s1768_s26 = smov 0  }
   0x5 LB: > { %s1292_s27 = sadd.s32 4294967295, %s1714_s26   ;;  %s42_s28 = sadd.s32 1, %s1702_s23  ;;  %s1714_s26 = sphi %s1768_s26, %s21_s26   ;;  %s1710_s25 = sphi %s1766_s25, %s2231_s25   ;;  %s1706_s24 = sphi %s1764_s24, %s2230_s24   ;;  %s1702_s23 = sphi %s1762_s23, %s2229_s23   ;;  %s1698_s22 = sphi %s1760_s22, %s2228_s22   ;;  %s1694_s21 = sphi %s1758_s21, %s2227_s21  }
   0x6   : > { %p49_p0 = scmp.ne.s32.totalorder %s1702_s23, %s1698_s22  ;;  %p50_p1 = scmp.eq.s32.totalorder %s1714_s26, 0 }
   0x7   : > { %p55_p2 = scmp.ne.s32.totalorder %s1698_s22, %s1694_s21  ;;  %p1792_p3 = scmp.eq.s32.totalorder %s1292_s27, 0 }
   0x8   : > { %p51_p4 = por %p50_p1, %p49_p0  ;;  %p1294_p5 = scmp.ge.s32.totalorder %s1714_s26, 1 }
   0x9   : > { %s2218_s29 = scalar_select %p1792_p3, 1, 0 }
   0xa   : > { %p1799_p6 = por %p1792_p3, %p55_p2  ;;  %p204_p7 = scmp.lt.s32.totalorder %s1714_s26, 3 }
   0xb   : > { %s1716_s8 = smov [#allocation5]   ;;  %p1509_p10 = scmp.lt.s32.totalorder %s1714_s26, 2 }
   0xc   : > { %s2219_s30 = scalar_select %p1799_p6, 1, 0 }
   0xd   : > { %p1804_p8 = pnand %p1294_p5, %p204_p7  ;;  %s220_s9 = sshll.u32 %s1716_s8, 4  ;;  %s221_s9 = int_to_ptr.vmem [resolvable:$true] %s220_s9 }
   0xe   : > { %p1817_p12 = pnand %p1509_p10, %p51_p4  ;;  %s1717_s12 = smov [#allocation7]  }
   0xf   : > { %s2220_s7 = scalar_select %p1804_p8, 1, 0 }
  0x10   : > { %p1496_p9 = pneg %p1804_p8  ;;  %s234_s13 = sshll.u32 %s1717_s12, 4  ;;  %s235_s13 = int_to_ptr.vmem [resolvable:$true] %s234_s13 }
  0x11   : > { %s2222_s11 = scalar_select %p1817_p12, 1, 0 }
  0x12   : > { %p1813_p11 = pnand %p1496_p9, %p1792_p3  ;;  %s1574_s16 = scalar_lea.hbm %s2208_s2, 16 }
  0x13   : > { %p1575_p13 = scmp.ne.s32.totalorder %s2208_s2, %s1574_s16  ;;  %p1581_p4 = scmp.lt.u32.totalorder %s1574_s16, %s2208_s2 }
  0x14   : > { %p1576_p0 = pneg %p1813_p11 }
  0x16   : > { %p1577_p1 = pnand %p1576_p0, %p1575_p13 }
  0x18   : > { %p1578_p2 = pneg %p1577_p1 }
  0x1a   : > { %p1583_p5 = pnand %p1581_p4, %p1578_p2 }
  0x1c   : > { %1586 = shalt.err (!%p1583_p5)
}
  0x1d   : > { %s1587_s21 = scalar_lea.vmem %s221_s9, 16  ;;  %s1594_s27 = scalar_lea.vmem %s221_s9, 32 }
  0x1e   : > { %p1588_p7 = scmp.ne.s32.totalorder %s221_s9, %s1587_s21  ;;  %p1595_p3 = scmp.lt.s32.totalorder %s221_s9, %s221_s9 }
  0x1f   : > { %p1596_p6 = scmp.lt.s32.totalorder %s1594_s27, %s1587_s21 }
  0x20   : > { %p1590_p9 = pnand %p1588_p7, %p1576_p0 }
  0x21   : > { %p1597_p8 = por %p1596_p6, %p1595_p3 }
  0x22   : > { %p1591_p10 = pneg %p1590_p9 }
  0x24   : > { %p1598_p12 = pnand %p1597_p8, %p1591_p10 }
  0x26   : > { %1601 = shalt.err (!%p1598_p12)
}
  0x27   : > { %1499 = dma.hbm_to_vmem [thread:$0]  (!%p1813_p11), %s2208_s2, 16, %s221_s9, [#allocation6]  }
  0x28   : > { %s33_s14 = sadd.s32 1, %s1710_s25  ;;  %s1602_s17 = scalar_lea.hbm %s2210_s4, 16 }
  0x29   : > { %p1603_p3 = scmp.ne.s32.totalorder %s2210_s4, %s1602_s17  ;;  %p1609_p12 = scmp.lt.u32.totalorder %s1602_s17, %s2210_s4 }
  0x2b   : > { %p1605_p6 = pnand %p1603_p3, %p1576_p0 }
  0x2d   : > { %p1606_p8 = pneg %p1605_p6 }
  0x2f   : > { %p1611_p13 = pnand %p1609_p12, %p1606_p8 }
  0x31   : > { %1614 = shalt.err (!%p1611_p13)
}
  0x32   : > { %s1615_s9 = scalar_lea.vmem %s235_s13, 16  ;;  %s1622_s27 = scalar_lea.vmem %s235_s13, 32 }
  0x33   : > { %p1616_p1 = scmp.ne.s32.totalorder %s235_s13, %s1615_s9  ;;  %p1623_p5 = scmp.lt.s32.totalorder %s235_s13, %s235_s13 }
  0x34   : > { %p1624_p7 = scmp.lt.s32.totalorder %s1622_s27, %s1615_s9 }
  0x35   : > { %p1618_p2 = pnand %p1616_p1, %p1576_p0 }
  0x36   : > { %p1625_p9 = por %p1624_p7, %p1623_p5 }
  0x37   : > { %p1619_p4 = pneg %p1618_p2 }
  0x39   : > { %p1626_p10 = pnand %p1625_p9, %p1619_p4 }
  0x3b   : > { %1629 = shalt.err (!%p1626_p10)
}
  0x3c   : > { %1502 = dma.hbm_to_vmem [thread:$0]  (!%p1813_p11), %s2210_s4, 16, %s235_s13, [#allocation6]  }
  0x3d   : > { %p35_p0 = scmp.ge.s32.totalorder %s33_s14, 2  ;;  %s245_s15 = sand.u32 1, %s1702_s23  }
  0x3e   : > { %s1298_s16 = sshll.u32 %s245_s15, 8  ;;  %s1367_s17 = sshll.u32 %s1710_s25, 12 }
  0x3f   : > { %s2233_s14 = smov (%p35_p0, %s33_s14), 0  ;;  %s1873_s20 = scalar_lea.hbm %s2206_s0, %s1367_s17 }
  0x40   : > { %s37_s18 = ssub.s32 %s1710_s25, %s2233_s14  ;;  %s249_s13 = scalar_lea.vmem [#allocation3], %s1298_s16 }
  0x41   : > { %p40_p11 = scmp.eq.s32.totalorder %s37_s18, 0  ;;  %s258_s21 = sshll.u32 %s249_s13, 4  ;;  %s1875_s21 = int_to_ptr.vmem [resolvable:$true] %s258_s21 }
  0x42   : > { %s1882_s27 = scalar_lea.sflag [#allocation4], %s245_s15  ;;  %s1630_s8 = scalar_lea.hbm %s1873_s20, 4096 }
  0x43   : > { %s1880_s9 = scalar_select %p40_p11, %s1702_s23, %s42_s28  }
  0x44   : > { %p1631_p3 = scmp.ne.s32.totalorder %s1873_s20, %s1630_s8  ;;  %p2223_p6 = scmp.ne.s32.totalorder %s2222_s11, 0 }
  0x45   : > { %s1635_s16 = scalar_lea.hbm %s2206_s0, 8192  ;;  %p1636_p1 = scmp.lt.u32.totalorder %s1873_s20, %s2206_s0 }
  0x46   : > { %p1632_p8 = pneg %p2223_p6  ;;  %p1637_p2 = scmp.lt.u32.totalorder %s1635_s16, %s1630_s8 }
  0x47   : > { %p1639_p5 = scmp.lt.u32.totalorder %s1630_s8, %s1873_s20 }
  0x48   : > { %p1633_p12 = pnand %p1632_p8, %p1631_p3  ;;  %p1638_p4 = por %p1637_p2, %p1636_p1 }
  0x4a   : > { %p1634_p13 = pneg %p1633_p12  ;;  %p1640_p7 = por %p1639_p5, %p1638_p4 }
  0x4c   : > { %p1641_p9 = pnand %p1640_p7, %p1634_p13 }
  0x4e   : > { %1644 = shalt.err (!%p1641_p9)
}
  0x4f   : > { %s1645_s28 = scalar_lea.vmem %s1875_s21, 4096  ;;  %s1718_s15 = smov [#allocation3]  }
  0x50   : > { %p1646_p10 = scmp.ne.s32.totalorder %s1875_s21, %s1645_s28  ;;  %s1650_s19 = sshll.u32 %s1718_s15, 4  ;;  %s1651_s19 = int_to_ptr.vmem [resolvable:$false] %s1650_s19 }
  0x51   : > { %s1652_s13 = scalar_lea.vmem %s1651_s19, 8192  ;;  %p1653_p3 = scmp.lt.s32.totalorder %s1875_s21, %s1651_s19 }
  0x52   : > { %p1648_p0 = pnand %p1646_p10, %p1632_p8  ;;  %p1654_p12 = scmp.lt.s32.totalorder %s1652_s13, %s1645_s28 }
  0x54   : > { %p1649_p11 = pneg %p1648_p0  ;;  %p1655_p1 = por %p1654_p12, %p1653_p3 }
  0x56   : > { %p1656_p2 = pnand %p1655_p1, %p1649_p11 }
  0x58   : > { %1659 = shalt.err (!%p1656_p2)
}
  0x59   : > { %s1719_s8 = smov 128   ;;  %s1720_s12 = smov 8  }
  0x5a   : > { %1506 = dma.hbm_to_vmem [thread:$0]  (!%p2223_p6), %s1873_s20, 4096, %s1875_s21, %s1882_s27, %s1719_s8, %s1719_s8, %s1720_s12  }
  0x5b   : > { %p2224_p8 = scmp.ne.s32.totalorder %s2220_s7, 0 }
  0x5c   : > { %s272_s17 = sand.u32 (!%p2224_p8), 1, %s1698_s22   ;;  %p2225_p13 = scmp.ne.s32.totalorder (!%p2224_p8), %s2219_s30, 0 }
  0x5d   : > { %270 = sbr.rel (%p2224_p8) target bundleno = 413 (0x19d), region = 40  ;;  %s1302_s16 = sshll.u32 (!%p2224_p8), %s272_s17, 8 }
  0x5e   : > { %s273_s18 = scalar_lea.sflag (!%p2224_p8), [#allocation4], %s272_s17  ;;  %s1913_s10 = scalar_lea.vmem (!%p2224_p8), [#allocation3], %s1302_s16 }
  0x64   : > { %1685 = dma.done.wait (%p2225_p13), %s273_s18, 4096  }
  0x65   : > { %1687 = vsyncadd (%p2225_p13), %s273_s18, 4294963200  ;;  %p2226_p4 = scmp.ne.s32.totalorder %s2218_s29, 0 }
  0x67   : > { %1689 = dma.done.wait (%p2226_p4), [#allocation6], 32  }
  0x68   : > { %1691 = vsyncadd (%p2226_p4), [#allocation6], 4294967264  ;;  %vm339_vm0 = vcmask 516096   ;;  %v1721_v0 = vmov 0.0   ;;  %v1566_v1 = vld [vmem:[%s2207_s1] sm:$0xff]   ;;  %v1567_v2 = vld [vmem:[%s2207_s1 + $0x8] sm:$0xff]  }
  0x69   : > { %340 = vst.msk [vmem:[#allocation2] sm:$0x1] %vm339_vm0, %v1721_v0  ;;  %1426 = vmatprep.subr.bf16.mxu0 %v1566_v1  ;;  %1478 = vmatprep.subr.bf16.mxu1 %v1566_v1  ;;  %vm538_vm1 = vcmask 523264   ;;  %v1568_v3 = vld [vmem:[%s2207_s1 + $0x10] sm:$0xff]   ;;  %v341_v4 = vld [vmem:[%s1913_s10] sm:$0xff]  ;;  %v344_v7 = vld [vmem:[%s1913_s10 + $0x18] sm:$0xff] }
  0x6a   : > { %1427 = vmatpush3.bf16.msra.mxu0 %v1566_v1  ;;  %1482 = vmatpush3.bf16.msra.mxu1 %v1566_v1  ;;  %v342_v5 = vld [vmem:[%s1913_s10 + $0x8] sm:$0xff]  ;;  %v343_v6 = vld [vmem:[%s1913_s10 + $0x10] sm:$0xff]  ;;  %v539_v8 = vsel %vm538_vm1, %v341_v4, 0.0  ;;  %v345_v13 = vld [vmem:[%s1913_s10 + $0x20] sm:$0xff]  ;;  %v544_v14 = vsel %vm538_vm1, %v344_v7, 0.0  ;;  %vm1722_vm2 = vmmov 0  }
  0x6b   : > { %1428 = vmatprep.subr.bf16.mxu0 %v1567_v2  ;;  %1479 = vmatprep.subr.bf16.mxu1 %v1567_v2  ;;  %v540_v9 = vsel %vm538_vm1, %v342_v5, 0.0  ;;  %v542_v10 = vsel %vm538_vm1, %v343_v6, 0.0  ;;  %v611_v11 = vpack.c.bf16 %v342_v5, %v341_v4  ;;  %v1569_v15 = vld [vmem:[%s2207_s1 + $0x18] sm:$0xff]   ;;  %v346_v17 = vld [vmem:[%s1913_s10 + $0x28] sm:$0xff]  ;;  %v546_v18 = vsel %vm538_vm1, %v345_v13, 0.0  ;;  %v1953_v24 = vld [vmem:[%s1913_s10 + $0xa0] sm:$0xff] }
  0x6c   : > { %v541_v12 = vadd.f32 %v540_v9, %v539_v8  ;;  %v347_v20 = vld [vmem:[%s1913_s10 + $0x30] sm:$0xff]  ;;  %v548_v21 = vsel %vm538_vm1, %v346_v17, 0.0  ;;  %v348_v22 = vld [vmem:[%s1913_s10 + $0x38] sm:$0xff]  ;;  %v1956_v25 = vld [vmem:[%s1913_s10 + $0xa8] sm:$0xff]  ;;  %v612_v29 = vpack.c.bf16 %v344_v7, %v343_v6  ;;  %v613_v34 = vpack.c.bf16 %v346_v17, %v345_v13  ;;  %p322_p6 = scmp.lt.s32.totalorder %s1706_s24, 1 }
  0x6d   : > { %1434 = vmatprep.mubr.msk.bf16.mxu0 %vm538_vm1, %v611_v11  ;;  %v550_v26 = vsel %vm538_vm1, %v347_v20, 0.0  ;;  %v349_v27 = vld [vmem:[%s1913_s10 + $0x40] sm:$0xff]  ;;  %v621_v28 = vpack.c.bf16 %v1956_v25, %v1953_v24  ;;  %v350_v31 = vld [vmem:[%s1913_s10 + $0x48] sm:$0xff]  ;;  %v1964_v32 = vld [vmem:[%s1913_s10 + $0xb0] sm:$0xff]  ;;  %v552_v35 = vsel %vm538_vm1, %v348_v22, 0.0  ;;  %v614_v50 = vpack.c.bf16 %v348_v22, %v347_v20 }
  0x6e   : > { %1429 = vmatpush3.bf16.msra.mxu0 %v1567_v2  ;;  %v543_v16 = vadd.f32 %v542_v10, %v541_v12  ;;  %1483 = vmatpush3.bf16.msra.mxu1 %v1567_v2  ;;  %v1967_v33 = vld [vmem:[%s1913_s10 + $0xb8] sm:$0xff]  ;;  %v1974_v37 = vld [vmem:[%s1913_s10 + $0xc0] sm:$0xff]  ;;  %v1977_v38 = vld [vmem:[%s1913_s10 + $0xc8] sm:$0xff]  ;;  %v554_v42 = vsel %vm538_vm1, %v349_v27, 0.0  ;;  %v556_v45 = vsel %vm538_vm1, %v350_v31, 0.0  ;;  %v615_v56 = vpack.c.bf16 %v350_v31, %v349_v27  ;;  %s2235_s24 = smov (!%p322_p6, %s1706_s24), 1 }
  0x6f   : > { %1430 = vmatprep.subr.bf16.mxu0 %v1568_v3  ;;  %1480 = vmatprep.subr.bf16.mxu1 %v1568_v3  ;;  %v622_v36 = vpack.c.bf16 %v1967_v33, %v1964_v32  ;;  %v1570_v40 = vld [vmem:[%s2209_s3] sm:$0xff]   ;;  %v623_v41 = vpack.c.bf16 %v1977_v38, %v1974_v37  ;;  %v351_v44 = vld [vmem:[%s1913_s10 + $0x50] sm:$0xff]  ;;  %v1571_v48 = vld [vmem:[%s2209_s3 + $0x8] sm:$0xff]   ;;  %vm1035_vm3 = vcmask 257024   ;;  %s333_s21 = scalar_lea.vmem %s2212_s6, %s2235_s24  ;;  %vm1151_vm4 = vcmask 253952  }
  0x70   : > { %v545_v19 = vadd.f32 %v544_v14, %v543_v16  ;;  %1454 = vmatprep.mubr.msk.bf16.mxu1 %vm538_vm1, %v621_v28  ;;  %v352_v46 = vld [vmem:[%s1913_s10 + $0x58] sm:$0xff]  ;;  %v558_v49 = vsel %vm538_vm1, %v351_v44, 0.0  ;;  %v353_v51 = vld [vmem:[%s1913_s10 + $0x60] sm:$0xff]  ;;  %v2000_v53 = vld [vmem:[%s1913_s10 + $0xd0] sm:$0xff] }
  0x71   : > { %v2003_v54 = vld [vmem:[%s1913_s10 + $0xd8] sm:$0xff]  ;;  %v560_v55 = vsel %vm538_vm1, %v352_v46, 0.0  ;;  %v2009_v58 = vld [vmem:[%s1913_s10 + $0xe0] sm:$0xff]  ;;  %v2012_v59 = vld [vmem:[%s1913_s10 + $0xe8] sm:$0xff]  ;;  %v562_v1 = vsel %vm538_vm1, %v353_v51, 0.0  ;;  %v616_v11 = vpack.c.bf16 %v352_v46, %v351_v44 }
  0x72   : > { %1431 = vmatpush3.bf16.msra.mxu0 %v1568_v3  ;;  %1484 = vmatpush3.bf16.msra.mxu1 %v1568_v3  ;;  %v547_v23 = vadd.f32 %v546_v18, %v545_v19  ;;  %v624_v57 = vpack.c.bf16 %v2003_v54, %v2000_v53  ;;  %v354_v60 = vld [vmem:[%s1913_s10 + $0x68] sm:$0xff]  ;;  %v625_v62 = vpack.c.bf16 %v2012_v59, %v2009_v58  ;;  %v355_v2 = vld [vmem:[%s1913_s10 + $0x70] sm:$0xff]  ;;  %v356_v5 = vld [vmem:[%s1913_s10 + $0x78] sm:$0xff] }
  0x73   : > { %1432 = vmatprep.subr.bf16.mxu0 %v1569_v15  ;;  %1481 = vmatprep.subr.bf16.mxu1 %v1569_v15  ;;  %v1572_v63 = vld [vmem:[%s2209_s3 + $0x10] sm:$0xff]   ;;  %v564_v4 = vsel %vm538_vm1, %v354_v60, 0.0  ;;  %v1573_v7 = vld [vmem:[%s2209_s3 + $0x18] sm:$0xff]   ;;  %v566_v8 = vsel %vm538_vm1, %v355_v2, 0.0  ;;  %v357_v9 = vld [vmem:[%s1913_s10 + $0x80] sm:$0xff]  ;;  %v568_v14 = vsel %vm538_vm1, %v356_v5, 0.0 }
  0x74   : > { %v549_v30 = vadd.f32 %v548_v21, %v547_v23  ;;  %v371_v12 = vld [vmem:[%s1913_s10 + $0xf0] sm:$0xff]  ;;  %v372_v13 = vld [vmem:[%s1913_s10 + $0xf8] sm:$0xff]  ;;  %v358_v17 = vld [vmem:[%s1913_s10 + $0x88] sm:$0xff]  ;;  %v570_v19 = vsel %vm538_vm1, %v357_v9, 0.0 }
  0x75   : > { %v626_v16 = vpack.c.bf16 %v372_v13, %v371_v12  ;;  %v359_v20 = vld [vmem:[%s1913_s10 + $0x90] sm:$0xff]  ;;  %v572_v22 = vsel %vm538_vm1, %v358_v17, 0.0  ;;  %v360_v23 = vld [vmem:[%s1913_s10 + $0x98] sm:$0xff]  ;;  %v619_v31 = vpack.c.bf16 %v358_v17, %v357_v9  ;;  %s1368_s10 = sshll.u32 %s2235_s24, 7 }
  0x76   : > { %1433 = vmatpush3.bf16.msra.mxu0 %v1569_v15  ;;  %v551_v39 = vadd.f32 %v550_v26, %v549_v30  ;;  %1485 = vmatpush3.bf16.msra.mxu1 %v1569_v15  ;;  %v617_v15 = vpack.c.bf16 %v354_v60, %v353_v51  ;;  %v574_v27 = vsel %vm538_vm1, %v359_v20, 0.0  ;;  %v576_v30 = vsel %vm538_vm1, %v360_v23, 0.0  ;;  %s2091_s30 = scalar_lea.vmem %s2211_s5, %s1368_s10 }
  0x77   : > { %1466 = vmatprep.subr.bf16.mxu1 %v1721_v0 }
  0x78   : > { %v553_v43 = vadd.f32 %v552_v35, %v551_v39  ;;  %v578_v35 = vsel %vm538_vm1, %v1953_v24, 0.0  ;;  %v580_v39 = vsel %vm538_vm1, %v1956_v25, 0.0  ;;  %v586_v24 = vsel %vm538_vm1, %v1974_v37, 0.0 }
  0x79   : > { %1435 = vmatmul.mubr.msk.bf16.vlgmr.msra.gmra.mrb[0].mxu0 %vm538_vm1, %v612_v29  ;;  %1455 = vmatmul.mubr.msk.bf16.vlgmr.msra.gmra.mrb[0].mxu1 %vm538_vm1, %v622_v36  ;;  %v618_v29 = vpack.c.bf16 %v356_v5, %v355_v2  ;;  %v588_v25 = vsel %vm538_vm1, %v1977_v38, 0.0  ;;  %v596_v37 = vsel %vm538_vm1, %v2012_v59, 0.0 }
  0x7a   : > { %1438 = vmatprep.mubr.msk.bf16.mxu0 %vm538_vm1, %v613_v34  ;;  %v555_v47 = vadd.f32 %v554_v42, %v553_v43  ;;  %1467 = vmatpush3.bf16.msra.mxu1 %v1570_v40  ;;  %v582_v40 = vsel %vm538_vm1, %v1964_v32, 0.0  ;;  %v620_v42 = vpack.c.bf16 %v360_v23, %v359_v20  ;;  %v584_v43 = vsel %vm538_vm1, %v1967_v33, 0.0 }
  0x7b   : > { %1458 = vmatprep.mubr.msk.bf16.mxu1 %vm538_vm1, %v623_v41  ;;  %1468 = vmatprep.subr.bf16.mxu1 %v1721_v0  ;;  %v594_v33 = vsel %vm538_vm1, %v2009_v58, 0.0  ;;  %v441_v58 = vld [vmem:[#allocation2] sm:$0x1] }
  0x7c   : > { %v557_v52 = vadd.f32 %v556_v45, %v555_v47  ;;  %v590_v47 = vsel %vm538_vm1, %v2000_v53, 0.0 }
  0x7e   : > { %v559_v61 = vadd.f32 %v558_v49, %v557_v52  ;;  %1469 = vmatpush3.bf16.msra.mxu1 %v1571_v48  ;;  %v592_v48 = vsel %vm538_vm1, %v2003_v54, 0.0  ;;  %v598_v52 = vsel %vm538_vm1, %v371_v12, 0.0 }
  0x7f   : > { %1470 = vmatprep.subr.bf16.mxu1 %v1721_v0 }
  0x80   : > { %v561_v3 = vadd.f32 %v560_v55, %v559_v61  ;;  %v600_v55 = vsel %vm538_vm1, %v372_v13, 0.0 }
  0x81   : > { %1439 = vmatmul.mubr.msk.bf16.gmra.mrb[4].mxu0 %vm538_vm1, %v614_v50  ;;  %1459 = vmatmul.mubr.msk.bf16.gmra.mrb[4].mxu1 %vm538_vm1, %v624_v57 }
  0x82   : > { %1442 = vmatprep.mubr.msk.bf16.mxu0 %vm538_vm1, %v615_v56  ;;  %v563_v6 = vadd.f32 %v562_v1, %v561_v3  ;;  %1462 = vmatprep.mubr.msk.bf16.mxu1 %vm538_vm1, %v625_v62 }
  0x83   : > { %1471 = vmatpush3.bf16.msra.mxu1 %v1572_v63 }
  0x84   : > { %1472 = vmatprep.subr.bf16.mxu1 %v1721_v0  ;;  %v565_v10 = vadd.f32 %v564_v4, %v563_v6  ;;  %v2080_v4 = vld [vmem:[#allocation5] ss:$0 sm:$0xff] }
  0x86   : > { %v567_v18 = vadd.f32 %v566_v8, %v565_v10 }
  0x87   : > { %1473 = vmatpush3.bf16.msra.mxu1 %v1573_v7 }
  0x88   : > { %v569_v21 = vadd.f32 %v568_v14, %v567_v18 }
  0x89   : > { %1443 = vmatmul.mubr.msk.bf16.gmra.mrb[8].mxu0 %vm538_vm1, %v616_v11  ;;  %1463 = vmatmul.mubr.msk.bf16.gmra.mrb[8].mxu1 %vm538_vm1, %v626_v16 }
  0x8a   : > { %1446 = vmatprep.mubr.msk.bf16.mxu0 %vm538_vm1, %v617_v15  ;;  %v571_v26 = vadd.f32 %v570_v19, %v569_v21  ;;  %1474 = vmatprep.mubr.msk.bf16.mxu1 %vm1722_vm2, %v1721_v0 }
  0x8c   : > { %v573_v28 = vadd.f32 %v572_v22, %v571_v26 }
  0x8e   : > { %v575_v34 = vadd.f32 %v574_v27, %v573_v28 }
  0x90   : > { %v577_v36 = vadd.f32 %v576_v30, %v575_v34 }
  0x91   : > { %1447 = vmatmul.mubr.msk.bf16.gmra.mrb[12].mxu0 %vm538_vm1, %v618_v29 }
  0x92   : > { %1450 = vmatprep.mubr.msk.bf16.mxu0 %vm538_vm1, %v619_v31  ;;  %v579_v0 = vadd.f32 %v578_v35, %v577_v36 }
  0x94   : > { %v581_v41 = vadd.f32 %v580_v39, %v579_v0 }
  0x96   : > { %v583_v44 = vadd.f32 %v582_v40, %v581_v41 }
  0x98   : > { %v585_v45 = vadd.f32 %v584_v43, %v583_v44 }
  0x99   : > { %1451 = vmatmul.mubr.msk.bf16.gmra.mrb[16].mxu0 %vm538_vm1, %v620_v42 }
  0x9a   : > { %v587_v46 = vadd.f32 %v586_v24, %v585_v45 }
  0x9c   : > { %v589_v32 = vadd.f32 %v588_v25, %v587_v46 }
  0x9e   : > { %v591_v49 = vadd.f32 %v590_v47, %v589_v32 }
  0xa0   : > { %v593_v50 = vadd.f32 %v592_v48, %v591_v49 }
  0xa2   : > { %v595_v51 = vadd.f32 %v594_v33, %v593_v50 }
  0xa4   : > { %v597_v38 = vadd.f32 %v596_v37, %v595_v51 }
  0xa6   : > { %v599_v53 = vadd.f32 %v598_v52, %v597_v38 }
  0xa8   : > { %v601_v56 = vadd.f32 %v600_v55, %v599_v53 }
  0xaa   : > { %v602_v57 = vrot.slane %v601_v56, 4 }
  0xac   : > { %v603_v54 = vadd.f32 %v602_v57, %v601_v56 }
  0xae   : > { %v604_v60 = vrot.slane %v603_v54, 2 }
  0xb0   : > { %v605_v61 = vadd.f32 %v604_v60, %v603_v54 }
  0xb2   : > { %v606_v62 = vrot.slane %v605_v61, 1 }
  0xb4   : > { %v607_v63 = vadd.f32 %v606_v62, %v605_v61 }
  0xb6   : > { %v608_v1 = vadd.f32 %v607_v63, %v441_v58 }
  0xb8   : > { %610 = vst.msk [vmem:[#allocation2] sm:$0x1] %vm339_vm0, %v608_v1 }
  0xbf   : > { %v1071_v59 = vld [vmem:[#allocation2] sm:$0x1] }
  0xc0   : > { %v1072_v2 = vmul.f32 0.00390625, %v1071_v59 }
  0xc2   : > { %v1073_v3 = vpack.c.bf16 %v1072_v2, %v1072_v2 }
  0xc4   : > { %1475 = vmatmul.mubr.msk.bf16.vlgmr.msra.gmra.mrb[12].mxu1 %vm538_vm1, %v1073_v3 }
 0x14c   : > { %v1436_v5 = vpop.f32.mrb[0].mxu0  ;;  %v1456_v8 = vpop.f32.mrb[0].mxu1 }
 0x14d   : > { %v757_v6 = vadd.f32 %v1436_v5, %v2080_v4  ;;  %v748_v7 = vpop.f32.mrb[1].mxu0  ;;  %v837_v11 = vadd.f32 %v1456_v8, %v2080_v4  ;;  %v828_v12 = vpop.f32.mrb[1].mxu1 }
 0x14e   : > { %v749_v9 = vadd.f32 %v2080_v4, %v748_v7  ;;  %v1437_v10 = vpop.f32.mrb[2].mxu0  ;;  %v829_v16 = vadd.f32 %v2080_v4, %v828_v12  ;;  %v1457_v17 = vpop.f32.mrb[2].mxu1 }
 0x14f   : > { %v877_v13 = vmax.f32 %v757_v6, 0.0  ;;  %v760_v14 = vadd.f32 %v1437_v10, %v2080_v4  ;;  %v751_v15 = vpop.f32.mrb[3].mxu0  ;;  %v897_v20 = vmax.f32 %v837_v11, 0.0  ;;  %v840_v21 = vadd.f32 %v1457_v17, %v2080_v4  ;;  %v831_v22 = vpop.f32.mrb[3].mxu1 }
 0x150   : > { %v875_v18 = vmax.f32 %v749_v9, 0.0  ;;  %v752_v19 = vadd.f32 %v2080_v4, %v751_v15  ;;  %v895_v27 = vmax.f32 %v829_v16, 0.0  ;;  %v832_v28 = vadd.f32 %v2080_v4, %v831_v22 }
 0x151   : > { %v1371_v23 = vpack.c.bf16 %v877_v13, %v877_v13  ;;  %v878_v26 = vmax.f32 %v760_v14, 0.0  ;;  %v1391_v31 = vpack.c.bf16 %v897_v20, %v897_v20  ;;  %v898_v34 = vmax.f32 %v840_v21, 0.0 }
 0x152   : > { %v1369_v29 = vpack.c.bf16 %v875_v18, %v875_v18  ;;  %v876_v30 = vmax.f32 %v752_v19, 0.0  ;;  %v1389_v36 = vpack.c.bf16 %v895_v27, %v895_v27  ;;  %v896_v39 = vmax.f32 %v832_v28, 0.0 }
 0x153   : > { %1038 = vst.msk [vmem:[%s2091_s30 + $0x8] sm:$0xf] %vm1035_vm3, %v1371_v23  ;;  %v1372_v35 = vpack.c.bf16 %v878_v26, %v878_v26  ;;  %1058 = vst.msk [vmem:[%s2091_s30 + $0x58] sm:$0xf] %vm1035_vm3, %v1391_v31  ;;  %v1392_v41 = vpack.c.bf16 %v898_v34, %v898_v34 }
 0x154   : > { %1036 = vst.msk [vmem:[%s2091_s30] sm:$0xf] %vm1035_vm3, %v1369_v29  ;;  %v1370_v0 = vpack.c.bf16 %v876_v30, %v876_v30  ;;  %v1440_v40 = vpop.f32.mrb[4].mxu0  ;;  %1056 = vst.msk [vmem:[%s2091_s30 + $0x50] sm:$0xf] %vm1035_vm3, %v1389_v36  ;;  %v1390_v44 = vpack.c.bf16 %v896_v39, %v896_v39  ;;  %v1460_v24 = vpop.f32.mrb[4].mxu1 }
 0x155   : > { %1039 = vst.msk [vmem:[%s2091_s30 + $0xc] sm:$0xf] %vm1035_vm3, %v1372_v35  ;;  %v773_v42 = vadd.f32 %v1440_v40, %v2080_v4  ;;  %v764_v43 = vpop.f32.mrb[5].mxu0  ;;  %1059 = vst.msk [vmem:[%s2091_s30 + $0x5c] sm:$0xf] %vm1035_vm3, %v1392_v41  ;;  %v853_v46 = vadd.f32 %v1460_v24, %v2080_v4  ;;  %v844_v47 = vpop.f32.mrb[5].mxu1 }
 0x156   : > { %1037 = vst.msk [vmem:[%s2091_s30 + $0x4] sm:$0xf] %vm1035_vm3, %v1370_v0  ;;  %v765_v45 = vadd.f32 %v2080_v4, %v764_v43  ;;  %v1441_v25 = vpop.f32.mrb[6].mxu0  ;;  %1057 = vst.msk [vmem:[%s2091_s30 + $0x54] sm:$0xf] %vm1035_vm3, %v1390_v44  ;;  %v845_v33 = vadd.f32 %v2080_v4, %v844_v47  ;;  %v1461_v50 = vpop.f32.mrb[6].mxu1 }
 0x157   : > { %v881_v32 = vmax.f32 %v773_v42, 0.0  ;;  %v776_v48 = vadd.f32 %v1441_v25, %v2080_v4  ;;  %v767_v49 = vpop.f32.mrb[7].mxu0  ;;  %v901_v52 = vmax.f32 %v853_v46, 0.0  ;;  %v856_v38 = vadd.f32 %v1461_v50, %v2080_v4  ;;  %v847_v55 = vpop.f32.mrb[7].mxu1 }
 0x158   : > { %v879_v37 = vmax.f32 %v765_v45, 0.0  ;;  %v768_v51 = vadd.f32 %v2080_v4, %v767_v49  ;;  %v899_v57 = vmax.f32 %v845_v33, 0.0  ;;  %v848_v54 = vadd.f32 %v2080_v4, %v847_v55 }
 0x159   : > { %v1375_v53 = vpack.c.bf16 %v881_v32, %v881_v32  ;;  %v882_v56 = vmax.f32 %v776_v48, 0.0  ;;  %v1395_v62 = vpack.c.bf16 %v901_v52, %v901_v52  ;;  %v902_v58 = vmax.f32 %v856_v38, 0.0 }
 0x15a   : > { %v1373_v60 = vpack.c.bf16 %v879_v37, %v879_v37  ;;  %v880_v61 = vmax.f32 %v768_v51, 0.0  ;;  %v1393_v1 = vpack.c.bf16 %v899_v57, %v899_v57  ;;  %v900_v59 = vmax.f32 %v848_v54, 0.0 }
 0x15b   : > { %1042 = vst.msk [vmem:[%s2091_s30 + $0x18] sm:$0xf] %vm1035_vm3, %v1375_v53  ;;  %v1376_v63 = vpack.c.bf16 %v882_v56, %v882_v56  ;;  %1062 = vst.msk [vmem:[%s2091_s30 + $0x68] sm:$0xf] %vm1035_vm3, %v1395_v62  ;;  %v1396_v5 = vpack.c.bf16 %v902_v58, %v902_v58 }
 0x15c   : > { %1040 = vst.msk [vmem:[%s2091_s30 + $0x10] sm:$0xf] %vm1035_vm3, %v1373_v60  ;;  %v1374_v2 = vpack.c.bf16 %v880_v61, %v880_v61  ;;  %v1444_v3 = vpop.f32.mrb[8].mxu0  ;;  %1060 = vst.msk [vmem:[%s2091_s30 + $0x60] sm:$0xf] %vm1035_vm3, %v1393_v1  ;;  %v1394_v8 = vpack.c.bf16 %v900_v59, %v900_v59  ;;  %v1464_v9 = vpop.f32.mrb[8].mxu1 }
 0x15d   : > { %1043 = vst.msk [vmem:[%s2091_s30 + $0x1c] sm:$0xf] %vm1035_vm3, %v1376_v63  ;;  %v789_v6 = vadd.f32 %v1444_v3, %v2080_v4  ;;  %v780_v7 = vpop.f32.mrb[9].mxu0  ;;  %1063 = vst.msk [vmem:[%s2091_s30 + $0x6c] sm:$0xf] %vm1035_vm3, %v1396_v5  ;;  %v869_v12 = vadd.f32 %v1464_v9, %v2080_v4  ;;  %v860_v13 = vpop.f32.mrb[9].mxu1 }
 0x15e   : > { %1041 = vst.msk [vmem:[%s2091_s30 + $0x14] sm:$0xf] %vm1035_vm3, %v1374_v2  ;;  %v781_v10 = vadd.f32 %v2080_v4, %v780_v7  ;;  %v1445_v11 = vpop.f32.mrb[10].mxu0  ;;  %1061 = vst.msk [vmem:[%s2091_s30 + $0x64] sm:$0xf] %vm1035_vm3, %v1394_v8  ;;  %v861_v17 = vadd.f32 %v2080_v4, %v860_v13  ;;  %v1465_v18 = vpop.f32.mrb[10].mxu1 }
 0x15f   : > { %v885_v14 = vmax.f32 %v789_v6, 0.0  ;;  %v792_v15 = vadd.f32 %v1445_v11, %v2080_v4  ;;  %v783_v16 = vpop.f32.mrb[11].mxu0  ;;  %v905_v21 = vmax.f32 %v869_v12, 0.0  ;;  %v872_v22 = vadd.f32 %v1465_v18, %v2080_v4  ;;  %v863_v23 = vpop.f32.mrb[11].mxu1  ;;  %v1082_v7 = vld [vmem:[#allocation7] sm:$0x1] }
 0x160   : > { %v883_v19 = vmax.f32 %v781_v10, 0.0  ;;  %v784_v20 = vadd.f32 %v2080_v4, %v783_v16  ;;  %v903_v28 = vmax.f32 %v861_v17, 0.0  ;;  %v864_v29 = vadd.f32 %v2080_v4, %v863_v23 }
 0x161   : > { %v1379_v26 = vpack.c.bf16 %v885_v14, %v885_v14  ;;  %v886_v27 = vmax.f32 %v792_v15, 0.0  ;;  %v1399_v34 = vpack.c.bf16 %v905_v21, %v905_v21  ;;  %v906_v35 = vmax.f32 %v872_v22, 0.0 }
 0x162   : > { %v1377_v30 = vpack.c.bf16 %v883_v19, %v883_v19  ;;  %v884_v31 = vmax.f32 %v784_v20, 0.0  ;;  %v1397_v39 = vpack.c.bf16 %v903_v28, %v903_v28  ;;  %v904_v0 = vmax.f32 %v864_v29, 0.0 }
 0x163   : > { %1046 = vst.msk [vmem:[%s2091_s30 + $0x28] sm:$0xf] %vm1035_vm3, %v1379_v26  ;;  %v1380_v36 = vpack.c.bf16 %v886_v27, %v886_v27  ;;  %1066 = vst.msk [vmem:[%s2091_s30 + $0x78] sm:$0xf] %vm1035_vm3, %v1399_v34  ;;  %v1400_v42 = vpack.c.bf16 %v906_v35, %v906_v35 }
 0x164   : > { %1044 = vst.msk [vmem:[%s2091_s30 + $0x20] sm:$0xf] %vm1035_vm3, %v1377_v30  ;;  %v1378_v40 = vpack.c.bf16 %v884_v31, %v884_v31  ;;  %v1448_v41 = vpop.f32.mrb[12].mxu0  ;;  %1064 = vst.msk [vmem:[%s2091_s30 + $0x70] sm:$0xf] %vm1035_vm3, %v1397_v39  ;;  %v1398_v24 = vpack.c.bf16 %v904_v0, %v904_v0 }
 0x165   : > { %1047 = vst.msk [vmem:[%s2091_s30 + $0x2c] sm:$0xf] %vm1035_vm3, %v1380_v36  ;;  %v805_v43 = vadd.f32 %v1448_v41, %v2080_v4  ;;  %v796_v44 = vpop.f32.mrb[13].mxu0  ;;  %1067 = vst.msk [vmem:[%s2091_s30 + $0x7c] sm:$0xf] %vm1035_vm3, %v1400_v42 }
 0x166   : > { %1045 = vst.msk [vmem:[%s2091_s30 + $0x24] sm:$0xf] %vm1035_vm3, %v1378_v40  ;;  %v797_v45 = vadd.f32 %v2080_v4, %v796_v44  ;;  %v1449_v25 = vpop.f32.mrb[14].mxu0  ;;  %1065 = vst.msk [vmem:[%s2091_s30 + $0x74] sm:$0xf] %vm1035_vm3, %v1398_v24 }
 0x167   : > { %v889_v46 = vmax.f32 %v805_v43, 0.0  ;;  %v808_v47 = vadd.f32 %v1449_v25, %v2080_v4  ;;  %v799_v32 = vpop.f32.mrb[15].mxu0 }
 0x168   : > { %v887_v48 = vmax.f32 %v797_v45, 0.0  ;;  %v800_v49 = vadd.f32 %v2080_v4, %v799_v32 }
 0x169   : > { %v1383_v33 = vpack.c.bf16 %v889_v46, %v889_v46  ;;  %v890_v50 = vmax.f32 %v808_v47, 0.0 }
 0x16a   : > { %v1381_v37 = vpack.c.bf16 %v887_v48, %v887_v48  ;;  %v888_v51 = vmax.f32 %v800_v49, 0.0 }
 0x16b   : > { %1050 = vst.msk [vmem:[%s2091_s30 + $0x38] sm:$0xf] %vm1035_vm3, %v1383_v33  ;;  %v1384_v52 = vpack.c.bf16 %v890_v50, %v890_v50 }
 0x16c   : > { %1048 = vst.msk [vmem:[%s2091_s30 + $0x30] sm:$0xf] %vm1035_vm3, %v1381_v37  ;;  %v1382_v38 = vpack.c.bf16 %v888_v51, %v888_v51  ;;  %v1452_v55 = vpop.f32.mrb[16].mxu0 }
 0x16d   : > { %1051 = vst.msk [vmem:[%s2091_s30 + $0x3c] sm:$0xf] %vm1035_vm3, %v1384_v52  ;;  %v821_v53 = vadd.f32 %v1452_v55, %v2080_v4  ;;  %v812_v56 = vpop.f32.mrb[17].mxu0 }
 0x16e   : > { %1049 = vst.msk [vmem:[%s2091_s30 + $0x34] sm:$0xf] %vm1035_vm3, %v1382_v38  ;;  %v813_v57 = vadd.f32 %v2080_v4, %v812_v56  ;;  %v1453_v54 = vpop.f32.mrb[18].mxu0 }
 0x16f   : > { %v893_v60 = vmax.f32 %v821_v53, 0.0  ;;  %v824_v61 = vadd.f32 %v1453_v54, %v2080_v4  ;;  %v815_v62 = vpop.f32.mrb[19].mxu0 }
 0x170   : > { %v891_v58 = vmax.f32 %v813_v57, 0.0  ;;  %v816_v63 = vadd.f32 %v2080_v4, %v815_v62 }
 0x171   : > { %v1387_v1 = vpack.c.bf16 %v893_v60, %v893_v60  ;;  %v894_v59 = vmax.f32 %v824_v61, 0.0 }
 0x172   : > { %v1385_v2 = vpack.c.bf16 %v891_v58, %v891_v58  ;;  %v892_v3 = vmax.f32 %v816_v63, 0.0 }
 0x173   : > { %1054 = vst.msk [vmem:[%s2091_s30 + $0x48] sm:$0xf] %vm1035_vm3, %v1387_v1  ;;  %v1388_v5 = vpack.c.bf16 %v894_v59, %v894_v59 }
 0x174   : > { %1052 = vst.msk [vmem:[%s2091_s30 + $0x40] sm:$0xf] %vm1035_vm3, %v1385_v2  ;;  %v1386_v6 = vpack.c.bf16 %v892_v3, %v892_v3 }
 0x175   : > { %1055 = vst.msk [vmem:[%s2091_s30 + $0x4c] sm:$0xf] %vm1035_vm3, %v1388_v5 }
 0x176   : > { %1053 = vst.msk [vmem:[%s2091_s30 + $0x44] sm:$0xf] %vm1035_vm3, %v1386_v6 }
 0x197   : > { %v1144_v8 = vpop.f32.mrb[12].mxu1 }
 0x198   : > { %v1145_v9 = vadd.f32 %v1144_v8, %v1082_v7  ;;  %v1476_v10 = vpop.f32.mrb[13].mxu1 }
 0x199   : > { %v1147_v4 = vpop.f32.mrb[14].mxu1 }
 0x19a   : > { %v1150_v11 = vmax.f32 %v1145_v9, 0.0  ;;  %v1477_v12 = vpop.f32.mrb[15].mxu1 }
 0x19c   : > { %1152 = vst.msk [vmem:[%s333_s21] sm:$0x1] %vm1151_vm4, %v1150_v11 }
 0x19d PF: > { %s21_s26 = sadd.s32 1, %s1714_s26   ;;  %s2227_s21 = smov %s1698_s22 }
 0x19e   : > { %p18_p5 = scmp.ge.s32.totalorder %s21_s26, 4   ;;  %s2228_s22 = smov %s1702_s23 }
 0x19f   : > { %s2229_s23 = smov %s1880_s9  ;;  %s2230_s24 = smov %s1710_s25 }
 0x1a0   : > { %s2231_s25 = smov %s2233_s14  ;;  %20 = sbr.rel (!%p18_p5) target bundleno = 5 (0x5), region = 108 }
 0x1a7   :  { %1195 = vsyncpa [#allocation4], 1 }
 0x1a8   :  { %1197 = vsyncpa [#allocation4 + $0x1], 1 }
 0x1a9   :  { %1198 = vsyncpa [#allocation6], 1 }

// kernel: aspp_forward.6
= control target key start
LH: loop header
LB: loop body
LE: loop exit
PB: predicated region body
PF: predicated region fallthrough
CT: control target
= control target key end

     0   :  { %s2624_s18 = smov 0   ;;  %s2626_s19 = smov 0   ;;  %s3791_s0 = inlined_call_operand.vmem [shape: f32[2,52,52,64], index: 0, kind: input, shape index: {}]   ;;  %s3792_s1 = inlined_call_operand.vmem [shape: f32[3,3,64], index: 1, kind: input, shape index: {}]   ;;  %s3793_s2 = inlined_call_operand.vmem [shape: f32[1,64], index: 2, kind: input, shape index: {}]   ;;  %s3794_s3 = inlined_call_operand.vmem [shape: bf16[64,32], index: 3, kind: input, shape index: {}]   ;;  %s3795_s4 = inlined_call_operand.vmem [shape: f32[1,32], index: 4, kind: input, shape index: {}]   ;;  %s3796_s5 = inlined_call_operand.vmem [shape: bf16[2,16,16,32], index: 5, kind: output, shape index: {}]  }
   0x1   :  { %s2628_s20 = smov 0  }
   0x2 LB: > { %s27_s21 = sadd.s32 1, %s2587_s19  ;;  %p2065_p0 = scmp.ge.s32.totalorder %s2591_s20, 1  ;;  %s2591_s20 = sphi %s2628_s20, %s15_s20   ;;  %s2587_s19 = sphi %s2626_s19, %s3852_s19   ;;  %s2583_s18 = sphi %s2624_s18, %s3851_s18  }
   0x3   : > { %p29_p1 = scmp.ge.s32.totalorder %s27_s21, 2  ;;  %p232_p2 = scmp.lt.s32.totalorder %s2591_s20, 3 }
   0x5   : > { %s3854_s21 = smov (%p29_p1, %s27_s21), 0  ;;  %p233_p3 = pnand %p2065_p0, %p232_p2 }
   0x7   : > { %236 = sbr.rel (%p233_p3) target bundleno = 422 (0x1a6), region = 40 }
   0xe   : > { %v2555_v0 = vld [vmem:[%s3794_s3] sm:$0xff]   ;;  %p275_p4 = scmp.lt.s32.totalorder %s2583_s18, 1  ;;  %v2556_v1 = vld [vmem:[%s3794_s3 + $0x8] sm:$0xff]   ;;  %v2557_v2 = vld [vmem:[%s3794_s3 + $0x10] sm:$0xff]   ;;  %vm1404_vm0 = vcmask 523264   ;;  %vm306_vm1 = vcmask 261120  }
   0xf   : > { %2481 = vmatprep.subr.bf16.mxu0 %v2555_v0  ;;  %2521 = vmatprep.subr.bf16.mxu1 %v2555_v0  ;;  %v2657_v3 = vld [vmem:[%s3792_s1] ss:$0 sm:$0xff]  ;;  %v2662_v4 = vld [vmem:[%s3792_s1 + $0x1] ss:$0 sm:$0xff]  ;;  %v2667_v5 = vld [vmem:[%s3792_s1 + $0x2] ss:$0 sm:$0xff] }
  0x10   : > { %s3856_s18 = smov (!%p275_p4, %s2583_s18), 1  ;;  %2482 = vmatpush3.bf16.msra.mxu0 %v2555_v0  ;;  %2525 = vmatpush3.bf16.msra.mxu1 %v2555_v0  ;;  %v2558_v6 = vld [vmem:[%s3794_s3 + $0x18] sm:$0xff]   ;;  %v2680_v7 = vld [vmem:[%s3792_s1 + $0x4] ss:$0 sm:$0xff]  ;;  %v2685_v8 = vld [vmem:[%s3792_s1 + $0x5] ss:$0 sm:$0xff] }
  0x11   : > { %2483 = vmatprep.subr.bf16.mxu0 %v2556_v1  ;;  %2522 = vmatprep.subr.bf16.mxu1 %v2556_v1  ;;  %s2529_s28 = smul.u32 2912, %s3856_s18  ;;  %v2690_v9 = vld [vmem:[%s3792_s1 + $0x6] ss:$0 sm:$0xff]  ;;  %v2698_v13 = vld [vmem:[%s3792_s1 + $0x8] ss:$0 sm:$0xff]  ;;  %s2428_s9 = sshll.u32 %s3856_s18, 7 }
  0x12   : > { %v2709_v20 = vld [vmem:[%s3792_s1 + $0x9] ss:$0 sm:$0xff]  ;;  %v2757_v50 = vld [vmem:[%s3792_s1 + $0xa] ss:$0 sm:$0xff]  ;;  %s3659_s18 = scalar_lea.vmem %s3796_s5, %s2428_s9  ;;  %vm1913_vm2 = vcmask 257024  }
  0x13   : > { %s2675_s14 = scalar_lea.vmem %s3791_s0, %s2529_s28 }
  0x14   : > { %2484 = vmatpush3.bf16.msra.mxu0 %v2556_v1  ;;  %2526 = vmatpush3.bf16.msra.mxu1 %v2556_v1  ;;  %v2069_v10 = vld [vmem:[%s2675_s14 + $0x2ac] sm:$0xff]  ;;  %v2070_v11 = vld [vmem:[%s2675_s14 + $0x2b4] sm:$0xff]  ;;  %v2136_v19 = vld [vmem:[%s2675_s14 + $0x2c0] sm:$0xff] }
  0x15   : > { %v2102_v12 = vld [vmem:[%s2675_s14 + $0x2b2] sm:$0xff]  ;;  %2485 = vmatprep.subr.bf16.mxu0 %v2557_v2  ;;  %2523 = vmatprep.subr.bf16.mxu1 %v2557_v2  ;;  %v377_v14 = vmul.f32 %v2657_v3, %v2069_v10  ;;  %v378_v15 = vmul.f32 %v2657_v3, %v2070_v11  ;;  %v2103_v16 = vld [vmem:[%s2675_s14 + $0x2ba] sm:$0xff]  ;;  %v580_v23 = vmul.f32 %v2667_v5, %v2136_v19  ;;  %v2169_v25 = vld [vmem:[%s2675_s14 + $0x404] sm:$0xff] }
  0x16   : > { %v478_v17 = vmul.f32 %v2662_v4, %v2102_v12  ;;  %v2135_v18 = vld [vmem:[%s2675_s14 + $0x2b8] sm:$0xff]  ;;  %v479_v21 = vmul.f32 %v2662_v4, %v2103_v16  ;;  %v2202_v26 = vld [vmem:[%s2675_s14 + $0x402] sm:$0xff]  ;;  %v683_v29 = vmul.f32 %v2680_v7, %v2169_v25  ;;  %v2203_v30 = vld [vmem:[%s2675_s14 + $0x40a] sm:$0xff] }
  0x17   : > { %v579_v22 = vmul.f32 %v2667_v5, %v2135_v18  ;;  %v2168_v24 = vld [vmem:[%s2675_s14 + $0x3fc] sm:$0xff]  ;;  %v783_v31 = vmul.f32 %v2685_v8, %v2202_v26  ;;  %v2236_v32 = vld [vmem:[%s2675_s14 + $0x408] sm:$0xff]  ;;  %v2237_v33 = vld [vmem:[%s2675_s14 + $0x410] sm:$0xff]  ;;  %v784_v35 = vmul.f32 %v2685_v8, %v2203_v30 }
  0x18   : > { %v510_v27 = vadd.f32 %v478_v17, %v377_v14  ;;  %v682_v28 = vmul.f32 %v2680_v7, %v2168_v24  ;;  %2486 = vmatpush3.bf16.msra.mxu0 %v2557_v2  ;;  %2527 = vmatpush3.bf16.msra.mxu1 %v2557_v2  ;;  %v511_v34 = vadd.f32 %v479_v21, %v378_v15  ;;  %v2726_v37 = vld [vmem:[%s2675_s14 + $0x54c] sm:$0xff]  ;;  %v2729_v38 = vld [vmem:[%s2675_s14 + $0x554] sm:$0xff]  ;;  %v2744_v45 = vld [vmem:[%s2675_s14 + $0x560] sm:$0xff] }
  0x19   : > { %v884_v36 = vmul.f32 %v2690_v9, %v2236_v32  ;;  %3815 = vst [vmem:[#allocation3_spill] sm:$0xff] %v2726_v37  ;;  %3816 = vst [vmem:[#allocation4_spill] sm:$0xff] %v2729_v38  ;;  %v2732_v39 = vld [vmem:[%s2675_s14 + $0x552] sm:$0xff]  ;;  %2487 = vmatprep.subr.bf16.mxu0 %v2558_v6  ;;  %2524 = vmatprep.subr.bf16.mxu1 %v2558_v6  ;;  %v885_v41 = vmul.f32 %v2690_v9, %v2237_v33  ;;  %v2738_v43 = vld [vmem:[%s2675_s14 + $0x55a] sm:$0xff] }
  0x1a   : > { %3817 = vst [vmem:[#allocation5_spill] sm:$0xff] %v2732_v39  ;;  %v611_v40 = vadd.f32 %v579_v22, %v510_v27  ;;  %v987_v42 = vmul.f32 %v2698_v13, %v2726_v37  ;;  %3818 = vst [vmem:[#allocation6_spill] sm:$0xff] %v2738_v43  ;;  %v2741_v44 = vld [vmem:[%s2675_s14 + $0x558] sm:$0xff]  ;;  %v612_v46 = vadd.f32 %v580_v23, %v511_v34  ;;  %v2760_v51 = vld [vmem:[%s2675_s14 + $0x46c] sm:$0xff] }
  0x1b   : > { %3819 = vst [vmem:[#allocation7_spill] sm:$0xff] %v2741_v44  ;;  %3820 = vst [vmem:[#allocation8_spill] sm:$0xff] %v2744_v45  ;;  %v988_v47 = vmul.f32 %v2698_v13, %v2729_v38  ;;  %v1088_v48 = vmul.f32 %v2709_v20, %v2732_v39  ;;  %v2752_v49 = vmul.f32 %v2709_v20, %v2738_v43  ;;  %v2771_v55 = vld [vmem:[%s2675_s14 + $0x474] sm:$0xff]  ;;  %v2789_v63 = vld [vmem:[%s2675_s14 + $0x480] sm:$0xff] }
  0x1c   : > { %v714_v52 = vadd.f32 %v682_v28, %v611_v40  ;;  %v2764_v53 = vmul.f32 %v2757_v50, %v2741_v44  ;;  %v2768_v54 = vmul.f32 %v2757_v50, %v2744_v45  ;;  %v393_v56 = vmul.f32 %v2657_v3, %v2760_v51  ;;  %v2776_v57 = vld [vmem:[%s2675_s14 + $0x472] sm:$0xff]  ;;  %v2779_v58 = vld [vmem:[%s2675_s14 + $0x47a] sm:$0xff]  ;;  %2488 = vmatpush3.bf16.msra.mxu0 %v2558_v6  ;;  %v2801_v11 = vld [vmem:[%s2675_s14 + $0x5c4] sm:$0xff] }
  0x1d   : > { %2528 = vmatpush3.bf16.msra.mxu1 %v2558_v6  ;;  %v715_v59 = vadd.f32 %v683_v29, %v612_v46  ;;  %v394_v60 = vmul.f32 %v2657_v3, %v2771_v55  ;;  %v494_v61 = vmul.f32 %v2662_v4, %v2776_v57  ;;  %v2786_v62 = vld [vmem:[%s2675_s14 + $0x478] sm:$0xff]  ;;  %v495_v2 = vmul.f32 %v2662_v4, %v2779_v58  ;;  %v2804_v12 = vld [vmem:[%s2675_s14 + $0x5c2] sm:$0xff]  ;;  %v2807_v14 = vld [vmem:[%s2675_s14 + $0x5ca] sm:$0xff] }
  0x1e   : > { %v2792_v0 = vld [vmem:[%s2675_s14 + $0x5bc] sm:$0xff]  ;;  %v815_v1 = vadd.f32 %v783_v31, %v714_v52  ;;  %v595_v6 = vmul.f32 %v2667_v5, %v2786_v62  ;;  %v596_v10 = vmul.f32 %v2667_v5, %v2789_v63  ;;  %v699_v18 = vmul.f32 %v2680_v7, %v2801_v11  ;;  %v2814_v19 = vld [vmem:[%s2675_s14 + $0x5c8] sm:$0xff]  ;;  %v2817_v21 = vld [vmem:[%s2675_s14 + $0x5d0] sm:$0xff] }
  0x1f   : > { %v816_v15 = vadd.f32 %v784_v35, %v715_v59  ;;  %v526_v16 = vadd.f32 %v494_v61, %v393_v56  ;;  %v698_v17 = vmul.f32 %v2680_v7, %v2792_v0  ;;  %v2286_v22 = vld [vmem:[%s2675_s14 + $0x70c] sm:$0xff]  ;;  %v527_v24 = vadd.f32 %v495_v2, %v394_v60  ;;  %v2287_v27 = vld [vmem:[%s2675_s14 + $0x714] sm:$0xff]  ;;  %v2355_v35 = vld [vmem:[%s2675_s14 + $0x720] sm:$0xff] }
  0x20   : > { %v916_v23 = vadd.f32 %v884_v36, %v815_v1  ;;  %v799_v25 = vmul.f32 %v2685_v8, %v2804_v12  ;;  %v800_v26 = vmul.f32 %v2685_v8, %v2807_v14  ;;  %v2320_v28 = vld [vmem:[%s2675_s14 + $0x712] sm:$0xff]  ;;  %v2321_v29 = vld [vmem:[%s2675_s14 + $0x71a] sm:$0xff]  ;;  %v900_v32 = vmul.f32 %v2690_v9, %v2814_v19  ;;  %v2104_v2 = vld [vmem:[%s2675_s14 + $0x2ea] sm:$0xff] }
  0x21   : > { %v917_v30 = vadd.f32 %v885_v41, %v816_v15  ;;  %v627_v31 = vadd.f32 %v595_v6, %v526_v16  ;;  %v901_v33 = vmul.f32 %v2690_v9, %v2817_v21  ;;  %v2354_v34 = vld [vmem:[%s2675_s14 + $0x718] sm:$0xff]  ;;  %v628_v40 = vadd.f32 %v596_v10, %v527_v24  ;;  %v2071_v41 = vld [vmem:[%s2675_s14 + $0x2e4] sm:$0xff]  ;;  %v2072_v56 = vld [vmem:[%s2675_s14 + $0x2ec] sm:$0xff] }
  0x22   : > { %v1019_v36 = vadd.f32 %v987_v42, %v916_v23  ;;  %v1003_v46 = vmul.f32 %v2698_v13, %v2286_v22  ;;  %v1004_v52 = vmul.f32 %v2698_v13, %v2287_v27  ;;  %v1104_v61 = vmul.f32 %v2709_v20, %v2320_v28  ;;  %v2105_v6 = vld [vmem:[%s2675_s14 + $0x2f2] sm:$0xff]  ;;  %v2074_v45 = vld [vmem:[%s2675_s14 + $0x324] sm:$0xff] }
  0x23   : > { %v1020_v59 = vadd.f32 %v988_v47, %v917_v30  ;;  %v730_v60 = vadd.f32 %v698_v17, %v627_v31  ;;  %v1105_v1 = vmul.f32 %v2709_v20, %v2321_v29  ;;  %v731_v42 = vadd.f32 %v699_v18, %v628_v40  ;;  %v2137_v22 = vld [vmem:[%s2675_s14 + $0x2f0] sm:$0xff]  ;;  %v2138_v23 = vld [vmem:[%s2675_s14 + $0x2f8] sm:$0xff]  ;;  %v2849_v17 = vld [vmem:[%s3793_s2] ss:$0 sm:$0xff] }
  0x24   : > { %v1120_v15 = vadd.f32 %v1088_v48, %v1019_v36  ;;  %v1205_v10 = vmul.f32 %v2757_v50, %v2354_v34  ;;  %v1206_v16 = vmul.f32 %v2757_v50, %v2355_v35  ;;  %v379_v48 = vmul.f32 %v2657_v3, %v2071_v41  ;;  %v2171_v31 = vld [vmem:[%s2675_s14 + $0x43c] sm:$0xff]  ;;  %v2139_v38 = vld [vmem:[%s2675_s14 + $0x328] sm:$0xff] }
  0x25   : > { %v1121_v47 = vadd.f32 %v2752_v49, %v1020_v59  ;;  %v831_v24 = vadd.f32 %v799_v25, %v730_v60  ;;  %v380_v27 = vmul.f32 %v2657_v3, %v2072_v56  ;;  %v832_v28 = vadd.f32 %v800_v26, %v731_v42  ;;  %v2170_v49 = vld [vmem:[%s2675_s14 + $0x434] sm:$0xff]  ;;  %v2205_v59 = vld [vmem:[%s2675_s14 + $0x442] sm:$0xff] }
  0x26   : > { %v1221_v18 = vadd.f32 %v2764_v53, %v1120_v15  ;;  %v480_v29 = vmul.f32 %v2662_v4, %v2104_v2  ;;  %v481_v30 = vmul.f32 %v2662_v4, %v2105_v6  ;;  %v581_v25 = vmul.f32 %v2667_v5, %v2137_v22  ;;  %v2204_v56 = vld [vmem:[%s2675_s14 + $0x43a] sm:$0xff]  ;;  %v2106_v44 = vld [vmem:[%s2675_s14 + $0x322] sm:$0xff] }
  0x27   : > { %v1222_v34 = vadd.f32 %v2768_v54, %v1121_v47  ;;  %v932_v35 = vadd.f32 %v900_v32, %v831_v24  ;;  %v582_v36 = vmul.f32 %v2667_v5, %v2138_v23  ;;  %v933_v53 = vadd.f32 %v901_v33, %v832_v28  ;;  %v2238_v6 = vld [vmem:[%s2675_s14 + $0x440] sm:$0xff]  ;;  %v2239_v23 = vld [vmem:[%s2675_s14 + $0x448] sm:$0xff] }
  0x28   : > { %v1260_v40 = vadd.f32 %v2849_v17, %v1221_v18  ;;  %v512_v26 = vadd.f32 %v480_v29, %v379_v48  ;;  %v513_v41 = vadd.f32 %v481_v30, %v380_v27  ;;  %v684_v54 = vmul.f32 %v2680_v7, %v2170_v49  ;;  %v2870_v47 = vld [vmem:[%s2675_s14 + $0x584] sm:$0xff]  ;;  %v2875_v18 = vld [vmem:[%s2675_s14 + $0x58c] sm:$0xff] }
  0x29   : > { %v1261_v60 = vadd.f32 %v2849_v17, %v1222_v34  ;;  %v1035_v2 = vadd.f32 %v1003_v46, %v932_v35  ;;  %v685_v32 = vmul.f32 %v2680_v7, %v2171_v31  ;;  %v1036_v42 = vadd.f32 %v1004_v52, %v933_v53  ;;  %3821 = vst [vmem:[#allocation9_spill] sm:$0xff] %v2870_v47  ;;  %v2879_v49 = vld [vmem:[%s2675_s14 + $0x58a] sm:$0xff]  ;;  %v2882_v31 = vld [vmem:[%s2675_s14 + $0x592] sm:$0xff] }
  0x2a   : > { %v1292_v15 = vmax.f32 %v1260_v40, 0.0  ;;  %v613_v22 = vadd.f32 %v581_v25, %v512_v26  ;;  %v614_v33 = vadd.f32 %v582_v36, %v513_v41  ;;  %v785_v46 = vmul.f32 %v2685_v8, %v2204_v56  ;;  %3822 = vst [vmem:[#allocation10_spill] sm:$0xff] %v2875_v18  ;;  %3823 = vst [vmem:[#allocation11_spill] sm:$0xff] %v2879_v49  ;;  %v2885_v34 = vld [vmem:[%s2675_s14 + $0x590] sm:$0xff]  ;;  %v2891_v36 = vld [vmem:[%s2675_s14 + $0x598] sm:$0xff] }
  0x2b   : > { %v1293_v24 = vmax.f32 %v1261_v60, 0.0  ;;  %v1136_v48 = vadd.f32 %v1104_v61, %v1035_v2  ;;  %v786_v27 = vmul.f32 %v2685_v8, %v2205_v59  ;;  %v1137_v28 = vadd.f32 %v1105_v1, %v1036_v42  ;;  %3824 = vst [vmem:[#allocation12_spill] sm:$0xff] %v2882_v31  ;;  %3825 = vst [vmem:[#allocation13_spill] sm:$0xff] %v2885_v34  ;;  %v2896_v56 = vld [vmem:[%s2675_s14 + $0x4a4] sm:$0xff] }
  0x2c   : > { %v716_v29 = vadd.f32 %v684_v54, %v613_v22  ;;  %v717_v52 = vadd.f32 %v685_v32, %v614_v33  ;;  %v886_v30 = vmul.f32 %v2690_v9, %v2238_v6  ;;  %v887_v25 = vmul.f32 %v2690_v9, %v2239_v23  ;;  %3826 = vst [vmem:[#allocation14_spill] sm:$0xff] %v2891_v36  ;;  %v2902_v59 = vld [vmem:[%s2675_s14 + $0x4aa] sm:$0xff]  ;;  %v2913_v32 = vld [vmem:[%s2675_s14 + $0x4b2] sm:$0xff] }
  0x2d   : > { %v1324_v61 = vpack.c.bf16 %v1293_v24, %v1292_v15  ;;  %v1237_v35 = vadd.f32 %v1205_v10, %v1136_v48  ;;  %v989_v1 = vmul.f32 %v2698_v13, %v2870_v47  ;;  %v1238_v40 = vadd.f32 %v1206_v16, %v1137_v28  ;;  %v2899_v10 = vld [vmem:[%s2675_s14 + $0x4ac] sm:$0xff]  ;;  %v2922_v23 = vld [vmem:[%s2675_s14 + $0x4b8] sm:$0xff] }
  0x2e   : > { %v817_v53 = vadd.f32 %v785_v46, %v716_v29  ;;  %v818_v26 = vadd.f32 %v786_v27, %v717_v52  ;;  %v990_v41 = vmul.f32 %v2698_v13, %v2875_v18  ;;  %v1090_v16 = vmul.f32 %v2709_v20, %v2879_v49  ;;  %v2919_v33 = vld [vmem:[%s2675_s14 + $0x4b0] sm:$0xff] }
  0x2f   : > { %2489 = vmatprep.mubr.msk.bf16.mxu0 %vm1404_vm0, %v1324_v61  ;;  %v1276_v60 = vadd.f32 %v2849_v17, %v1237_v35  ;;  %v1091_v2 = vmul.f32 %v2709_v20, %v2882_v31  ;;  %v1191_v54 = vmul.f32 %v2757_v50, %v2885_v34  ;;  %v1277_v6 = vadd.f32 %v2849_v17, %v1238_v40  ;;  %v2925_v24 = vld [vmem:[%s2675_s14 + $0x5f4] sm:$0xff]  ;;  %v2936_v35 = vld [vmem:[%s2675_s14 + $0x5fc] sm:$0xff]  ;;  %v2289_v34 = vld [vmem:[%s2675_s14 + $0x74c] sm:$0xff] }
  0x30   : > { %v918_v15 = vadd.f32 %v886_v30, %v817_v53  ;;  %v919_v42 = vadd.f32 %v887_v25, %v818_v26  ;;  %v1192_v22 = vmul.f32 %v2757_v50, %v2891_v36  ;;  %v395_v46 = vmul.f32 %v2657_v3, %v2896_v56  ;;  %v2939_v25 = vld [vmem:[%s2675_s14 + $0x5fa] sm:$0xff]  ;;  %v2942_v40 = vld [vmem:[%s2675_s14 + $0x602] sm:$0xff] }
  0x31   : > { %v1308_v48 = vmax.f32 %v1276_v60, 0.0  ;;  %v396_v27 = vmul.f32 %v2657_v3, %v2899_v10  ;;  %v496_v28 = vmul.f32 %v2662_v4, %v2902_v59  ;;  %v1309_v29 = vmax.f32 %v1277_v6, 0.0  ;;  %3827 = vst [vmem:[#allocation15_spill] sm:$0xff] %v2942_v40  ;;  %v2951_v60 = vld [vmem:[%s2675_s14 + $0x600] sm:$0xff] }
  0x32   : > { %v1021_v52 = vadd.f32 %v989_v1, %v918_v15  ;;  %v1022_v30 = vadd.f32 %v990_v41, %v919_v42  ;;  %v497_v61 = vmul.f32 %v2662_v4, %v2913_v32  ;;  %v597_v26 = vmul.f32 %v2667_v5, %v2919_v33  ;;  %3828 = vst [vmem:[#allocation16_spill] sm:$0xff] %v2951_v60 }
  0x33   : > { %v528_v53 = vadd.f32 %v496_v28, %v395_v46  ;;  %v598_v1 = vmul.f32 %v2667_v5, %v2922_v23  ;;  %v700_v41 = vmul.f32 %v2680_v7, %v2925_v24  ;;  %v1332_v6 = vpack.c.bf16 %v1309_v29, %v1308_v48  ;;  %v2954_v46 = vld [vmem:[%s2675_s14 + $0x608] sm:$0xff] }
  0x34   : > { %v1122_v15 = vadd.f32 %v1090_v16, %v1021_v52  ;;  %v1123_v42 = vadd.f32 %v1091_v2, %v1022_v30  ;;  %v529_v36 = vadd.f32 %v497_v61, %v396_v27  ;;  %3829 = vst [vmem:[#allocation17_spill] sm:$0xff] %v2954_v46  ;;  %v2288_v28 = vld [vmem:[%s2675_s14 + $0x744] sm:$0xff]  ;;  %v701_v49 = vmul.f32 %v2680_v7, %v2936_v35  ;;  %v2323_v30 = vld [vmem:[%s2675_s14 + $0x752] sm:$0xff] }
  0x35   : > { %v629_v31 = vadd.f32 %v597_v26, %v528_v53  ;;  %v801_v18 = vmul.f32 %v2685_v8, %v2939_v25  ;;  %v802_v16 = vmul.f32 %v2685_v8, %v2942_v40  ;;  %v2322_v48 = vld [vmem:[%s2675_s14 + $0x74a] sm:$0xff]  ;;  %2505 = vmatprep.mubr.msk.bf16.mxu1 %vm1404_vm0, %v1332_v6  ;;  %v902_v52 = vmul.f32 %v2690_v9, %v2951_v60  ;;  %v2357_v53 = vld [vmem:[%s2675_s14 + $0x758] sm:$0xff] }
  0x36   : > { %v1223_v2 = vadd.f32 %v1191_v54, %v1122_v15  ;;  %v1224_v27 = vadd.f32 %v1192_v22, %v1123_v42  ;;  %v630_v29 = vadd.f32 %v598_v1, %v529_v36  ;;  %v2356_v61 = vld [vmem:[%s2675_s14 + $0x750] sm:$0xff]  ;;  %v903_v47 = vmul.f32 %v2690_v9, %v2954_v46  ;;  %v2073_v22 = vld [vmem:[%s2675_s14 + $0x31c] sm:$0xff] }
  0x37   : > { %v732_v26 = vadd.f32 %v700_v41, %v629_v31  ;;  %v1005_v6 = vmul.f32 %v2698_v13, %v2288_v28  ;;  %v1006_v54 = vmul.f32 %v2698_v13, %v2289_v34  ;;  %v1106_v42 = vmul.f32 %v2709_v20, %v2322_v48  ;;  %v2107_v31 = vld [vmem:[%s2675_s14 + $0x32a] sm:$0xff] }
  0x38   : > { %v1262_v36 = vadd.f32 %v2849_v17, %v1223_v2  ;;  %v1263_v1 = vadd.f32 %v2849_v17, %v1224_v27  ;;  %v733_v15 = vadd.f32 %v701_v49, %v630_v29  ;;  %v1107_v43 = vmul.f32 %v2709_v20, %v2323_v30  ;;  %v2140_v34 = vld [vmem:[%s2675_s14 + $0x330] sm:$0xff] }
  0x39   : > { %v833_v41 = vadd.f32 %v801_v18, %v732_v26  ;;  %v1207_v39 = vmul.f32 %v2757_v50, %v2356_v61  ;;  %v1208_v28 = vmul.f32 %v2757_v50, %v2357_v53  ;;  %v381_v27 = vmul.f32 %v2657_v3, %v2073_v22  ;;  %v3011_v22 = vld [vmem:[%s2675_s14 + $0x4dc] sm:$0xff] }
  0x3a   : > { %v1294_v37 = vmax.f32 %v1262_v36, 0.0  ;;  %v1295_v46 = vmax.f32 %v1263_v1, 0.0  ;;  %v834_v2 = vadd.f32 %v802_v16, %v733_v15  ;;  %v382_v48 = vmul.f32 %v2657_v3, %v2074_v45  ;;  %v3019_v1 = vld [vmem:[%s2675_s14 + $0x4e2] sm:$0xff] }
  0x3b   : > { %v934_v49 = vadd.f32 %v902_v52, %v833_v41  ;;  %v482_v29 = vmul.f32 %v2662_v4, %v2106_v44  ;;  %v483_v18 = vmul.f32 %v2662_v4, %v2107_v31  ;;  %v583_v61 = vmul.f32 %v2667_v5, %v2139_v38 }
  0x3c   : > { %v1325_v26 = vpack.c.bf16 %v1295_v46, %v1294_v37  ;;  %v935_v30 = vadd.f32 %v903_v47, %v834_v2  ;;  %v584_v53 = vmul.f32 %v2667_v5, %v2140_v34  ;;  %v686_v16 = vmul.f32 %v2680_v7, %v2760_v51 }
  0x3d   : > { %v1037_v60 = vadd.f32 %v1005_v6, %v934_v49  ;;  %v514_v40 = vadd.f32 %v482_v29, %v381_v27  ;;  %v515_v36 = vadd.f32 %v483_v18, %v382_v48  ;;  %v687_v44 = vmul.f32 %v2680_v7, %v2771_v55  ;;  %v3047_v27 = vld [vmem:[%s2675_s14 + $0x62c] sm:$0xff]  ;;  %v3050_v49 = vld [vmem:[%s2675_s14 + $0x634] sm:$0xff] }
  0x3e   : > { %2490 = vmatmul.mubr.msk.bf16.vlgmr.msra.gmra.mrb[0].mxu0 %vm1404_vm0, %v1325_v26  ;;  %v1038_v45 = vadd.f32 %v1006_v54, %v935_v30  ;;  %v787_v37 = vmul.f32 %v2685_v8, %v2776_v57  ;;  %v788_v38 = vmul.f32 %v2685_v8, %v2779_v58  ;;  %v888_v51 = vmul.f32 %v2690_v9, %v2786_v62  ;;  %v3055_v30 = vld [vmem:[%s2675_s14 + $0x632] sm:$0xff] }
  0x3f   : > { %v1138_v47 = vadd.f32 %v1106_v42, %v1037_v60  ;;  %v615_v46 = vadd.f32 %v583_v61, %v514_v40  ;;  %v616_v52 = vadd.f32 %v584_v53, %v515_v36  ;;  %v889_v55 = vmul.f32 %v2690_v9, %v2789_v63  ;;  %v3022_v63 = vld [vmem:[%s2675_s14 + $0x4ea] sm:$0xff] }
  0x40   : > { %v1139_v6 = vadd.f32 %v1107_v43, %v1038_v45  ;;  %v991_v54 = vmul.f32 %v2698_v13, %v2792_v0  ;;  %v992_v57 = vmul.f32 %v2698_v13, %v2801_v11  ;;  %v1092_v62 = vmul.f32 %v2709_v20, %v2804_v12  ;;  %v3016_v43 = vld [vmem:[%s2675_s14 + $0x4e4] sm:$0xff]  ;;  %v3060_v45 = vld [vmem:[%s2675_s14 + $0x63a] sm:$0xff] }
  0x41   : > { %v1239_v58 = vadd.f32 %v1207_v39, %v1138_v47  ;;  %v718_v40 = vadd.f32 %v686_v16, %v615_v46  ;;  %v719_v60 = vadd.f32 %v687_v44, %v616_v52  ;;  %v1093_v11 = vmul.f32 %v2709_v20, %v2807_v14  ;;  %v3031_v42 = vld [vmem:[%s2675_s14 + $0x4e8] sm:$0xff]  ;;  %v3063_v44 = vld [vmem:[%s2675_s14 + $0x638] sm:$0xff]  ;;  %v3070_v52 = vld [vmem:[%s2675_s14 + $0x640] sm:$0xff] }
  0x42   : > { %v1240_v0 = vadd.f32 %v1208_v28, %v1139_v6  ;;  %v1193_v39 = vmul.f32 %v2757_v50, %v2814_v19  ;;  %v1194_v15 = vmul.f32 %v2757_v50, %v2817_v21  ;;  %v397_v34 = vmul.f32 %v2657_v3, %v3011_v22  ;;  %v3037_v28 = vld [vmem:[%s2675_s14 + $0x4f0] sm:$0xff] }
  0x43   : > { %v1278_v12 = vadd.f32 %v2849_v17, %v1239_v58  ;;  %v819_v31 = vadd.f32 %v787_v37, %v718_v40  ;;  %v820_v41 = vadd.f32 %v788_v38, %v719_v60  ;;  %v398_v19 = vmul.f32 %v2657_v3, %v3016_v43  ;;  %v2291_v40 = vld [vmem:[%s2675_s14 + $0x784] sm:$0xff] }
  0x44   : > { %v1279_v14 = vadd.f32 %v2849_v17, %v1240_v0  ;;  %v498_v21 = vmul.f32 %v2662_v4, %v3019_v1  ;;  %v499_v2 = vmul.f32 %v2662_v4, %v3022_v63  ;;  %v599_v26 = vmul.f32 %v2667_v5, %v3031_v42 }
  0x45   : > { %v1310_v48 = vmax.f32 %v1278_v12, 0.0  ;;  %v920_v29 = vadd.f32 %v888_v51, %v819_v31  ;;  %v921_v18 = vadd.f32 %v889_v55, %v820_v41  ;;  %v600_v16 = vmul.f32 %v2667_v5, %v3037_v28  ;;  %v2290_v51 = vld [vmem:[%s2675_s14 + $0x77c] sm:$0xff]  ;;  %v2325_v41 = vld [vmem:[%s2675_s14 + $0x78a] sm:$0xff] }
  0x46   : > { %v1311_v61 = vmax.f32 %v1279_v14, 0.0  ;;  %v530_v53 = vadd.f32 %v498_v21, %v397_v34  ;;  %v531_v36 = vadd.f32 %v499_v2, %v398_v19  ;;  %v702_v47 = vmul.f32 %v2680_v7, %v3047_v27  ;;  %v2358_v34 = vld [vmem:[%s2675_s14 + $0x788] sm:$0xff]  ;;  %v2359_v21 = vld [vmem:[%s2675_s14 + $0x790] sm:$0xff] }
  0x47   : > { %v1023_v37 = vadd.f32 %v991_v54, %v920_v29  ;;  %v1024_v38 = vadd.f32 %v992_v57, %v921_v18  ;;  %v703_v46 = vmul.f32 %v2680_v7, %v3050_v49  ;;  %v803_v54 = vmul.f32 %v2685_v8, %v3055_v30  ;;  %v2324_v57 = vld [vmem:[%s2675_s14 + $0x782] sm:$0xff]  ;;  %v2075_v2 = vld [vmem:[%s2675_s14 + $0x354] sm:$0xff] }
  0x48   : > { %v1333_v6 = vpack.c.bf16 %v1311_v61, %v1310_v48  ;;  %v631_v55 = vadd.f32 %v599_v26, %v530_v53  ;;  %v632_v58 = vadd.f32 %v600_v16, %v531_v36  ;;  %v804_v12 = vmul.f32 %v2685_v8, %v3060_v45  ;;  %v2076_v61 = vld [vmem:[%s2675_s14 + $0x35c] sm:$0xff] }
  0x49   : > { %v1124_v60 = vadd.f32 %v1092_v62, %v1023_v37  ;;  %v1125_v0 = vadd.f32 %v1093_v11, %v1024_v38  ;;  %v904_v31 = vmul.f32 %v2690_v9, %v3063_v44  ;;  %v905_v62 = vmul.f32 %v2690_v9, %v3070_v52  ;;  %v2108_v53 = vld [vmem:[%s2675_s14 + $0x35a] sm:$0xff] }
  0x4a   : > { %2506 = vmatmul.mubr.msk.bf16.vlgmr.msra.gmra.mrb[0].mxu1 %vm1404_vm0, %v1333_v6  ;;  %v734_v14 = vadd.f32 %v702_v47, %v631_v55  ;;  %v735_v19 = vadd.f32 %v703_v46, %v632_v58  ;;  %v1007_v11 = vmul.f32 %v2698_v13, %v2290_v51  ;;  %v1008_v18 = vmul.f32 %v2698_v13, %v2291_v40  ;;  %v2109_v47 = vld [vmem:[%s2675_s14 + $0x362] sm:$0xff] }
  0x4b   : > { %v1225_v48 = vadd.f32 %v1193_v39, %v1124_v60  ;;  %v1226_v29 = vadd.f32 %v1194_v15, %v1125_v0  ;;  %v1108_v26 = vmul.f32 %v2709_v20, %v2324_v57  ;;  %v1109_v37 = vmul.f32 %v2709_v20, %v2325_v41  ;;  %v2141_v46 = vld [vmem:[%s2675_s14 + $0x360] sm:$0xff]  ;;  %v2142_v55 = vld [vmem:[%s2675_s14 + $0x368] sm:$0xff] }
  0x4c   : > { %v835_v36 = vadd.f32 %v803_v54, %v734_v14  ;;  %v836_v16 = vadd.f32 %v804_v12, %v735_v19  ;;  %v1209_v38 = vmul.f32 %v2757_v50, %v2358_v34  ;;  %v1210_v15 = vmul.f32 %v2757_v50, %v2359_v21 }
  0x4d   : > { %v1264_v51 = vadd.f32 %v2849_v17, %v1225_v48  ;;  %v1265_v39 = vadd.f32 %v2849_v17, %v1226_v29  ;;  %v383_v6 = vmul.f32 %v2657_v3, %v2075_v2  ;;  %v384_v54 = vmul.f32 %v2657_v3, %v2076_v61 }
  0x4e   : > { %v936_v58 = vadd.f32 %v904_v31, %v835_v36  ;;  %v937_v40 = vadd.f32 %v905_v62, %v836_v16  ;;  %v484_v57 = vmul.f32 %v2662_v4, %v2108_v53  ;;  %v485_v12 = vmul.f32 %v2662_v4, %v2109_v47  ;;  %v3123_v47 = vld [vmem:[%s2675_s14 + $0x514] sm:$0xff] }
  0x4f   : > { %v1296_v60 = vmax.f32 %v1264_v51, 0.0  ;;  %v1297_v0 = vmax.f32 %v1265_v39, 0.0  ;;  %v585_v41 = vmul.f32 %v2667_v5, %v2141_v46  ;;  %v586_v21 = vmul.f32 %v2667_v5, %v2142_v55  ;;  %v3126_v46 = vld [vmem:[%s2675_s14 + $0x51c] sm:$0xff]  ;;  %v3831_v55 = vld [vmem:[#allocation16_spill] sm:$0xff] }
  0x50   : > { %v1039_v34 = vadd.f32 %v1007_v11, %v936_v58  ;;  %v1040_v14 = vadd.f32 %v1008_v18, %v937_v40  ;;  %v516_v19 = vadd.f32 %v484_v57, %v383_v6  ;;  %v517_v2 = vadd.f32 %v485_v12, %v384_v54  ;;  %v3135_v39 = vld [vmem:[%s2675_s14 + $0x51a] sm:$0xff]  ;;  %v3142_v40 = vld [vmem:[%s2675_s14 + $0x522] sm:$0xff]  ;;  %v3832_v57 = vld [vmem:[#allocation17_spill] sm:$0xff] }
  0x51   : > { %v1326_v48 = vpack.c.bf16 %v1297_v0, %v1296_v60  ;;  %v688_v31 = vmul.f32 %v2680_v7, %v2896_v56  ;;  %v689_v62 = vmul.f32 %v2680_v7, %v2899_v10  ;;  %v789_v11 = vmul.f32 %v2685_v8, %v2902_v59 }
  0x52   : > { %v1140_v29 = vadd.f32 %v1108_v26, %v1039_v34  ;;  %v1141_v61 = vadd.f32 %v1109_v37, %v1040_v14  ;;  %v617_v53 = vadd.f32 %v585_v41, %v516_v19  ;;  %v618_v18 = vadd.f32 %v586_v21, %v517_v2  ;;  %v3157_v41 = vld [vmem:[%s2675_s14 + $0x664] sm:$0xff] }
  0x53   : > { %2493 = vmatprep.mubr.msk.bf16.mxu0 %vm1404_vm0, %v1326_v48  ;;  %v790_v36 = vmul.f32 %v2685_v8, %v2913_v32  ;;  %v890_v56 = vmul.f32 %v2690_v9, %v2919_v33  ;;  %v891_v16 = vmul.f32 %v2690_v9, %v2922_v23  ;;  %v993_v59 = vmul.f32 %v2698_v13, %v2925_v24  ;;  %v3162_v48 = vld [vmem:[%s2675_s14 + $0x66c] sm:$0xff] }
  0x54   : > { %v1241_v10 = vadd.f32 %v1209_v38, %v1140_v29  ;;  %v1242_v26 = vadd.f32 %v1210_v15, %v1141_v61  ;;  %v720_v37 = vadd.f32 %v688_v31, %v617_v53  ;;  %v721_v32 = vadd.f32 %v689_v62, %v618_v18  ;;  %v3830_v38 = vld [vmem:[#allocation15_spill] sm:$0xff]  ;;  %v3165_v2 = vld [vmem:[%s2675_s14 + $0x66a] sm:$0xff]  ;;  %v3174_v53 = vld [vmem:[%s2675_s14 + $0x672] sm:$0xff] }
  0x55   : > { %v994_v33 = vmul.f32 %v2698_v13, %v2936_v35  ;;  %v1094_v23 = vmul.f32 %v2709_v20, %v2939_v25  ;;  %v1095_v51 = vmul.f32 %v2709_v20, %v3830_v38  ;;  %v1195_v58 = vmul.f32 %v2757_v50, %v3831_v55  ;;  %v3145_v35 = vld [vmem:[%s2675_s14 + $0x520] sm:$0xff]  ;;  %v3148_v25 = vld [vmem:[%s2675_s14 + $0x528] sm:$0xff]  ;;  %3833 = vst [vmem:[#allocation15_spill] sm:$0xff] %v3174_v53 }
  0x56   : > { %v1280_v15 = vadd.f32 %v2849_v17, %v1241_v10  ;;  %v1281_v24 = vadd.f32 %v2849_v17, %v1242_v26  ;;  %v821_v6 = vadd.f32 %v789_v11, %v720_v37  ;;  %v822_v54 = vadd.f32 %v790_v36, %v721_v32  ;;  %v3177_v11 = vld [vmem:[%s2675_s14 + $0x670] sm:$0xff]  ;;  %v3182_v10 = vld [vmem:[%s2675_s14 + $0x678] sm:$0xff] }
  0x57   : > { %v1196_v60 = vmul.f32 %v2757_v50, %v3832_v57  ;;  %v399_v0 = vmul.f32 %v2657_v3, %v3123_v47  ;;  %v400_v12 = vmul.f32 %v2657_v3, %v3126_v46  ;;  %v500_v21 = vmul.f32 %v2662_v4, %v3135_v39  ;;  %3834 = vst [vmem:[#allocation16_spill] sm:$0xff] %v3177_v11  ;;  %v2292_v26 = vld [vmem:[%s2675_s14 + $0x7b4] sm:$0xff]  ;;  %v2327_v57 = vld [vmem:[%s2675_s14 + $0x7c2] sm:$0xff] }
  0x58   : > { %v1312_v34 = vmax.f32 %v1280_v15, 0.0  ;;  %v1313_v14 = vmax.f32 %v1281_v24, 0.0  ;;  %v922_v19 = vadd.f32 %v890_v56, %v821_v6  ;;  %v923_v31 = vadd.f32 %v891_v16, %v822_v54  ;;  %3835 = vst [vmem:[#allocation17_spill] sm:$0xff] %v3182_v10  ;;  %v2326_v24 = vld [vmem:[%s2675_s14 + $0x7ba] sm:$0xff] }
  0x59   : > { %v501_v62 = vmul.f32 %v2662_v4, %v3142_v40  ;;  %v601_v29 = vmul.f32 %v2667_v5, %v3145_v35  ;;  %v602_v61 = vmul.f32 %v2667_v5, %v3148_v25  ;;  %v532_v56 = vadd.f32 %v500_v21, %v399_v0  ;;  %v2360_v0 = vld [vmem:[%s2675_s14 + $0x7c0] sm:$0xff]  ;;  %v2077_v21 = vld [vmem:[%s2675_s14 + $0x38c] sm:$0xff] }
  0x5a   : > { %v1334_v18 = vpack.c.bf16 %v1313_v14, %v1312_v34  ;;  %v1025_v36 = vadd.f32 %v993_v59, %v922_v19  ;;  %v704_v16 = vmul.f32 %v2680_v7, %v3157_v41  ;;  %v1026_v37 = vadd.f32 %v994_v33, %v923_v31  ;;  %v2293_v59 = vld [vmem:[%s2675_s14 + $0x7bc] sm:$0xff]  ;;  %v2361_v19 = vld [vmem:[%s2675_s14 + $0x7c8] sm:$0xff] }
  0x5b   : > { %v533_v32 = vadd.f32 %v501_v62, %v400_v12  ;;  %v705_v38 = vmul.f32 %v2680_v7, %v3162_v48  ;;  %v805_v15 = vmul.f32 %v2685_v8, %v3165_v2  ;;  %v633_v55 = vadd.f32 %v601_v29, %v532_v56  ;;  %v2110_v56 = vld [vmem:[%s2675_s14 + $0x392] sm:$0xff] }
  0x5c   : > { %2509 = vmatprep.mubr.msk.bf16.mxu1 %vm1404_vm0, %v1334_v18  ;;  %v1126_v6 = vadd.f32 %v1094_v23, %v1025_v36  ;;  %v806_v33 = vmul.f32 %v2685_v8, %v3174_v53  ;;  %v906_v54 = vmul.f32 %v2690_v9, %v3177_v11  ;;  %v1127_v12 = vadd.f32 %v1095_v51, %v1026_v37  ;;  %v2078_v36 = vld [vmem:[%s2675_s14 + $0x394] sm:$0xff] }
  0x5d   : > { %v634_v34 = vadd.f32 %v602_v61, %v533_v32  ;;  %v907_v14 = vmul.f32 %v2690_v9, %v3182_v10  ;;  %v1009_v23 = vmul.f32 %v2698_v13, %v2292_v26  ;;  %v736_v62 = vadd.f32 %v704_v16, %v633_v55  ;;  %v2111_v10 = vld [vmem:[%s2675_s14 + $0x39a] sm:$0xff] }
  0x5e   : > { %v1227_v31 = vadd.f32 %v1195_v58, %v1126_v6  ;;  %v1010_v29 = vmul.f32 %v2698_v13, %v2293_v59  ;;  %v1110_v18 = vmul.f32 %v2709_v20, %v2326_v24  ;;  %v1228_v51 = vadd.f32 %v1196_v60, %v1127_v12  ;;  %v2143_v11 = vld [vmem:[%s2675_s14 + $0x398] sm:$0xff]  ;;  %v2144_v59 = vld [vmem:[%s2675_s14 + $0x3a0] sm:$0xff] }
  0x5f   : > { %v737_v37 = vadd.f32 %v705_v38, %v634_v34  ;;  %v1111_v61 = vmul.f32 %v2709_v20, %v2327_v57  ;;  %v1211_v32 = vmul.f32 %v2757_v50, %v2360_v0  ;;  %v837_v53 = vadd.f32 %v805_v15, %v736_v62 }
  0x60   : > { %v1266_v26 = vadd.f32 %v2849_v17, %v1227_v31  ;;  %v1212_v58 = vmul.f32 %v2757_v50, %v2361_v19  ;;  %v385_v16 = vmul.f32 %v2657_v3, %v2077_v21  ;;  %v1267_v24 = vadd.f32 %v2849_v17, %v1228_v51 }
  0x61   : > { %v838_v6 = vadd.f32 %v806_v33, %v737_v37  ;;  %v386_v60 = vmul.f32 %v2657_v3, %v2078_v36  ;;  %v486_v38 = vmul.f32 %v2662_v4, %v2110_v56  ;;  %v938_v57 = vadd.f32 %v906_v54, %v837_v53 }
  0x62   : > { %v1298_v55 = vmax.f32 %v1266_v26, 0.0  ;;  %v487_v0 = vmul.f32 %v2662_v4, %v2111_v10  ;;  %v587_v12 = vmul.f32 %v2667_v5, %v2143_v11  ;;  %v1299_v34 = vmax.f32 %v1267_v24, 0.0  ;;  %v3255_v24 = vld [vmem:[%s2675_s14 + $0x69c] sm:$0xff] }
  0x63   : > { %v939_v15 = vadd.f32 %v907_v14, %v838_v6  ;;  %v518_v31 = vadd.f32 %v486_v38, %v385_v16  ;;  %v588_v19 = vmul.f32 %v2667_v5, %v2144_v59  ;;  %v1041_v21 = vadd.f32 %v1009_v23, %v938_v57  ;;  %v3838_v59 = vld [vmem:[#allocation5_spill] sm:$0xff]  ;;  %v3258_v6 = vld [vmem:[%s2675_s14 + $0x6a4] sm:$0xff]  ;;  %v3839_v38 = vld [vmem:[#allocation6_spill] sm:$0xff] }
  0x64   : > { %v519_v62 = vadd.f32 %v487_v0, %v386_v60  ;;  %v690_v33 = vmul.f32 %v2680_v7, %v3011_v22  ;;  %v691_v36 = vmul.f32 %v2680_v7, %v3016_v43  ;;  %v1327_v56 = vpack.c.bf16 %v1299_v34, %v1298_v55  ;;  %v3840_v57 = vld [vmem:[#allocation7_spill] sm:$0xff] }
  0x65   : > { %v1042_v51 = vadd.f32 %v1010_v29, %v939_v15  ;;  %v619_v53 = vadd.f32 %v587_v12, %v518_v31  ;;  %v791_v10 = vmul.f32 %v2685_v8, %v3019_v1  ;;  %v1142_v11 = vadd.f32 %v1110_v18, %v1041_v21  ;;  %v3265_v12 = vld [vmem:[%s2675_s14 + $0x6a2] sm:$0xff]  ;;  %v3270_v21 = vld [vmem:[%s2675_s14 + $0x6aa] sm:$0xff] }
  0x66   : > { %v620_v54 = vadd.f32 %v588_v19, %v519_v62  ;;  %v792_v14 = vmul.f32 %v2685_v8, %v3022_v63  ;;  %v892_v23 = vmul.f32 %v2690_v9, %v3031_v42  ;;  %2494 = vmatmul.mubr.msk.bf16.gmra.mrb[4].mxu0 %vm1404_vm0, %v1327_v56  ;;  %v893_v43 = vmul.f32 %v2690_v9, %v3037_v28  ;;  %v3841_v31 = vld [vmem:[#allocation8_spill] sm:$0xff] }
  0x67   : > { %v1143_v22 = vadd.f32 %v1111_v61, %v1042_v51  ;;  %v722_v37 = vadd.f32 %v690_v33, %v619_v53  ;;  %v995_v29 = vmul.f32 %v2698_v13, %v3047_v27  ;;  %v1243_v26 = vadd.f32 %v1211_v32, %v1142_v11  ;;  %v3273_v62 = vld [vmem:[%s2675_s14 + $0x6a8] sm:$0xff]  ;;  %v3280_v51 = vld [vmem:[%s2675_s14 + $0x6b0] sm:$0xff] }
  0x68   : > { %v723_v1 = vadd.f32 %v691_v36, %v620_v54  ;;  %v996_v63 = vmul.f32 %v2698_v13, %v3050_v49  ;;  %v1096_v42 = vmul.f32 %v2709_v20, %v3055_v30  ;;  %v1097_v61 = vmul.f32 %v2709_v20, %v3060_v45  ;;  %v3836_v13 = vld [vmem:[#allocation3_spill] sm:$0xff]  ;;  %v3837_v20 = vld [vmem:[#allocation4_spill] sm:$0xff] }
  0x69   : > { %v1244_v18 = vadd.f32 %v1212_v58, %v1143_v22  ;;  %v823_v16 = vadd.f32 %v791_v10, %v722_v37  ;;  %v1197_v9 = vmul.f32 %v2757_v50, %v3063_v44  ;;  %v1282_v28 = vadd.f32 %v2849_v17, %v1243_v26  ;;  %v2294_v53 = vld [vmem:[%s2675_s14 + $0x7ec] sm:$0xff]  ;;  %v2329_v26 = vld [vmem:[%s2675_s14 + $0x7fa] sm:$0xff] }
  0x6a   : > { %v824_v27 = vadd.f32 %v792_v14, %v723_v1  ;;  %v1198_v32 = vmul.f32 %v2757_v50, %v3070_v52  ;;  %v401_v49 = vmul.f32 %v3836_v13, %v2657_v3  ;;  %v402_v45 = vmul.f32 %v3837_v20, %v2657_v3  ;;  %v2295_v14 = vld [vmem:[%s2675_s14 + $0x7f4] sm:$0xff]  ;;  %v2080_v20 = vld [vmem:[%s2675_s14 + $0x3cc] sm:$0xff] }
  0x6b   : > { %v1283_v30 = vadd.f32 %v2849_v17, %v1244_v18  ;;  %v924_v58 = vadd.f32 %v892_v23, %v823_v16  ;;  %v502_v44 = vmul.f32 %v3838_v59, %v2662_v4  ;;  %v1314_v52 = vmax.f32 %v1282_v28, 0.0  ;;  %v2328_v23 = vld [vmem:[%s2675_s14 + $0x7f2] sm:$0xff]  ;;  %v3309_v16 = vld [vmem:[%s3792_s1 + $0x8] ss:$0 sm:$0xff]  ;;  %v2363_v28 = vld [vmem:[%s2675_s14 + $0x800] sm:$0xff] }
  0x6c   : > { %v925_v60 = vadd.f32 %v893_v43, %v824_v27  ;;  %v503_v55 = vmul.f32 %v3839_v38, %v2662_v4  ;;  %v603_v0 = vmul.f32 %v3840_v57, %v2667_v5  ;;  %v604_v19 = vmul.f32 %v3841_v31, %v2667_v5  ;;  %v2362_v1 = vld [vmem:[%s2675_s14 + $0x7f8] sm:$0xff]  ;;  %v2079_v27 = vld [vmem:[%s2675_s14 + $0x3c4] sm:$0xff]  ;;  %v2145_v38 = vld [vmem:[%s2675_s14 + $0x3d0] sm:$0xff] }
  0x6d   : > { %v1315_v3 = vmax.f32 %v1283_v30, 0.0  ;;  %v1027_v34 = vadd.f32 %v995_v29, %v924_v58  ;;  %v534_v15 = vadd.f32 %v502_v44, %v401_v49  ;;  %v706_v4 = vmul.f32 %v2680_v7, %v3255_v24  ;;  %v3297_v29 = vld [vmem:[%s3792_s1 + $0x6] ss:$0 sm:$0xff] }
  0x6e   : > { %v1028_v33 = vadd.f32 %v996_v63, %v925_v60  ;;  %v535_v36 = vadd.f32 %v503_v55, %v402_v45  ;;  %v707_v56 = vmul.f32 %v2680_v7, %v3258_v6  ;;  %v807_v54 = vmul.f32 %v2685_v8, %v3265_v12  ;;  %v3290_v7 = vld [vmem:[%s3792_s1 + $0x5] ss:$0 sm:$0xff]  ;;  %v2112_v45 = vld [vmem:[%s2675_s14 + $0x3ca] sm:$0xff]  ;;  %v2113_v60 = vld [vmem:[%s2675_s14 + $0x3d2] sm:$0xff] }
  0x6f   : > { %v1335_v10 = vpack.c.bf16 %v1315_v3, %v1314_v52  ;;  %v1128_v11 = vadd.f32 %v1096_v42, %v1027_v34  ;;  %v635_v5 = vadd.f32 %v603_v0, %v534_v15  ;;  %v808_v43 = vmul.f32 %v3290_v7, %v3270_v21  ;;  %v3333_v3 = vld [vmem:[%s3792_s1] ss:$0 sm:$0xff]  ;;  %v2146_v15 = vld [vmem:[%s2675_s14 + $0x3d8] sm:$0xff] }
  0x70   : > { %v1129_v22 = vadd.f32 %v1097_v61, %v1028_v33  ;;  %v636_v37 = vadd.f32 %v604_v19, %v535_v36  ;;  %v908_v8 = vmul.f32 %v3297_v29, %v3273_v62  ;;  %v909_v18 = vmul.f32 %v3297_v29, %v3280_v51  ;;  %v3341_v36 = vld [vmem:[%s3792_s1 + $0x1] ss:$0 sm:$0xff] }
  0x71   : > { %2510 = vmatmul.mubr.msk.bf16.gmra.mrb[4].mxu1 %vm1404_vm0, %v1335_v10  ;;  %v1229_v63 = vadd.f32 %v1197_v9, %v1128_v11  ;;  %v738_v42 = vadd.f32 %v706_v4, %v635_v5  ;;  %v1011_v61 = vmul.f32 %v3309_v16, %v2294_v53  ;;  %v1012_v30 = vmul.f32 %v3309_v16, %v2295_v14  ;;  %v3318_v9 = vld [vmem:[%s3792_s1 + $0x9] ss:$0 sm:$0xff]  ;;  %v3348_v10 = vld [vmem:[%s3792_s1 + $0x2] ss:$0 sm:$0xff] }
  0x72   : > { %v1230_v13 = vadd.f32 %v1198_v32, %v1129_v22  ;;  %v739_v49 = vadd.f32 %v707_v56, %v636_v37  ;;  %v1112_v58 = vmul.f32 %v3318_v9, %v2328_v23  ;;  %v1113_v52 = vmul.f32 %v3318_v9, %v2329_v26  ;;  %v3355_v23 = vld [vmem:[%s3792_s1 + $0x4] ss:$0 sm:$0xff] }
  0x73   : > { %v1268_v59 = vadd.f32 %v2849_v17, %v1229_v63  ;;  %v839_v44 = vadd.f32 %v807_v54, %v738_v42  ;;  %v1213_v32 = vmul.f32 %v2757_v50, %v2362_v1  ;;  %v1214_v0 = vmul.f32 %v2757_v50, %v2363_v28 }
  0x74   : > { %v1269_v55 = vadd.f32 %v2849_v17, %v1230_v13  ;;  %v840_v57 = vadd.f32 %v808_v43, %v739_v49  ;;  %v387_v34 = vmul.f32 %v3333_v3, %v2079_v27  ;;  %v388_v33 = vmul.f32 %v3333_v3, %v2080_v20  ;;  %v3842_v20 = vld [vmem:[#allocation15_spill] sm:$0xff] }
  0x75   : > { %v1300_v31 = vmax.f32 %v1268_v59, 0.0  ;;  %v940_v19 = vadd.f32 %v908_v8, %v839_v44  ;;  %v488_v4 = vmul.f32 %v3341_v36, %v2112_v45  ;;  %v489_v53 = vmul.f32 %v3341_v36, %v2113_v60  ;;  %v3843_v59 = vld [vmem:[#allocation16_spill] sm:$0xff]  ;;  %v3844_v44 = vld [vmem:[#allocation17_spill] sm:$0xff] }
  0x76   : > { %v1301_v50 = vmax.f32 %v1269_v55, 0.0  ;;  %v941_v56 = vadd.f32 %v909_v18, %v840_v57  ;;  %v589_v11 = vmul.f32 %v3348_v10, %v2145_v38  ;;  %v590_v14 = vmul.f32 %v3348_v10, %v2146_v15  ;;  %v3845_v60 = vld [vmem:[#allocation9_spill] sm:$0xff]  ;;  %v3846_v55 = vld [vmem:[#allocation10_spill] sm:$0xff] }
  0x77   : > { %v1043_v5 = vadd.f32 %v1011_v61, %v940_v19  ;;  %v520_v54 = vadd.f32 %v488_v4, %v387_v34  ;;  %v692_v22 = vmul.f32 %v3355_v23, %v3123_v47  ;;  %v521_v8 = vadd.f32 %v489_v53, %v388_v33  ;;  %v3848_v33 = vld [vmem:[#allocation12_spill] sm:$0xff]  ;;  %v3401_v4 = vld [vmem:[%s2675_s14 + $0x6dc] sm:$0xff] }
  0x78   : > { %v1328_v37 = vpack.c.bf16 %v1301_v50, %v1300_v31  ;;  %v1044_v43 = vadd.f32 %v1012_v30, %v941_v56  ;;  %v693_v26 = vmul.f32 %v3355_v23, %v3126_v46  ;;  %v793_v42 = vmul.f32 %v3290_v7, %v3135_v39  ;;  %v3847_v31 = vld [vmem:[#allocation11_spill] sm:$0xff] }
  0x79   : > { %v1144_v1 = vadd.f32 %v1112_v58, %v1043_v5  ;;  %v621_v63 = vadd.f32 %v589_v11, %v520_v54  ;;  %v794_v18 = vmul.f32 %v3290_v7, %v3142_v40  ;;  %v622_v28 = vadd.f32 %v590_v14, %v521_v8  ;;  %v3404_v50 = vld [vmem:[%s2675_s14 + $0x6da] sm:$0xff]  ;;  %v3849_v11 = vld [vmem:[#allocation13_spill] sm:$0xff] }
  0x7a   : > { %2497 = vmatprep.mubr.msk.bf16.mxu0 %vm1404_vm0, %v1328_v37  ;;  %v1145_v61 = vadd.f32 %v1113_v52, %v1044_v43  ;;  %v894_v47 = vmul.f32 %v3297_v29, %v3145_v35  ;;  %v895_v27 = vmul.f32 %v3297_v29, %v3148_v25  ;;  %v997_v49 = vmul.f32 %v3309_v16, %v3157_v41  ;;  %v3382_v41 = vld [vmem:[%s3792_s1 + $0xa] ss:$0 sm:$0xff]  ;;  %v3850_v54 = vld [vmem:[#allocation14_spill] sm:$0xff] }
  0x7b   : > { %v1245_v13 = vadd.f32 %v1213_v32, %v1144_v1  ;;  %v724_v46 = vadd.f32 %v692_v22, %v621_v63  ;;  %v998_v39 = vmul.f32 %v3309_v16, %v3162_v48  ;;  %v725_v30 = vadd.f32 %v693_v26, %v622_v28  ;;  %v3411_v22 = vld [vmem:[%s2675_s14 + $0x6e2] sm:$0xff] }
  0x7c   : > { %v1246_v40 = vadd.f32 %v1214_v0, %v1145_v61  ;;  %v1098_v58 = vmul.f32 %v3318_v9, %v3165_v2  ;;  %v1099_v35 = vmul.f32 %v3318_v9, %v3842_v20  ;;  %v1199_v48 = vmul.f32 %v3382_v41, %v3843_v59  ;;  %v3394_v0 = vld [vmem:[%s2675_s14 + $0x6d4] sm:$0xff]  ;;  %v3416_v1 = vld [vmem:[%s2675_s14 + $0x6e0] sm:$0xff]  ;;  %v3419_v63 = vld [vmem:[%s2675_s14 + $0x6e8] sm:$0xff] }
  0x7d   : > { %v1284_v25 = vadd.f32 %v2849_v17, %v1245_v13  ;;  %v825_v45 = vadd.f32 %v793_v42, %v724_v46  ;;  %v1200_v52 = vmul.f32 %v3382_v41, %v3844_v44  ;;  %v826_v32 = vadd.f32 %v794_v18, %v725_v30  ;;  %v2296_v42 = vld [vmem:[%s2675_s14 + $0x824] sm:$0xff]  ;;  %v2331_v20 = vld [vmem:[%s2675_s14 + $0x832] sm:$0xff] }
  0x7e   : > { %v1285_v2 = vadd.f32 %v2849_v17, %v1246_v40  ;;  %v403_v38 = vmul.f32 %v3333_v3, %v3845_v60  ;;  %v404_v57 = vmul.f32 %v3333_v3, %v3846_v55  ;;  %v504_v19 = vmul.f32 %v3341_v36, %v3847_v31  ;;  %v2330_v30 = vld [vmem:[%s2675_s14 + $0x82a] sm:$0xff]  ;;  %v2365_v44 = vld [vmem:[%s2675_s14 + $0x838] sm:$0xff] }
  0x7f   : > { %v1316_v34 = vmax.f32 %v1284_v25, 0.0  ;;  %v926_v15 = vadd.f32 %v894_v47, %v825_v45  ;;  %v505_v17 = vmul.f32 %v3341_v36, %v3848_v33  ;;  %v927_v53 = vadd.f32 %v895_v27, %v826_v32  ;;  %v2297_v27 = vld [vmem:[%s2675_s14 + $0x82c] sm:$0xff]  ;;  %v2081_v55 = vld [vmem:[%s2675_s14 + $0x3fc] sm:$0xff] }
  0x80   : > { %v1317_v56 = vmax.f32 %v1285_v2, 0.0  ;;  %v605_v5 = vmul.f32 %v3348_v10, %v3849_v11  ;;  %v606_v14 = vmul.f32 %v3348_v10, %v3850_v54  ;;  %v536_v43 = vadd.f32 %v504_v19, %v403_v38  ;;  %v2115_v33 = vld [vmem:[%s2675_s14 + $0x40a] sm:$0xff] }
  0x81   : > { %v1029_v37 = vadd.f32 %v997_v49, %v926_v15  ;;  %v537_v8 = vadd.f32 %v505_v17, %v404_v57  ;;  %v708_v26 = vmul.f32 %v3355_v23, %v3394_v0  ;;  %v1030_v61 = vadd.f32 %v998_v39, %v927_v53  ;;  %v2364_v39 = vld [vmem:[%s2675_s14 + $0x830] sm:$0xff]  ;;  %v2082_v57 = vld [vmem:[%s2675_s14 + $0x404] sm:$0xff] }
  0x82   : > { %v1336_v18 = vpack.c.bf16 %v1317_v56, %v1316_v34  ;;  %v709_v28 = vmul.f32 %v3355_v23, %v3401_v4  ;;  %v809_v47 = vmul.f32 %v3290_v7, %v3404_v50  ;;  %v637_v46 = vadd.f32 %v605_v5, %v536_v43  ;;  %v2147_v11 = vld [vmem:[%s2675_s14 + $0x408] sm:$0xff]  ;;  %v2148_v5 = vld [vmem:[%s2675_s14 + $0x410] sm:$0xff] }
  0x83   : > { %v1130_v13 = vadd.f32 %v1098_v58, %v1029_v37  ;;  %v638_v49 = vadd.f32 %v606_v14, %v537_v8  ;;  %v810_v40 = vmul.f32 %v3290_v7, %v3411_v22  ;;  %v1131_v25 = vadd.f32 %v1099_v35, %v1030_v61  ;;  %v2114_v35 = vld [vmem:[%s2675_s14 + $0x402] sm:$0xff]  ;;  %v2180_v8 = vld [vmem:[%s2675_s14 + $0x54c] sm:$0xff] }
  0x84   : > { %2513 = vmatprep.mubr.msk.bf16.mxu1 %vm1404_vm0, %v1336_v18  ;;  %v910_v45 = vmul.f32 %v3297_v29, %v3416_v1  ;;  %v911_v58 = vmul.f32 %v3297_v29, %v3419_v63  ;;  %v1013_v59 = vmul.f32 %v3309_v16, %v2296_v42  ;;  %v740_v32 = vadd.f32 %v708_v26, %v637_v46 }
  0x85   : > { %v1231_v2 = vadd.f32 %v1199_v48, %v1130_v13  ;;  %v741_v60 = vadd.f32 %v709_v28, %v638_v49  ;;  %v1014_v38 = vmul.f32 %v3309_v16, %v2297_v27  ;;  %v1232_v34 = vadd.f32 %v1200_v52, %v1131_v25  ;;  %v3450_v48 = vld [vmem:[%s3793_s2] ss:$0 sm:$0xff]  ;;  %v2181_v28 = vld [vmem:[%s2675_s14 + $0x554] sm:$0xff] }
  0x86   : > { %v1114_v15 = vmul.f32 %v3318_v9, %v2330_v30  ;;  %v1115_v31 = vmul.f32 %v3318_v9, %v2331_v20  ;;  %v1215_v19 = vmul.f32 %v3382_v41, %v2364_v39  ;;  %v841_v56 = vadd.f32 %v809_v47, %v740_v32  ;;  %v2214_v47 = vld [vmem:[%s2675_s14 + $0x552] sm:$0xff] }
  0x87   : > { %v1270_v17 = vadd.f32 %v3450_v48, %v1231_v2  ;;  %v842_v53 = vadd.f32 %v810_v40, %v741_v60  ;;  %v1216_v52 = vmul.f32 %v3382_v41, %v2365_v44  ;;  %v1271_v54 = vadd.f32 %v3450_v48, %v1232_v34  ;;  %v2215_v40 = vld [vmem:[%s2675_s14 + $0x55a] sm:$0xff] }
  0x88   : > { %v389_v14 = vmul.f32 %v3333_v3, %v2081_v55  ;;  %v390_v37 = vmul.f32 %v3333_v3, %v2082_v57  ;;  %v490_v43 = vmul.f32 %v3341_v36, %v2114_v35  ;;  %v942_v42 = vadd.f32 %v910_v45, %v841_v56  ;;  %v2248_v44 = vld [vmem:[%s2675_s14 + $0x558] sm:$0xff]  ;;  %v2249_v2 = vld [vmem:[%s2675_s14 + $0x560] sm:$0xff] }
  0x89   : > { %v1302_v26 = vmax.f32 %v1270_v17, 0.0  ;;  %v943_v18 = vadd.f32 %v911_v58, %v842_v53  ;;  %v491_v61 = vmul.f32 %v3341_v36, %v2115_v33  ;;  %v1303_v27 = vmax.f32 %v1271_v54, 0.0  ;;  %v2130_v54 = vld [vmem:[%s2675_s14 + $0x5c2] sm:$0xff] }
  0x8a   : > { %v522_v13 = vadd.f32 %v490_v43, %v389_v14  ;;  %v591_v46 = vmul.f32 %v3348_v10, %v2147_v11  ;;  %v592_v49 = vmul.f32 %v3348_v10, %v2148_v5  ;;  %v1045_v30 = vadd.f32 %v1013_v59, %v942_v42  ;;  %v2097_v11 = vld [vmem:[%s2675_s14 + $0x5bc] sm:$0xff]  ;;  %v2098_v5 = vld [vmem:[%s2675_s14 + $0x5c4] sm:$0xff] }
  0x8b   : > { %v1046_v20 = vadd.f32 %v1014_v38, %v943_v18  ;;  %v523_v39 = vadd.f32 %v491_v61, %v390_v37  ;;  %v694_v25 = vmul.f32 %v3355_v23, %v2180_v8  ;;  %v1329_v45 = vpack.c.bf16 %v1303_v27, %v1302_v26  ;;  %v2163_v42 = vld [vmem:[%s2675_s14 + $0x5c8] sm:$0xff]  ;;  %v2164_v18 = vld [vmem:[%s2675_s14 + $0x5d0] sm:$0xff] }
  0x8c   : > { %v623_v58 = vadd.f32 %v591_v46, %v522_v13  ;;  %v695_v32 = vmul.f32 %v3355_v23, %v2181_v28  ;;  %v795_v60 = vmul.f32 %v3290_v7, %v2214_v47  ;;  %v1146_v55 = vadd.f32 %v1114_v15, %v1045_v30  ;;  %v2196_v28 = vld [vmem:[%s2675_s14 + $0x70c] sm:$0xff] }
  0x8d   : > { %v1147_v57 = vadd.f32 %v1115_v31, %v1046_v20  ;;  %v624_v35 = vadd.f32 %v592_v49, %v523_v39  ;;  %v796_v59 = vmul.f32 %v3290_v7, %v2215_v40  ;;  %2498 = vmatmul.mubr.msk.bf16.gmra.mrb[8].mxu0 %vm1404_vm0, %v1329_v45  ;;  %v896_v34 = vmul.f32 %v3297_v29, %v2248_v44  ;;  %v2230_v49 = vld [vmem:[%s2675_s14 + $0x712] sm:$0xff] }
  0x8e   : > { %v726_v38 = vadd.f32 %v694_v25, %v623_v58  ;;  %v897_v33 = vmul.f32 %v3297_v29, %v2249_v2  ;;  %v999_v17 = vmul.f32 %v3309_v16, %v3255_v24  ;;  %v1247_v56 = vadd.f32 %v1215_v19, %v1146_v55  ;;  %v2131_v19 = vld [vmem:[%s2675_s14 + $0x5ca] sm:$0xff]  ;;  %v2231_v25 = vld [vmem:[%s2675_s14 + $0x71a] sm:$0xff] }
  0x8f   : > { %v1248_v53 = vadd.f32 %v1216_v52, %v1147_v57  ;;  %v727_v15 = vadd.f32 %v695_v32, %v624_v35  ;;  %v1000_v31 = vmul.f32 %v3309_v16, %v3258_v6  ;;  %v1100_v37 = vmul.f32 %v3318_v9, %v3265_v12  ;;  %v2264_v44 = vld [vmem:[%s2675_s14 + $0x718] sm:$0xff] }
  0x90   : > { %v827_v14 = vadd.f32 %v795_v60, %v726_v38  ;;  %v1101_v43 = vmul.f32 %v3318_v9, %v3270_v21  ;;  %v1201_v24 = vmul.f32 %v3382_v41, %v3273_v62  ;;  %v1286_v52 = vadd.f32 %v3450_v48, %v1247_v56  ;;  %v2265_v60 = vld [vmem:[%s2675_s14 + $0x720] sm:$0xff] }
  0x91   : > { %v1287_v6 = vadd.f32 %v3450_v48, %v1248_v53  ;;  %v828_v8 = vadd.f32 %v796_v59, %v727_v15  ;;  %v1202_v26 = vmul.f32 %v3382_v41, %v3280_v51  ;;  %v405_v21 = vmul.f32 %v3333_v3, %v2097_v11  ;;  %v2197_v51 = vld [vmem:[%s2675_s14 + $0x714] sm:$0xff]  ;;  %v2298_v55 = vld [vmem:[%s2675_s14 + $0x85c] sm:$0xff]  ;;  %v2366_v11 = vld [vmem:[%s2675_s14 + $0x868] sm:$0xff] }
  0x92   : > { %v928_v12 = vadd.f32 %v896_v34, %v827_v14  ;;  %v406_v62 = vmul.f32 %v3333_v3, %v2098_v5  ;;  %v506_v61 = vmul.f32 %v3341_v36, %v2130_v54  ;;  %v1318_v47 = vmax.f32 %v1286_v52, 0.0  ;;  %v2299_v34 = vld [vmem:[%s2675_s14 + $0x864] sm:$0xff]  ;;  %v2083_v52 = vld [vmem:[%s2675_s14 + $0x434] sm:$0xff] }
  0x93   : > { %v1319_v27 = vmax.f32 %v1287_v6, 0.0  ;;  %v929_v13 = vadd.f32 %v897_v33, %v828_v8  ;;  %v507_v46 = vmul.f32 %v3341_v36, %v2131_v19  ;;  %v607_v20 = vmul.f32 %v3348_v10, %v2163_v42  ;;  %v2332_v33 = vld [vmem:[%s2675_s14 + $0x862] sm:$0xff]  ;;  %v2367_v19 = vld [vmem:[%s2675_s14 + $0x870] sm:$0xff] }
  0x94   : > { %v1031_v40 = vadd.f32 %v999_v17, %v928_v12  ;;  %v538_v30 = vadd.f32 %v506_v61, %v405_v21  ;;  %v608_v39 = vmul.f32 %v3348_v10, %v2164_v18  ;;  %v710_v32 = vmul.f32 %v3355_v23, %v2196_v28  ;;  %v2084_v18 = vld [vmem:[%s2675_s14 + $0x43c] sm:$0xff] }
  0x95   : > { %v1337_v2 = vpack.c.bf16 %v1319_v27, %v1318_v47  ;;  %v1032_v45 = vadd.f32 %v1000_v31, %v929_v13  ;;  %v539_v58 = vadd.f32 %v507_v46, %v406_v62  ;;  %v711_v59 = vmul.f32 %v3355_v23, %v2197_v51  ;;  %v2333_v31 = vld [vmem:[%s2675_s14 + $0x86a] sm:$0xff]  ;;  %v2116_v12 = vld [vmem:[%s2675_s14 + $0x43a] sm:$0xff]  ;;  %v2117_v28 = vld [vmem:[%s2675_s14 + $0x442] sm:$0xff] }
  0x96   : > { %v1132_v57 = vadd.f32 %v1100_v37, %v1031_v40  ;;  %v639_v35 = vadd.f32 %v607_v20, %v538_v30  ;;  %v811_v38 = vmul.f32 %v3290_v7, %v2230_v49  ;;  %v812_v53 = vmul.f32 %v3290_v7, %v2231_v25  ;;  %v2149_v47 = vld [vmem:[%s2675_s14 + $0x440] sm:$0xff]  ;;  %v2150_v51 = vld [vmem:[%s2675_s14 + $0x448] sm:$0xff] }
  0x97   : > { %2514 = vmatmul.mubr.msk.bf16.gmra.mrb[8].mxu1 %vm1404_vm0, %v1337_v2  ;;  %v1133_v17 = vadd.f32 %v1101_v43, %v1032_v45  ;;  %v640_v56 = vadd.f32 %v608_v39, %v539_v58  ;;  %v912_v15 = vmul.f32 %v3297_v29, %v2264_v44  ;;  %v913_v14 = vmul.f32 %v3297_v29, %v2265_v60  ;;  %v2182_v49 = vld [vmem:[%s2675_s14 + $0x584] sm:$0xff]  ;;  %v2183_v25 = vld [vmem:[%s2675_s14 + $0x58c] sm:$0xff] }
  0x98   : > { %v1233_v5 = vadd.f32 %v1201_v24, %v1132_v57  ;;  %v742_v54 = vadd.f32 %v710_v32, %v639_v35  ;;  %v1015_v37 = vmul.f32 %v3309_v16, %v2298_v55  ;;  %v1016_v8 = vmul.f32 %v3309_v16, %v2299_v34  ;;  %v2216_v32 = vld [vmem:[%s2675_s14 + $0x58a] sm:$0xff]  ;;  %v2217_v60 = vld [vmem:[%s2675_s14 + $0x592] sm:$0xff] }
  0x99   : > { %v1234_v43 = vadd.f32 %v1202_v26, %v1133_v17  ;;  %v743_v6 = vadd.f32 %v711_v59, %v640_v56  ;;  %v1116_v42 = vmul.f32 %v3318_v9, %v2332_v33  ;;  %v1117_v62 = vmul.f32 %v3318_v9, %v2333_v31  ;;  %v2251_v34 = vld [vmem:[%s2675_s14 + $0x598] sm:$0xff] }
  0x9a   : > { %v1272_v24 = vadd.f32 %v3450_v48, %v1233_v5  ;;  %v843_v21 = vadd.f32 %v811_v38, %v742_v54  ;;  %v1217_v61 = vmul.f32 %v3382_v41, %v2366_v11  ;;  %v1218_v13 = vmul.f32 %v3382_v41, %v2367_v19  ;;  %v2250_v38 = vld [vmem:[%s2675_s14 + $0x590] sm:$0xff] }
  0x9b   : > { %v1273_v26 = vadd.f32 %v3450_v48, %v1234_v43  ;;  %v844_v27 = vadd.f32 %v812_v53, %v743_v6  ;;  %v391_v46 = vmul.f32 %v3333_v3, %v2083_v52  ;;  %v392_v20 = vmul.f32 %v3333_v3, %v2084_v18  ;;  %v2100_v18 = vld [vmem:[%s2675_s14 + $0x5fc] sm:$0xff] }
  0x9c   : > { %v1304_v40 = vmax.f32 %v1272_v24, 0.0  ;;  %v944_v30 = vadd.f32 %v912_v15, %v843_v21  ;;  %v492_v39 = vmul.f32 %v3341_v36, %v2116_v12  ;;  %v493_v45 = vmul.f32 %v3341_v36, %v2117_v28  ;;  %v2133_v28 = vld [vmem:[%s2675_s14 + $0x602] sm:$0xff] }
  0x9d   : > { %v1305_v44 = vmax.f32 %v1273_v26, 0.0  ;;  %v945_v2 = vadd.f32 %v913_v14, %v844_v27  ;;  %v593_v58 = vmul.f32 %v3348_v10, %v2149_v47  ;;  %v594_v35 = vmul.f32 %v3348_v10, %v2150_v51  ;;  %v2165_v27 = vld [vmem:[%s2675_s14 + $0x600] sm:$0xff] }
  0x9e   : > { %v1047_v55 = vadd.f32 %v1015_v37, %v944_v30  ;;  %v524_v57 = vadd.f32 %v492_v39, %v391_v46  ;;  %v696_v59 = vmul.f32 %v3355_v23, %v2182_v49  ;;  %v525_v56 = vadd.f32 %v493_v45, %v392_v20  ;;  %v2198_v49 = vld [vmem:[%s2675_s14 + $0x744] sm:$0xff]  ;;  %v2199_v39 = vld [vmem:[%s2675_s14 + $0x74c] sm:$0xff] }
  0x9f   : > { %v1330_v33 = vpack.c.bf16 %v1305_v44, %v1304_v40  ;;  %v1048_v17 = vadd.f32 %v1016_v8, %v945_v2  ;;  %v697_v53 = vmul.f32 %v3355_v23, %v2183_v25  ;;  %v797_v11 = vmul.f32 %v3290_v7, %v2216_v32 }
  0xa0   : > { %v1148_v15 = vadd.f32 %v1116_v42, %v1047_v55  ;;  %v625_v31 = vadd.f32 %v593_v58, %v524_v57  ;;  %v798_v5 = vmul.f32 %v3290_v7, %v2217_v60  ;;  %v626_v14 = vadd.f32 %v594_v35, %v525_v56  ;;  %v2099_v42 = vld [vmem:[%s2675_s14 + $0x5f4] sm:$0xff] }
  0xa1   : > { %2501 = vmatprep.mubr.msk.bf16.mxu0 %vm1404_vm0, %v1330_v33  ;;  %v1149_v54 = vadd.f32 %v1117_v62, %v1048_v17  ;;  %v898_v37 = vmul.f32 %v3297_v29, %v2250_v38  ;;  %v899_v19 = vmul.f32 %v3297_v29, %v2251_v34  ;;  %v1001_v6 = vmul.f32 %v3309_v16, %v3394_v0  ;;  %v2233_v58 = vld [vmem:[%s2675_s14 + $0x752] sm:$0xff] }
  0xa2   : > { %v1249_v52 = vadd.f32 %v1217_v61, %v1148_v15  ;;  %v728_v43 = vadd.f32 %v696_v59, %v625_v31  ;;  %v1002_v8 = vmul.f32 %v3309_v16, %v3401_v4  ;;  %v729_v24 = vadd.f32 %v697_v53, %v626_v14  ;;  %v2132_v61 = vld [vmem:[%s2675_s14 + $0x5fa] sm:$0xff]  ;;  %v2266_v57 = vld [vmem:[%s2675_s14 + $0x750] sm:$0xff] }
  0xa3   : > { %v1250_v12 = vadd.f32 %v1218_v13, %v1149_v54  ;;  %v1102_v21 = vmul.f32 %v3318_v9, %v3404_v50  ;;  %v1103_v62 = vmul.f32 %v3318_v9, %v3411_v22  ;;  %v1203_v4 = vmul.f32 %v3382_v41, %v3416_v1  ;;  %v2166_v13 = vld [vmem:[%s2675_s14 + $0x608] sm:$0xff]  ;;  %v2267_v34 = vld [vmem:[%s2675_s14 + $0x758] sm:$0xff] }
  0xa4   : > { %v1288_v47 = vadd.f32 %v3450_v48, %v1249_v52  ;;  %v829_v0 = vadd.f32 %v797_v11, %v728_v43  ;;  %v1204_v26 = vmul.f32 %v3382_v41, %v3419_v63  ;;  %v830_v46 = vadd.f32 %v798_v5, %v729_v24  ;;  %v2232_v63 = vld [vmem:[%s2675_s14 + $0x74a] sm:$0xff]  ;;  %v2300_v53 = vld [vmem:[%s2675_s14 + $0x894] sm:$0xff]  ;;  %v2301_v11 = vld [vmem:[%s2675_s14 + $0x89c] sm:$0xff] }
  0xa5   : > { %v1289_v50 = vadd.f32 %v3450_v48, %v1250_v12  ;;  %v407_v22 = vmul.f32 %v3333_v3, %v2099_v42  ;;  %v408_v51 = vmul.f32 %v3333_v3, %v2100_v18  ;;  %v508_v20 = vmul.f32 %v3341_v36, %v2132_v61  ;;  %v2335_v43 = vld [vmem:[%s2675_s14 + $0x8a2] sm:$0xff] }
  0xa6   : > { %v1320_v40 = vmax.f32 %v1288_v47, 0.0  ;;  %v930_v30 = vadd.f32 %v898_v37, %v829_v0  ;;  %v509_v1 = vmul.f32 %v3341_v36, %v2133_v28  ;;  %v931_v44 = vadd.f32 %v899_v19, %v830_v46  ;;  %v2334_v37 = vld [vmem:[%s2675_s14 + $0x89a] sm:$0xff] }
  0xa7   : > { %v1321_v25 = vmax.f32 %v1289_v50, 0.0  ;;  %v609_v2 = vmul.f32 %v3348_v10, %v2165_v27  ;;  %v610_v45 = vmul.f32 %v3348_v10, %v2166_v13  ;;  %v540_v32 = vadd.f32 %v508_v20, %v407_v22  ;;  %v2368_v24 = vld [vmem:[%s2675_s14 + $0x8a0] sm:$0xff] }
  0xa8   : > { %v1033_v3 = vadd.f32 %v1001_v6, %v930_v30  ;;  %v541_v60 = vadd.f32 %v509_v1, %v408_v51  ;;  %v712_v55 = vmul.f32 %v3355_v23, %v2198_v49  ;;  %v1034_v36 = vadd.f32 %v1002_v8, %v931_v44 }
  0xa9   : > { %v1338_v35 = vpack.c.bf16 %v1321_v25, %v1320_v40  ;;  %v713_v59 = vmul.f32 %v3355_v23, %v2199_v39  ;;  %v813_v38 = vmul.f32 %v3290_v7, %v2232_v63  ;;  %v641_v10 = vadd.f32 %v609_v2, %v540_v32 }
  0xaa   : > { %v1134_v33 = vadd.f32 %v1102_v21, %v1033_v3  ;;  %v642_v17 = vadd.f32 %v610_v45, %v541_v60  ;;  %v814_v56 = vmul.f32 %v3290_v7, %v2233_v58  ;;  %v1135_v15 = vadd.f32 %v1103_v62, %v1034_v36  ;;  %v2369_v21 = vld [vmem:[%s2675_s14 + $0x8a8] sm:$0xff]  ;;  %v3650_v60 = vld [vmem:[%s3795_s4] ss:$0 sm:$0xff] }
  0xab   : > { %2517 = vmatprep.mubr.msk.bf16.mxu1 %vm1404_vm0, %v1338_v35  ;;  %v914_v31 = vmul.f32 %v3297_v29, %v2266_v57  ;;  %v744_v5 = vadd.f32 %v712_v55, %v641_v10  ;;  %v915_v14 = vmul.f32 %v3297_v29, %v2267_v34  ;;  %v1017_v52 = vmul.f32 %v3309_v16, %v2300_v53 }
  0xac   : > { %v1235_v23 = vadd.f32 %v1203_v4, %v1134_v33  ;;  %v745_v54 = vadd.f32 %v713_v59, %v642_v17  ;;  %v1236_v19 = vadd.f32 %v1204_v26, %v1135_v15  ;;  %v1018_v42 = vmul.f32 %v3309_v16, %v2301_v11 }
  0xad   : > { %v845_v6 = vadd.f32 %v813_v38, %v744_v5  ;;  %v1118_v12 = vmul.f32 %v3318_v9, %v2334_v37  ;;  %v1119_v28 = vmul.f32 %v3318_v9, %v2335_v43  ;;  %v2593_v47 = vmov 0.0  }
  0xae   : > { %v1274_v7 = vadd.f32 %v3450_v48, %v1235_v23  ;;  %v846_v8 = vadd.f32 %v814_v56, %v745_v54  ;;  %v1275_v18 = vadd.f32 %v3450_v48, %v1236_v19  ;;  %309 = vst.msk [vmem:[#allocation2 + $0x10] sm:$0xff] %vm306_vm1, %v2593_v47  ;;  %307 = vst.msk [vmem:[#allocation2] sm:$0xff] %vm306_vm1, %v2593_v47 }
  0xaf   : > { %v946_v29 = vadd.f32 %v914_v31, %v845_v6  ;;  %308 = vst.msk [vmem:[#allocation2 + $0x8] sm:$0xff] %vm306_vm1, %v2593_v47  ;;  %310 = vst.msk [vmem:[#allocation2 + $0x18] sm:$0xff] %vm306_vm1, %v2593_v47  ;;  %v1219_v4 = vmul.f32 %v3382_v41, %v2368_v24  ;;  %v1220_v26 = vmul.f32 %v3382_v41, %v2369_v21 }
  0xb0   : > { %v1306_v62 = vmax.f32 %v1274_v7, 0.0  ;;  %v947_v61 = vadd.f32 %v915_v14, %v846_v8  ;;  %311 = vst.msk [vmem:[#allocation2 + $0x20] sm:$0xff] %vm306_vm1, %v2593_v47  ;;  %312 = vst.msk [vmem:[#allocation2 + $0x28] sm:$0xff] %vm306_vm1, %v2593_v47  ;;  %v1307_v16 = vmax.f32 %v1275_v18, 0.0 }
  0xb1   : > { %313 = vst.msk [vmem:[#allocation2 + $0x30] sm:$0xff] %vm306_vm1, %v2593_v47  ;;  %314 = vst.msk [vmem:[#allocation2 + $0x38] sm:$0xff] %vm306_vm1, %v2593_v47  ;;  %v1049_v9 = vadd.f32 %v1017_v52, %v946_v29 }
  0xb2   : > { %315 = vst.msk [vmem:[#allocation2 + $0x40] sm:$0xff] %vm306_vm1, %v2593_v47  ;;  %316 = vst.msk [vmem:[#allocation2 + $0x48] sm:$0xff] %vm306_vm1, %v2593_v47  ;;  %v1050_v0 = vadd.f32 %v1018_v42, %v947_v61  ;;  %v1331_v27 = vpack.c.bf16 %v1307_v16, %v1306_v62 }
  0xb3   : > { %317 = vst.msk [vmem:[#allocation2 + $0x50] sm:$0xff] %vm306_vm1, %v2593_v47  ;;  %318 = vst.msk [vmem:[#allocation2 + $0x58] sm:$0xff] %vm306_vm1, %v2593_v47  ;;  %v1150_v13 = vadd.f32 %v1118_v12, %v1049_v9 }
  0xb4   : > { %319 = vst.msk [vmem:[#allocation2 + $0x60] sm:$0xff] %vm306_vm1, %v2593_v47  ;;  %320 = vst.msk [vmem:[#allocation2 + $0x68] sm:$0xff] %vm306_vm1, %v2593_v47  ;;  %v1151_v50 = vadd.f32 %v1119_v28, %v1050_v0  ;;  %2502 = vmatmul.mubr.msk.bf16.gmra.mrb[12].mxu0 %vm1404_vm0, %v1331_v27 }
  0xb5   : > { %321 = vst.msk [vmem:[#allocation2 + $0x70] sm:$0xff] %vm306_vm1, %v2593_v47  ;;  %322 = vst.msk [vmem:[#allocation2 + $0x78] sm:$0xff] %vm306_vm1, %v2593_v47  ;;  %v1251_v46 = vadd.f32 %v1219_v4, %v1150_v13  ;;  %v1342_v1 = vld [vmem:[#allocation2 + $0x10] sm:$0xff]  ;;  %v1340_v39 = vld [vmem:[#allocation2] sm:$0xff] }
  0xb6   : > { %323 = vst.msk [vmem:[#allocation2 + $0x80] sm:$0xff] %vm306_vm1, %v2593_v47  ;;  %324 = vst.msk [vmem:[#allocation2 + $0x88] sm:$0xff] %vm306_vm1, %v2593_v47  ;;  %v1252_v22 = vadd.f32 %v1220_v26, %v1151_v50  ;;  %v1343_v41 = vld [vmem:[#allocation2 + $0x18] sm:$0xff]  ;;  %v1341_v2 = vld [vmem:[#allocation2 + $0x8] sm:$0xff] }
  0xb7   : > { %325 = vst.msk [vmem:[#allocation2 + $0x90] sm:$0xff] %vm306_vm1, %v2593_v47  ;;  %326 = vst.msk [vmem:[#allocation2 + $0x98] sm:$0xff] %vm306_vm1, %v2593_v47  ;;  %v1290_v51 = vadd.f32 %v3450_v48, %v1251_v46 }
  0xb8   : > { %327 = vst.msk [vmem:[#allocation2 + $0xa0] sm:$0xff] %vm306_vm1, %v2593_v47  ;;  %328 = vst.msk [vmem:[#allocation2 + $0xa8] sm:$0xff] %vm306_vm1, %v2593_v47  ;;  %v1291_v49 = vadd.f32 %v3450_v48, %v1252_v22  ;;  %v1346_v46 = vld [vmem:[#allocation2 + $0x30] sm:$0xff]  ;;  %v1344_v22 = vld [vmem:[#allocation2 + $0x20] sm:$0xff] }
  0xb9   : > { %329 = vst.msk [vmem:[#allocation2 + $0xb0] sm:$0xff] %vm306_vm1, %v2593_v47  ;;  %330 = vst.msk [vmem:[#allocation2 + $0xb8] sm:$0xff] %vm306_vm1, %v2593_v47  ;;  %v1322_v40 = vmax.f32 %v1290_v51, 0.0 }
  0xba   : > { %331 = vst.msk [vmem:[#allocation2 + $0xc0] sm:$0xff] %vm306_vm1, %v2593_v47  ;;  %332 = vst.msk [vmem:[#allocation2 + $0xc8] sm:$0xff] %vm306_vm1, %v2593_v47  ;;  %v1323_v30 = vmax.f32 %v1291_v49, 0.0  ;;  %v1347_v49 = vld [vmem:[#allocation2 + $0x38] sm:$0xff] }
  0xbb   : > { %333 = vst.msk [vmem:[#allocation2 + $0xd0] sm:$0xff] %vm306_vm1, %v2593_v47  ;;  %334 = vst.msk [vmem:[#allocation2 + $0xd8] sm:$0xff] %vm306_vm1, %v2593_v47 }
  0xbc   : > { %335 = vst.msk [vmem:[#allocation2 + $0xe0] sm:$0xff] %vm306_vm1, %v2593_v47  ;;  %336 = vst.msk [vmem:[#allocation2 + $0xe8] sm:$0xff] %vm306_vm1, %v2593_v47  ;;  %v1339_v20 = vpack.c.bf16 %v1323_v30, %v1322_v40 }
  0xbd   : > { %337 = vst.msk [vmem:[#allocation2 + $0xf0] sm:$0xff] %vm306_vm1, %v2593_v47  ;;  %338 = vst.msk [vmem:[#allocation2 + $0xf8] sm:$0xff] %vm306_vm1, %v2593_v47  ;;  %v1356_v59 = vld [vmem:[#allocation2 + $0x80] sm:$0xff]  ;;  %v1357_v11 = vld [vmem:[#allocation2 + $0x88] sm:$0xff] }
  0xbe   : > { %2518 = vmatmul.mubr.msk.bf16.gmra.mrb[12].mxu1 %vm1404_vm0, %v1339_v20  ;;  %v1358_v57 = vld [vmem:[#allocation2 + $0x90] sm:$0xff]  ;;  %v1359_v10 = vld [vmem:[#allocation2 + $0x98] sm:$0xff]  ;;  %v1345_v20 = vld [vmem:[#allocation2 + $0x28] sm:$0xff] }
 0x111   : > { %v2491_v63 = vpop.f32.mrb[0].mxu0 }
 0x112   : > { %v1616_v25 = vadd.f32 %v2491_v63, %v1342_v1  ;;  %v1487_v44 = vpop.f32.mrb[1].mxu0 }
 0x113   : > { %v1614_v45 = vadd.f32 %v1487_v44, %v1340_v39  ;;  %v2492_v58 = vpop.f32.mrb[2].mxu0  ;;  %v1362_v44 = vld [vmem:[#allocation2 + $0xb0] sm:$0xff] }
 0x114   : > { %1649 = vst.msk [vmem:[#allocation2 + $0x10] sm:$0xff] %vm306_vm1, %v1616_v25  ;;  %v1617_v3 = vadd.f32 %v2492_v58, %v1343_v41  ;;  %v1490_v32 = vpop.f32.mrb[3].mxu0 }
 0x115   : > { %1647 = vst.msk [vmem:[#allocation2] sm:$0xff] %vm306_vm1, %v1614_v45  ;;  %v1615_v48 = vadd.f32 %v1490_v32, %v1341_v2  ;;  %v1360_v2 = vld [vmem:[#allocation2 + $0xa0] sm:$0xff] }
 0x116   : > { %1650 = vst.msk [vmem:[#allocation2 + $0x18] sm:$0xff] %vm306_vm1, %v1617_v3  ;;  %v1363_v3 = vld [vmem:[#allocation2 + $0xb8] sm:$0xff] }
 0x117   : > { %1648 = vst.msk [vmem:[#allocation2 + $0x8] sm:$0xff] %vm306_vm1, %v1615_v48 }
 0x11b   : > { %v1684_v55 = vld [vmem:[#allocation2 + $0x10] sm:$0xff] }
 0x11c   : > { %v1723_v35 = vadd.f32 %v3650_v60, %v1684_v55  ;;  %v1682_v36 = vld [vmem:[#allocation2] sm:$0xff] }
 0x11d   : > { %v2507_v38 = vpop.f32.mrb[0].mxu1  ;;  %v1721_v34 = vadd.f32 %v3650_v60, %v1682_v36  ;;  %v1685_v33 = vld [vmem:[#allocation2 + $0x18] sm:$0xff] }
 0x11e   : > { %v1755_v17 = vmax.f32 %v1723_v35, 0.0  ;;  %v1632_v56 = vadd.f32 %v2507_v38, %v1358_v57  ;;  %v1551_v53 = vpop.f32.mrb[1].mxu1  ;;  %v1724_v15 = vadd.f32 %v3650_v60, %v1685_v33  ;;  %v1683_v31 = vld [vmem:[#allocation2 + $0x8] sm:$0xff] }
 0x11f   : > { %v1753_v23 = vmax.f32 %v1721_v34, 0.0  ;;  %v1630_v5 = vadd.f32 %v1551_v53, %v1356_v59  ;;  %v2508_v54 = vpop.f32.mrb[2].mxu1  ;;  %v1722_v14 = vadd.f32 %v3650_v60, %v1683_v31  ;;  %v1361_v35 = vld [vmem:[#allocation2 + $0xa8] sm:$0xff] }
 0x120   : > { %v2431_v37 = vpack.c.bf16 %v1755_v17, %v1755_v17  ;;  %1665 = vst.msk [vmem:[#allocation2 + $0x90] sm:$0xff] %vm306_vm1, %v1632_v56  ;;  %v1756_v19 = vmax.f32 %v1724_v15, 0.0  ;;  %v1633_v52 = vadd.f32 %v2508_v54, %v1359_v10  ;;  %v1554_v43 = vpop.f32.mrb[3].mxu1 }
 0x121   : > { %v2429_v7 = vpack.c.bf16 %v1753_v23, %v1753_v23  ;;  %1663 = vst.msk [vmem:[#allocation2 + $0x80] sm:$0xff] %vm306_vm1, %v1630_v5  ;;  %v1754_v6 = vmax.f32 %v1722_v14, 0.0  ;;  %v1631_v8 = vadd.f32 %v1554_v43, %v1357_v11 }
 0x122   : > { %1916 = vst.msk [vmem:[%s3659_s18 + $0x8] sm:$0xf] %vm1913_vm2, %v2431_v37  ;;  %v2432_v42 = vpack.c.bf16 %v1756_v19, %v1756_v19 }
 0x123   : > { %1666 = vst.msk [vmem:[#allocation2 + $0x98] sm:$0xff] %vm306_vm1, %v1633_v52  ;;  %v2430_v18 = vpack.c.bf16 %v1754_v6, %v1754_v6  ;;  %1664 = vst.msk [vmem:[#allocation2 + $0x88] sm:$0xff] %vm306_vm1, %v1631_v8 }
 0x124   : > { %1914 = vst.msk [vmem:[%s3659_s18] sm:$0xf] %vm1913_vm2, %v2429_v7  ;;  %1917 = vst.msk [vmem:[%s3659_s18 + $0xc] sm:$0xf] %vm1913_vm2, %v2432_v42 }
 0x125   : > { %1915 = vst.msk [vmem:[%s3659_s18 + $0x4] sm:$0xf] %vm1913_vm2, %v2430_v18 }
 0x127   : > { %v1700_v12 = vld [vmem:[#allocation2 + $0x90] sm:$0xff] }
 0x128   : > { %v1739_v24 = vadd.f32 %v3650_v60, %v1700_v12  ;;  %v1698_v21 = vld [vmem:[#allocation2 + $0x80] sm:$0xff] }
 0x129   : > { %v1737_v62 = vadd.f32 %v3650_v60, %v1698_v21 }
 0x12a   : > { %v1701_v29 = vld [vmem:[#allocation2 + $0x98] sm:$0xff]  ;;  %v1771_v61 = vmax.f32 %v1739_v24, 0.0  ;;  %v1699_v47 = vld [vmem:[#allocation2 + $0x88] sm:$0xff] }
 0x12b   : > { %v1740_v28 = vadd.f32 %v3650_v60, %v1701_v29  ;;  %v1769_v16 = vmax.f32 %v1737_v62, 0.0  ;;  %v1738_v9 = vadd.f32 %v3650_v60, %v1699_v47 }
 0x12c   : > { %v2447_v0 = vpack.c.bf16 %v1771_v61, %v1771_v61 }
 0x12d   : > { %v1772_v4 = vmax.f32 %v1740_v28, 0.0  ;;  %v2445_v26 = vpack.c.bf16 %v1769_v16, %v1769_v16  ;;  %v1770_v27 = vmax.f32 %v1738_v9, 0.0  ;;  %v1350_v9 = vld [vmem:[#allocation2 + $0x50] sm:$0xff] }
 0x12e   : > { %1932 = vst.msk [vmem:[%s3659_s18 + $0x48] sm:$0xf] %vm1913_vm2, %v2447_v0  ;;  %v1348_v0 = vld [vmem:[#allocation2 + $0x40] sm:$0xff] }
 0x12f   : > { %v2448_v13 = vpack.c.bf16 %v1772_v4, %v1772_v4  ;;  %1930 = vst.msk [vmem:[%s3659_s18 + $0x40] sm:$0xf] %vm1913_vm2, %v2445_v26  ;;  %v2446_v50 = vpack.c.bf16 %v1770_v27, %v1770_v27  ;;  %v1351_v26 = vld [vmem:[#allocation2 + $0x58] sm:$0xff] }
 0x131   : > { %1933 = vst.msk [vmem:[%s3659_s18 + $0x4c] sm:$0xf] %vm1913_vm2, %v2448_v13  ;;  %1931 = vst.msk [vmem:[%s3659_s18 + $0x44] sm:$0xf] %vm1913_vm2, %v2446_v50  ;;  %v1349_v50 = vld [vmem:[#allocation2 + $0x48] sm:$0xff] }
 0x139   : > { %v2495_v51 = vpop.f32.mrb[4].mxu0 }
 0x13a   : > { %v1620_v40 = vadd.f32 %v2495_v51, %v1346_v46  ;;  %v1503_v30 = vpop.f32.mrb[5].mxu0 }
 0x13b   : > { %v1618_v1 = vadd.f32 %v1503_v30, %v1344_v22  ;;  %v2496_v39 = vpop.f32.mrb[6].mxu0  ;;  %v1366_v30 = vld [vmem:[#allocation2 + $0xd0] sm:$0xff] }
 0x13c   : > { %1653 = vst.msk [vmem:[#allocation2 + $0x30] sm:$0xff] %vm306_vm1, %v1620_v40  ;;  %v1621_v63 = vadd.f32 %v2496_v39, %v1347_v49  ;;  %v1506_v41 = vpop.f32.mrb[7].mxu0  ;;  %v1367_v39 = vld [vmem:[#allocation2 + $0xd8] sm:$0xff] }
 0x13d   : > { %1651 = vst.msk [vmem:[#allocation2 + $0x20] sm:$0xff] %vm306_vm1, %v1618_v1  ;;  %v1619_v25 = vadd.f32 %v1506_v41, %v1345_v20  ;;  %v1364_v20 = vld [vmem:[#allocation2 + $0xc0] sm:$0xff] }
 0x13e   : > { %1654 = vst.msk [vmem:[#allocation2 + $0x38] sm:$0xff] %vm306_vm1, %v1621_v63 }
 0x13f   : > { %1652 = vst.msk [vmem:[#allocation2 + $0x28] sm:$0xff] %vm306_vm1, %v1619_v25 }
 0x143   : > { %v1688_v45 = vld [vmem:[#allocation2 + $0x30] sm:$0xff] }
 0x144   : > { %v2511_v58 = vpop.f32.mrb[4].mxu1  ;;  %v1727_v32 = vadd.f32 %v3650_v60, %v1688_v45  ;;  %v1686_v55 = vld [vmem:[#allocation2 + $0x20] sm:$0xff] }
 0x145   : > { %v1636_v48 = vadd.f32 %v2511_v58, %v1362_v44  ;;  %v1567_v57 = vpop.f32.mrb[5].mxu1  ;;  %v1725_v36 = vadd.f32 %v3650_v60, %v1686_v55  ;;  %v1689_v38 = vld [vmem:[#allocation2 + $0x38] sm:$0xff]  ;;  %v1365_v44 = vld [vmem:[#allocation2 + $0xc8] sm:$0xff] }
 0x146   : > { %v1634_v59 = vadd.f32 %v1567_v57, %v1360_v2  ;;  %v2512_v34 = vpop.f32.mrb[6].mxu1  ;;  %v1759_v33 = vmax.f32 %v1727_v32, 0.0  ;;  %v1728_v10 = vadd.f32 %v3650_v60, %v1689_v38  ;;  %v1687_v56 = vld [vmem:[#allocation2 + $0x28] sm:$0xff] }
 0x147   : > { %1669 = vst.msk [vmem:[#allocation2 + $0xb0] sm:$0xff] %vm306_vm1, %v1636_v48  ;;  %v1637_v17 = vadd.f32 %v2512_v34, %v1363_v3  ;;  %v1570_v53 = vpop.f32.mrb[7].mxu1  ;;  %v1757_v15 = vmax.f32 %v1725_v36, 0.0  ;;  %v1726_v31 = vadd.f32 %v3650_v60, %v1687_v56 }
 0x148   : > { %1667 = vst.msk [vmem:[#allocation2 + $0xa0] sm:$0xff] %vm306_vm1, %v1634_v59  ;;  %v1635_v11 = vadd.f32 %v1570_v53, %v1361_v35  ;;  %v2435_v23 = vpack.c.bf16 %v1759_v33, %v1759_v33  ;;  %v1760_v5 = vmax.f32 %v1728_v10, 0.0 }
 0x149   : > { %1670 = vst.msk [vmem:[#allocation2 + $0xb8] sm:$0xff] %vm306_vm1, %v1637_v17  ;;  %v2433_v54 = vpack.c.bf16 %v1757_v15, %v1757_v15  ;;  %v1758_v14 = vmax.f32 %v1726_v31, 0.0 }
 0x14a   : > { %1668 = vst.msk [vmem:[#allocation2 + $0xa8] sm:$0xff] %vm306_vm1, %v1635_v11  ;;  %v2436_v37 = vpack.c.bf16 %v1760_v5, %v1760_v5 }
 0x14b   : > { %1920 = vst.msk [vmem:[%s3659_s18 + $0x18] sm:$0xf] %vm1913_vm2, %v2435_v23  ;;  %1918 = vst.msk [vmem:[%s3659_s18 + $0x10] sm:$0xf] %vm1913_vm2, %v2433_v54  ;;  %v2434_v19 = vpack.c.bf16 %v1758_v14, %v1758_v14 }
 0x14c   : > { %1921 = vst.msk [vmem:[%s3659_s18 + $0x1c] sm:$0xf] %vm1913_vm2, %v2436_v37 }
 0x14d   : > { %1919 = vst.msk [vmem:[%s3659_s18 + $0x14] sm:$0xf] %vm1913_vm2, %v2434_v19 }
 0x14e   : > { %v1704_v52 = vld [vmem:[#allocation2 + $0xb0] sm:$0xff] }
 0x14f   : > { %v1743_v43 = vadd.f32 %v3650_v60, %v1704_v52  ;;  %v1702_v7 = vld [vmem:[#allocation2 + $0xa0] sm:$0xff] }
 0x150   : > { %v1741_v6 = vadd.f32 %v3650_v60, %v1702_v7  ;;  %v1705_v8 = vld [vmem:[#allocation2 + $0xb8] sm:$0xff] }
 0x151   : > { %v1775_v42 = vmax.f32 %v1743_v43, 0.0  ;;  %v1744_v18 = vadd.f32 %v3650_v60, %v1705_v8  ;;  %v1703_v12 = vld [vmem:[#allocation2 + $0xa8] sm:$0xff] }
 0x152   : > { %v1773_v24 = vmax.f32 %v1741_v6, 0.0  ;;  %v1742_v21 = vadd.f32 %v3650_v60, %v1703_v12 }
 0x153   : > { %v2451_v62 = vpack.c.bf16 %v1775_v42, %v1775_v42  ;;  %v1776_v29 = vmax.f32 %v1744_v18, 0.0 }
 0x154   : > { %v2449_v61 = vpack.c.bf16 %v1773_v24, %v1773_v24  ;;  %v1774_v28 = vmax.f32 %v1742_v21, 0.0  ;;  %v1354_v21 = vld [vmem:[#allocation2 + $0x70] sm:$0xff] }
 0x155   : > { %1936 = vst.msk [vmem:[%s3659_s18 + $0x58] sm:$0xf] %vm1913_vm2, %v2451_v62  ;;  %v2452_v47 = vpack.c.bf16 %v1776_v29, %v1776_v29  ;;  %v1352_v62 = vld [vmem:[#allocation2 + $0x60] sm:$0xff] }
 0x156   : > { %1934 = vst.msk [vmem:[%s3659_s18 + $0x50] sm:$0xf] %vm1913_vm2, %v2449_v61  ;;  %v2450_v16 = vpack.c.bf16 %v1774_v28, %v1774_v28  ;;  %v1355_v61 = vld [vmem:[#allocation2 + $0x78] sm:$0xff] }
 0x157   : > { %1937 = vst.msk [vmem:[%s3659_s18 + $0x5c] sm:$0xf] %vm1913_vm2, %v2452_v47 }
 0x158   : > { %1935 = vst.msk [vmem:[%s3659_s18 + $0x54] sm:$0xf] %vm1913_vm2, %v2450_v16  ;;  %v1353_v16 = vld [vmem:[#allocation2 + $0x68] sm:$0xff] }
 0x160   : > { %v2499_v4 = vpop.f32.mrb[8].mxu0 }
 0x161   : > { %v1624_v27 = vadd.f32 %v2499_v4, %v1350_v9  ;;  %v1519_v13 = vpop.f32.mrb[9].mxu0 }
 0x162   : > { %v1622_v46 = vadd.f32 %v1519_v13, %v1348_v0  ;;  %v2500_v22 = vpop.f32.mrb[10].mxu0  ;;  %v1370_v13 = vld [vmem:[#allocation2 + $0xf0] sm:$0xff] }
 0x163   : > { %1657 = vst.msk [vmem:[#allocation2 + $0x50] sm:$0xff] %vm306_vm1, %v1624_v27  ;;  %v1625_v51 = vadd.f32 %v2500_v22, %v1351_v26  ;;  %v1522_v49 = vpop.f32.mrb[11].mxu0  ;;  %v1371_v22 = vld [vmem:[#allocation2 + $0xf8] sm:$0xff] }
 0x164   : > { %1655 = vst.msk [vmem:[#allocation2 + $0x40] sm:$0xff] %vm306_vm1, %v1622_v46  ;;  %v1623_v40 = vadd.f32 %v1522_v49, %v1349_v50  ;;  %v1368_v50 = vld [vmem:[#allocation2 + $0xe0] sm:$0xff] }
 0x165   : > { %1658 = vst.msk [vmem:[#allocation2 + $0x58] sm:$0xff] %vm306_vm1, %v1625_v51 }
 0x166   : > { %1656 = vst.msk [vmem:[#allocation2 + $0x48] sm:$0xff] %vm306_vm1, %v1623_v40 }
 0x16a   : > { %v2515_v1 = vpop.f32.mrb[8].mxu1  ;;  %v1692_v63 = vld [vmem:[#allocation2 + $0x50] sm:$0xff] }
 0x16b   : > { %v1640_v41 = vadd.f32 %v2515_v1, %v1366_v30  ;;  %v1583_v25 = vpop.f32.mrb[9].mxu1  ;;  %v1731_v2 = vadd.f32 %v3650_v60, %v1692_v63  ;;  %v1690_v45 = vld [vmem:[#allocation2 + $0x40] sm:$0xff]  ;;  %v1369_v30 = vld [vmem:[#allocation2 + $0xe8] sm:$0xff] }
 0x16c   : > { %v1638_v58 = vadd.f32 %v1583_v25, %v1364_v20  ;;  %v2516_v3 = vpop.f32.mrb[10].mxu1  ;;  %v1729_v32 = vadd.f32 %v3650_v60, %v1690_v45  ;;  %v1693_v48 = vld [vmem:[#allocation2 + $0x58] sm:$0xff] }
 0x16d   : > { %1673 = vst.msk [vmem:[#allocation2 + $0xd0] sm:$0xff] %vm306_vm1, %v1640_v41  ;;  %v1641_v55 = vadd.f32 %v2516_v3, %v1367_v39  ;;  %v1586_v57 = vpop.f32.mrb[11].mxu1  ;;  %v1763_v35 = vmax.f32 %v1731_v2, 0.0  ;;  %v1732_v36 = vadd.f32 %v3650_v60, %v1693_v48  ;;  %v1691_v59 = vld [vmem:[#allocation2 + $0x48] sm:$0xff] }
 0x16e   : > { %1671 = vst.msk [vmem:[#allocation2 + $0xc0] sm:$0xff] %vm306_vm1, %v1638_v58  ;;  %v1639_v38 = vadd.f32 %v1586_v57, %v1365_v44  ;;  %v1761_v34 = vmax.f32 %v1729_v32, 0.0  ;;  %v1730_v33 = vadd.f32 %v3650_v60, %v1691_v59 }
 0x16f   : > { %1674 = vst.msk [vmem:[#allocation2 + $0xd8] sm:$0xff] %vm306_vm1, %v1641_v55  ;;  %v2439_v10 = vpack.c.bf16 %v1763_v35, %v1763_v35  ;;  %v1764_v17 = vmax.f32 %v1732_v36, 0.0 }
 0x170   : > { %1672 = vst.msk [vmem:[#allocation2 + $0xc8] sm:$0xff] %vm306_vm1, %v1639_v38  ;;  %v2437_v56 = vpack.c.bf16 %v1761_v34, %v1761_v34  ;;  %v1762_v53 = vmax.f32 %v1730_v33, 0.0 }
 0x171   : > { %1924 = vst.msk [vmem:[%s3659_s18 + $0x28] sm:$0xf] %vm1913_vm2, %v2439_v10  ;;  %v2440_v15 = vpack.c.bf16 %v1764_v17, %v1764_v17 }
 0x172   : > { %1922 = vst.msk [vmem:[%s3659_s18 + $0x20] sm:$0xf] %vm1913_vm2, %v2437_v56  ;;  %v2438_v31 = vpack.c.bf16 %v1762_v53, %v1762_v53 }
 0x173   : > { %1925 = vst.msk [vmem:[%s3659_s18 + $0x2c] sm:$0xf] %vm1913_vm2, %v2440_v15 }
 0x174   : > { %v1708_v11 = vld [vmem:[#allocation2 + $0xd0] sm:$0xff]  ;;  %1923 = vst.msk [vmem:[%s3659_s18 + $0x24] sm:$0xf] %vm1913_vm2, %v2438_v31 }
 0x175   : > { %v1747_v23 = vadd.f32 %v3650_v60, %v1708_v11  ;;  %v1706_v5 = vld [vmem:[#allocation2 + $0xc0] sm:$0xff] }
 0x176   : > { %v1745_v54 = vadd.f32 %v3650_v60, %v1706_v5  ;;  %v1709_v14 = vld [vmem:[#allocation2 + $0xd8] sm:$0xff] }
 0x177   : > { %v1779_v37 = vmax.f32 %v1747_v23, 0.0  ;;  %v1748_v19 = vadd.f32 %v3650_v60, %v1709_v14  ;;  %v1707_v52 = vld [vmem:[#allocation2 + $0xc8] sm:$0xff] }
 0x178   : > { %v1777_v43 = vmax.f32 %v1745_v54, 0.0  ;;  %v1746_v7 = vadd.f32 %v3650_v60, %v1707_v52 }
 0x179   : > { %v2455_v6 = vpack.c.bf16 %v1779_v37, %v1779_v37  ;;  %v1780_v8 = vmax.f32 %v1748_v19, 0.0 }
 0x17a   : > { %v2453_v42 = vpack.c.bf16 %v1777_v43, %v1777_v43  ;;  %v1778_v18 = vmax.f32 %v1746_v7, 0.0 }
 0x17b   : > { %1940 = vst.msk [vmem:[%s3659_s18 + $0x68] sm:$0xf] %vm1913_vm2, %v2455_v6  ;;  %v2456_v12 = vpack.c.bf16 %v1780_v8, %v1780_v8 }
 0x17c   : > { %1938 = vst.msk [vmem:[%s3659_s18 + $0x60] sm:$0xf] %vm1913_vm2, %v2453_v42  ;;  %v2454_v24 = vpack.c.bf16 %v1778_v18, %v1778_v18 }
 0x17d   : > { %1941 = vst.msk [vmem:[%s3659_s18 + $0x6c] sm:$0xf] %vm1913_vm2, %v2456_v12 }
 0x17e   : > { %1939 = vst.msk [vmem:[%s3659_s18 + $0x64] sm:$0xf] %vm1913_vm2, %v2454_v24 }
 0x187   : > { %v2503_v29 = vpop.f32.mrb[12].mxu0 }
 0x188   : > { %v1628_v28 = vadd.f32 %v2503_v29, %v1354_v21  ;;  %v1535_v47 = vpop.f32.mrb[13].mxu0 }
 0x189   : > { %v1626_v9 = vadd.f32 %v1535_v47, %v1352_v62  ;;  %v2504_v0 = vpop.f32.mrb[14].mxu0 }
 0x18a   : > { %1661 = vst.msk [vmem:[#allocation2 + $0x70] sm:$0xff] %vm306_vm1, %v1628_v28  ;;  %v1629_v4 = vadd.f32 %v2504_v0, %v1355_v61  ;;  %v1538_v26 = vpop.f32.mrb[15].mxu0 }
 0x18b   : > { %1659 = vst.msk [vmem:[#allocation2 + $0x60] sm:$0xff] %vm306_vm1, %v1626_v9  ;;  %v1627_v27 = vadd.f32 %v1538_v26, %v1353_v16 }
 0x18c   : > { %1662 = vst.msk [vmem:[#allocation2 + $0x78] sm:$0xff] %vm306_vm1, %v1629_v4 }
 0x18d   : > { %1660 = vst.msk [vmem:[#allocation2 + $0x68] sm:$0xff] %vm306_vm1, %v1627_v27 }
 0x191   : > { %v2519_v46 = vpop.f32.mrb[12].mxu1  ;;  %v1696_v51 = vld [vmem:[#allocation2 + $0x70] sm:$0xff] }
 0x192   : > { %v1644_v49 = vadd.f32 %v2519_v46, %v1370_v13  ;;  %v1599_v40 = vpop.f32.mrb[13].mxu1  ;;  %v1735_v20 = vadd.f32 %v3650_v60, %v1696_v51  ;;  %v1694_v1 = vld [vmem:[#allocation2 + $0x60] sm:$0xff] }
 0x193   : > { %v1642_v39 = vadd.f32 %v1599_v40, %v1368_v50  ;;  %v2520_v63 = vpop.f32.mrb[14].mxu1  ;;  %v1733_v41 = vadd.f32 %v3650_v60, %v1694_v1  ;;  %v1697_v25 = vld [vmem:[#allocation2 + $0x78] sm:$0xff] }
 0x194   : > { %1677 = vst.msk [vmem:[#allocation2 + $0xf0] sm:$0xff] %vm306_vm1, %v1644_v49  ;;  %v1645_v44 = vadd.f32 %v2520_v63, %v1371_v22  ;;  %v1602_v2 = vpop.f32.mrb[15].mxu1  ;;  %v1767_v45 = vmax.f32 %v1735_v20, 0.0  ;;  %v1736_v58 = vadd.f32 %v3650_v60, %v1697_v25  ;;  %v1695_v3 = vld [vmem:[#allocation2 + $0x68] sm:$0xff] }
 0x195   : > { %1675 = vst.msk [vmem:[#allocation2 + $0xe0] sm:$0xff] %vm306_vm1, %v1642_v39  ;;  %v1643_v32 = vadd.f32 %v1602_v2, %v1369_v30  ;;  %v1765_v48 = vmax.f32 %v1733_v41, 0.0  ;;  %v1734_v55 = vadd.f32 %v3650_v60, %v1695_v3 }
 0x196   : > { %1678 = vst.msk [vmem:[#allocation2 + $0xf8] sm:$0xff] %vm306_vm1, %v1645_v44  ;;  %v2443_v57 = vpack.c.bf16 %v1767_v45, %v1767_v45  ;;  %v1768_v35 = vmax.f32 %v1736_v58, 0.0 }
 0x197   : > { %1676 = vst.msk [vmem:[#allocation2 + $0xe8] sm:$0xff] %vm306_vm1, %v1643_v32  ;;  %v2441_v36 = vpack.c.bf16 %v1765_v48, %v1765_v48  ;;  %v1766_v59 = vmax.f32 %v1734_v55, 0.0 }
 0x198   : > { %1928 = vst.msk [vmem:[%s3659_s18 + $0x38] sm:$0xf] %vm1913_vm2, %v2443_v57  ;;  %v2444_v38 = vpack.c.bf16 %v1768_v35, %v1768_v35 }
 0x199   : > { %1926 = vst.msk [vmem:[%s3659_s18 + $0x30] sm:$0xf] %vm1913_vm2, %v2441_v36  ;;  %v2442_v34 = vpack.c.bf16 %v1766_v59, %v1766_v59 }
 0x19a   : > { %1929 = vst.msk [vmem:[%s3659_s18 + $0x3c] sm:$0xf] %vm1913_vm2, %v2444_v38 }
 0x19b   : > { %v1712_v33 = vld [vmem:[#allocation2 + $0xf0] sm:$0xff]  ;;  %1927 = vst.msk [vmem:[%s3659_s18 + $0x34] sm:$0xf] %vm1913_vm2, %v2442_v34 }
 0x19c   : > { %v1751_v10 = vadd.f32 %v3650_v60, %v1712_v33  ;;  %v1710_v17 = vld [vmem:[#allocation2 + $0xe0] sm:$0xff] }
 0x19d   : > { %v1749_v56 = vadd.f32 %v3650_v60, %v1710_v17  ;;  %v1713_v53 = vld [vmem:[#allocation2 + $0xf8] sm:$0xff] }
 0x19e   : > { %v1783_v15 = vmax.f32 %v1751_v10, 0.0  ;;  %v1752_v31 = vadd.f32 %v3650_v60, %v1713_v53  ;;  %v1711_v11 = vld [vmem:[#allocation2 + $0xe8] sm:$0xff] }
 0x19f   : > { %v1781_v23 = vmax.f32 %v1749_v56, 0.0  ;;  %v1750_v5 = vadd.f32 %v3650_v60, %v1711_v11 }
 0x1a0   : > { %v2459_v54 = vpack.c.bf16 %v1783_v15, %v1783_v15  ;;  %v1784_v14 = vmax.f32 %v1752_v31, 0.0 }
 0x1a1   : > { %v2457_v37 = vpack.c.bf16 %v1781_v23, %v1781_v23  ;;  %v1782_v19 = vmax.f32 %v1750_v5, 0.0 }
 0x1a2   : > { %1944 = vst.msk [vmem:[%s3659_s18 + $0x78] sm:$0xf] %vm1913_vm2, %v2459_v54  ;;  %v2460_v52 = vpack.c.bf16 %v1784_v14, %v1784_v14 }
 0x1a3   : > { %1942 = vst.msk [vmem:[%s3659_s18 + $0x70] sm:$0xf] %vm1913_vm2, %v2457_v37  ;;  %v2458_v43 = vpack.c.bf16 %v1782_v19, %v1782_v19 }
 0x1a4   : > { %1945 = vst.msk [vmem:[%s3659_s18 + $0x7c] sm:$0xf] %vm1913_vm2, %v2460_v52 }
 0x1a5   : > { %1943 = vst.msk [vmem:[%s3659_s18 + $0x74] sm:$0xf] %vm1913_vm2, %v2458_v43 }
 0x1a6 PF: > { %s15_s20 = sadd.s32 1, %s2591_s20   ;;  %s3851_s18 = smov %s2587_s19 }
 0x1a7   : > { %p12_p5 = scmp.ge.s32.totalorder %s15_s20, 4   ;;  %s3852_s19 = smov %s3854_s21 }
 0x1a9   :  { %14 = sbr.rel (!%p12_p5) target bundleno = 2 (0x2), region = 92 }

// kernel: aspp_forward.7
= control target key start
LH: loop header
LB: loop body
LE: loop exit
PB: predicated region body
PF: predicated region fallthrough
CT: control target
= control target key end

     0   :  { %s2624_s18 = smov 0   ;;  %s2626_s19 = smov 0   ;;  %s3713_s0 = inlined_call_operand.vmem [shape: f32[2,52,52,64], index: 0, kind: input, shape index: {}]   ;;  %s3714_s1 = inlined_call_operand.vmem [shape: f32[3,3,64], index: 1, kind: input, shape index: {}]   ;;  %s3715_s2 = inlined_call_operand.vmem [shape: f32[1,64], index: 2, kind: input, shape index: {}]   ;;  %s3716_s3 = inlined_call_operand.vmem [shape: bf16[64,32], index: 3, kind: input, shape index: {}]   ;;  %s3717_s4 = inlined_call_operand.vmem [shape: f32[1,32], index: 4, kind: input, shape index: {}]   ;;  %s3718_s5 = inlined_call_operand.vmem [shape: bf16[2,16,16,32], index: 5, kind: output, shape index: {}]  }
   0x1   :  { %s2628_s20 = smov 0  }
   0x2 LB: > { %s27_s21 = sadd.s32 1, %s2587_s19  ;;  %p2065_p0 = scmp.ge.s32.totalorder %s2591_s20, 1  ;;  %s2591_s20 = sphi %s2628_s20, %s15_s20   ;;  %s2587_s19 = sphi %s2626_s19, %s3795_s19   ;;  %s2583_s18 = sphi %s2624_s18, %s3794_s18  }
   0x3   : > { %p29_p1 = scmp.ge.s32.totalorder %s27_s21, 2  ;;  %p232_p2 = scmp.lt.s32.totalorder %s2591_s20, 3 }
   0x5   : > { %s3797_s21 = smov (%p29_p1, %s27_s21), 0  ;;  %p233_p3 = pnand %p2065_p0, %p232_p2 }
   0x7   : > { %236 = sbr.rel (%p233_p3) target bundleno = 422 (0x1a6), region = 40 }
   0xe   : > { %v2555_v0 = vld [vmem:[%s3716_s3] sm:$0xff]   ;;  %p275_p4 = scmp.lt.s32.totalorder %s2583_s18, 1  ;;  %v2556_v1 = vld [vmem:[%s3716_s3 + $0x8] sm:$0xff]   ;;  %v2557_v2 = vld [vmem:[%s3716_s3 + $0x10] sm:$0xff]   ;;  %vm1404_vm0 = vcmask 523264   ;;  %vm306_vm1 = vcmask 261120  }
   0xf   : > { %2481 = vmatprep.subr.bf16.mxu0 %v2555_v0  ;;  %2521 = vmatprep.subr.bf16.mxu1 %v2555_v0  ;;  %v2657_v3 = vld [vmem:[%s3714_s1] ss:$0 sm:$0xff]  ;;  %v2662_v4 = vld [vmem:[%s3714_s1 + $0x1] ss:$0 sm:$0xff]  ;;  %v2667_v5 = vld [vmem:[%s3714_s1 + $0x2] ss:$0 sm:$0xff] }
  0x10   : > { %s3799_s18 = smov (!%p275_p4, %s2583_s18), 1  ;;  %2482 = vmatpush3.bf16.msra.mxu0 %v2555_v0  ;;  %2525 = vmatpush3.bf16.msra.mxu1 %v2555_v0  ;;  %v2558_v6 = vld [vmem:[%s3716_s3 + $0x18] sm:$0xff]   ;;  %v2680_v7 = vld [vmem:[%s3714_s1 + $0x4] ss:$0 sm:$0xff]  ;;  %v2685_v8 = vld [vmem:[%s3714_s1 + $0x5] ss:$0 sm:$0xff] }
  0x11   : > { %2483 = vmatprep.subr.bf16.mxu0 %v2556_v1  ;;  %2522 = vmatprep.subr.bf16.mxu1 %v2556_v1  ;;  %s2529_s28 = smul.u32 2912, %s3799_s18  ;;  %v2690_v9 = vld [vmem:[%s3714_s1 + $0x6] ss:$0 sm:$0xff]  ;;  %v2698_v13 = vld [vmem:[%s3714_s1 + $0x8] ss:$0 sm:$0xff]  ;;  %s2428_s9 = sshll.u32 %s3799_s18, 7 }
  0x12   : > { %v2709_v20 = vld [vmem:[%s3714_s1 + $0x9] ss:$0 sm:$0xff]  ;;  %v2769_v50 = vld [vmem:[%s3714_s1 + $0xa] ss:$0 sm:$0xff]  ;;  %s3581_s18 = scalar_lea.vmem %s3718_s5, %s2428_s9  ;;  %vm1913_vm2 = vcmask 257024  }
  0x13   : > { %s2675_s14 = scalar_lea.vmem %s3713_s0, %s2529_s28 }
  0x14   : > { %2484 = vmatpush3.bf16.msra.mxu0 %v2556_v1  ;;  %2526 = vmatpush3.bf16.msra.mxu1 %v2556_v1  ;;  %v2069_v10 = vld [vmem:[%s2675_s14 + $0x156] sm:$0xff]  ;;  %v2070_v11 = vld [vmem:[%s2675_s14 + $0x15e] sm:$0xff]  ;;  %v2103_v16 = vld [vmem:[%s2675_s14 + $0x16a] sm:$0xff] }
  0x15   : > { %v2102_v12 = vld [vmem:[%s2675_s14 + $0x162] sm:$0xff]  ;;  %2485 = vmatprep.subr.bf16.mxu0 %v2557_v2  ;;  %2523 = vmatprep.subr.bf16.mxu1 %v2557_v2  ;;  %v377_v14 = vmul.f32 %v2657_v3, %v2069_v10  ;;  %v378_v15 = vmul.f32 %v2657_v3, %v2070_v11  ;;  %v2135_v18 = vld [vmem:[%s2675_s14 + $0x16e] sm:$0xff]  ;;  %v2136_v19 = vld [vmem:[%s2675_s14 + $0x176] sm:$0xff]  ;;  %v479_v21 = vmul.f32 %v2662_v4, %v2103_v16 }
  0x16   : > { %v478_v17 = vmul.f32 %v2662_v4, %v2102_v12  ;;  %v579_v22 = vmul.f32 %v2667_v5, %v2135_v18  ;;  %v580_v23 = vmul.f32 %v2667_v5, %v2136_v19  ;;  %v2168_v24 = vld [vmem:[%s2675_s14 + $0x3f6] sm:$0xff]  ;;  %v2169_v25 = vld [vmem:[%s2675_s14 + $0x3fe] sm:$0xff]  ;;  %v2722_v30 = vld [vmem:[%s2675_s14 + $0x40a] sm:$0xff] }
  0x17   : > { %v2717_v26 = vld [vmem:[%s2675_s14 + $0x402] sm:$0xff]  ;;  %v682_v28 = vmul.f32 %v2680_v7, %v2168_v24  ;;  %v683_v29 = vmul.f32 %v2680_v7, %v2169_v25  ;;  %v2727_v32 = vld [vmem:[%s2675_s14 + $0x40e] sm:$0xff]  ;;  %v2730_v33 = vld [vmem:[%s2675_s14 + $0x416] sm:$0xff]  ;;  %v511_v34 = vadd.f32 %v479_v21, %v378_v15  ;;  %v784_v35 = vmul.f32 %v2685_v8, %v2722_v30 }
  0x18   : > { %v510_v27 = vadd.f32 %v478_v17, %v377_v14  ;;  %v783_v31 = vmul.f32 %v2685_v8, %v2717_v26  ;;  %2486 = vmatpush3.bf16.msra.mxu0 %v2557_v2  ;;  %2527 = vmatpush3.bf16.msra.mxu1 %v2557_v2  ;;  %v884_v36 = vmul.f32 %v2690_v9, %v2727_v32  ;;  %v2737_v37 = vld [vmem:[%s2675_s14 + $0x696] sm:$0xff]  ;;  %v2740_v38 = vld [vmem:[%s2675_s14 + $0x69e] sm:$0xff]  ;;  %v2750_v43 = vld [vmem:[%s2675_s14 + $0x6aa] sm:$0xff] }
  0x19   : > { %v2743_v39 = vld [vmem:[%s2675_s14 + $0x6a2] sm:$0xff]  ;;  %2487 = vmatprep.subr.bf16.mxu0 %v2558_v6  ;;  %2524 = vmatprep.subr.bf16.mxu1 %v2558_v6  ;;  %v885_v41 = vmul.f32 %v2690_v9, %v2730_v33  ;;  %v987_v42 = vmul.f32 %v2698_v13, %v2737_v37  ;;  %v2753_v44 = vld [vmem:[%s2675_s14 + $0x6ae] sm:$0xff]  ;;  %v2756_v45 = vld [vmem:[%s2675_s14 + $0x6b6] sm:$0xff]  ;;  %v612_v46 = vadd.f32 %v580_v23, %v511_v34 }
  0x1a   : > { %v611_v40 = vadd.f32 %v579_v22, %v510_v27  ;;  %v988_v47 = vmul.f32 %v2698_v13, %v2740_v38  ;;  %v1088_v48 = vmul.f32 %v2709_v20, %v2743_v39  ;;  %v2764_v49 = vmul.f32 %v2709_v20, %v2750_v43  ;;  %v2085_v51 = vld [vmem:[%s2675_s14 + $0x316] sm:$0xff]  ;;  %v2086_v55 = vld [vmem:[%s2675_s14 + $0x31e] sm:$0xff]  ;;  %v2119_v58 = vld [vmem:[%s2675_s14 + $0x32a] sm:$0xff] }
  0x1b   : > { %v2774_v53 = vmul.f32 %v2769_v50, %v2753_v44  ;;  %v2778_v54 = vmul.f32 %v2769_v50, %v2756_v45  ;;  %v393_v56 = vmul.f32 %v2657_v3, %v2085_v51  ;;  %v2118_v57 = vld [vmem:[%s2675_s14 + $0x322] sm:$0xff]  ;;  %v715_v59 = vadd.f32 %v683_v29, %v612_v46  ;;  %v2151_v62 = vld [vmem:[%s2675_s14 + $0x32e] sm:$0xff]  ;;  %v2152_v63 = vld [vmem:[%s2675_s14 + $0x336] sm:$0xff] }
  0x1c   : > { %v714_v52 = vadd.f32 %v682_v28, %v611_v40  ;;  %2488 = vmatpush3.bf16.msra.mxu0 %v2558_v6  ;;  %2528 = vmatpush3.bf16.msra.mxu1 %v2558_v6  ;;  %v394_v60 = vmul.f32 %v2657_v3, %v2086_v55  ;;  %v494_v61 = vmul.f32 %v2662_v4, %v2118_v57  ;;  %v2184_v0 = vld [vmem:[%s2675_s14 + $0x5b6] sm:$0xff]  ;;  %v2185_v6 = vld [vmem:[%s2675_s14 + $0x5be] sm:$0xff]  ;;  %v2219_v14 = vld [vmem:[%s2675_s14 + $0x5ca] sm:$0xff] }
  0x1d   : > { %v495_v2 = vmul.f32 %v2662_v4, %v2119_v58  ;;  %v595_v10 = vmul.f32 %v2667_v5, %v2151_v62  ;;  %v596_v11 = vmul.f32 %v2667_v5, %v2152_v63  ;;  %v2218_v12 = vld [vmem:[%s2675_s14 + $0x5c2] sm:$0xff]  ;;  %v816_v15 = vadd.f32 %v784_v35, %v715_v59  ;;  %v2252_v19 = vld [vmem:[%s2675_s14 + $0x5ce] sm:$0xff]  ;;  %v2253_v21 = vld [vmem:[%s2675_s14 + $0x5d6] sm:$0xff] }
  0x1e   : > { %v815_v1 = vadd.f32 %v783_v31, %v714_v52  ;;  %v526_v16 = vadd.f32 %v494_v61, %v393_v56  ;;  %v698_v17 = vmul.f32 %v2680_v7, %v2184_v0  ;;  %v699_v18 = vmul.f32 %v2680_v7, %v2185_v6  ;;  %v2286_v22 = vld [vmem:[%s2675_s14 + $0x856] sm:$0xff]  ;;  %v2287_v28 = vld [vmem:[%s2675_s14 + $0x85e] sm:$0xff]  ;;  %v2321_v31 = vld [vmem:[%s2675_s14 + $0x86a] sm:$0xff] }
  0x1f   : > { %v527_v24 = vadd.f32 %v495_v2, %v394_v60  ;;  %v799_v25 = vmul.f32 %v2685_v8, %v2218_v12  ;;  %v800_v27 = vmul.f32 %v2685_v8, %v2219_v14  ;;  %v2320_v29 = vld [vmem:[%s2675_s14 + $0x862] sm:$0xff]  ;;  %v917_v34 = vadd.f32 %v885_v41, %v816_v15  ;;  %v2354_v51 = vld [vmem:[%s2675_s14 + $0x86e] sm:$0xff]  ;;  %v2072_v59 = vld [vmem:[%s2675_s14 + $0x196] sm:$0xff] }
  0x20   : > { %v916_v23 = vadd.f32 %v884_v36, %v815_v1  ;;  %v627_v35 = vadd.f32 %v595_v10, %v526_v16  ;;  %v900_v40 = vmul.f32 %v2690_v9, %v2252_v19  ;;  %v901_v46 = vmul.f32 %v2690_v9, %v2253_v21  ;;  %v2355_v36 = vld [vmem:[%s2675_s14 + $0x876] sm:$0xff]  ;;  %v2071_v58 = vld [vmem:[%s2675_s14 + $0x18e] sm:$0xff]  ;;  %v2105_v0 = vld [vmem:[%s2675_s14 + $0x1a2] sm:$0xff] }
  0x21   : > { %v628_v55 = vadd.f32 %v596_v11, %v527_v24  ;;  %v1003_v56 = vmul.f32 %v2698_v13, %v2286_v22  ;;  %v1004_v57 = vmul.f32 %v2698_v13, %v2287_v28  ;;  %v1020_v41 = vadd.f32 %v988_v47, %v917_v34  ;;  %v2104_v63 = vld [vmem:[%s2675_s14 + $0x19a] sm:$0xff]  ;;  %v2137_v11 = vld [vmem:[%s2675_s14 + $0x1a6] sm:$0xff]  ;;  %v2138_v6 = vld [vmem:[%s2675_s14 + $0x1ae] sm:$0xff] }
  0x22   : > { %v1019_v52 = vadd.f32 %v987_v42, %v916_v23  ;;  %v730_v60 = vadd.f32 %v698_v17, %v627_v35  ;;  %v1104_v61 = vmul.f32 %v2709_v20, %v2320_v29  ;;  %v1105_v62 = vmul.f32 %v2709_v20, %v2321_v31  ;;  %v2825_v12 = vld [vmem:[%s3715_s2] ss:$0 sm:$0xff]  ;;  %v2836_v21 = vld [vmem:[%s2675_s14 + $0x436] sm:$0xff]  ;;  %v2846_v34 = vld [vmem:[%s2675_s14 + $0x442] sm:$0xff] }
  0x23   : > { %v731_v42 = vadd.f32 %v699_v18, %v628_v55  ;;  %v1205_v2 = vmul.f32 %v2769_v50, %v2354_v51  ;;  %v1206_v10 = vmul.f32 %v2769_v50, %v2355_v36  ;;  %v1121_v47 = vadd.f32 %v2764_v49, %v1020_v41  ;;  %v2833_v49 = vld [vmem:[%s2675_s14 + $0x42e] sm:$0xff]  ;;  %v2843_v31 = vld [vmem:[%s2675_s14 + $0x43a] sm:$0xff]  ;;  %v2854_v36 = vld [vmem:[%s2675_s14 + $0x446] sm:$0xff] }
  0x24   : > { %v1120_v1 = vadd.f32 %v1088_v48, %v1019_v52  ;;  %v831_v14 = vadd.f32 %v799_v25, %v730_v60  ;;  %v379_v48 = vmul.f32 %v2657_v3, %v2071_v58  ;;  %v380_v15 = vmul.f32 %v2657_v3, %v2072_v59  ;;  %v2857_v59 = vld [vmem:[%s2675_s14 + $0x44e] sm:$0xff] }
  0x25   : > { %v832_v17 = vadd.f32 %v800_v27, %v731_v42  ;;  %v480_v18 = vmul.f32 %v2662_v4, %v2104_v63  ;;  %v481_v19 = vmul.f32 %v2662_v4, %v2105_v0  ;;  %v1222_v22 = vadd.f32 %v2778_v54, %v1121_v47  ;;  %v2860_v41 = vld [vmem:[%s2675_s14 + $0x6ce] sm:$0xff]  ;;  %v2872_v47 = vld [vmem:[%s2675_s14 + $0x6da] sm:$0xff] }
  0x26   : > { %v1221_v16 = vadd.f32 %v2774_v53, %v1120_v1  ;;  %v932_v23 = vadd.f32 %v900_v40, %v831_v14  ;;  %v581_v24 = vmul.f32 %v2667_v5, %v2137_v11  ;;  %v582_v25 = vmul.f32 %v2667_v5, %v2138_v6  ;;  %v2867_v1 = vld [vmem:[%s2675_s14 + $0x6d6] sm:$0xff]  ;;  %v2878_v14 = vld [vmem:[%s2675_s14 + $0x6e6] sm:$0xff] }
  0x27   : > { %v933_v27 = vadd.f32 %v901_v46, %v832_v17  ;;  %v512_v28 = vadd.f32 %v480_v18, %v379_v48  ;;  %v513_v29 = vadd.f32 %v481_v19, %v380_v15  ;;  %v1261_v35 = vadd.f32 %v2825_v12, %v1222_v22  ;;  %v2885_v17 = vld [vmem:[%s2675_s14 + $0x6ee] sm:$0xff] }
  0x28   : > { %v1260_v53 = vadd.f32 %v2825_v12, %v1221_v16  ;;  %v1035_v54 = vadd.f32 %v1003_v56, %v932_v23  ;;  %v684_v40 = vmul.f32 %v2680_v7, %v2833_v49  ;;  %v685_v51 = vmul.f32 %v2680_v7, %v2836_v21  ;;  %3744 = vst [vmem:[#allocation3_spill] sm:$0xff] %v2885_v17 }
  0x29   : > { %v1036_v52 = vadd.f32 %v1004_v57, %v933_v27  ;;  %v613_v55 = vadd.f32 %v581_v24, %v512_v28  ;;  %v614_v58 = vadd.f32 %v582_v25, %v513_v29  ;;  %v1293_v56 = vmax.f32 %v1261_v35, 0.0  ;;  %v2087_v24 = vld [vmem:[%s2675_s14 + $0x34e] sm:$0xff]  ;;  %v2120_v25 = vld [vmem:[%s2675_s14 + $0x35a] sm:$0xff]  ;;  %v2121_v29 = vld [vmem:[%s2675_s14 + $0x362] sm:$0xff] }
  0x2a   : > { %v1292_v46 = vmax.f32 %v1260_v53, 0.0  ;;  %v1136_v60 = vadd.f32 %v1104_v61, %v1035_v54  ;;  %v785_v63 = vmul.f32 %v2685_v8, %v2843_v31  ;;  %v786_v0 = vmul.f32 %v2685_v8, %v2846_v34  ;;  %v2875_v61 = vld [vmem:[%s2675_s14 + $0x6e2] sm:$0xff] }
  0x2b   : > { %v1137_v42 = vadd.f32 %v1105_v62, %v1036_v52  ;;  %v716_v57 = vadd.f32 %v684_v40, %v613_v55  ;;  %v717_v11 = vadd.f32 %v685_v51, %v614_v58  ;;  %v886_v6 = vmul.f32 %v2690_v9, %v2854_v36  ;;  %v2154_v52 = vld [vmem:[%s2675_s14 + $0x36e] sm:$0xff] }
  0x2c   : > { %v1324_v48 = vpack.c.bf16 %v1293_v56, %v1292_v46  ;;  %v1237_v15 = vadd.f32 %v1205_v2, %v1136_v60  ;;  %v887_v62 = vmul.f32 %v2690_v9, %v2857_v59  ;;  %v989_v16 = vmul.f32 %v2698_v13, %v2860_v41  ;;  %v2088_v2 = vld [vmem:[%s2675_s14 + $0x356] sm:$0xff]  ;;  %v2153_v46 = vld [vmem:[%s2675_s14 + $0x366] sm:$0xff]  ;;  %v2186_v55 = vld [vmem:[%s2675_s14 + $0x5ee] sm:$0xff] }
  0x2d   : > { %v1238_v18 = vadd.f32 %v1206_v10, %v1137_v42  ;;  %v817_v19 = vadd.f32 %v785_v63, %v716_v57  ;;  %v818_v22 = vadd.f32 %v786_v0, %v717_v11  ;;  %v990_v23 = vmul.f32 %v2698_v13, %v2867_v1 }
  0x2e   : > { %2489 = vmatprep.mubr.msk.bf16.mxu0 %vm1404_vm0, %v1324_v48  ;;  %v1276_v53 = vadd.f32 %v2825_v12, %v1237_v15  ;;  %v1090_v27 = vmul.f32 %v2709_v20, %v2872_v47  ;;  %v1091_v10 = vmul.f32 %v2709_v20, %v2875_v61  ;;  %v1191_v28 = vmul.f32 %v2769_v50, %v2878_v14  ;;  %v2220_v48 = vld [vmem:[%s2675_s14 + $0x5fa] sm:$0xff]  ;;  %v2221_v15 = vld [vmem:[%s2675_s14 + $0x602] sm:$0xff] }
  0x2f   : > { %v1277_v35 = vadd.f32 %v2825_v12, %v1238_v18  ;;  %v918_v54 = vadd.f32 %v886_v6, %v817_v19  ;;  %v919_v40 = vadd.f32 %v887_v62, %v818_v22  ;;  %v1192_v51 = vmul.f32 %v2769_v50, %v2885_v17  ;;  %v2187_v6 = vld [vmem:[%s2675_s14 + $0x5f6] sm:$0xff] }
  0x30   : > { %v1308_v58 = vmax.f32 %v1276_v53, 0.0  ;;  %v395_v56 = vmul.f32 %v2657_v3, %v2087_v24  ;;  %v396_v60 = vmul.f32 %v2657_v3, %v2088_v2  ;;  %v496_v63 = vmul.f32 %v2662_v4, %v2120_v25  ;;  %v2254_v24 = vld [vmem:[%s2675_s14 + $0x606] sm:$0xff]  ;;  %v2255_v53 = vld [vmem:[%s2675_s14 + $0x60e] sm:$0xff] }
  0x31   : > { %v1309_v0 = vmax.f32 %v1277_v35, 0.0  ;;  %v1021_v42 = vadd.f32 %v989_v16, %v918_v54  ;;  %v1022_v57 = vadd.f32 %v990_v23, %v919_v40  ;;  %v497_v11 = vmul.f32 %v2662_v4, %v2121_v29  ;;  %v2288_v29 = vld [vmem:[%s2675_s14 + $0x88e] sm:$0xff]  ;;  %v2289_v35 = vld [vmem:[%s2675_s14 + $0x896] sm:$0xff] }
  0x32   : > { %v528_v62 = vadd.f32 %v496_v63, %v395_v56  ;;  %v597_v18 = vmul.f32 %v2667_v5, %v2153_v46  ;;  %v598_v19 = vmul.f32 %v2667_v5, %v2154_v52  ;;  %v700_v22 = vmul.f32 %v2680_v7, %v2186_v55  ;;  %v2322_v55 = vld [vmem:[%s2675_s14 + $0x89a] sm:$0xff]  ;;  %v2356_v63 = vld [vmem:[%s2675_s14 + $0x8a6] sm:$0xff] }
  0x33   : > { %v1332_v2 = vpack.c.bf16 %v1309_v0, %v1308_v58  ;;  %v1122_v25 = vadd.f32 %v1090_v27, %v1021_v42  ;;  %v1123_v16 = vadd.f32 %v1091_v10, %v1022_v57  ;;  %v529_v23 = vadd.f32 %v497_v11, %v396_v60  ;;  %v2323_v60 = vld [vmem:[%s2675_s14 + $0x8a2] sm:$0xff]  ;;  %v2357_v0 = vld [vmem:[%s2675_s14 + $0x8ae] sm:$0xff] }
  0x34   : > { %v629_v54 = vadd.f32 %v597_v18, %v528_v62  ;;  %v701_v40 = vmul.f32 %v2680_v7, %v2187_v6  ;;  %v801_v46 = vmul.f32 %v2685_v8, %v2220_v48  ;;  %v802_v52 = vmul.f32 %v2685_v8, %v2221_v15  ;;  %v2074_v18 = vld [vmem:[%s2675_s14 + $0x1ce] sm:$0xff] }
  0x35   : > { %2505 = vmatprep.mubr.msk.bf16.mxu1 %vm1404_vm0, %v1332_v2  ;;  %v1223_v27 = vadd.f32 %v1191_v28, %v1122_v25  ;;  %v1224_v10 = vadd.f32 %v1192_v51, %v1123_v16  ;;  %v630_v58 = vadd.f32 %v598_v19, %v529_v23  ;;  %v902_v56 = vmul.f32 %v2690_v9, %v2254_v24  ;;  %v2073_v28 = vld [vmem:[%s2675_s14 + $0x1c6] sm:$0xff]  ;;  %v2106_v19 = vld [vmem:[%s2675_s14 + $0x1d2] sm:$0xff]  ;;  %v2139_v23 = vld [vmem:[%s2675_s14 + $0x1de] sm:$0xff] }
  0x36   : > { %v732_v42 = vadd.f32 %v700_v22, %v629_v54  ;;  %v903_v57 = vmul.f32 %v2690_v9, %v2255_v53  ;;  %v1005_v11 = vmul.f32 %v2698_v13, %v2288_v29  ;;  %v1006_v6 = vmul.f32 %v2698_v13, %v2289_v35  ;;  %v2107_v22 = vld [vmem:[%s2675_s14 + $0x1da] sm:$0xff]  ;;  %v2140_v53 = vld [vmem:[%s2675_s14 + $0x1e6] sm:$0xff] }
  0x37   : > { %v1262_v51 = vadd.f32 %v2825_v12, %v1223_v27  ;;  %v1263_v48 = vadd.f32 %v2825_v12, %v1224_v10  ;;  %v733_v15 = vadd.f32 %v701_v40, %v630_v58  ;;  %v1106_v62 = vmul.f32 %v2709_v20, %v2322_v55  ;;  %v2947_v55 = vld [vmem:[%s2675_s14 + $0x466] sm:$0xff] }
  0x38   : > { %v833_v24 = vadd.f32 %v801_v46, %v732_v42  ;;  %v1107_v2 = vmul.f32 %v2709_v20, %v2323_v60  ;;  %v1207_v25 = vmul.f32 %v2769_v50, %v2356_v63  ;;  %v1208_v16 = vmul.f32 %v2769_v50, %v2357_v0  ;;  %3745 = vst [vmem:[#allocation4_spill] sm:$0xff] %v2947_v55  ;;  %v2953_v60 = vld [vmem:[%s2675_s14 + $0x46e] sm:$0xff]  ;;  %v2959_v0 = vld [vmem:[%s2675_s14 + $0x47a] sm:$0xff] }
  0x39   : > { %v1294_v29 = vmax.f32 %v1262_v51, 0.0  ;;  %v1295_v35 = vmax.f32 %v1263_v48, 0.0  ;;  %v834_v54 = vadd.f32 %v802_v52, %v733_v15  ;;  %v381_v40 = vmul.f32 %v2657_v3, %v2073_v28  ;;  %3746 = vst [vmem:[#allocation5_spill] sm:$0xff] %v2953_v60  ;;  %v2956_v63 = vld [vmem:[%s2675_s14 + $0x472] sm:$0xff]  ;;  %3748 = vst [vmem:[#allocation7_spill] sm:$0xff] %v2959_v0  ;;  %v2964_v51 = vld [vmem:[%s2675_s14 + $0x47e] sm:$0xff] }
  0x3a   : > { %v934_v27 = vadd.f32 %v902_v56, %v833_v24  ;;  %v382_v46 = vmul.f32 %v2657_v3, %v2074_v18  ;;  %v482_v10 = vmul.f32 %v2662_v4, %v2106_v19  ;;  %v483_v58 = vmul.f32 %v2662_v4, %v2107_v22  ;;  %3747 = vst [vmem:[#allocation6_spill] sm:$0xff] %v2956_v63  ;;  %v2969_v22 = vld [vmem:[%s2675_s14 + $0x486] sm:$0xff] }
  0x3b   : > { %v1325_v52 = vpack.c.bf16 %v1295_v35, %v1294_v29  ;;  %v935_v42 = vadd.f32 %v903_v57, %v834_v54  ;;  %v583_v56 = vmul.f32 %v2667_v5, %v2139_v23  ;;  %v584_v28 = vmul.f32 %v2667_v5, %v2140_v53  ;;  %3749 = vst [vmem:[#allocation8_spill] sm:$0xff] %v2964_v51  ;;  %v2972_v24 = vld [vmem:[%s2675_s14 + $0x706] sm:$0xff]  ;;  %v2975_v57 = vld [vmem:[%s2675_s14 + $0x70e] sm:$0xff] }
  0x3c   : > { %v1037_v48 = vadd.f32 %v1005_v11, %v934_v27  ;;  %v514_v15 = vadd.f32 %v482_v10, %v381_v40  ;;  %v515_v18 = vadd.f32 %v483_v58, %v382_v46  ;;  %v686_v19 = vmul.f32 %v2680_v7, %v2947_v55  ;;  %3750 = vst [vmem:[#allocation9_spill] sm:$0xff] %v2969_v22  ;;  %v2985_v35 = vld [vmem:[%s2675_s14 + $0x712] sm:$0xff]  ;;  %v2990_v46 = vld [vmem:[%s2675_s14 + $0x71a] sm:$0xff]  ;;  %v2996_v58 = vld [vmem:[%s2675_s14 + $0x726] sm:$0xff] }
  0x3d   : > { %3751 = vst [vmem:[#allocation10_spill] sm:$0xff] %v2972_v24  ;;  %3752 = vst [vmem:[#allocation11_spill] sm:$0xff] %v2975_v57  ;;  %2490 = vmatmul.mubr.msk.bf16.vlgmr.msra.gmra.mrb[0].mxu0 %vm1404_vm0, %v1325_v52  ;;  %v1038_v23 = vadd.f32 %v1006_v6, %v935_v42  ;;  %v687_v11 = vmul.f32 %v2680_v7, %v2953_v60  ;;  %v787_v53 = vmul.f32 %v2685_v8, %v2956_v63  ;;  %v2993_v10 = vld [vmem:[%s2675_s14 + $0x71e] sm:$0xff]  ;;  %v2189_v63 = vld [vmem:[%s2675_s14 + $0x62e] sm:$0xff] }
  0x3e   : > { %v788_v29 = vmul.f32 %v2685_v8, %v2959_v0  ;;  %3753 = vst [vmem:[#allocation12_spill] sm:$0xff] %v2985_v35  ;;  %v1138_v54 = vadd.f32 %v1106_v62, %v1037_v48  ;;  %v615_v40 = vadd.f32 %v583_v56, %v514_v15  ;;  %v616_v27 = vadd.f32 %v584_v28, %v515_v18  ;;  %v2089_v28 = vld [vmem:[%s2675_s14 + $0x386] sm:$0xff]  ;;  %v2090_v0 = vld [vmem:[%s2675_s14 + $0x38e] sm:$0xff]  ;;  %v2256_v55 = vld [vmem:[%s2675_s14 + $0x63e] sm:$0xff] }
  0x3f   : > { %v888_v6 = vmul.f32 %v2690_v9, %v2964_v51  ;;  %3754 = vst [vmem:[#allocation13_spill] sm:$0xff] %v2990_v46  ;;  %3755 = vst [vmem:[#allocation14_spill] sm:$0xff] %v2993_v10  ;;  %v1139_v52 = vadd.f32 %v1107_v2, %v1038_v23  ;;  %v889_v42 = vmul.f32 %v2690_v9, %v2969_v22  ;;  %v2122_v2 = vld [vmem:[%s2675_s14 + $0x392] sm:$0xff]  ;;  %v2123_v23 = vld [vmem:[%s2675_s14 + $0x39a] sm:$0xff] }
  0x40   : > { %3756 = vst [vmem:[#allocation15_spill] sm:$0xff] %v2996_v58  ;;  %v991_v62 = vmul.f32 %v2698_v13, %v2972_v24  ;;  %v992_v56 = vmul.f32 %v2698_v13, %v2975_v57  ;;  %v1239_v48 = vadd.f32 %v1207_v25, %v1138_v54  ;;  %v718_v15 = vadd.f32 %v686_v19, %v615_v40  ;;  %v2155_v19 = vld [vmem:[%s2675_s14 + $0x39e] sm:$0xff] }
  0x41   : > { %v719_v18 = vadd.f32 %v687_v11, %v616_v27  ;;  %v1092_v51 = vmul.f32 %v2709_v20, %v2985_v35  ;;  %v1240_v22 = vadd.f32 %v1208_v16, %v1139_v52  ;;  %v1093_v24 = vmul.f32 %v2709_v20, %v2990_v46  ;;  %v2156_v35 = vld [vmem:[%s2675_s14 + $0x3a6] sm:$0xff] }
  0x42   : > { %v1193_v57 = vmul.f32 %v2769_v50, %v2993_v10  ;;  %v1194_v25 = vmul.f32 %v2769_v50, %v2996_v58  ;;  %v1278_v11 = vadd.f32 %v2825_v12, %v1239_v48  ;;  %v819_v54 = vadd.f32 %v787_v53, %v718_v15  ;;  %v2188_v58 = vld [vmem:[%s2675_s14 + $0x626] sm:$0xff]  ;;  %v2222_v48 = vld [vmem:[%s2675_s14 + $0x632] sm:$0xff] }
  0x43   : > { %v820_v40 = vadd.f32 %v788_v29, %v719_v18  ;;  %v397_v27 = vmul.f32 %v2657_v3, %v2089_v28  ;;  %v1279_v16 = vadd.f32 %v2825_v12, %v1240_v22  ;;  %v398_v52 = vmul.f32 %v2657_v3, %v2090_v0 }
  0x44   : > { %v498_v10 = vmul.f32 %v2662_v4, %v2122_v2  ;;  %v499_v46 = vmul.f32 %v2662_v4, %v2123_v23  ;;  %v1310_v60 = vmax.f32 %v1278_v11, 0.0  ;;  %v920_v53 = vadd.f32 %v888_v6, %v819_v54  ;;  %v2223_v2 = vld [vmem:[%s2675_s14 + $0x63a] sm:$0xff] }
  0x45   : > { %v921_v29 = vadd.f32 %v889_v42, %v820_v40  ;;  %v599_v28 = vmul.f32 %v2667_v5, %v2155_v19  ;;  %v1311_v15 = vmax.f32 %v1279_v16, 0.0  ;;  %v600_v0 = vmul.f32 %v2667_v5, %v2156_v35  ;;  %v2257_v42 = vld [vmem:[%s2675_s14 + $0x646] sm:$0xff]  ;;  %v2291_v35 = vld [vmem:[%s2675_s14 + $0x8ce] sm:$0xff] }
  0x46   : > { %v530_v22 = vadd.f32 %v498_v10, %v397_v27  ;;  %v531_v18 = vadd.f32 %v499_v46, %v398_v52  ;;  %v1023_v23 = vadd.f32 %v991_v62, %v920_v53  ;;  %v702_v11 = vmul.f32 %v2680_v7, %v2188_v58  ;;  %v2290_v19 = vld [vmem:[%s2675_s14 + $0x8c6] sm:$0xff]  ;;  %v2324_v27 = vld [vmem:[%s2675_s14 + $0x8d2] sm:$0xff]  ;;  %v2358_v52 = vld [vmem:[%s2675_s14 + $0x8de] sm:$0xff] }
  0x47   : > { %v1024_v17 = vadd.f32 %v992_v56, %v921_v29  ;;  %v703_v6 = vmul.f32 %v2680_v7, %v2189_v63  ;;  %v1333_v54 = vpack.c.bf16 %v1311_v15, %v1310_v60  ;;  %v803_v46 = vmul.f32 %v2685_v8, %v2222_v48  ;;  %v2325_v63 = vld [vmem:[%s2675_s14 + $0x8da] sm:$0xff] }
  0x48   : > { %v631_v40 = vadd.f32 %v599_v28, %v530_v22  ;;  %v632_v10 = vadd.f32 %v600_v0, %v531_v18  ;;  %v1124_v16 = vadd.f32 %v1092_v51, %v1023_v23  ;;  %v804_v56 = vmul.f32 %v2685_v8, %v2223_v2  ;;  %v2359_v51 = vld [vmem:[%s2675_s14 + $0x8e6] sm:$0xff] }
  0x49   : > { %v1125_v62 = vadd.f32 %v1093_v24, %v1024_v17  ;;  %v904_v58 = vmul.f32 %v2690_v9, %v2256_v55  ;;  %2506 = vmatmul.mubr.msk.bf16.vlgmr.msra.gmra.mrb[0].mxu1 %vm1404_vm0, %v1333_v54  ;;  %v905_v29 = vmul.f32 %v2690_v9, %v2257_v42  ;;  %v1007_v28 = vmul.f32 %v2698_v13, %v2290_v19  ;;  %v2075_v17 = vld [vmem:[%s2675_s14 + $0x1fe] sm:$0xff]  ;;  %v2076_v22 = vld [vmem:[%s2675_s14 + $0x206] sm:$0xff]  ;;  %v2141_v42 = vld [vmem:[%s2675_s14 + $0x216] sm:$0xff] }
  0x4a   : > { %v734_v60 = vadd.f32 %v702_v11, %v631_v40  ;;  %v735_v53 = vadd.f32 %v703_v6, %v632_v10  ;;  %v1225_v24 = vadd.f32 %v1193_v57, %v1124_v16  ;;  %v1008_v15 = vmul.f32 %v2698_v13, %v2291_v35  ;;  %v2108_v18 = vld [vmem:[%s2675_s14 + $0x20a] sm:$0xff]  ;;  %v2109_v6 = vld [vmem:[%s2675_s14 + $0x212] sm:$0xff]  ;;  %v2142_v40 = vld [vmem:[%s2675_s14 + $0x21e] sm:$0xff] }
  0x4b   : > { %v1226_v48 = vadd.f32 %v1194_v25, %v1125_v62  ;;  %v1108_v55 = vmul.f32 %v2709_v20, %v2324_v27  ;;  %v1109_v23 = vmul.f32 %v2709_v20, %v2325_v63  ;;  %v1209_v11 = vmul.f32 %v2769_v50, %v2358_v52  ;;  %v3063_v16 = vld [vmem:[%s2675_s14 + $0x49e] sm:$0xff]  ;;  %v3066_v62 = vld [vmem:[%s2675_s14 + $0x4a6] sm:$0xff] }
  0x4c   : > { %v835_v0 = vadd.f32 %v803_v46, %v734_v60  ;;  %v836_v2 = vadd.f32 %v804_v56, %v735_v53  ;;  %v1264_v57 = vadd.f32 %v2825_v12, %v1225_v24  ;;  %v1210_v19 = vmul.f32 %v2769_v50, %v2359_v51  ;;  %3757 = vst [vmem:[#allocation16_spill] sm:$0xff] %v3063_v16  ;;  %v3071_v53 = vld [vmem:[%s2675_s14 + $0x4aa] sm:$0xff]  ;;  %v3075_v24 = vld [vmem:[%s2675_s14 + $0x4b2] sm:$0xff] }
  0x4d   : > { %v1265_v25 = vadd.f32 %v2825_v12, %v1226_v48  ;;  %v383_v54 = vmul.f32 %v2657_v3, %v2075_v17  ;;  %v384_v35 = vmul.f32 %v2657_v3, %v2076_v22  ;;  %v484_v27 = vmul.f32 %v2662_v4, %v2108_v18  ;;  %3758 = vst [vmem:[#allocation17_spill] sm:$0xff] %v3066_v62  ;;  %v3078_v48 = vld [vmem:[%s2675_s14 + $0x4b6] sm:$0xff]  ;;  %v3081_v22 = vld [vmem:[%s2675_s14 + $0x4be] sm:$0xff] }
  0x4e   : > { %v936_v10 = vadd.f32 %v904_v58, %v835_v0  ;;  %v937_v46 = vadd.f32 %v905_v29, %v836_v2  ;;  %v1296_v56 = vmax.f32 %v1264_v57, 0.0  ;;  %v485_v52 = vmul.f32 %v2662_v4, %v2109_v6  ;;  %3759 = vst [vmem:[#allocation18_spill] sm:$0xff] %v3071_v53  ;;  %3760 = vst [vmem:[#allocation19_spill] sm:$0xff] %v3075_v24 }
  0x4f   : > { %v1297_v63 = vmax.f32 %v1265_v25, 0.0  ;;  %v585_v60 = vmul.f32 %v2667_v5, %v2141_v42  ;;  %v516_v51 = vadd.f32 %v484_v27, %v383_v54  ;;  %v586_v17 = vmul.f32 %v2667_v5, %v2142_v40  ;;  %3761 = vst [vmem:[#allocation20_spill] sm:$0xff] %v3078_v48  ;;  %3762 = vst [vmem:[#allocation21_spill] sm:$0xff] %v3081_v22  ;;  %v3093_v54 = vld [vmem:[%s2675_s14 + $0x746] sm:$0xff]  ;;  %v3109_v27 = vld [vmem:[%s2675_s14 + $0x756] sm:$0xff] }
  0x50   : > { %v1039_v58 = vadd.f32 %v1007_v28, %v936_v10  ;;  %v1040_v29 = vadd.f32 %v1008_v15, %v937_v46  ;;  %v517_v0 = vadd.f32 %v485_v52, %v384_v35  ;;  %v688_v2 = vmul.f32 %v2680_v7, %v3063_v16  ;;  %v3088_v15 = vld [vmem:[%s2675_s14 + $0x73e] sm:$0xff]  ;;  %3764 = vst [vmem:[#allocation23_spill] sm:$0xff] %v3093_v54  ;;  %v3096_v40 = vld [vmem:[%s2675_s14 + $0x74a] sm:$0xff]  ;;  %v3099_v10 = vld [vmem:[%s2675_s14 + $0x752] sm:$0xff] }
  0x51   : > { %v1326_v18 = vpack.c.bf16 %v1297_v63, %v1296_v56  ;;  %v689_v28 = vmul.f32 %v2680_v7, %v3066_v62  ;;  %3763 = vst [vmem:[#allocation22_spill] sm:$0xff] %v3088_v15  ;;  %v617_v57 = vadd.f32 %v585_v60, %v516_v51  ;;  %v789_v25 = vmul.f32 %v2685_v8, %v3071_v53  ;;  %v2092_v51 = vld [vmem:[%s2675_s14 + $0x3c6] sm:$0xff] }
  0x52   : > { %v1140_v6 = vadd.f32 %v1108_v55, %v1039_v58  ;;  %v1141_v42 = vadd.f32 %v1109_v23, %v1040_v29  ;;  %3765 = vst [vmem:[#allocation24_spill] sm:$0xff] %v3096_v40  ;;  %3766 = vst [vmem:[#allocation25_spill] sm:$0xff] %v3099_v10  ;;  %v618_v46 = vadd.f32 %v586_v17, %v517_v0  ;;  %v3114_v58 = vld [vmem:[%s2675_s14 + $0x75e] sm:$0xff]  ;;  %v2124_v0 = vld [vmem:[%s2675_s14 + $0x3ca] sm:$0xff] }
  0x53   : > { %2493 = vmatprep.mubr.msk.bf16.mxu0 %vm1404_vm0, %v1326_v18  ;;  %v790_v55 = vmul.f32 %v2685_v8, %v3075_v24  ;;  %v890_v23 = vmul.f32 %v2690_v9, %v3078_v48  ;;  %v891_v35 = vmul.f32 %v2690_v9, %v3081_v22  ;;  %3767 = vst [vmem:[#allocation26_spill] sm:$0xff] %v3109_v27  ;;  %3768 = vst [vmem:[#allocation27_spill] sm:$0xff] %v3114_v58  ;;  %v2091_v29 = vld [vmem:[%s2675_s14 + $0x3be] sm:$0xff]  ;;  %v2191_v48 = vld [vmem:[%s2675_s14 + $0x666] sm:$0xff] }
  0x54   : > { %v1241_v56 = vadd.f32 %v1209_v11, %v1140_v6  ;;  %v1242_v63 = vadd.f32 %v1210_v19, %v1141_v42  ;;  %v720_v52 = vadd.f32 %v688_v2, %v617_v57  ;;  %v993_v60 = vmul.f32 %v2698_v13, %v3088_v15  ;;  %v2125_v57 = vld [vmem:[%s2675_s14 + $0x3d2] sm:$0xff]  ;;  %v2190_v22 = vld [vmem:[%s2675_s14 + $0x65e] sm:$0xff]  ;;  %v2224_v24 = vld [vmem:[%s2675_s14 + $0x66a] sm:$0xff] }
  0x55   : > { %v721_v17 = vadd.f32 %v689_v28, %v618_v46  ;;  %v994_v18 = vmul.f32 %v2698_v13, %v3093_v54  ;;  %v1094_v11 = vmul.f32 %v2709_v20, %v3096_v40  ;;  %v1095_v19 = vmul.f32 %v2709_v20, %v3099_v10  ;;  %v2157_v46 = vld [vmem:[%s2675_s14 + $0x3d6] sm:$0xff]  ;;  %v2158_v54 = vld [vmem:[%s2675_s14 + $0x3de] sm:$0xff]  ;;  %v2326_v16 = vld [vmem:[%s2675_s14 + $0x90a] sm:$0xff] }
  0x56   : > { %v1280_v2 = vadd.f32 %v2825_v12, %v1241_v56  ;;  %v1281_v6 = vadd.f32 %v2825_v12, %v1242_v63  ;;  %v821_v42 = vadd.f32 %v789_v25, %v720_v52  ;;  %v1195_v28 = vmul.f32 %v2769_v50, %v3109_v27 }
  0x57   : > { %v822_v15 = vadd.f32 %v790_v55, %v721_v17  ;;  %v1196_v10 = vmul.f32 %v2769_v50, %v3114_v58  ;;  %v399_v40 = vmul.f32 %v2657_v3, %v2091_v29  ;;  %v400_v56 = vmul.f32 %v2657_v3, %v2092_v51  ;;  %v2225_v51 = vld [vmem:[%s2675_s14 + $0x672] sm:$0xff] }
  0x58   : > { %v1312_v63 = vmax.f32 %v1280_v2, 0.0  ;;  %v1313_v25 = vmax.f32 %v1281_v6, 0.0  ;;  %v922_v52 = vadd.f32 %v890_v23, %v821_v42  ;;  %v500_v27 = vmul.f32 %v2662_v4, %v2124_v0  ;;  %v2258_v58 = vld [vmem:[%s2675_s14 + $0x676] sm:$0xff]  ;;  %v2259_v0 = vld [vmem:[%s2675_s14 + $0x67e] sm:$0xff] }
  0x59   : > { %v923_v53 = vadd.f32 %v891_v35, %v822_v15  ;;  %v501_v55 = vmul.f32 %v2662_v4, %v2125_v57  ;;  %v601_v17 = vmul.f32 %v2667_v5, %v2157_v46  ;;  %v602_v29 = vmul.f32 %v2667_v5, %v2158_v54  ;;  %v2292_v42 = vld [vmem:[%s2675_s14 + $0x8fe] sm:$0xff]  ;;  %v2293_v54 = vld [vmem:[%s2675_s14 + $0x906] sm:$0xff] }
  0x5a   : > { %v1334_v2 = vpack.c.bf16 %v1313_v25, %v1312_v63  ;;  %v1025_v62 = vadd.f32 %v993_v60, %v922_v52  ;;  %v532_v6 = vadd.f32 %v500_v27, %v399_v40  ;;  %v704_v23 = vmul.f32 %v2680_v7, %v2190_v22  ;;  %v2361_v25 = vld [vmem:[%s2675_s14 + $0x91e] sm:$0xff]  ;;  %v2077_v52 = vld [vmem:[%s2675_s14 + $0x236] sm:$0xff] }
  0x5b   : > { %v1026_v15 = vadd.f32 %v994_v18, %v923_v53  ;;  %v533_v35 = vadd.f32 %v501_v55, %v400_v56  ;;  %v705_v57 = vmul.f32 %v2680_v7, %v2191_v48  ;;  %v805_v46 = vmul.f32 %v2685_v8, %v2224_v24  ;;  %v2327_v53 = vld [vmem:[%s2675_s14 + $0x912] sm:$0xff] }
  0x5c   : > { %2509 = vmatprep.mubr.msk.bf16.mxu1 %vm1404_vm0, %v1334_v2  ;;  %v1126_v60 = vadd.f32 %v1094_v11, %v1025_v62  ;;  %v633_v40 = vadd.f32 %v601_v17, %v532_v6  ;;  %v806_v22 = vmul.f32 %v2685_v8, %v2225_v51  ;;  %v906_v27 = vmul.f32 %v2690_v9, %v2258_v58  ;;  %v2360_v18 = vld [vmem:[%s2675_s14 + $0x916] sm:$0xff]  ;;  %v2078_v58 = vld [vmem:[%s2675_s14 + $0x23e] sm:$0xff] }
  0x5d   : > { %v1127_v56 = vadd.f32 %v1095_v19, %v1026_v15  ;;  %v634_v48 = vadd.f32 %v602_v29, %v533_v35  ;;  %v907_v24 = vmul.f32 %v2690_v9, %v2259_v0  ;;  %v1009_v63 = vmul.f32 %v2698_v13, %v2292_v42  ;;  %v2110_v51 = vld [vmem:[%s2675_s14 + $0x242] sm:$0xff]  ;;  %v2111_v0 = vld [vmem:[%s2675_s14 + $0x24a] sm:$0xff]  ;;  %v2144_v35 = vld [vmem:[%s2675_s14 + $0x256] sm:$0xff] }
  0x5e   : > { %v1227_v62 = vadd.f32 %v1195_v28, %v1126_v60  ;;  %v736_v11 = vadd.f32 %v704_v23, %v633_v40  ;;  %v1010_v55 = vmul.f32 %v2698_v13, %v2293_v54  ;;  %v1110_v17 = vmul.f32 %v2709_v20, %v2326_v16  ;;  %v2143_v42 = vld [vmem:[%s2675_s14 + $0x24e] sm:$0xff]  ;;  %v2176_v40 = vld [vmem:[%s2675_s14 + $0x4d6] sm:$0xff] }
  0x5f   : > { %v1228_v19 = vadd.f32 %v1196_v10, %v1127_v56  ;;  %v737_v29 = vadd.f32 %v705_v57, %v634_v48  ;;  %v1111_v2 = vmul.f32 %v2709_v20, %v2327_v53  ;;  %v1211_v6 = vmul.f32 %v2769_v50, %v2360_v18  ;;  %v2177_v53 = vld [vmem:[%s2675_s14 + $0x4de] sm:$0xff] }
  0x60   : > { %v1266_v28 = vadd.f32 %v2825_v12, %v1227_v62  ;;  %v837_v23 = vadd.f32 %v805_v46, %v736_v11  ;;  %v1212_v15 = vmul.f32 %v2769_v50, %v2361_v25  ;;  %v385_v16 = vmul.f32 %v2657_v3, %v2077_v52  ;;  %v2210_v25 = vld [vmem:[%s2675_s14 + $0x4e2] sm:$0xff]  ;;  %v2211_v11 = vld [vmem:[%s2675_s14 + $0x4ea] sm:$0xff] }
  0x61   : > { %v1267_v10 = vadd.f32 %v2825_v12, %v1228_v19  ;;  %v838_v57 = vadd.f32 %v806_v22, %v737_v29  ;;  %v386_v54 = vmul.f32 %v2657_v3, %v2078_v58  ;;  %v486_v60 = vmul.f32 %v2662_v4, %v2110_v51  ;;  %v2244_v58 = vld [vmem:[%s2675_s14 + $0x4ee] sm:$0xff]  ;;  %v2245_v29 = vld [vmem:[%s2675_s14 + $0x4f6] sm:$0xff] }
  0x62   : > { %v1298_v18 = vmax.f32 %v1266_v28, 0.0  ;;  %v938_v46 = vadd.f32 %v906_v27, %v837_v23  ;;  %v487_v56 = vmul.f32 %v2662_v4, %v2111_v0  ;;  %v587_v48 = vmul.f32 %v2667_v5, %v2143_v42  ;;  %v2278_v0 = vld [vmem:[%s2675_s14 + $0x776] sm:$0xff] }
  0x63   : > { %v1299_v52 = vmax.f32 %v1267_v10, 0.0  ;;  %v939_v62 = vadd.f32 %v907_v24, %v838_v57  ;;  %v518_v22 = vadd.f32 %v486_v60, %v385_v16  ;;  %v588_v3 = vmul.f32 %v2667_v5, %v2144_v35  ;;  %v2279_v5 = vld [vmem:[%s2675_s14 + $0x77e] sm:$0xff] }
  0x64   : > { %v1041_v51 = vadd.f32 %v1009_v63, %v938_v46  ;;  %v519_v19 = vadd.f32 %v487_v56, %v386_v54  ;;  %v690_v27 = vmul.f32 %v2680_v7, %v2176_v40  ;;  %v691_v4 = vmul.f32 %v2680_v7, %v2177_v53  ;;  %v2312_v16 = vld [vmem:[%s2675_s14 + $0x782] sm:$0xff]  ;;  %v2313_v54 = vld [vmem:[%s2675_s14 + $0x78a] sm:$0xff]  ;;  %v2093_v46 = vld [vmem:[%s2675_s14 + $0x3f6] sm:$0xff] }
  0x65   : > { %v1327_v42 = vpack.c.bf16 %v1299_v52, %v1298_v18  ;;  %v1042_v28 = vadd.f32 %v1010_v55, %v939_v62  ;;  %v619_v24 = vadd.f32 %v587_v48, %v518_v22  ;;  %v791_v23 = vmul.f32 %v2685_v8, %v2210_v25  ;;  %v2346_v7 = vld [vmem:[%s2675_s14 + $0x78e] sm:$0xff]  ;;  %v2347_v18 = vld [vmem:[%s2675_s14 + $0x796] sm:$0xff]  ;;  %v2094_v25 = vld [vmem:[%s2675_s14 + $0x3fe] sm:$0xff] }
  0x66   : > { %v1142_v35 = vadd.f32 %v1110_v17, %v1041_v51  ;;  %v620_v63 = vadd.f32 %v588_v3, %v519_v19  ;;  %v792_v10 = vmul.f32 %v2685_v8, %v2211_v11  ;;  %v892_v57 = vmul.f32 %v2690_v9, %v2244_v58 }
  0x67   : > { %2494 = vmatmul.mubr.msk.bf16.gmra.mrb[4].mxu0 %vm1404_vm0, %v1327_v42  ;;  %v1143_v60 = vadd.f32 %v1111_v2, %v1042_v28  ;;  %v722_v55 = vadd.f32 %v690_v27, %v619_v24  ;;  %v893_v40 = vmul.f32 %v2690_v9, %v2245_v29  ;;  %v995_v53 = vmul.f32 %v2698_v13, %v2278_v0  ;;  %v3227_v29 = vld [vmem:[%s3714_s1 + $0x2] ss:$0 sm:$0xff] }
  0x68   : > { %v1243_v56 = vadd.f32 %v1211_v6, %v1142_v35  ;;  %v723_v17 = vadd.f32 %v691_v4, %v620_v63  ;;  %v996_v48 = vmul.f32 %v2698_v13, %v2279_v5  ;;  %v1096_v8 = vmul.f32 %v2709_v20, %v2312_v16  ;;  %v3210_v6 = vld [vmem:[%s3714_s1] ss:$0 sm:$0xff]  ;;  %v2294_v35 = vld [vmem:[%s2675_s14 + $0x936] sm:$0xff] }
  0x69   : > { %v1244_v52 = vadd.f32 %v1212_v15, %v1143_v60  ;;  %v823_v62 = vadd.f32 %v791_v23, %v722_v55  ;;  %v1097_v22 = vmul.f32 %v2709_v20, %v2313_v54  ;;  %v1197_v2 = vmul.f32 %v2769_v50, %v2346_v7  ;;  %v3218_v20 = vld [vmem:[%s3714_s1 + $0x1] ss:$0 sm:$0xff] }
  0x6a   : > { %v1282_v3 = vadd.f32 %v2825_v12, %v1243_v56  ;;  %v824_v9 = vadd.f32 %v792_v10, %v723_v17  ;;  %v1198_v11 = vmul.f32 %v2769_v50, %v2347_v18  ;;  %v401_v13 = vmul.f32 %v3210_v6, %v2093_v46  ;;  %v2295_v7 = vld [vmem:[%s2675_s14 + $0x93e] sm:$0xff]  ;;  %v2329_v18 = vld [vmem:[%s2675_s14 + $0x94a] sm:$0xff] }
  0x6b   : > { %v1283_v58 = vadd.f32 %v2825_v12, %v1244_v52  ;;  %v924_v15 = vadd.f32 %v892_v57, %v823_v62  ;;  %v402_v51 = vmul.f32 %v3210_v6, %v2094_v25  ;;  %v502_v50 = vmul.f32 %v3218_v20, %v2717_v26 }
  0x6c   : > { %v1314_v19 = vmax.f32 %v1282_v3, 0.0  ;;  %v925_v27 = vadd.f32 %v893_v40, %v824_v9  ;;  %v503_v4 = vmul.f32 %v3218_v20, %v2722_v30  ;;  %v603_v0 = vmul.f32 %v3227_v29, %v2727_v32  ;;  %v3236_v30 = vld [vmem:[%s3714_s1 + $0x4] ss:$0 sm:$0xff]  ;;  %v3257_v40 = vld [vmem:[%s3714_s1 + $0x6] ss:$0 sm:$0xff]  ;;  %v2112_v3 = vld [vmem:[%s2675_s14 + $0x27a] sm:$0xff] }
  0x6d   : > { %v1315_v42 = vmax.f32 %v1283_v58, 0.0  ;;  %v1027_v28 = vadd.f32 %v995_v53, %v924_v15  ;;  %v534_v24 = vadd.f32 %v502_v50, %v401_v13  ;;  %v604_v26 = vmul.f32 %v3227_v29, %v2730_v33  ;;  %v3246_v33 = vld [vmem:[%s3714_s1 + $0x5] ss:$0 sm:$0xff]  ;;  %v3288_v58 = vld [vmem:[%s3714_s1 + $0xa] ss:$0 sm:$0xff] }
  0x6e   : > { %v1028_v23 = vadd.f32 %v996_v48, %v925_v27  ;;  %v535_v5 = vadd.f32 %v503_v4, %v402_v51  ;;  %v706_v16 = vmul.f32 %v3236_v30, %v2737_v37  ;;  %v707_v32 = vmul.f32 %v3236_v30, %v2740_v38  ;;  %v2328_v37 = vld [vmem:[%s2675_s14 + $0x942] sm:$0xff] }
  0x6f   : > { %v1335_v63 = vpack.c.bf16 %v1315_v42, %v1314_v19  ;;  %v1128_v10 = vadd.f32 %v1096_v8, %v1027_v28  ;;  %v635_v57 = vadd.f32 %v603_v0, %v534_v24  ;;  %v807_v54 = vmul.f32 %v3246_v33, %v2743_v39  ;;  %v2362_v39 = vld [vmem:[%s2675_s14 + $0x94e] sm:$0xff]  ;;  %v2113_v51 = vld [vmem:[%s2675_s14 + $0x282] sm:$0xff] }
  0x70   : > { %v1129_v60 = vadd.f32 %v1097_v22, %v1028_v23  ;;  %v636_v55 = vadd.f32 %v604_v26, %v535_v5  ;;  %v808_v38 = vmul.f32 %v3246_v33, %v2750_v43  ;;  %v908_v53 = vmul.f32 %v3257_v40, %v2753_v44  ;;  %v3269_v43 = vld [vmem:[%s3714_s1 + $0x8] ss:$0 sm:$0xff]  ;;  %v2363_v44 = vld [vmem:[%s2675_s14 + $0x956] sm:$0xff]  ;;  %v2079_v8 = vld [vmem:[%s2675_s14 + $0x26e] sm:$0xff] }
  0x71   : > { %2510 = vmatmul.mubr.msk.bf16.gmra.mrb[4].mxu1 %vm1404_vm0, %v1335_v63  ;;  %v1229_v46 = vadd.f32 %v1197_v2, %v1128_v10  ;;  %v738_v56 = vadd.f32 %v706_v16, %v635_v57  ;;  %v909_v17 = vmul.f32 %v3257_v40, %v2756_v45  ;;  %v1011_v48 = vmul.f32 %v3269_v43, %v2294_v35  ;;  %v3278_v45 = vld [vmem:[%s3714_s1 + $0x9] ss:$0 sm:$0xff]  ;;  %v2080_v2 = vld [vmem:[%s2675_s14 + $0x276] sm:$0xff]  ;;  %v2146_v42 = vld [vmem:[%s2675_s14 + $0x28e] sm:$0xff] }
  0x72   : > { %v1230_v25 = vadd.f32 %v1198_v11, %v1129_v60  ;;  %v739_v52 = vadd.f32 %v707_v32, %v636_v55  ;;  %v1012_v62 = vmul.f32 %v3269_v43, %v2295_v7  ;;  %v1112_v22 = vmul.f32 %v3278_v45, %v2328_v37  ;;  %v2145_v50 = vld [vmem:[%s2675_s14 + $0x286] sm:$0xff]  ;;  %v2178_v28 = vld [vmem:[%s2675_s14 + $0x50e] sm:$0xff]  ;;  %v2179_v16 = vld [vmem:[%s2675_s14 + $0x516] sm:$0xff] }
  0x73   : > { %v1268_v9 = vadd.f32 %v2825_v12, %v1229_v46  ;;  %v839_v13 = vadd.f32 %v807_v54, %v738_v56  ;;  %v1113_v11 = vmul.f32 %v3278_v45, %v2329_v18  ;;  %v1213_v15 = vmul.f32 %v3288_v58, %v2362_v39  ;;  %v2212_v57 = vld [vmem:[%s2675_s14 + $0x51a] sm:$0xff]  ;;  %v2213_v54 = vld [vmem:[%s2675_s14 + $0x522] sm:$0xff] }
  0x74   : > { %v1269_v19 = vadd.f32 %v2825_v12, %v1230_v25  ;;  %v840_v27 = vadd.f32 %v808_v38, %v739_v52  ;;  %v1214_v4 = vmul.f32 %v3288_v58, %v2363_v44  ;;  %v387_v0 = vmul.f32 %v3210_v6, %v2079_v8  ;;  %v2246_v38 = vld [vmem:[%s2675_s14 + $0x526] sm:$0xff]  ;;  %v2281_v44 = vld [vmem:[%s2675_s14 + $0x7b6] sm:$0xff] }
  0x75   : > { %v1300_v24 = vmax.f32 %v1268_v9, 0.0  ;;  %v940_v26 = vadd.f32 %v908_v53, %v839_v13  ;;  %v388_v23 = vmul.f32 %v3210_v6, %v2080_v2  ;;  %v488_v5 = vmul.f32 %v3218_v20, %v2112_v3  ;;  %v2247_v53 = vld [vmem:[%s2675_s14 + $0x52e] sm:$0xff]  ;;  %v2314_v2 = vld [vmem:[%s2675_s14 + $0x7ba] sm:$0xff]  ;;  %v2315_v3 = vld [vmem:[%s2675_s14 + $0x7c2] sm:$0xff] }
  0x76   : > { %v1301_v32 = vmax.f32 %v1269_v19, 0.0  ;;  %v941_v35 = vadd.f32 %v909_v17, %v840_v27  ;;  %v489_v63 = vmul.f32 %v3218_v20, %v2113_v51  ;;  %v589_v10 = vmul.f32 %v3227_v29, %v2145_v50  ;;  %v2280_v17 = vld [vmem:[%s2675_s14 + $0x7ae] sm:$0xff]  ;;  %v2348_v50 = vld [vmem:[%s2675_s14 + $0x7c6] sm:$0xff] }
  0x77   : > { %v1043_v7 = vadd.f32 %v1011_v48, %v940_v26  ;;  %v520_v37 = vadd.f32 %v488_v5, %v387_v0  ;;  %v590_v60 = vmul.f32 %v3227_v29, %v2146_v42  ;;  %v692_v55 = vmul.f32 %v3236_v30, %v2178_v28  ;;  %v2349_v19 = vld [vmem:[%s2675_s14 + $0x7ce] sm:$0xff] }
  0x78   : > { %v1328_v18 = vpack.c.bf16 %v1301_v32, %v1300_v24  ;;  %v1044_v39 = vadd.f32 %v1012_v62, %v941_v35  ;;  %v521_v46 = vadd.f32 %v489_v63, %v388_v23  ;;  %v693_v56 = vmul.f32 %v3236_v30, %v2179_v16 }
  0x79   : > { %v1144_v8 = vadd.f32 %v1112_v22, %v1043_v7  ;;  %v621_v48 = vadd.f32 %v589_v10, %v520_v37  ;;  %v793_v25 = vmul.f32 %v3246_v33, %v2212_v57  ;;  %v794_v52 = vmul.f32 %v3246_v33, %v2213_v54 }
  0x7a   : > { %2497 = vmatprep.mubr.msk.bf16.mxu0 %vm1404_vm0, %v1328_v18  ;;  %v1145_v9 = vadd.f32 %v1113_v11, %v1044_v39  ;;  %v622_v13 = vadd.f32 %v590_v60, %v521_v46  ;;  %v894_v62 = vmul.f32 %v3257_v40, %v2246_v38  ;;  %v895_v51 = vmul.f32 %v3257_v40, %v2247_v53  ;;  %v2296_v53 = vld [vmem:[%s2675_s14 + $0x96e] sm:$0xff]  ;;  %v2297_v46 = vld [vmem:[%s2675_s14 + $0x976] sm:$0xff] }
  0x7b   : > { %v1245_v27 = vadd.f32 %v1213_v15, %v1144_v8  ;;  %v724_v0 = vadd.f32 %v692_v55, %v621_v48  ;;  %v997_v22 = vmul.f32 %v3269_v43, %v2280_v17  ;;  %v998_v42 = vmul.f32 %v3269_v43, %v2281_v44  ;;  %v2331_v8 = vld [vmem:[%s2675_s14 + $0x982] sm:$0xff] }
  0x7c   : > { %v1246_v28 = vadd.f32 %v1214_v4, %v1145_v9  ;;  %v725_v24 = vadd.f32 %v693_v56, %v622_v13  ;;  %v1098_v26 = vmul.f32 %v3278_v45, %v2314_v2  ;;  %v1099_v23 = vmul.f32 %v3278_v45, %v2315_v3  ;;  %v2364_v48 = vld [vmem:[%s2675_s14 + $0x986] sm:$0xff]  ;;  %v2365_v3 = vld [vmem:[%s2675_s14 + $0x98e] sm:$0xff] }
  0x7d   : > { %v1284_v11 = vadd.f32 %v2825_v12, %v1245_v27  ;;  %v825_v5 = vadd.f32 %v793_v25, %v724_v0  ;;  %v1199_v16 = vmul.f32 %v3288_v58, %v2348_v50  ;;  %v1200_v32 = vmul.f32 %v3288_v58, %v2349_v19  ;;  %v2082_v50 = vld [vmem:[%s2675_s14 + $0x2ae] sm:$0xff] }
  0x7e   : > { %v1285_v15 = vadd.f32 %v2825_v12, %v1246_v28  ;;  %v826_v35 = vadd.f32 %v794_v52, %v725_v24  ;;  %v403_v63 = vmul.f32 %v3210_v6, %v2833_v49  ;;  %v404_v4 = vmul.f32 %v3210_v6, %v2836_v21  ;;  %v2114_v19 = vld [vmem:[%s2675_s14 + $0x2b2] sm:$0xff]  ;;  %v3372_v28 = vld [vmem:[%s3715_s2] ss:$0 sm:$0xff] }
  0x7f   : > { %v1316_v10 = vmax.f32 %v1284_v11, 0.0  ;;  %v926_v57 = vadd.f32 %v894_v62, %v825_v5  ;;  %v504_v54 = vmul.f32 %v3218_v20, %v2843_v31  ;;  %v505_v7 = vmul.f32 %v3218_v20, %v2846_v34  ;;  %v2147_v5 = vld [vmem:[%s2675_s14 + $0x2be] sm:$0xff] }
  0x80   : > { %v1317_v37 = vmax.f32 %v1285_v15, 0.0  ;;  %v927_v60 = vadd.f32 %v895_v51, %v826_v35  ;;  %v605_v12 = vmul.f32 %v3227_v29, %v2854_v36  ;;  %v606_v49 = vmul.f32 %v3227_v29, %v2857_v59  ;;  %v2081_v51 = vld [vmem:[%s2675_s14 + $0x2a6] sm:$0xff] }
  0x81   : > { %v1029_v21 = vadd.f32 %v997_v22, %v926_v57  ;;  %v536_v55 = vadd.f32 %v504_v54, %v403_v63  ;;  %v537_v38 = vadd.f32 %v505_v7, %v404_v4  ;;  %v708_v31 = vmul.f32 %v3236_v30, %v2860_v41  ;;  %v2330_v41 = vld [vmem:[%s2675_s14 + $0x97a] sm:$0xff]  ;;  %v2180_v4 = vld [vmem:[%s2675_s14 + $0x546] sm:$0xff] }
  0x82   : > { %v1336_v18 = vpack.c.bf16 %v1317_v37, %v1316_v10  ;;  %v1030_v34 = vadd.f32 %v998_v42, %v927_v60  ;;  %v709_v39 = vmul.f32 %v3236_v30, %v2867_v1  ;;  %v809_v36 = vmul.f32 %v3246_v33, %v2872_v47  ;;  %v3769_v47 = vld [vmem:[#allocation3_spill] sm:$0xff]  ;;  %v2181_v37 = vld [vmem:[%s2675_s14 + $0x54e] sm:$0xff] }
  0x83   : > { %v1130_v59 = vadd.f32 %v1098_v26, %v1029_v21  ;;  %v637_v56 = vadd.f32 %v605_v12, %v536_v55  ;;  %v638_v17 = vadd.f32 %v606_v49, %v537_v38  ;;  %v810_v44 = vmul.f32 %v3246_v33, %v2875_v61  ;;  %v2115_v42 = vld [vmem:[%s2675_s14 + $0x2ba] sm:$0xff]  ;;  %v2214_v60 = vld [vmem:[%s2675_s14 + $0x552] sm:$0xff] }
  0x84   : > { %2513 = vmatprep.mubr.msk.bf16.mxu1 %vm1404_vm0, %v1336_v18  ;;  %v1131_v25 = vadd.f32 %v1099_v23, %v1030_v34  ;;  %v910_v1 = vmul.f32 %v3257_v40, %v2878_v14  ;;  %v911_v52 = vmul.f32 %v3257_v40, %v3769_v47  ;;  %v1013_v2 = vmul.f32 %v3269_v43, %v2296_v53  ;;  %v2215_v38 = vld [vmem:[%s2675_s14 + $0x55a] sm:$0xff]  ;;  %v2316_v47 = vld [vmem:[%s2675_s14 + $0x7f2] sm:$0xff] }
  0x85   : > { %v1231_v9 = vadd.f32 %v1199_v16, %v1130_v59  ;;  %v740_v13 = vadd.f32 %v708_v31, %v637_v56  ;;  %v741_v61 = vadd.f32 %v709_v39, %v638_v17  ;;  %v1014_v62 = vmul.f32 %v3269_v43, %v2297_v46  ;;  %v2148_v16 = vld [vmem:[%s2675_s14 + $0x2c6] sm:$0xff]  ;;  %v2248_v39 = vld [vmem:[%s2675_s14 + $0x55e] sm:$0xff] }
  0x86   : > { %v1232_v27 = vadd.f32 %v1200_v32, %v1131_v25  ;;  %v1114_v14 = vmul.f32 %v3278_v45, %v2330_v41  ;;  %v1115_v0 = vmul.f32 %v3278_v45, %v2331_v8  ;;  %v1215_v22 = vmul.f32 %v3288_v58, %v2364_v48  ;;  %v2282_v46 = vld [vmem:[%s2675_s14 + $0x7e6] sm:$0xff]  ;;  %v2283_v41 = vld [vmem:[%s2675_s14 + $0x7ee] sm:$0xff] }
  0x87   : > { %v1270_v24 = vadd.f32 %v3372_v28, %v1231_v9  ;;  %v841_v26 = vadd.f32 %v809_v36, %v740_v13  ;;  %v842_v23 = vadd.f32 %v810_v44, %v741_v61  ;;  %v1216_v11 = vmul.f32 %v3288_v58, %v2365_v3  ;;  %v2249_v36 = vld [vmem:[%s2675_s14 + $0x566] sm:$0xff] }
  0x88   : > { %v1271_v32 = vadd.f32 %v3372_v28, %v1232_v27  ;;  %v389_v15 = vmul.f32 %v3210_v6, %v2081_v51  ;;  %v390_v35 = vmul.f32 %v3210_v6, %v2082_v50  ;;  %v490_v63 = vmul.f32 %v3218_v20, %v2114_v19 }
  0x89   : > { %v1302_v10 = vmax.f32 %v1270_v24, 0.0  ;;  %v942_v57 = vadd.f32 %v910_v1, %v841_v26  ;;  %v943_v54 = vadd.f32 %v911_v52, %v842_v23  ;;  %v491_v7 = vmul.f32 %v3218_v20, %v2115_v42  ;;  %v2317_v52 = vld [vmem:[%s2675_s14 + $0x7fa] sm:$0xff] }
  0x8a   : > { %v1303_v12 = vmax.f32 %v1271_v32, 0.0  ;;  %v522_v49 = vadd.f32 %v490_v63, %v389_v15  ;;  %v591_v21 = vmul.f32 %v3227_v29, %v2147_v5  ;;  %v592_v55 = vmul.f32 %v3227_v29, %v2148_v16  ;;  %v3771_v15 = vld [vmem:[#allocation5_spill] sm:$0xff]  ;;  %v3772_v63 = vld [vmem:[#allocation6_spill] sm:$0xff] }
  0x8b   : > { %v1045_v31 = vadd.f32 %v1013_v2, %v942_v57  ;;  %v1046_v53 = vadd.f32 %v1014_v62, %v943_v54  ;;  %v523_v18 = vadd.f32 %v491_v7, %v390_v35  ;;  %v694_v34 = vmul.f32 %v3236_v30, %v2180_v4  ;;  %v2350_v2 = vld [vmem:[%s2675_s14 + $0x7fe] sm:$0xff]  ;;  %v2351_v62 = vld [vmem:[%s2675_s14 + $0x806] sm:$0xff] }
  0x8c   : > { %v1329_v59 = vpack.c.bf16 %v1303_v12, %v1302_v10  ;;  %v623_v56 = vadd.f32 %v591_v21, %v522_v49  ;;  %v695_v17 = vmul.f32 %v3236_v30, %v2181_v37  ;;  %v795_v44 = vmul.f32 %v3246_v33, %v2214_v60  ;;  %v3773_v7 = vld [vmem:[#allocation7_spill] sm:$0xff]  ;;  %v3774_v49 = vld [vmem:[#allocation8_spill] sm:$0xff] }
  0x8d   : > { %v1146_v8 = vadd.f32 %v1114_v14, %v1045_v31  ;;  %v1147_v48 = vadd.f32 %v1115_v0, %v1046_v53  ;;  %v624_v25 = vadd.f32 %v592_v55, %v523_v18  ;;  %v796_v1 = vmul.f32 %v3246_v33, %v2215_v38  ;;  %v3775_v55 = vld [vmem:[#allocation9_spill] sm:$0xff] }
  0x8e   : > { %2498 = vmatmul.mubr.msk.bf16.gmra.mrb[8].mxu0 %vm1404_vm0, %v1329_v59  ;;  %v726_v3 = vadd.f32 %v694_v34, %v623_v56  ;;  %v896_v9 = vmul.f32 %v3257_v40, %v2248_v39  ;;  %v897_v13 = vmul.f32 %v3257_v40, %v2249_v36  ;;  %v999_v61 = vmul.f32 %v3269_v43, %v2282_v46  ;;  %v3776_v34 = vld [vmem:[#allocation10_spill] sm:$0xff]  ;;  %v2298_v36 = vld [vmem:[%s2675_s14 + $0x9a6] sm:$0xff] }
  0x8f   : > { %v1247_v51 = vadd.f32 %v1215_v22, %v1146_v8  ;;  %v1248_v50 = vadd.f32 %v1216_v11, %v1147_v48  ;;  %v727_v19 = vadd.f32 %v695_v17, %v624_v25  ;;  %v1000_v27 = vmul.f32 %v3269_v43, %v2283_v41  ;;  %v3770_v22 = vld [vmem:[#allocation4_spill] sm:$0xff]  ;;  %v3777_v56 = vld [vmem:[#allocation11_spill] sm:$0xff]  ;;  %v2332_v48 = vld [vmem:[%s2675_s14 + $0x9b2] sm:$0xff] }
  0x90   : > { %v827_v14 = vadd.f32 %v795_v44, %v726_v3  ;;  %v1100_v0 = vmul.f32 %v3278_v45, %v2316_v47  ;;  %v1101_v42 = vmul.f32 %v3278_v45, %v2317_v52  ;;  %v1201_v24 = vmul.f32 %v3288_v58, %v2350_v2  ;;  %v3778_v44 = vld [vmem:[#allocation12_spill] sm:$0xff]  ;;  %v3779_v47 = vld [vmem:[#allocation13_spill] sm:$0xff]  ;;  %v3780_v2 = vld [vmem:[#allocation14_spill] sm:$0xff] }
  0x91   : > { %v1286_v26 = vadd.f32 %v3372_v28, %v1247_v51  ;;  %v1287_v23 = vadd.f32 %v3372_v28, %v1248_v50  ;;  %v828_v5 = vadd.f32 %v796_v1, %v727_v19  ;;  %v1202_v16 = vmul.f32 %v3288_v58, %v2351_v62  ;;  %v2299_v8 = vld [vmem:[%s2675_s14 + $0x9ae] sm:$0xff]  ;;  %v3781_v51 = vld [vmem:[#allocation15_spill] sm:$0xff] }
  0x92   : > { %v928_v32 = vadd.f32 %v896_v9, %v827_v14  ;;  %v405_v11 = vmul.f32 %v3210_v6, %v3770_v22  ;;  %v406_v35 = vmul.f32 %v3210_v6, %v3771_v15  ;;  %v506_v4 = vmul.f32 %v3218_v20, %v3772_v63  ;;  %v2333_v9 = vld [vmem:[%s2675_s14 + $0x9ba] sm:$0xff] }
  0x93   : > { %v1318_v10 = vmax.f32 %v1286_v26, 0.0  ;;  %v1319_v57 = vmax.f32 %v1287_v23, 0.0  ;;  %v929_v54 = vadd.f32 %v897_v13, %v828_v5  ;;  %v507_v37 = vmul.f32 %v3218_v20, %v3773_v7  ;;  %v2366_v13 = vld [vmem:[%s2675_s14 + $0x9be] sm:$0xff]  ;;  %v2084_v5 = vld [vmem:[%s2675_s14 + $0x2e6] sm:$0xff]  ;;  %v2149_v63 = vld [vmem:[%s2675_s14 + $0x2f6] sm:$0xff] }
  0x94   : > { %v1031_v60 = vadd.f32 %v999_v61, %v928_v32  ;;  %v538_v12 = vadd.f32 %v506_v4, %v405_v11  ;;  %v607_v21 = vmul.f32 %v3227_v29, %v3774_v49  ;;  %v608_v38 = vmul.f32 %v3227_v29, %v3775_v55  ;;  %v2083_v14 = vld [vmem:[%s2675_s14 + $0x2de] sm:$0xff] }
  0x95   : > { %v1337_v31 = vpack.c.bf16 %v1319_v57, %v1318_v10  ;;  %v1032_v53 = vadd.f32 %v1000_v27, %v929_v54  ;;  %v539_v18 = vadd.f32 %v507_v37, %v406_v35  ;;  %v710_v39 = vmul.f32 %v3236_v30, %v3776_v34  ;;  %v2367_v27 = vld [vmem:[%s2675_s14 + $0x9c6] sm:$0xff]  ;;  %v2117_v35 = vld [vmem:[%s2675_s14 + $0x2f2] sm:$0xff]  ;;  %v2150_v54 = vld [vmem:[%s2675_s14 + $0x2fe] sm:$0xff] }
  0x96   : > { %v1132_v46 = vadd.f32 %v1100_v0, %v1031_v60  ;;  %v639_v59 = vadd.f32 %v607_v21, %v538_v12  ;;  %v711_v17 = vmul.f32 %v3236_v30, %v3777_v56  ;;  %v811_v41 = vmul.f32 %v3246_v33, %v3778_v44  ;;  %v2182_v7 = vld [vmem:[%s2675_s14 + $0x57e] sm:$0xff]  ;;  %v2183_v21 = vld [vmem:[%s2675_s14 + $0x586] sm:$0xff]  ;;  %v2217_v34 = vld [vmem:[%s2675_s14 + $0x592] sm:$0xff] }
  0x97   : > { %2514 = vmatmul.mubr.msk.bf16.gmra.mrb[8].mxu1 %vm1404_vm0, %v1337_v31  ;;  %v1133_v25 = vadd.f32 %v1101_v42, %v1032_v53  ;;  %v640_v1 = vadd.f32 %v608_v38, %v539_v18  ;;  %v812_v52 = vmul.f32 %v3246_v33, %v3779_v47  ;;  %v912_v3 = vmul.f32 %v3257_v40, %v3780_v2  ;;  %v2216_v18 = vld [vmem:[%s2675_s14 + $0x58a] sm:$0xff]  ;;  %v2250_v56 = vld [vmem:[%s2675_s14 + $0x596] sm:$0xff] }
  0x98   : > { %v1233_v61 = vadd.f32 %v1201_v24, %v1132_v46  ;;  %v742_v62 = vadd.f32 %v710_v39, %v639_v59  ;;  %v913_v50 = vmul.f32 %v3257_v40, %v3781_v51  ;;  %v1015_v19 = vmul.f32 %v3269_v43, %v2298_v36  ;;  %v2116_v24 = vld [vmem:[%s2675_s14 + $0x2ea] sm:$0xff] }
  0x99   : > { %v1234_v0 = vadd.f32 %v1202_v16, %v1133_v25  ;;  %v743_v42 = vadd.f32 %v711_v17, %v640_v1  ;;  %v1016_v26 = vmul.f32 %v3269_v43, %v2299_v8  ;;  %v1116_v23 = vmul.f32 %v3278_v45, %v2332_v48  ;;  %v2251_v17 = vld [vmem:[%s2675_s14 + $0x59e] sm:$0xff]  ;;  %v2285_v1 = vld [vmem:[%s2675_s14 + $0x826] sm:$0xff] }
  0x9a   : > { %v1272_v32 = vadd.f32 %v3372_v28, %v1233_v61  ;;  %v843_v22 = vadd.f32 %v811_v41, %v742_v62  ;;  %v1117_v11 = vmul.f32 %v3278_v45, %v2333_v9  ;;  %v1217_v15 = vmul.f32 %v3288_v58, %v2366_v13  ;;  %v2284_v25 = vld [vmem:[%s2675_s14 + $0x81e] sm:$0xff]  ;;  %v2318_v9 = vld [vmem:[%s2675_s14 + $0x82a] sm:$0xff]  ;;  %v2319_v13 = vld [vmem:[%s2675_s14 + $0x832] sm:$0xff] }
  0x9b   : > { %v1273_v16 = vadd.f32 %v3372_v28, %v1234_v0  ;;  %v844_v4 = vadd.f32 %v812_v52, %v743_v42  ;;  %v1218_v10 = vmul.f32 %v3288_v58, %v2367_v27  ;;  %v391_v57 = vmul.f32 %v3210_v6, %v2083_v14  ;;  %v2353_v27 = vld [vmem:[%s2675_s14 + $0x83e] sm:$0xff] }
  0x9c   : > { %v1304_v37 = vmax.f32 %v1272_v32, 0.0  ;;  %v944_v60 = vadd.f32 %v912_v3, %v843_v22  ;;  %v392_v12 = vmul.f32 %v3210_v6, %v2084_v5  ;;  %v492_v49 = vmul.f32 %v3218_v20, %v2116_v24 }
  0x9d   : > { %v1305_v55 = vmax.f32 %v1273_v16, 0.0  ;;  %v945_v38 = vadd.f32 %v913_v50, %v844_v4  ;;  %v493_v31 = vmul.f32 %v3218_v20, %v2117_v35  ;;  %v593_v53 = vmul.f32 %v3227_v29, %v2149_v63  ;;  %v3782_v4 = vld [vmem:[#allocation16_spill] sm:$0xff] }
  0x9e   : > { %v1047_v39 = vadd.f32 %v1015_v19, %v944_v60  ;;  %v524_v36 = vadd.f32 %v492_v49, %v391_v57  ;;  %v594_v46 = vmul.f32 %v3227_v29, %v2150_v54  ;;  %v696_v59 = vmul.f32 %v3236_v30, %v2182_v7  ;;  %v2352_v19 = vld [vmem:[%s2675_s14 + $0x836] sm:$0xff]  ;;  %v3785_v49 = vld [vmem:[#allocation19_spill] sm:$0xff] }
  0x9f   : > { %v1330_v44 = vpack.c.bf16 %v1305_v55, %v1304_v37  ;;  %v1048_v41 = vadd.f32 %v1016_v26, %v945_v38  ;;  %v525_v8 = vadd.f32 %v493_v31, %v392_v12  ;;  %v697_v48 = vmul.f32 %v3236_v30, %v2183_v21  ;;  %v3783_v54 = vld [vmem:[#allocation17_spill] sm:$0xff]  ;;  %v3784_v60 = vld [vmem:[#allocation18_spill] sm:$0xff]  ;;  %v3786_v31 = vld [vmem:[#allocation20_spill] sm:$0xff] }
  0xa0   : > { %v1148_v47 = vadd.f32 %v1116_v23, %v1047_v39  ;;  %v625_v52 = vadd.f32 %v593_v53, %v524_v36  ;;  %v797_v2 = vmul.f32 %v3246_v33, %v2216_v18  ;;  %v798_v3 = vmul.f32 %v3246_v33, %v2217_v34  ;;  %v3787_v18 = vld [vmem:[#allocation21_spill] sm:$0xff] }
  0xa1   : > { %2501 = vmatprep.mubr.msk.bf16.mxu0 %vm1404_vm0, %v1330_v44  ;;  %v1149_v61 = vadd.f32 %v1117_v11, %v1048_v41  ;;  %v626_v62 = vadd.f32 %v594_v46, %v525_v8  ;;  %v898_v51 = vmul.f32 %v3257_v40, %v2250_v56  ;;  %v899_v50 = vmul.f32 %v3257_v40, %v2251_v17  ;;  %v3788_v46 = vld [vmem:[#allocation22_spill] sm:$0xff]  ;;  %v3789_v44 = vld [vmem:[#allocation23_spill] sm:$0xff]  ;;  %v3790_v41 = vld [vmem:[#allocation24_spill] sm:$0xff] }
  0xa2   : > { %v1249_v14 = vadd.f32 %v1217_v15, %v1148_v47  ;;  %v728_v0 = vadd.f32 %v696_v59, %v625_v52  ;;  %v1001_v42 = vmul.f32 %v3269_v43, %v2284_v25  ;;  %v1002_v26 = vmul.f32 %v3269_v43, %v2285_v1  ;;  %v3791_v1 = vld [vmem:[#allocation25_spill] sm:$0xff]  ;;  %v2300_v52 = vld [vmem:[%s2675_s14 + $0x9de] sm:$0xff] }
  0xa3   : > { %v1250_v23 = vadd.f32 %v1218_v10, %v1149_v61  ;;  %v729_v5 = vadd.f32 %v697_v48, %v626_v62  ;;  %v1102_v24 = vmul.f32 %v3278_v45, %v2318_v9  ;;  %v1103_v32 = vmul.f32 %v3278_v45, %v2319_v13  ;;  %v2301_v13 = vld [vmem:[%s2675_s14 + $0x9e6] sm:$0xff] }
  0xa4   : > { %v1288_v22 = vadd.f32 %v3372_v28, %v1249_v14  ;;  %v829_v11 = vadd.f32 %v797_v2, %v728_v0  ;;  %v1203_v35 = vmul.f32 %v3288_v58, %v2352_v19  ;;  %v1204_v63 = vmul.f32 %v3288_v58, %v2353_v27  ;;  %v2334_v19 = vld [vmem:[%s2675_s14 + $0x9ea] sm:$0xff]  ;;  %v2335_v14 = vld [vmem:[%s2675_s14 + $0x9f2] sm:$0xff] }
  0xa5   : > { %v1289_v15 = vadd.f32 %v3372_v28, %v1250_v23  ;;  %v830_v16 = vadd.f32 %v798_v3, %v729_v5  ;;  %v407_v57 = vmul.f32 %v3210_v6, %v3782_v4  ;;  %v408_v10 = vmul.f32 %v3210_v6, %v3783_v54  ;;  %v3792_v3 = vld [vmem:[#allocation26_spill] sm:$0xff] }
  0xa6   : > { %v1320_v7 = vmax.f32 %v1288_v22, 0.0  ;;  %v930_v37 = vadd.f32 %v898_v51, %v829_v11  ;;  %v508_v12 = vmul.f32 %v3218_v20, %v3784_v60  ;;  %v509_v21 = vmul.f32 %v3218_v20, %v3785_v49  ;;  %v3793_v51 = vld [vmem:[#allocation27_spill] sm:$0xff] }
  0xa7   : > { %v1321_v55 = vmax.f32 %v1289_v15, 0.0  ;;  %v931_v38 = vadd.f32 %v899_v50, %v830_v16  ;;  %v609_v53 = vmul.f32 %v3227_v29, %v3786_v31  ;;  %v610_v34 = vmul.f32 %v3227_v29, %v3787_v18  ;;  %v2369_v22 = vld [vmem:[%s2675_s14 + $0x9fe] sm:$0xff] }
  0xa8   : > { %v1033_v39 = vadd.f32 %v1001_v42, %v930_v37  ;;  %v540_v6 = vadd.f32 %v508_v12, %v407_v57  ;;  %v541_v36 = vadd.f32 %v509_v21, %v408_v10  ;;  %v712_v59 = vmul.f32 %v3236_v30, %v3788_v46 }
  0xa9   : > { %v1338_v56 = vpack.c.bf16 %v1321_v55, %v1320_v7  ;;  %v1034_v17 = vadd.f32 %v1002_v26, %v931_v38  ;;  %v713_v20 = vmul.f32 %v3236_v30, %v3789_v44  ;;  %v813_v8 = vmul.f32 %v3246_v33, %v3790_v41 }
  0xaa   : > { %v1134_v48 = vadd.f32 %v1102_v24, %v1033_v39  ;;  %v641_v25 = vadd.f32 %v609_v53, %v540_v6  ;;  %v642_v29 = vadd.f32 %v610_v34, %v541_v36  ;;  %v814_v47 = vmul.f32 %v3246_v33, %v3791_v1 }
  0xab   : > { %2517 = vmatprep.mubr.msk.bf16.mxu1 %vm1404_vm0, %v1338_v56  ;;  %v1135_v2 = vadd.f32 %v1103_v32, %v1034_v17  ;;  %v914_v9 = vmul.f32 %v3257_v40, %v3792_v3  ;;  %v915_v50 = vmul.f32 %v3257_v40, %v3793_v51  ;;  %v1017_v33 = vmul.f32 %v3269_v43, %v2300_v52  ;;  %v2368_v32 = vld [vmem:[%s2675_s14 + $0x9f6] sm:$0xff]  ;;  %v3572_v17 = vld [vmem:[%s3717_s4] ss:$0 sm:$0xff] }
  0xac   : > { %v1235_v30 = vadd.f32 %v1203_v35, %v1134_v48  ;;  %v744_v61 = vadd.f32 %v712_v59, %v641_v25  ;;  %v745_v62 = vadd.f32 %v713_v20, %v642_v29  ;;  %v1018_v23 = vmul.f32 %v3269_v43, %v2301_v13 }
  0xad   : > { %v1236_v27 = vadd.f32 %v1204_v63, %v1135_v2  ;;  %v1118_v24 = vmul.f32 %v3278_v45, %v2334_v19  ;;  %v1119_v63 = vmul.f32 %v3278_v45, %v2335_v14  ;;  %v2593_v15 = vmov 0.0  }
  0xae   : > { %v1274_v0 = vadd.f32 %v3372_v28, %v1235_v30  ;;  %v845_v42 = vadd.f32 %v813_v8, %v744_v61  ;;  %v846_v26 = vadd.f32 %v814_v47, %v745_v62  ;;  %309 = vst.msk [vmem:[#allocation2 + $0x10] sm:$0xff] %vm306_vm1, %v2593_v15  ;;  %307 = vst.msk [vmem:[#allocation2] sm:$0xff] %vm306_vm1, %v2593_v15 }
  0xaf   : > { %v1275_v5 = vadd.f32 %v3372_v28, %v1236_v27  ;;  %308 = vst.msk [vmem:[#allocation2 + $0x8] sm:$0xff] %vm306_vm1, %v2593_v15  ;;  %310 = vst.msk [vmem:[#allocation2 + $0x18] sm:$0xff] %vm306_vm1, %v2593_v15  ;;  %v1219_v4 = vmul.f32 %v3288_v58, %v2368_v32  ;;  %v1220_v57 = vmul.f32 %v3288_v58, %v2369_v22 }
  0xb0   : > { %v1306_v11 = vmax.f32 %v1274_v0, 0.0  ;;  %v946_v40 = vadd.f32 %v914_v9, %v845_v42  ;;  %v947_v35 = vadd.f32 %v915_v50, %v846_v26  ;;  %311 = vst.msk [vmem:[#allocation2 + $0x20] sm:$0xff] %vm306_vm1, %v2593_v15  ;;  %312 = vst.msk [vmem:[#allocation2 + $0x28] sm:$0xff] %vm306_vm1, %v2593_v15 }
  0xb1   : > { %313 = vst.msk [vmem:[#allocation2 + $0x30] sm:$0xff] %vm306_vm1, %v2593_v15  ;;  %314 = vst.msk [vmem:[#allocation2 + $0x38] sm:$0xff] %vm306_vm1, %v2593_v15  ;;  %v1307_v43 = vmax.f32 %v1275_v5, 0.0 }
  0xb2   : > { %315 = vst.msk [vmem:[#allocation2 + $0x40] sm:$0xff] %vm306_vm1, %v2593_v15  ;;  %316 = vst.msk [vmem:[#allocation2 + $0x48] sm:$0xff] %vm306_vm1, %v2593_v15  ;;  %v1049_v45 = vadd.f32 %v1017_v33, %v946_v40  ;;  %v1050_v16 = vadd.f32 %v1018_v23, %v947_v35 }
  0xb3   : > { %317 = vst.msk [vmem:[#allocation2 + $0x50] sm:$0xff] %vm306_vm1, %v2593_v15  ;;  %318 = vst.msk [vmem:[#allocation2 + $0x58] sm:$0xff] %vm306_vm1, %v2593_v15  ;;  %v1331_v54 = vpack.c.bf16 %v1307_v43, %v1306_v11 }
  0xb4   : > { %319 = vst.msk [vmem:[#allocation2 + $0x60] sm:$0xff] %vm306_vm1, %v2593_v15  ;;  %320 = vst.msk [vmem:[#allocation2 + $0x68] sm:$0xff] %vm306_vm1, %v2593_v15  ;;  %v1150_v10 = vadd.f32 %v1118_v24, %v1049_v45  ;;  %v1151_v7 = vadd.f32 %v1119_v63, %v1050_v16 }
  0xb5   : > { %321 = vst.msk [vmem:[#allocation2 + $0x70] sm:$0xff] %vm306_vm1, %v2593_v15  ;;  %322 = vst.msk [vmem:[#allocation2 + $0x78] sm:$0xff] %vm306_vm1, %v2593_v15  ;;  %2502 = vmatmul.mubr.msk.bf16.gmra.mrb[12].mxu0 %vm1404_vm0, %v1331_v54  ;;  %v1342_v31 = vld [vmem:[#allocation2 + $0x10] sm:$0xff]  ;;  %v1340_v53 = vld [vmem:[#allocation2] sm:$0xff] }
  0xb6   : > { %323 = vst.msk [vmem:[#allocation2 + $0x80] sm:$0xff] %vm306_vm1, %v2593_v15  ;;  %324 = vst.msk [vmem:[#allocation2 + $0x88] sm:$0xff] %vm306_vm1, %v2593_v15  ;;  %v1251_v37 = vadd.f32 %v1219_v4, %v1150_v10  ;;  %v1252_v60 = vadd.f32 %v1220_v57, %v1151_v7  ;;  %v1343_v58 = vld [vmem:[#allocation2 + $0x18] sm:$0xff]  ;;  %v1341_v6 = vld [vmem:[#allocation2 + $0x8] sm:$0xff] }
  0xb7   : > { %325 = vst.msk [vmem:[#allocation2 + $0x90] sm:$0xff] %vm306_vm1, %v2593_v15  ;;  %326 = vst.msk [vmem:[#allocation2 + $0x98] sm:$0xff] %vm306_vm1, %v2593_v15 }
  0xb8   : > { %327 = vst.msk [vmem:[#allocation2 + $0xa0] sm:$0xff] %vm306_vm1, %v2593_v15  ;;  %328 = vst.msk [vmem:[#allocation2 + $0xa8] sm:$0xff] %vm306_vm1, %v2593_v15  ;;  %v1290_v12 = vadd.f32 %v3372_v28, %v1251_v37  ;;  %v1291_v49 = vadd.f32 %v3372_v28, %v1252_v60  ;;  %v1346_v37 = vld [vmem:[#allocation2 + $0x30] sm:$0xff]  ;;  %v1344_v60 = vld [vmem:[#allocation2 + $0x20] sm:$0xff] }
  0xb9   : > { %329 = vst.msk [vmem:[#allocation2 + $0xb0] sm:$0xff] %vm306_vm1, %v2593_v15  ;;  %330 = vst.msk [vmem:[#allocation2 + $0xb8] sm:$0xff] %vm306_vm1, %v2593_v15 }
  0xba   : > { %331 = vst.msk [vmem:[#allocation2 + $0xc0] sm:$0xff] %vm306_vm1, %v2593_v15  ;;  %332 = vst.msk [vmem:[#allocation2 + $0xc8] sm:$0xff] %vm306_vm1, %v2593_v15  ;;  %v1322_v21 = vmax.f32 %v1290_v12, 0.0  ;;  %v1323_v55 = vmax.f32 %v1291_v49, 0.0  ;;  %v1347_v49 = vld [vmem:[#allocation2 + $0x38] sm:$0xff] }
  0xbb   : > { %333 = vst.msk [vmem:[#allocation2 + $0xd0] sm:$0xff] %vm306_vm1, %v2593_v15  ;;  %334 = vst.msk [vmem:[#allocation2 + $0xd8] sm:$0xff] %vm306_vm1, %v2593_v15 }
  0xbc   : > { %335 = vst.msk [vmem:[#allocation2 + $0xe0] sm:$0xff] %vm306_vm1, %v2593_v15  ;;  %336 = vst.msk [vmem:[#allocation2 + $0xe8] sm:$0xff] %vm306_vm1, %v2593_v15  ;;  %v1339_v38 = vpack.c.bf16 %v1323_v55, %v1322_v21 }
  0xbd   : > { %337 = vst.msk [vmem:[#allocation2 + $0xf0] sm:$0xff] %vm306_vm1, %v2593_v15  ;;  %338 = vst.msk [vmem:[#allocation2 + $0xf8] sm:$0xff] %vm306_vm1, %v2593_v15  ;;  %v1356_v48 = vld [vmem:[#allocation2 + $0x80] sm:$0xff]  ;;  %v1357_v30 = vld [vmem:[#allocation2 + $0x88] sm:$0xff] }
  0xbe   : > { %2518 = vmatmul.mubr.msk.bf16.gmra.mrb[12].mxu1 %vm1404_vm0, %v1339_v38  ;;  %v1358_v20 = vld [vmem:[#allocation2 + $0x90] sm:$0xff]  ;;  %v1359_v47 = vld [vmem:[#allocation2 + $0x98] sm:$0xff]  ;;  %v1345_v38 = vld [vmem:[#allocation2 + $0x28] sm:$0xff] }
 0x110   : > { %v2491_v18 = vpop.f32.mrb[0].mxu0 }
 0x111   : > { %v1616_v34 = vadd.f32 %v2491_v18, %v1342_v31  ;;  %v1487_v39 = vpop.f32.mrb[1].mxu0 }
 0x112   : > { %v1614_v36 = vadd.f32 %v1487_v39, %v1340_v53  ;;  %v2492_v46 = vpop.f32.mrb[2].mxu0  ;;  %v1362_v39 = vld [vmem:[#allocation2 + $0xb0] sm:$0xff] }
 0x113   : > { %1649 = vst.msk [vmem:[#allocation2 + $0x10] sm:$0xff] %vm306_vm1, %v1616_v34  ;;  %v1617_v59 = vadd.f32 %v2492_v46, %v1343_v58  ;;  %v1490_v56 = vpop.f32.mrb[3].mxu0 }
 0x114   : > { %1647 = vst.msk [vmem:[#allocation2] sm:$0xff] %vm306_vm1, %v1614_v36  ;;  %v1615_v28 = vadd.f32 %v1490_v56, %v1341_v6  ;;  %v1360_v6 = vld [vmem:[#allocation2 + $0xa0] sm:$0xff] }
 0x115   : > { %1650 = vst.msk [vmem:[#allocation2 + $0x18] sm:$0xff] %vm306_vm1, %v1617_v59  ;;  %v1363_v59 = vld [vmem:[#allocation2 + $0xb8] sm:$0xff] }
 0x116   : > { %1648 = vst.msk [vmem:[#allocation2 + $0x8] sm:$0xff] %vm306_vm1, %v1615_v28 }
 0x11a   : > { %v1684_v44 = vld [vmem:[#allocation2 + $0x10] sm:$0xff] }
 0x11b   : > { %v1723_v41 = vadd.f32 %v3572_v17, %v1684_v44  ;;  %v1682_v8 = vld [vmem:[#allocation2] sm:$0xff] }
 0x11c   : > { %v2507_v25 = vpop.f32.mrb[0].mxu1  ;;  %v1721_v29 = vadd.f32 %v3572_v17, %v1682_v8  ;;  %v1685_v1 = vld [vmem:[#allocation2 + $0x18] sm:$0xff] }
 0x11d   : > { %v1755_v52 = vmax.f32 %v1723_v41, 0.0  ;;  %v1632_v2 = vadd.f32 %v2507_v25, %v1358_v20  ;;  %v1551_v3 = vpop.f32.mrb[1].mxu1  ;;  %v1724_v9 = vadd.f32 %v3572_v17, %v1685_v1  ;;  %v1683_v13 = vld [vmem:[#allocation2 + $0x8] sm:$0xff] }
 0x11e   : > { %v1753_v61 = vmax.f32 %v1721_v29, 0.0  ;;  %v1630_v62 = vadd.f32 %v1551_v3, %v1356_v48  ;;  %v2508_v51 = vpop.f32.mrb[2].mxu1  ;;  %v1722_v50 = vadd.f32 %v3572_v17, %v1683_v13  ;;  %v1361_v41 = vld [vmem:[#allocation2 + $0xa8] sm:$0xff] }
 0x11f   : > { %v2431_v19 = vpack.c.bf16 %v1755_v52, %v1755_v52  ;;  %1665 = vst.msk [vmem:[#allocation2 + $0x90] sm:$0xff] %vm306_vm1, %v1632_v2  ;;  %v1756_v27 = vmax.f32 %v1724_v9, 0.0  ;;  %v1633_v33 = vadd.f32 %v2508_v51, %v1359_v47  ;;  %v1554_v14 = vpop.f32.mrb[3].mxu1 }
 0x120   : > { %v2429_v0 = vpack.c.bf16 %v1753_v61, %v1753_v61  ;;  %1663 = vst.msk [vmem:[#allocation2 + $0x80] sm:$0xff] %vm306_vm1, %v1630_v62  ;;  %v1754_v42 = vmax.f32 %v1722_v50, 0.0  ;;  %v1631_v26 = vadd.f32 %v1554_v14, %v1357_v30 }
 0x121   : > { %1916 = vst.msk [vmem:[%s3581_s18 + $0x8] sm:$0xf] %vm1913_vm2, %v2431_v19  ;;  %v2432_v23 = vpack.c.bf16 %v1756_v27, %v1756_v27 }
 0x122   : > { %1666 = vst.msk [vmem:[#allocation2 + $0x98] sm:$0xff] %vm306_vm1, %v1633_v33  ;;  %v2430_v5 = vpack.c.bf16 %v1754_v42, %v1754_v42  ;;  %1664 = vst.msk [vmem:[#allocation2 + $0x88] sm:$0xff] %vm306_vm1, %v1631_v26 }
 0x123   : > { %1914 = vst.msk [vmem:[%s3581_s18] sm:$0xf] %vm1913_vm2, %v2429_v0  ;;  %1917 = vst.msk [vmem:[%s3581_s18 + $0xc] sm:$0xf] %vm1913_vm2, %v2432_v23 }
 0x124   : > { %1915 = vst.msk [vmem:[%s3581_s18 + $0x4] sm:$0xf] %vm1913_vm2, %v2430_v5 }
 0x126   : > { %v1700_v24 = vld [vmem:[#allocation2 + $0x90] sm:$0xff] }
 0x127   : > { %v1739_v32 = vadd.f32 %v3572_v17, %v1700_v24  ;;  %v1698_v22 = vld [vmem:[#allocation2 + $0x80] sm:$0xff] }
 0x128   : > { %v1737_v11 = vadd.f32 %v3572_v17, %v1698_v22 }
 0x129   : > { %v1701_v40 = vld [vmem:[#allocation2 + $0x98] sm:$0xff]  ;;  %v1771_v35 = vmax.f32 %v1739_v32, 0.0  ;;  %v1699_v15 = vld [vmem:[#allocation2 + $0x88] sm:$0xff] }
 0x12a   : > { %v1740_v63 = vadd.f32 %v3572_v17, %v1701_v40  ;;  %v1769_v43 = vmax.f32 %v1737_v11, 0.0  ;;  %v1738_v45 = vadd.f32 %v3572_v17, %v1699_v15 }
 0x12b   : > { %v2447_v16 = vpack.c.bf16 %v1771_v35, %v1771_v35 }
 0x12c   : > { %v1772_v4 = vmax.f32 %v1740_v63, 0.0  ;;  %v2445_v57 = vpack.c.bf16 %v1769_v43, %v1769_v43  ;;  %v1770_v54 = vmax.f32 %v1738_v45, 0.0  ;;  %v1350_v45 = vld [vmem:[#allocation2 + $0x50] sm:$0xff] }
 0x12d   : > { %1932 = vst.msk [vmem:[%s3581_s18 + $0x48] sm:$0xf] %vm1913_vm2, %v2447_v16  ;;  %v1348_v16 = vld [vmem:[#allocation2 + $0x40] sm:$0xff] }
 0x12e   : > { %v2448_v10 = vpack.c.bf16 %v1772_v4, %v1772_v4  ;;  %1930 = vst.msk [vmem:[%s3581_s18 + $0x40] sm:$0xf] %vm1913_vm2, %v2445_v57  ;;  %v2446_v7 = vpack.c.bf16 %v1770_v54, %v1770_v54  ;;  %v1351_v57 = vld [vmem:[#allocation2 + $0x58] sm:$0xff] }
 0x130   : > { %1933 = vst.msk [vmem:[%s3581_s18 + $0x4c] sm:$0xf] %vm1913_vm2, %v2448_v10  ;;  %1931 = vst.msk [vmem:[%s3581_s18 + $0x44] sm:$0xf] %vm1913_vm2, %v2446_v7  ;;  %v1349_v7 = vld [vmem:[#allocation2 + $0x48] sm:$0xff] }
 0x13a   : > { %v2495_v12 = vpop.f32.mrb[4].mxu0 }
 0x13b   : > { %v1620_v21 = vadd.f32 %v2495_v12, %v1346_v37  ;;  %v1503_v55 = vpop.f32.mrb[5].mxu0 }
 0x13c   : > { %v1618_v31 = vadd.f32 %v1503_v55, %v1344_v60  ;;  %v2496_v53 = vpop.f32.mrb[6].mxu0  ;;  %v1366_v55 = vld [vmem:[#allocation2 + $0xd0] sm:$0xff] }
 0x13d   : > { %1653 = vst.msk [vmem:[#allocation2 + $0x30] sm:$0xff] %vm306_vm1, %v1620_v21  ;;  %v1621_v18 = vadd.f32 %v2496_v53, %v1347_v49  ;;  %v1506_v58 = vpop.f32.mrb[7].mxu0  ;;  %v1367_v53 = vld [vmem:[#allocation2 + $0xd8] sm:$0xff] }
 0x13e   : > { %1651 = vst.msk [vmem:[#allocation2 + $0x20] sm:$0xff] %vm306_vm1, %v1618_v31  ;;  %v1619_v34 = vadd.f32 %v1506_v58, %v1345_v38  ;;  %v1364_v38 = vld [vmem:[#allocation2 + $0xc0] sm:$0xff] }
 0x13f   : > { %1654 = vst.msk [vmem:[#allocation2 + $0x38] sm:$0xff] %vm306_vm1, %v1621_v18 }
 0x140   : > { %1652 = vst.msk [vmem:[#allocation2 + $0x28] sm:$0xff] %vm306_vm1, %v1619_v34 }
 0x144   : > { %v1688_v36 = vld [vmem:[#allocation2 + $0x30] sm:$0xff]  ;;  %v2511_v46 = vpop.f32.mrb[4].mxu1 }
 0x145   : > { %v1727_v56 = vadd.f32 %v3572_v17, %v1688_v36  ;;  %v1636_v28 = vadd.f32 %v2511_v46, %v1362_v39  ;;  %v1686_v44 = vld [vmem:[#allocation2 + $0x20] sm:$0xff]  ;;  %v1567_v20 = vpop.f32.mrb[5].mxu1  ;;  %v1365_v39 = vld [vmem:[#allocation2 + $0xc8] sm:$0xff] }
 0x146   : > { %v1725_v8 = vadd.f32 %v3572_v17, %v1686_v44  ;;  %v1634_v48 = vadd.f32 %v1567_v20, %v1360_v6  ;;  %v1689_v25 = vld [vmem:[#allocation2 + $0x38] sm:$0xff]  ;;  %v2512_v29 = vpop.f32.mrb[6].mxu1 }
 0x147   : > { %v1759_v1 = vmax.f32 %v1727_v56, 0.0  ;;  %1669 = vst.msk [vmem:[#allocation2 + $0xb0] sm:$0xff] %vm306_vm1, %v1636_v28  ;;  %v1728_v47 = vadd.f32 %v3572_v17, %v1689_v25  ;;  %v1637_v52 = vadd.f32 %v2512_v29, %v1363_v59  ;;  %v1687_v2 = vld [vmem:[#allocation2 + $0x28] sm:$0xff]  ;;  %v1570_v3 = vpop.f32.mrb[7].mxu1 }
 0x148   : > { %v1757_v9 = vmax.f32 %v1725_v8, 0.0  ;;  %1667 = vst.msk [vmem:[#allocation2 + $0xa0] sm:$0xff] %vm306_vm1, %v1634_v48  ;;  %v1726_v13 = vadd.f32 %v3572_v17, %v1687_v2  ;;  %v1635_v30 = vadd.f32 %v1570_v3, %v1361_v41 }
 0x149   : > { %v2435_v61 = vpack.c.bf16 %v1759_v1, %v1759_v1  ;;  %v1760_v62 = vmax.f32 %v1728_v47, 0.0  ;;  %1670 = vst.msk [vmem:[#allocation2 + $0xb8] sm:$0xff] %vm306_vm1, %v1637_v52 }
 0x14a   : > { %v2433_v51 = vpack.c.bf16 %v1757_v9, %v1757_v9  ;;  %v1758_v50 = vmax.f32 %v1726_v13, 0.0  ;;  %1668 = vst.msk [vmem:[#allocation2 + $0xa8] sm:$0xff] %vm306_vm1, %v1635_v30 }
 0x14b   : > { %1920 = vst.msk [vmem:[%s3581_s18 + $0x18] sm:$0xf] %vm1913_vm2, %v2435_v61  ;;  %v2436_v19 = vpack.c.bf16 %v1760_v62, %v1760_v62 }
 0x14c   : > { %1918 = vst.msk [vmem:[%s3581_s18 + $0x10] sm:$0xf] %vm1913_vm2, %v2433_v51  ;;  %v2434_v27 = vpack.c.bf16 %v1758_v50, %v1758_v50 }
 0x14d   : > { %1921 = vst.msk [vmem:[%s3581_s18 + $0x1c] sm:$0xf] %vm1913_vm2, %v2436_v19 }
 0x14e   : > { %v1704_v33 = vld [vmem:[#allocation2 + $0xb0] sm:$0xff]  ;;  %1919 = vst.msk [vmem:[%s3581_s18 + $0x14] sm:$0xf] %vm1913_vm2, %v2434_v27 }
 0x14f   : > { %v1743_v14 = vadd.f32 %v3572_v17, %v1704_v33  ;;  %v1702_v0 = vld [vmem:[#allocation2 + $0xa0] sm:$0xff] }
 0x150   : > { %v1741_v42 = vadd.f32 %v3572_v17, %v1702_v0  ;;  %v1705_v26 = vld [vmem:[#allocation2 + $0xb8] sm:$0xff] }
 0x151   : > { %v1775_v23 = vmax.f32 %v1743_v14, 0.0  ;;  %v1744_v5 = vadd.f32 %v3572_v17, %v1705_v26  ;;  %v1703_v24 = vld [vmem:[#allocation2 + $0xa8] sm:$0xff] }
 0x152   : > { %v1773_v32 = vmax.f32 %v1741_v42, 0.0  ;;  %v1742_v22 = vadd.f32 %v3572_v17, %v1703_v24 }
 0x153   : > { %v2451_v11 = vpack.c.bf16 %v1775_v23, %v1775_v23  ;;  %v1776_v40 = vmax.f32 %v1744_v5, 0.0 }
 0x154   : > { %v2449_v35 = vpack.c.bf16 %v1773_v32, %v1773_v32  ;;  %v1774_v63 = vmax.f32 %v1742_v22, 0.0  ;;  %v1354_v22 = vld [vmem:[#allocation2 + $0x70] sm:$0xff] }
 0x155   : > { %1936 = vst.msk [vmem:[%s3581_s18 + $0x58] sm:$0xf] %vm1913_vm2, %v2451_v11  ;;  %v2452_v15 = vpack.c.bf16 %v1776_v40, %v1776_v40  ;;  %v1352_v11 = vld [vmem:[#allocation2 + $0x60] sm:$0xff] }
 0x156   : > { %1934 = vst.msk [vmem:[%s3581_s18 + $0x50] sm:$0xf] %vm1913_vm2, %v2449_v35  ;;  %v2450_v43 = vpack.c.bf16 %v1774_v63, %v1774_v63  ;;  %v1355_v35 = vld [vmem:[#allocation2 + $0x78] sm:$0xff] }
 0x157   : > { %1937 = vst.msk [vmem:[%s3581_s18 + $0x5c] sm:$0xf] %vm1913_vm2, %v2452_v15 }
 0x158   : > { %1935 = vst.msk [vmem:[%s3581_s18 + $0x54] sm:$0xf] %vm1913_vm2, %v2450_v43  ;;  %v1353_v43 = vld [vmem:[#allocation2 + $0x68] sm:$0xff] }
 0x161   : > { %v2499_v4 = vpop.f32.mrb[8].mxu0 }
 0x162   : > { %v1624_v54 = vadd.f32 %v2499_v4, %v1350_v45  ;;  %v1519_v10 = vpop.f32.mrb[9].mxu0 }
 0x163   : > { %v1622_v37 = vadd.f32 %v1519_v10, %v1348_v16  ;;  %v2500_v60 = vpop.f32.mrb[10].mxu0  ;;  %v1370_v10 = vld [vmem:[#allocation2 + $0xf0] sm:$0xff] }
 0x164   : > { %1657 = vst.msk [vmem:[#allocation2 + $0x50] sm:$0xff] %vm306_vm1, %v1624_v54  ;;  %v1625_v12 = vadd.f32 %v2500_v60, %v1351_v57  ;;  %v1522_v49 = vpop.f32.mrb[11].mxu0  ;;  %v1371_v60 = vld [vmem:[#allocation2 + $0xf8] sm:$0xff] }
 0x165   : > { %1655 = vst.msk [vmem:[#allocation2 + $0x40] sm:$0xff] %vm306_vm1, %v1622_v37  ;;  %v1623_v21 = vadd.f32 %v1522_v49, %v1349_v7  ;;  %v1368_v7 = vld [vmem:[#allocation2 + $0xe0] sm:$0xff] }
 0x166   : > { %1658 = vst.msk [vmem:[#allocation2 + $0x58] sm:$0xff] %vm306_vm1, %v1625_v12 }
 0x167   : > { %1656 = vst.msk [vmem:[#allocation2 + $0x48] sm:$0xff] %vm306_vm1, %v1623_v21 }
 0x16a   : > { %v2515_v31 = vpop.f32.mrb[8].mxu1 }
 0x16b   : > { %v1692_v18 = vld [vmem:[#allocation2 + $0x50] sm:$0xff]  ;;  %v1640_v58 = vadd.f32 %v2515_v31, %v1366_v55  ;;  %v1583_v34 = vpop.f32.mrb[9].mxu1  ;;  %v1369_v55 = vld [vmem:[#allocation2 + $0xe8] sm:$0xff] }
 0x16c   : > { %v1731_v6 = vadd.f32 %v3572_v17, %v1692_v18  ;;  %v1690_v36 = vld [vmem:[#allocation2 + $0x40] sm:$0xff]  ;;  %v1638_v46 = vadd.f32 %v1583_v34, %v1364_v38  ;;  %v2516_v59 = vpop.f32.mrb[10].mxu1 }
 0x16d   : > { %1673 = vst.msk [vmem:[#allocation2 + $0xd0] sm:$0xff] %vm306_vm1, %v1640_v58  ;;  %v1729_v56 = vadd.f32 %v3572_v17, %v1690_v36  ;;  %v1693_v28 = vld [vmem:[#allocation2 + $0x58] sm:$0xff]  ;;  %v1641_v44 = vadd.f32 %v2516_v59, %v1367_v53  ;;  %v1586_v20 = vpop.f32.mrb[11].mxu1 }
 0x16e   : > { %v1763_v41 = vmax.f32 %v1731_v6, 0.0  ;;  %1671 = vst.msk [vmem:[#allocation2 + $0xc0] sm:$0xff] %vm306_vm1, %v1638_v46  ;;  %v1732_v8 = vadd.f32 %v3572_v17, %v1693_v28  ;;  %v1691_v48 = vld [vmem:[#allocation2 + $0x48] sm:$0xff]  ;;  %v1639_v25 = vadd.f32 %v1586_v20, %v1365_v39 }
 0x16f   : > { %v1761_v29 = vmax.f32 %v1729_v56, 0.0  ;;  %1674 = vst.msk [vmem:[#allocation2 + $0xd8] sm:$0xff] %vm306_vm1, %v1641_v44  ;;  %v1730_v1 = vadd.f32 %v3572_v17, %v1691_v48 }
 0x170   : > { %v2439_v47 = vpack.c.bf16 %v1763_v41, %v1763_v41  ;;  %v1764_v52 = vmax.f32 %v1732_v8, 0.0  ;;  %1672 = vst.msk [vmem:[#allocation2 + $0xc8] sm:$0xff] %vm306_vm1, %v1639_v25 }
 0x171   : > { %v2437_v2 = vpack.c.bf16 %v1761_v29, %v1761_v29  ;;  %v1762_v3 = vmax.f32 %v1730_v1, 0.0 }
 0x172   : > { %1924 = vst.msk [vmem:[%s3581_s18 + $0x28] sm:$0xf] %vm1913_vm2, %v2439_v47  ;;  %v2440_v9 = vpack.c.bf16 %v1764_v52, %v1764_v52 }
 0x173   : > { %1922 = vst.msk [vmem:[%s3581_s18 + $0x20] sm:$0xf] %vm1913_vm2, %v2437_v2  ;;  %v2438_v13 = vpack.c.bf16 %v1762_v3, %v1762_v3 }
 0x174   : > { %v1708_v30 = vld [vmem:[#allocation2 + $0xd0] sm:$0xff]  ;;  %1925 = vst.msk [vmem:[%s3581_s18 + $0x2c] sm:$0xf] %vm1913_vm2, %v2440_v9 }
 0x175   : > { %v1747_v61 = vadd.f32 %v3572_v17, %v1708_v30  ;;  %v1706_v62 = vld [vmem:[#allocation2 + $0xc0] sm:$0xff]  ;;  %1923 = vst.msk [vmem:[%s3581_s18 + $0x24] sm:$0xf] %vm1913_vm2, %v2438_v13 }
 0x176   : > { %v1745_v51 = vadd.f32 %v3572_v17, %v1706_v62  ;;  %v1709_v50 = vld [vmem:[#allocation2 + $0xd8] sm:$0xff] }
 0x177   : > { %v1779_v19 = vmax.f32 %v1747_v61, 0.0  ;;  %v1748_v27 = vadd.f32 %v3572_v17, %v1709_v50  ;;  %v1707_v33 = vld [vmem:[#allocation2 + $0xc8] sm:$0xff] }
 0x178   : > { %v1777_v14 = vmax.f32 %v1745_v51, 0.0  ;;  %v1746_v0 = vadd.f32 %v3572_v17, %v1707_v33 }
 0x179   : > { %v2455_v42 = vpack.c.bf16 %v1779_v19, %v1779_v19  ;;  %v1780_v26 = vmax.f32 %v1748_v27, 0.0 }
 0x17a   : > { %v2453_v23 = vpack.c.bf16 %v1777_v14, %v1777_v14  ;;  %v1778_v5 = vmax.f32 %v1746_v0, 0.0 }
 0x17b   : > { %1940 = vst.msk [vmem:[%s3581_s18 + $0x68] sm:$0xf] %vm1913_vm2, %v2455_v42  ;;  %v2456_v24 = vpack.c.bf16 %v1780_v26, %v1780_v26 }
 0x17c   : > { %1938 = vst.msk [vmem:[%s3581_s18 + $0x60] sm:$0xf] %vm1913_vm2, %v2453_v23  ;;  %v2454_v32 = vpack.c.bf16 %v1778_v5, %v1778_v5 }
 0x17d   : > { %1941 = vst.msk [vmem:[%s3581_s18 + $0x6c] sm:$0xf] %vm1913_vm2, %v2456_v24 }
 0x17e   : > { %1939 = vst.msk [vmem:[%s3581_s18 + $0x64] sm:$0xf] %vm1913_vm2, %v2454_v32 }
 0x188   : > { %v2503_v40 = vpop.f32.mrb[12].mxu0 }
 0x189   : > { %v1628_v63 = vadd.f32 %v2503_v40, %v1354_v22  ;;  %v1535_v15 = vpop.f32.mrb[13].mxu0 }
 0x18a   : > { %v1626_v45 = vadd.f32 %v1535_v15, %v1352_v11  ;;  %v2504_v16 = vpop.f32.mrb[14].mxu0 }
 0x18b   : > { %1661 = vst.msk [vmem:[#allocation2 + $0x70] sm:$0xff] %vm306_vm1, %v1628_v63  ;;  %v1629_v4 = vadd.f32 %v2504_v16, %v1355_v35  ;;  %v1538_v57 = vpop.f32.mrb[15].mxu0 }
 0x18c   : > { %1659 = vst.msk [vmem:[#allocation2 + $0x60] sm:$0xff] %vm306_vm1, %v1626_v45  ;;  %v1627_v54 = vadd.f32 %v1538_v57, %v1353_v43 }
 0x18d   : > { %1662 = vst.msk [vmem:[#allocation2 + $0x78] sm:$0xff] %vm306_vm1, %v1629_v4 }
 0x18e   : > { %1660 = vst.msk [vmem:[#allocation2 + $0x68] sm:$0xff] %vm306_vm1, %v1627_v54 }
 0x191   : > { %v2519_v37 = vpop.f32.mrb[12].mxu1 }
 0x192   : > { %v1696_v12 = vld [vmem:[#allocation2 + $0x70] sm:$0xff]  ;;  %v1644_v49 = vadd.f32 %v2519_v37, %v1370_v10  ;;  %v1599_v21 = vpop.f32.mrb[13].mxu1 }
 0x193   : > { %v1735_v38 = vadd.f32 %v3572_v17, %v1696_v12  ;;  %v1694_v31 = vld [vmem:[#allocation2 + $0x60] sm:$0xff]  ;;  %v1642_v53 = vadd.f32 %v1599_v21, %v1368_v7  ;;  %v2520_v18 = vpop.f32.mrb[14].mxu1 }
 0x194   : > { %1677 = vst.msk [vmem:[#allocation2 + $0xf0] sm:$0xff] %vm306_vm1, %v1644_v49  ;;  %v1733_v58 = vadd.f32 %v3572_v17, %v1694_v31  ;;  %v1697_v34 = vld [vmem:[#allocation2 + $0x78] sm:$0xff]  ;;  %v1645_v39 = vadd.f32 %v2520_v18, %v1371_v60  ;;  %v1602_v6 = vpop.f32.mrb[15].mxu1 }
 0x195   : > { %v1767_v36 = vmax.f32 %v1735_v38, 0.0  ;;  %1675 = vst.msk [vmem:[#allocation2 + $0xe0] sm:$0xff] %vm306_vm1, %v1642_v53  ;;  %v1736_v46 = vadd.f32 %v3572_v17, %v1697_v34  ;;  %v1695_v59 = vld [vmem:[#allocation2 + $0x68] sm:$0xff]  ;;  %v1643_v56 = vadd.f32 %v1602_v6, %v1369_v55 }
 0x196   : > { %v1765_v28 = vmax.f32 %v1733_v58, 0.0  ;;  %1678 = vst.msk [vmem:[#allocation2 + $0xf8] sm:$0xff] %vm306_vm1, %v1645_v39  ;;  %v1734_v44 = vadd.f32 %v3572_v17, %v1695_v59 }
 0x197   : > { %v2443_v20 = vpack.c.bf16 %v1767_v36, %v1767_v36  ;;  %v1768_v41 = vmax.f32 %v1736_v46, 0.0  ;;  %1676 = vst.msk [vmem:[#allocation2 + $0xe8] sm:$0xff] %vm306_vm1, %v1643_v56 }
 0x198   : > { %v2441_v8 = vpack.c.bf16 %v1765_v28, %v1765_v28  ;;  %v1766_v48 = vmax.f32 %v1734_v44, 0.0 }
 0x199   : > { %1928 = vst.msk [vmem:[%s3581_s18 + $0x38] sm:$0xf] %vm1913_vm2, %v2443_v20  ;;  %v2444_v25 = vpack.c.bf16 %v1768_v41, %v1768_v41 }
 0x19a   : > { %1926 = vst.msk [vmem:[%s3581_s18 + $0x30] sm:$0xf] %vm1913_vm2, %v2441_v8  ;;  %v2442_v29 = vpack.c.bf16 %v1766_v48, %v1766_v48 }
 0x19b   : > { %v1712_v1 = vld [vmem:[#allocation2 + $0xf0] sm:$0xff]  ;;  %1929 = vst.msk [vmem:[%s3581_s18 + $0x3c] sm:$0xf] %vm1913_vm2, %v2444_v25 }
 0x19c   : > { %v1751_v47 = vadd.f32 %v3572_v17, %v1712_v1  ;;  %v1710_v52 = vld [vmem:[#allocation2 + $0xe0] sm:$0xff]  ;;  %1927 = vst.msk [vmem:[%s3581_s18 + $0x34] sm:$0xf] %vm1913_vm2, %v2442_v29 }
 0x19d   : > { %v1749_v2 = vadd.f32 %v3572_v17, %v1710_v52  ;;  %v1713_v3 = vld [vmem:[#allocation2 + $0xf8] sm:$0xff] }
 0x19e   : > { %v1783_v9 = vmax.f32 %v1751_v47, 0.0  ;;  %v1752_v13 = vadd.f32 %v3572_v17, %v1713_v3  ;;  %v1711_v30 = vld [vmem:[#allocation2 + $0xe8] sm:$0xff] }
 0x19f   : > { %v1781_v61 = vmax.f32 %v1749_v2, 0.0  ;;  %v1750_v62 = vadd.f32 %v3572_v17, %v1711_v30 }
 0x1a0   : > { %v2459_v51 = vpack.c.bf16 %v1783_v9, %v1783_v9  ;;  %v1784_v50 = vmax.f32 %v1752_v13, 0.0 }
 0x1a1   : > { %v2457_v19 = vpack.c.bf16 %v1781_v61, %v1781_v61  ;;  %v1782_v27 = vmax.f32 %v1750_v62, 0.0 }
 0x1a2   : > { %1944 = vst.msk [vmem:[%s3581_s18 + $0x78] sm:$0xf] %vm1913_vm2, %v2459_v51  ;;  %v2460_v33 = vpack.c.bf16 %v1784_v50, %v1784_v50 }
 0x1a3   : > { %1942 = vst.msk [vmem:[%s3581_s18 + $0x70] sm:$0xf] %vm1913_vm2, %v2457_v19  ;;  %v2458_v14 = vpack.c.bf16 %v1782_v27, %v1782_v27 }
 0x1a4   : > { %1945 = vst.msk [vmem:[%s3581_s18 + $0x7c] sm:$0xf] %vm1913_vm2, %v2460_v33 }
 0x1a5   : > { %1943 = vst.msk [vmem:[%s3581_s18 + $0x74] sm:$0xf] %vm1913_vm2, %v2458_v14 }
 0x1a6 PF: > { %s15_s20 = sadd.s32 1, %s2591_s20   ;;  %s3794_s18 = smov %s2587_s19 }
 0x1a7   : > { %p12_p5 = scmp.ge.s32.totalorder %s15_s20, 4   ;;  %s3795_s19 = smov %s3797_s21 }
 0x1a9   :  { %14 = sbr.rel (!%p12_p5) target bundleno = 2 (0x2), region = 92 }

// kernel: aspp_forward.8
= control target key start
LH: loop header
LB: loop body
LE: loop exit
PB: predicated region body
PF: predicated region fallthrough
CT: control target
= control target key end

     0   :  { %s2527_s18 = smov 0   ;;  %s2529_s19 = smov 0   ;;  %s3478_s0 = inlined_call_operand.vmem [shape: f32[2,52,52,64], index: 0, kind: input, shape index: {}]   ;;  %s3479_s1 = inlined_call_operand.vmem [shape: f32[3,3,64], index: 1, kind: input, shape index: {}]   ;;  %s3480_s2 = inlined_call_operand.vmem [shape: f32[1,64], index: 2, kind: input, shape index: {}]   ;;  %s3481_s3 = inlined_call_operand.vmem [shape: bf16[64,32], index: 3, kind: input, shape index: {}]   ;;  %s3482_s4 = inlined_call_operand.vmem [shape: f32[1,32], index: 4, kind: input, shape index: {}]   ;;  %s3483_s5 = inlined_call_operand.vmem [shape: bf16[2,16,16,32], index: 5, kind: output, shape index: {}]  }
   0x1   :  { %s2531_s20 = smov 0  }
   0x2 LB: > { %s27_s21 = sadd.s32 1, %s2490_s19  ;;  %p2064_p0 = scmp.ge.s32.totalorder %s2494_s20, 1  ;;  %s2494_s20 = sphi %s2531_s20, %s15_s20   ;;  %s2490_s19 = sphi %s2529_s19, %s3485_s19   ;;  %s2486_s18 = sphi %s2527_s18, %s3484_s18  }
   0x3   : > { %p29_p1 = scmp.ge.s32.totalorder %s27_s21, 2  ;;  %p232_p2 = scmp.lt.s32.totalorder %s2494_s20, 3 }
   0x5   : > { %s3487_s21 = smov (%p29_p1, %s27_s21), 0  ;;  %p233_p3 = pnand %p2064_p0, %p232_p2 }
   0x6   : > { %v2458_v0 = vld [vmem:[%s3481_s3] sm:$0xff] (!%p233_p3)   ;;  %p275_p4 = scmp.lt.s32.totalorder (!%p233_p3), %s2486_s18, 1  ;;  %v2459_v1 = vld [vmem:[%s3481_s3 + $0x8] sm:$0xff] (!%p233_p3)   ;;  %v2460_v2 = vld [vmem:[%s3481_s3 + $0x10] sm:$0xff] (!%p233_p3)   ;;  %vm1403_vm0 = vcmask (!%p233_p3), 523264   ;;  %vm306_vm1 = vcmask (!%p233_p3), 261120  }
   0x7   : > { %236 = sbr.rel (%p233_p3) target bundleno = 419 (0x1a3), region = 40  ;;  %2384 = vmatprep.subr.bf16.mxu0 (!%p233_p3), %v2458_v0  ;;  %2424 = vmatprep.subr.bf16.mxu1 (!%p233_p3), %v2458_v0  ;;  %v2560_v3 = vld [vmem:[%s3479_s1] ss:$0 sm:$0xff] (!%p233_p3)  ;;  %v2565_v4 = vld [vmem:[%s3479_s1 + $0x1] ss:$0 sm:$0xff] (!%p233_p3)  ;;  %v2461_v6 = vld [vmem:[%s3481_s3 + $0x18] sm:$0xff] (!%p233_p3)  }
   0x8   : > { %2385 = vmatpush3.bf16.msra.mxu0 (!%p233_p3), %v2458_v0  ;;  %2428 = vmatpush3.bf16.msra.mxu1 (!%p233_p3), %v2458_v0  ;;  %v2570_v5 = vld [vmem:[%s3479_s1 + $0x2] ss:$0 sm:$0xff] (!%p233_p3)  ;;  %v2583_v7 = vld [vmem:[%s3479_s1 + $0x4] ss:$0 sm:$0xff] (!%p233_p3)  ;;  %v2588_v8 = vld [vmem:[%s3479_s1 + $0x5] ss:$0 sm:$0xff] (!%p233_p3) }
   0x9   : > { %2386 = vmatprep.subr.bf16.mxu0 (!%p233_p3), %v2459_v1  ;;  %2425 = vmatprep.subr.bf16.mxu1 (!%p233_p3), %v2459_v1  ;;  %v2593_v9 = vld [vmem:[%s3479_s1 + $0x6] ss:$0 sm:$0xff] (!%p233_p3)  ;;  %v2601_v13 = vld [vmem:[%s3479_s1 + $0x8] ss:$0 sm:$0xff] (!%p233_p3)  ;;  %v2612_v20 = vld [vmem:[%s3479_s1 + $0x9] ss:$0 sm:$0xff] (!%p233_p3) }
   0xa   : > { %v2644_v50 = vld [vmem:[%s3479_s1 + $0xa] ss:$0 sm:$0xff] (!%p233_p3)  ;;  %vm1912_vm2 = vcmask (!%p233_p3), 257024  }
   0xc   : > { %2387 = vmatpush3.bf16.msra.mxu0 (!%p233_p3), %v2459_v1  ;;  %2429 = vmatpush3.bf16.msra.mxu1 (!%p233_p3), %v2459_v1 }
   0xd   : > { %2388 = vmatprep.subr.bf16.mxu0 (!%p233_p3), %v2460_v2  ;;  %2426 = vmatprep.subr.bf16.mxu1 (!%p233_p3), %v2460_v2 }
   0xe   : > { %s3489_s18 = smov (!%p275_p4, %s2486_s18), 1 }
   0xf   : > { %s2432_s28 = smul.u32 2912, %s3489_s18  ;;  %s2331_s9 = sshll.u32 %s3489_s18, 7 }
  0x10   : > { %2389 = vmatpush3.bf16.msra.mxu0 %v2460_v2  ;;  %2430 = vmatpush3.bf16.msra.mxu1 %v2460_v2  ;;  %s3346_s18 = scalar_lea.vmem %s3483_s5, %s2331_s9 }
  0x11   : > { %s2578_s14 = scalar_lea.vmem %s3478_s0, %s2432_s28  ;;  %2390 = vmatprep.subr.bf16.mxu0 %v2461_v6  ;;  %2427 = vmatprep.subr.bf16.mxu1 %v2461_v6 }
  0x12   : > { %v339_v10 = vld [vmem:[%s2578_s14] sm:$0xff]  ;;  %v340_v11 = vld [vmem:[%s2578_s14 + $0x8] sm:$0xff]  ;;  %v440_v12 = vld [vmem:[%s2578_s14 + $0x12] sm:$0xff] }
  0x13   : > { %v376_v14 = vmul.f32 %v2560_v3, %v339_v10  ;;  %v377_v15 = vmul.f32 %v2560_v3, %v340_v11  ;;  %v441_v16 = vld [vmem:[%s2578_s14 + $0x1a] sm:$0xff]  ;;  %v477_v17 = vmul.f32 %v2565_v4, %v440_v12  ;;  %v541_v18 = vld [vmem:[%s2578_s14 + $0x24] sm:$0xff]  ;;  %v542_v19 = vld [vmem:[%s2578_s14 + $0x2c] sm:$0xff] }
  0x14   : > { %v478_v21 = vmul.f32 %v2565_v4, %v441_v16  ;;  %v578_v22 = vmul.f32 %v2570_v5, %v541_v18  ;;  %v579_v23 = vmul.f32 %v2570_v5, %v542_v19  ;;  %v2071_v24 = vld [vmem:[%s2578_s14 + $0x3f0] sm:$0xff]  ;;  %v2072_v25 = vld [vmem:[%s2578_s14 + $0x3f8] sm:$0xff]  ;;  %v2105_v26 = vld [vmem:[%s2578_s14 + $0x402] sm:$0xff]  ;;  %2391 = vmatpush3.bf16.msra.mxu0 %v2461_v6  ;;  %2431 = vmatpush3.bf16.msra.mxu1 %v2461_v6 }
  0x15   : > { %v509_v27 = vadd.f32 %v477_v17, %v376_v14  ;;  %v681_v28 = vmul.f32 %v2583_v7, %v2071_v24  ;;  %v682_v29 = vmul.f32 %v2583_v7, %v2072_v25  ;;  %v2106_v30 = vld [vmem:[%s2578_s14 + $0x40a] sm:$0xff]  ;;  %v782_v31 = vmul.f32 %v2588_v8, %v2105_v26  ;;  %v2139_v32 = vld [vmem:[%s2578_s14 + $0x414] sm:$0xff]  ;;  %v2140_v33 = vld [vmem:[%s2578_s14 + $0x41c] sm:$0xff] }
  0x16   : > { %v510_v34 = vadd.f32 %v478_v21, %v377_v15  ;;  %v783_v35 = vmul.f32 %v2588_v8, %v2106_v30  ;;  %v883_v36 = vmul.f32 %v2593_v9, %v2139_v32  ;;  %v2173_v37 = vld [vmem:[%s2578_s14 + $0x7e0] sm:$0xff]  ;;  %v2174_v38 = vld [vmem:[%s2578_s14 + $0x7e8] sm:$0xff]  ;;  %v2207_v39 = vld [vmem:[%s2578_s14 + $0x7f2] sm:$0xff]  ;;  %v884_v41 = vmul.f32 %v2593_v9, %v2140_v33 }
  0x17   : > { %v610_v40 = vadd.f32 %v578_v22, %v509_v27  ;;  %v986_v42 = vmul.f32 %v2601_v13, %v2173_v37  ;;  %v2208_v43 = vld [vmem:[%s2578_s14 + $0x7fa] sm:$0xff]  ;;  %v2241_v44 = vld [vmem:[%s2578_s14 + $0x804] sm:$0xff]  ;;  %v2242_v45 = vld [vmem:[%s2578_s14 + $0x80c] sm:$0xff]  ;;  %v987_v47 = vmul.f32 %v2601_v13, %v2174_v38  ;;  %v1087_v48 = vmul.f32 %v2612_v20, %v2207_v39 }
  0x18   : > { %v611_v46 = vadd.f32 %v579_v23, %v510_v34  ;;  %v2639_v49 = vmul.f32 %v2612_v20, %v2208_v43  ;;  %v355_v51 = vld [vmem:[%s2578_s14 + $0x1c0] sm:$0xff]  ;;  %v2648_v53 = vmul.f32 %v2644_v50, %v2241_v44  ;;  %v2651_v54 = vmul.f32 %v2644_v50, %v2242_v45  ;;  %v356_v55 = vld [vmem:[%s2578_s14 + $0x1c8] sm:$0xff]  ;;  %v456_v57 = vld [vmem:[%s2578_s14 + $0x1d2] sm:$0xff] }
  0x19   : > { %v713_v52 = vadd.f32 %v681_v28, %v610_v40  ;;  %v392_v56 = vmul.f32 %v2560_v3, %v355_v51  ;;  %v457_v58 = vld [vmem:[%s2578_s14 + $0x1da] sm:$0xff]  ;;  %v393_v60 = vmul.f32 %v2560_v3, %v356_v55  ;;  %v493_v61 = vmul.f32 %v2565_v4, %v456_v57  ;;  %v557_v62 = vld [vmem:[%s2578_s14 + $0x1e4] sm:$0xff]  ;;  %v558_v63 = vld [vmem:[%s2578_s14 + $0x1ec] sm:$0xff] }
  0x1a   : > { %v714_v59 = vadd.f32 %v682_v29, %v611_v46  ;;  %v2087_v0 = vld [vmem:[%s2578_s14 + $0x5b0] sm:$0xff]  ;;  %v494_v2 = vmul.f32 %v2565_v4, %v457_v58  ;;  %v594_v10 = vmul.f32 %v2570_v5, %v557_v62  ;;  %v595_v11 = vmul.f32 %v2570_v5, %v558_v63  ;;  %v2088_v6 = vld [vmem:[%s2578_s14 + $0x5b8] sm:$0xff]  ;;  %v2121_v12 = vld [vmem:[%s2578_s14 + $0x5c2] sm:$0xff] }
  0x1b   : > { %v814_v1 = vadd.f32 %v782_v31, %v713_v52  ;;  %v2122_v14 = vld [vmem:[%s2578_s14 + $0x5ca] sm:$0xff]  ;;  %v525_v16 = vadd.f32 %v493_v61, %v392_v56  ;;  %v697_v17 = vmul.f32 %v2583_v7, %v2087_v0  ;;  %v698_v18 = vmul.f32 %v2583_v7, %v2088_v6  ;;  %v2155_v19 = vld [vmem:[%s2578_s14 + $0x5d4] sm:$0xff]  ;;  %v2156_v21 = vld [vmem:[%s2578_s14 + $0x5dc] sm:$0xff] }
  0x1c   : > { %v815_v15 = vadd.f32 %v783_v35, %v714_v59  ;;  %v2189_v22 = vld [vmem:[%s2578_s14 + $0x9a0] sm:$0xff]  ;;  %v526_v24 = vadd.f32 %v494_v2, %v393_v60  ;;  %v798_v25 = vmul.f32 %v2588_v8, %v2121_v12  ;;  %v799_v26 = vmul.f32 %v2588_v8, %v2122_v14  ;;  %v2190_v27 = vld [vmem:[%s2578_s14 + $0x9a8] sm:$0xff]  ;;  %v2223_v28 = vld [vmem:[%s2578_s14 + $0x9b2] sm:$0xff] }
  0x1d   : > { %v915_v23 = vadd.f32 %v883_v36, %v814_v1  ;;  %v2224_v29 = vld [vmem:[%s2578_s14 + $0x9ba] sm:$0xff]  ;;  %v626_v31 = vadd.f32 %v594_v10, %v525_v16  ;;  %v899_v32 = vmul.f32 %v2593_v9, %v2155_v19  ;;  %v900_v33 = vmul.f32 %v2593_v9, %v2156_v21  ;;  %v2257_v34 = vld [vmem:[%s2578_s14 + $0x9c4] sm:$0xff]  ;;  %v2258_v35 = vld [vmem:[%s2578_s14 + $0x9cc] sm:$0xff] }
  0x1e   : > { %v916_v30 = vadd.f32 %v884_v41, %v815_v15  ;;  %v627_v37 = vadd.f32 %v595_v11, %v526_v24  ;;  %v1002_v38 = vmul.f32 %v2601_v13, %v2189_v22  ;;  %v1003_v39 = vmul.f32 %v2601_v13, %v2190_v27  ;;  %v341_v40 = vld [vmem:[%s2578_s14 + $0x38] sm:$0xff]  ;;  %v342_v43 = vld [vmem:[%s2578_s14 + $0x40] sm:$0xff]  ;;  %v442_v51 = vld [vmem:[%s2578_s14 + $0x4a] sm:$0xff] }
  0x1f   : > { %v1018_v36 = vadd.f32 %v986_v42, %v915_v23  ;;  %v729_v44 = vadd.f32 %v697_v17, %v626_v31  ;;  %v1103_v45 = vmul.f32 %v2612_v20, %v2223_v28  ;;  %v1104_v46 = vmul.f32 %v2612_v20, %v2224_v29  ;;  %v443_v52 = vld [vmem:[%s2578_s14 + $0x52] sm:$0xff]  ;;  %v543_v58 = vld [vmem:[%s2578_s14 + $0x5c] sm:$0xff]  ;;  %v544_v59 = vld [vmem:[%s2578_s14 + $0x64] sm:$0xff] }
  0x20   : > { %v1019_v41 = vadd.f32 %v987_v47, %v916_v30  ;;  %v730_v42 = vadd.f32 %v698_v18, %v627_v37  ;;  %v1204_v56 = vmul.f32 %v2644_v50, %v2257_v34  ;;  %v1205_v57 = vmul.f32 %v2644_v50, %v2258_v35  ;;  %v2698_v60 = vld [vmem:[%s3480_s2] ss:$0 sm:$0xff]  ;;  %v2074_v10 = vld [vmem:[%s2578_s14 + $0x430] sm:$0xff]  ;;  %v2108_v19 = vld [vmem:[%s2578_s14 + $0x442] sm:$0xff] }
  0x21   : > { %v1119_v55 = vadd.f32 %v1087_v48, %v1018_v36  ;;  %v830_v61 = vadd.f32 %v798_v25, %v729_v44  ;;  %v378_v48 = vmul.f32 %v2560_v3, %v341_v40  ;;  %v379_v62 = vmul.f32 %v2560_v3, %v342_v43  ;;  %v2107_v18 = vld [vmem:[%s2578_s14 + $0x43a] sm:$0xff]  ;;  %v2141_v24 = vld [vmem:[%s2578_s14 + $0x44c] sm:$0xff] }
  0x22   : > { %v1120_v47 = vadd.f32 %v2639_v49, %v1019_v41  ;;  %v831_v0 = vadd.f32 %v799_v26, %v730_v42  ;;  %v479_v1 = vmul.f32 %v2565_v4, %v442_v51  ;;  %v480_v2 = vmul.f32 %v2565_v4, %v443_v52  ;;  %v2073_v49 = vld [vmem:[%s2578_s14 + $0x428] sm:$0xff]  ;;  %v2142_v29 = vld [vmem:[%s2578_s14 + $0x454] sm:$0xff]  ;;  %v2176_v35 = vld [vmem:[%s2578_s14 + $0x820] sm:$0xff] }
  0x23   : > { %v1220_v63 = vadd.f32 %v2648_v53, %v1119_v55  ;;  %v931_v6 = vadd.f32 %v899_v32, %v830_v61  ;;  %v580_v12 = vmul.f32 %v2570_v5, %v543_v58  ;;  %v581_v14 = vmul.f32 %v2570_v5, %v544_v59  ;;  %v2175_v30 = vld [vmem:[%s2578_s14 + $0x818] sm:$0xff]  ;;  %v2209_v40 = vld [vmem:[%s2578_s14 + $0x82a] sm:$0xff]  ;;  %v358_v61 = vld [vmem:[%s2578_s14 + $0x200] sm:$0xff] }
  0x24   : > { %v1221_v11 = vadd.f32 %v2651_v54, %v1120_v47  ;;  %v932_v53 = vadd.f32 %v900_v33, %v831_v0  ;;  %v511_v16 = vadd.f32 %v479_v1, %v378_v48  ;;  %v512_v17 = vadd.f32 %v480_v2, %v379_v62  ;;  %v2210_v43 = vld [vmem:[%s2578_s14 + $0x832] sm:$0xff]  ;;  %v2243_v41 = vld [vmem:[%s2578_s14 + $0x83c] sm:$0xff]  ;;  %v2244_v55 = vld [vmem:[%s2578_s14 + $0x844] sm:$0xff] }
  0x25   : > { %v1259_v15 = vadd.f32 %v2698_v60, %v1220_v63  ;;  %v1034_v22 = vadd.f32 %v1002_v38, %v931_v6  ;;  %v683_v54 = vmul.f32 %v2583_v7, %v2073_v49  ;;  %v684_v23 = vmul.f32 %v2583_v7, %v2074_v10  ;;  %v357_v47 = vld [vmem:[%s2578_s14 + $0x1f8] sm:$0xff]  ;;  %v458_v48 = vld [vmem:[%s2578_s14 + $0x20a] sm:$0xff] }
  0x26   : > { %v1260_v21 = vadd.f32 %v2698_v60, %v1221_v11  ;;  %v1035_v26 = vadd.f32 %v1003_v39, %v932_v53  ;;  %v612_v27 = vadd.f32 %v580_v12, %v511_v16  ;;  %v613_v28 = vadd.f32 %v581_v14, %v512_v17  ;;  %v459_v0 = vld [vmem:[%s2578_s14 + $0x212] sm:$0xff]  ;;  %v559_v11 = vld [vmem:[%s2578_s14 + $0x21c] sm:$0xff]  ;;  %v560_v6 = vld [vmem:[%s2578_s14 + $0x224] sm:$0xff] }
  0x27   : > { %v1291_v25 = vmax.f32 %v1259_v15, 0.0  ;;  %v1135_v32 = vadd.f32 %v1103_v45, %v1034_v22  ;;  %v784_v33 = vmul.f32 %v2588_v8, %v2107_v18  ;;  %v785_v34 = vmul.f32 %v2588_v8, %v2108_v19  ;;  %v2089_v12 = vld [vmem:[%s2578_s14 + $0x5e8] sm:$0xff]  ;;  %v2090_v22 = vld [vmem:[%s2578_s14 + $0x5f0] sm:$0xff] }
  0x28   : > { %v1292_v31 = vmax.f32 %v1260_v21, 0.0  ;;  %v1136_v36 = vadd.f32 %v1104_v46, %v1035_v26  ;;  %v715_v37 = vadd.f32 %v683_v54, %v612_v27  ;;  %v716_v38 = vadd.f32 %v684_v23, %v613_v28  ;;  %v2123_v54 = vld [vmem:[%s2578_s14 + $0x5fa] sm:$0xff]  ;;  %v2124_v23 = vld [vmem:[%s2578_s14 + $0x602] sm:$0xff]  ;;  %v2157_v28 = vld [vmem:[%s2578_s14 + $0x60c] sm:$0xff] }
  0x29   : > { %v885_v39 = vmul.f32 %v2593_v9, %v2141_v24  ;;  %v1236_v51 = vadd.f32 %v1204_v56, %v1135_v32  ;;  %v886_v45 = vmul.f32 %v2593_v9, %v2142_v29  ;;  %v988_v52 = vmul.f32 %v2601_v13, %v2175_v30 }
  0x2a   : > { %v1323_v44 = vpack.c.bf16 %v1292_v31, %v1291_v25  ;;  %v1237_v42 = vadd.f32 %v1205_v57, %v1136_v36  ;;  %v816_v46 = vadd.f32 %v784_v33, %v715_v37  ;;  %v817_v58 = vadd.f32 %v785_v34, %v716_v38  ;;  %v2158_v33 = vld [vmem:[%s2578_s14 + $0x614] sm:$0xff] }
  0x2b   : > { %v989_v59 = vmul.f32 %v2601_v13, %v2176_v35  ;;  %v1275_v56 = vadd.f32 %v2698_v60, %v1236_v51  ;;  %v1089_v62 = vmul.f32 %v2612_v20, %v2209_v40  ;;  %v1090_v63 = vmul.f32 %v2612_v20, %v2210_v43  ;;  %v2191_v34 = vld [vmem:[%s2578_s14 + $0x9d8] sm:$0xff]  ;;  %v2192_v35 = vld [vmem:[%s2578_s14 + $0x9e0] sm:$0xff]  ;;  %v2225_v40 = vld [vmem:[%s2578_s14 + $0x9ea] sm:$0xff] }
  0x2c   : > { %2392 = vmatprep.mubr.msk.bf16.mxu0 %vm1403_vm0, %v1323_v44  ;;  %v1190_v57 = vmul.f32 %v2644_v50, %v2243_v41  ;;  %v1276_v1 = vadd.f32 %v2698_v60, %v1237_v42  ;;  %v917_v2 = vadd.f32 %v885_v39, %v816_v46  ;;  %v918_v49 = vadd.f32 %v886_v45, %v817_v58  ;;  %v2226_v45 = vld [vmem:[%s2578_s14 + $0x9f2] sm:$0xff] }
  0x2d   : > { %v1191_v10 = vmul.f32 %v2644_v50, %v2244_v55  ;;  %v1307_v14 = vmax.f32 %v1275_v56, 0.0  ;;  %v394_v15 = vmul.f32 %v2560_v3, %v357_v47  ;;  %v395_v53 = vmul.f32 %v2560_v3, %v358_v61  ;;  %v2260_v55 = vld [vmem:[%s2578_s14 + $0xa04] sm:$0xff]  ;;  %v343_v47 = vld [vmem:[%s2578_s14 + $0x70] sm:$0xff] }
  0x2e   : > { %v495_v16 = vmul.f32 %v2565_v4, %v458_v48  ;;  %v1308_v17 = vmax.f32 %v1276_v1, 0.0  ;;  %v1020_v18 = vadd.f32 %v988_v52, %v917_v2  ;;  %v1021_v19 = vadd.f32 %v989_v59, %v918_v49  ;;  %v2259_v52 = vld [vmem:[%s2578_s14 + $0x9fc] sm:$0xff] }
  0x2f   : > { %v496_v21 = vmul.f32 %v2565_v4, %v459_v0  ;;  %v596_v25 = vmul.f32 %v2570_v5, %v559_v11  ;;  %v597_v26 = vmul.f32 %v2570_v5, %v560_v6  ;;  %v699_v27 = vmul.f32 %v2583_v7, %v2089_v12  ;;  %v445_v0 = vld [vmem:[%s2578_s14 + $0x8a] sm:$0xff]  ;;  %v545_v11 = vld [vmem:[%s2578_s14 + $0x94] sm:$0xff]  ;;  %v546_v6 = vld [vmem:[%s2578_s14 + $0x9c] sm:$0xff] }
  0x30   : > { %v527_v24 = vadd.f32 %v495_v16, %v394_v15  ;;  %v1331_v29 = vpack.c.bf16 %v1308_v17, %v1307_v14  ;;  %v1121_v30 = vadd.f32 %v1089_v62, %v1020_v18  ;;  %v1122_v31 = vadd.f32 %v1090_v63, %v1021_v19  ;;  %v344_v63 = vld [vmem:[%s2578_s14 + $0x78] sm:$0xff]  ;;  %v2075_v16 = vld [vmem:[%s2578_s14 + $0x460] sm:$0xff] }
  0x31   : > { %v528_v32 = vadd.f32 %v496_v21, %v395_v53  ;;  %v700_v37 = vmul.f32 %v2583_v7, %v2090_v22  ;;  %v800_v38 = vmul.f32 %v2588_v8, %v2123_v54  ;;  %v801_v39 = vmul.f32 %v2588_v8, %v2124_v23  ;;  %v2076_v22 = vld [vmem:[%s2578_s14 + $0x468] sm:$0xff]  ;;  %v2109_v54 = vld [vmem:[%s2578_s14 + $0x472] sm:$0xff]  ;;  %v2110_v23 = vld [vmem:[%s2578_s14 + $0x47a] sm:$0xff] }
  0x32   : > { %v628_v36 = vadd.f32 %v596_v25, %v527_v24  ;;  %2408 = vmatprep.mubr.msk.bf16.mxu1 %vm1403_vm0, %v1331_v29  ;;  %v1222_v43 = vadd.f32 %v1190_v57, %v1121_v30  ;;  %v1223_v41 = vadd.f32 %v1191_v10, %v1122_v31  ;;  %v901_v51 = vmul.f32 %v2593_v9, %v2157_v28  ;;  %v444_v57 = vld [vmem:[%s2578_s14 + $0x82] sm:$0xff] }
  0x33   : > { %v629_v44 = vadd.f32 %v597_v26, %v528_v32  ;;  %v902_v46 = vmul.f32 %v2593_v9, %v2158_v33  ;;  %v1004_v58 = vmul.f32 %v2601_v13, %v2191_v34  ;;  %v1005_v59 = vmul.f32 %v2601_v13, %v2192_v35  ;;  %v2143_v28 = vld [vmem:[%s2578_s14 + $0x484] sm:$0xff]  ;;  %v2144_v33 = vld [vmem:[%s2578_s14 + $0x48c] sm:$0xff]  ;;  %v2178_v35 = vld [vmem:[%s2578_s14 + $0x858] sm:$0xff] }
  0x34   : > { %v731_v42 = vadd.f32 %v699_v27, %v628_v36  ;;  %v1261_v61 = vadd.f32 %v2698_v60, %v1222_v43  ;;  %v1262_v48 = vadd.f32 %v2698_v60, %v1223_v41  ;;  %v1105_v62 = vmul.f32 %v2612_v20, %v2225_v40  ;;  %v2177_v34 = vld [vmem:[%s2578_s14 + $0x850] sm:$0xff]  ;;  %v2211_v40 = vld [vmem:[%s2578_s14 + $0x862] sm:$0xff] }
  0x35   : > { %v732_v56 = vadd.f32 %v700_v37, %v629_v44  ;;  %v1106_v2 = vmul.f32 %v2612_v20, %v2226_v45  ;;  %v1206_v49 = vmul.f32 %v2644_v50, %v2259_v52  ;;  %v1207_v10 = vmul.f32 %v2644_v50, %v2260_v55  ;;  %v2212_v45 = vld [vmem:[%s2578_s14 + $0x86a] sm:$0xff]  ;;  %v2245_v52 = vld [vmem:[%s2578_s14 + $0x874] sm:$0xff]  ;;  %v2246_v55 = vld [vmem:[%s2578_s14 + $0x87c] sm:$0xff] }
  0x36   : > { %v832_v1 = vadd.f32 %v800_v38, %v731_v42  ;;  %v1293_v12 = vmax.f32 %v1261_v61, 0.0  ;;  %v1294_v14 = vmax.f32 %v1262_v48, 0.0  ;;  %v380_v53 = vmul.f32 %v2560_v3, %v343_v47  ;;  %v359_v47 = vld [vmem:[%s2578_s14 + $0x230] sm:$0xff] }
  0x37   : > { %v833_v15 = vadd.f32 %v801_v39, %v732_v56  ;;  %v381_v18 = vmul.f32 %v2560_v3, %v344_v63  ;;  %v481_v19 = vmul.f32 %v2565_v4, %v444_v57  ;;  %v482_v21 = vmul.f32 %v2565_v4, %v445_v0  ;;  %v360_v63 = vld [vmem:[%s2578_s14 + $0x238] sm:$0xff]  ;;  %v460_v57 = vld [vmem:[%s2578_s14 + $0x242] sm:$0xff]  ;;  %v461_v0 = vld [vmem:[%s2578_s14 + $0x24a] sm:$0xff] }
  0x38   : > { %v933_v17 = vadd.f32 %v901_v51, %v832_v1  ;;  %v1324_v24 = vpack.c.bf16 %v1294_v14, %v1293_v12  ;;  %v582_v26 = vmul.f32 %v2570_v5, %v545_v11  ;;  %v583_v27 = vmul.f32 %v2570_v5, %v546_v6  ;;  %v561_v12 = vld [vmem:[%s2578_s14 + $0x254] sm:$0xff] }
  0x39   : > { %v934_v25 = vadd.f32 %v902_v46, %v833_v15  ;;  %v513_v30 = vadd.f32 %v481_v19, %v380_v53  ;;  %v514_v31 = vadd.f32 %v482_v21, %v381_v18  ;;  %v685_v32 = vmul.f32 %v2583_v7, %v2075_v16  ;;  %v562_v16 = vld [vmem:[%s2578_s14 + $0x25c] sm:$0xff] }
  0x3a   : > { %v1036_v29 = vadd.f32 %v1004_v58, %v933_v17  ;;  %2393 = vmatmul.mubr.msk.bf16.vlgmr.msra.gmra.mrb[0].mxu0 %vm1403_vm0, %v1324_v24  ;;  %v686_v37 = vmul.f32 %v2583_v7, %v2076_v22  ;;  %v786_v38 = vmul.f32 %v2588_v8, %v2109_v54  ;;  %v787_v39 = vmul.f32 %v2588_v8, %v2110_v23  ;;  %v2091_v21 = vld [vmem:[%s2578_s14 + $0x620] sm:$0xff]  ;;  %v2092_v22 = vld [vmem:[%s2578_s14 + $0x628] sm:$0xff] }
  0x3b   : > { %v1037_v36 = vadd.f32 %v1005_v59, %v934_v25  ;;  %v614_v41 = vadd.f32 %v582_v26, %v513_v30  ;;  %v615_v44 = vadd.f32 %v583_v27, %v514_v31  ;;  %v887_v51 = vmul.f32 %v2593_v9, %v2143_v28  ;;  %v2125_v26 = vld [vmem:[%s2578_s14 + $0x632] sm:$0xff]  ;;  %v2126_v31 = vld [vmem:[%s2578_s14 + $0x63a] sm:$0xff] }
  0x3c   : > { %v1137_v43 = vadd.f32 %v1105_v62, %v1036_v29  ;;  %v888_v46 = vmul.f32 %v2593_v9, %v2144_v33  ;;  %v990_v58 = vmul.f32 %v2601_v13, %v2177_v34  ;;  %v991_v59 = vmul.f32 %v2601_v13, %v2178_v35 }
  0x3d   : > { %v1138_v42 = vadd.f32 %v1106_v2, %v1037_v36  ;;  %v717_v48 = vadd.f32 %v685_v32, %v614_v41  ;;  %v718_v56 = vadd.f32 %v686_v37, %v615_v44  ;;  %v1091_v62 = vmul.f32 %v2612_v20, %v2211_v40  ;;  %v2159_v32 = vld [vmem:[%s2578_s14 + $0x644] sm:$0xff]  ;;  %v2160_v37 = vld [vmem:[%s2578_s14 + $0x64c] sm:$0xff]  ;;  %v2194_v44 = vld [vmem:[%s2578_s14 + $0xa18] sm:$0xff] }
  0x3e   : > { %v1238_v61 = vadd.f32 %v1206_v49, %v1137_v43  ;;  %v1092_v2 = vmul.f32 %v2612_v20, %v2212_v45  ;;  %v1192_v11 = vmul.f32 %v2644_v50, %v2245_v52  ;;  %v1193_v6 = vmul.f32 %v2644_v50, %v2246_v55 }
  0x3f   : > { %v1239_v1 = vadd.f32 %v1207_v10, %v1138_v42  ;;  %v818_v14 = vadd.f32 %v786_v38, %v717_v48  ;;  %v819_v15 = vadd.f32 %v787_v39, %v718_v56  ;;  %v396_v53 = vmul.f32 %v2560_v3, %v359_v47  ;;  %v2193_v38 = vld [vmem:[%s2578_s14 + $0xa10] sm:$0xff]  ;;  %v2262_v56 = vld [vmem:[%s2578_s14 + $0xa3c] sm:$0xff] }
  0x40   : > { %v1277_v49 = vadd.f32 %v2698_v60, %v1238_v61  ;;  %v397_v10 = vmul.f32 %v2560_v3, %v360_v63  ;;  %v497_v18 = vmul.f32 %v2565_v4, %v460_v57  ;;  %v498_v19 = vmul.f32 %v2565_v4, %v461_v0 }
  0x41   : > { %v1278_v17 = vadd.f32 %v2698_v60, %v1239_v1  ;;  %v919_v23 = vadd.f32 %v887_v51, %v818_v14  ;;  %v920_v24 = vadd.f32 %v888_v46, %v819_v15  ;;  %v598_v25 = vmul.f32 %v2570_v5, %v561_v12  ;;  %v2227_v51 = vld [vmem:[%s2578_s14 + $0xa22] sm:$0xff]  ;;  %v2228_v46 = vld [vmem:[%s2578_s14 + $0xa2a] sm:$0xff]  ;;  %v446_v12 = vld [vmem:[%s2578_s14 + $0xba] sm:$0xff] }
  0x42   : > { %v1309_v54 = vmax.f32 %v1277_v49, 0.0  ;;  %v529_v28 = vadd.f32 %v497_v18, %v396_v53  ;;  %v530_v29 = vadd.f32 %v498_v19, %v397_v10  ;;  %v599_v30 = vmul.f32 %v2570_v5, %v562_v16  ;;  %v447_v16 = vld [vmem:[%s2578_s14 + $0xc2] sm:$0xff]  ;;  %v548_v19 = vld [vmem:[%s2578_s14 + $0xd4] sm:$0xff] }
  0x43   : > { %v1310_v27 = vmax.f32 %v1278_v17, 0.0  ;;  %v1022_v33 = vadd.f32 %v990_v58, %v919_v23  ;;  %v1023_v34 = vadd.f32 %v991_v59, %v920_v24  ;;  %v701_v35 = vmul.f32 %v2583_v7, %v2091_v21  ;;  %v2261_v58 = vld [vmem:[%s2578_s14 + $0xa34] sm:$0xff]  ;;  %v547_v17 = vld [vmem:[%s2578_s14 + $0xcc] sm:$0xff] }
  0x44   : > { %v702_v36 = vmul.f32 %v2583_v7, %v2092_v22  ;;  %v630_v40 = vadd.f32 %v598_v25, %v529_v28  ;;  %v631_v43 = vadd.f32 %v599_v30, %v530_v29  ;;  %v802_v41 = vmul.f32 %v2588_v8, %v2125_v26  ;;  %v2077_v24 = vld [vmem:[%s2578_s14 + $0x498] sm:$0xff]  ;;  %v2078_v25 = vld [vmem:[%s2578_s14 + $0x4a0] sm:$0xff]  ;;  %v2111_v30 = vld [vmem:[%s2578_s14 + $0x4aa] sm:$0xff] }
  0x45   : > { %v1332_v39 = vpack.c.bf16 %v1310_v27, %v1309_v54  ;;  %v1123_v45 = vadd.f32 %v1091_v62, %v1022_v33  ;;  %v1124_v52 = vadd.f32 %v1092_v2, %v1023_v34  ;;  %v803_v55 = vmul.f32 %v2588_v8, %v2126_v31  ;;  %v345_v62 = vld [vmem:[%s2578_s14 + $0xa8] sm:$0xff]  ;;  %v346_v2 = vld [vmem:[%s2578_s14 + $0xb0] sm:$0xff] }
  0x46   : > { %v903_v42 = vmul.f32 %v2593_v9, %v2159_v32  ;;  %v733_v59 = vadd.f32 %v701_v35, %v630_v40  ;;  %v734_v47 = vadd.f32 %v702_v36, %v631_v43  ;;  %v904_v61 = vmul.f32 %v2593_v9, %v2160_v37  ;;  %v2112_v35 = vld [vmem:[%s2578_s14 + $0x4b2] sm:$0xff]  ;;  %v2145_v36 = vld [vmem:[%s2578_s14 + $0x4bc] sm:$0xff]  ;;  %v2146_v37 = vld [vmem:[%s2578_s14 + $0x4c4] sm:$0xff] }
  0x47   : > { %2409 = vmatmul.mubr.msk.bf16.vlgmr.msra.gmra.mrb[0].mxu1 %vm1403_vm0, %v1332_v39  ;;  %v1006_v48 = vmul.f32 %v2601_v13, %v2193_v38  ;;  %v1224_v63 = vadd.f32 %v1192_v11, %v1123_v45  ;;  %v1225_v57 = vadd.f32 %v1193_v6, %v1124_v52  ;;  %v1007_v0 = vmul.f32 %v2601_v13, %v2194_v44 }
  0x48   : > { %v1107_v1 = vmul.f32 %v2612_v20, %v2227_v51  ;;  %v834_v49 = vadd.f32 %v802_v41, %v733_v59  ;;  %v835_v14 = vadd.f32 %v803_v55, %v734_v47  ;;  %v1108_v15 = vmul.f32 %v2612_v20, %v2228_v46  ;;  %v2179_v41 = vld [vmem:[%s2578_s14 + $0x888] sm:$0xff]  ;;  %v2180_v55 = vld [vmem:[%s2578_s14 + $0x890] sm:$0xff] }
  0x49   : > { %v1208_v53 = vmul.f32 %v2644_v50, %v2261_v58  ;;  %v1263_v11 = vadd.f32 %v2698_v60, %v1224_v63  ;;  %v1264_v6 = vadd.f32 %v2698_v60, %v1225_v57  ;;  %v1209_v10 = vmul.f32 %v2644_v50, %v2262_v56  ;;  %v2214_v46 = vld [vmem:[%s2578_s14 + $0x8a2] sm:$0xff] }
  0x4a   : > { %v382_v18 = vmul.f32 %v2560_v3, %v345_v62  ;;  %v935_v21 = vadd.f32 %v903_v42, %v834_v49  ;;  %v936_v22 = vadd.f32 %v904_v61, %v835_v14  ;;  %v383_v54 = vmul.f32 %v2560_v3, %v346_v2  ;;  %v2213_v42 = vld [vmem:[%s2578_s14 + $0x89a] sm:$0xff]  ;;  %v362_v2 = vld [vmem:[%s2578_s14 + $0x270] sm:$0xff] }
  0x4b   : > { %v483_v23 = vmul.f32 %v2565_v4, %v446_v12  ;;  %v1295_v26 = vmax.f32 %v1263_v11, 0.0  ;;  %v1296_v27 = vmax.f32 %v1264_v6, 0.0  ;;  %v484_v28 = vmul.f32 %v2565_v4, %v447_v16  ;;  %v462_v16 = vld [vmem:[%s2578_s14 + $0x27a] sm:$0xff] }
  0x4c   : > { %v584_v29 = vmul.f32 %v2570_v5, %v547_v17  ;;  %v1038_v31 = vadd.f32 %v1006_v48, %v935_v21  ;;  %v1039_v32 = vadd.f32 %v1007_v0, %v936_v22  ;;  %v585_v34 = vmul.f32 %v2570_v5, %v548_v19  ;;  %v2247_v48 = vld [vmem:[%s2578_s14 + $0x8ac] sm:$0xff]  ;;  %v2248_v0 = vld [vmem:[%s2578_s14 + $0x8b4] sm:$0xff] }
  0x4d   : > { %v515_v33 = vadd.f32 %v483_v23, %v382_v18  ;;  %v1325_v38 = vpack.c.bf16 %v1296_v27, %v1295_v26  ;;  %v516_v39 = vadd.f32 %v484_v28, %v383_v54  ;;  %v687_v40 = vmul.f32 %v2583_v7, %v2077_v24  ;;  %v563_v18 = vld [vmem:[%s2578_s14 + $0x28c] sm:$0xff]  ;;  %v564_v19 = vld [vmem:[%s2578_s14 + $0x294] sm:$0xff] }
  0x4e   : > { %v688_v43 = vmul.f32 %v2583_v7, %v2078_v25  ;;  %v1139_v44 = vadd.f32 %v1107_v1, %v1038_v31  ;;  %v1140_v51 = vadd.f32 %v1108_v15, %v1039_v32  ;;  %v788_v52 = vmul.f32 %v2588_v8, %v2111_v30  ;;  %v361_v1 = vld [vmem:[%s2578_s14 + $0x268] sm:$0xff]  ;;  %v2093_v24 = vld [vmem:[%s2578_s14 + $0x658] sm:$0xff] }
  0x4f   : > { %v616_v45 = vadd.f32 %v584_v29, %v515_v33  ;;  %2396 = vmatprep.mubr.msk.bf16.mxu0 %vm1403_vm0, %v1325_v38  ;;  %v617_v58 = vadd.f32 %v585_v34, %v516_v39  ;;  %v789_v59 = vmul.f32 %v2588_v8, %v2112_v35  ;;  %v889_v47 = vmul.f32 %v2593_v9, %v2145_v36  ;;  %v2094_v29 = vld [vmem:[%s2578_s14 + $0x660] sm:$0xff]  ;;  %v2127_v30 = vld [vmem:[%s2578_s14 + $0x66a] sm:$0xff]  ;;  %v2128_v35 = vld [vmem:[%s2578_s14 + $0x672] sm:$0xff] }
  0x50   : > { %v890_v61 = vmul.f32 %v2593_v9, %v2146_v37  ;;  %v1240_v56 = vadd.f32 %v1208_v53, %v1139_v44  ;;  %v1241_v62 = vadd.f32 %v1209_v10, %v1140_v51  ;;  %v992_v57 = vmul.f32 %v2601_v13, %v2179_v41  ;;  %v463_v10 = vld [vmem:[%s2578_s14 + $0x282] sm:$0xff] }
  0x51   : > { %v719_v63 = vadd.f32 %v687_v40, %v616_v45  ;;  %v720_v12 = vadd.f32 %v688_v43, %v617_v58  ;;  %v993_v49 = vmul.f32 %v2601_v13, %v2180_v55  ;;  %v1093_v14 = vmul.f32 %v2612_v20, %v2213_v42  ;;  %v2161_v36 = vld [vmem:[%s2578_s14 + $0x67c] sm:$0xff]  ;;  %v2162_v43 = vld [vmem:[%s2578_s14 + $0x684] sm:$0xff]  ;;  %v2196_v55 = vld [vmem:[%s2578_s14 + $0xa50] sm:$0xff] }
  0x52   : > { %v1094_v15 = vmul.f32 %v2612_v20, %v2214_v46  ;;  %v1279_v53 = vadd.f32 %v2698_v60, %v1240_v56  ;;  %v1280_v17 = vadd.f32 %v2698_v60, %v1241_v62  ;;  %v1194_v6 = vmul.f32 %v2644_v50, %v2247_v48  ;;  %v2195_v41 = vld [vmem:[%s2578_s14 + $0xa48] sm:$0xff]  ;;  %v2229_v42 = vld [vmem:[%s2578_s14 + $0xa5a] sm:$0xff] }
  0x53   : > { %v820_v11 = vadd.f32 %v788_v52, %v719_v63  ;;  %v821_v21 = vadd.f32 %v789_v59, %v720_v12  ;;  %v1195_v22 = vmul.f32 %v2644_v50, %v2248_v0  ;;  %v398_v54 = vmul.f32 %v2560_v3, %v361_v1  ;;  %v2263_v48 = vld [vmem:[%s2578_s14 + $0xa6c] sm:$0xff]  ;;  %v2264_v0 = vld [vmem:[%s2578_s14 + $0xa74] sm:$0xff]  ;;  %v347_v1 = vld [vmem:[%s2578_s14 + $0xe0] sm:$0xff] }
  0x54   : > { %v399_v23 = vmul.f32 %v2560_v3, %v362_v2  ;;  %v1311_v25 = vmax.f32 %v1279_v53, 0.0  ;;  %v1312_v26 = vmax.f32 %v1280_v17, 0.0  ;;  %v499_v28 = vmul.f32 %v2565_v4, %v462_v16  ;;  %v348_v16 = vld [vmem:[%s2578_s14 + $0xe8] sm:$0xff]  ;;  %v448_v53 = vld [vmem:[%s2578_s14 + $0xf2] sm:$0xff] }
  0x55   : > { %v921_v27 = vadd.f32 %v889_v47, %v820_v11  ;;  %v922_v31 = vadd.f32 %v890_v61, %v821_v21  ;;  %v500_v32 = vmul.f32 %v2565_v4, %v463_v10  ;;  %v600_v33 = vmul.f32 %v2570_v5, %v563_v18  ;;  %v2230_v61 = vld [vmem:[%s2578_s14 + $0xa62] sm:$0xff]  ;;  %v449_v18 = vld [vmem:[%s2578_s14 + $0xfa] sm:$0xff] }
  0x56   : > { %v601_v34 = vmul.f32 %v2570_v5, %v564_v19  ;;  %v1333_v37 = vpack.c.bf16 %v1312_v26, %v1311_v25  ;;  %v531_v39 = vadd.f32 %v499_v28, %v398_v54  ;;  %v703_v40 = vmul.f32 %v2583_v7, %v2093_v24  ;;  %v549_v19 = vld [vmem:[%s2578_s14 + $0x104] sm:$0xff]  ;;  %v550_v24 = vld [vmem:[%s2578_s14 + $0x10c] sm:$0xff] }
  0x57   : > { %v1024_v38 = vadd.f32 %v992_v57, %v921_v27  ;;  %v1025_v44 = vadd.f32 %v993_v49, %v922_v31  ;;  %v532_v51 = vadd.f32 %v500_v32, %v399_v23  ;;  %v704_v45 = vmul.f32 %v2583_v7, %v2094_v29  ;;  %v2079_v28 = vld [vmem:[%s2578_s14 + $0x4d0] sm:$0xff]  ;;  %v2080_v29 = vld [vmem:[%s2578_s14 + $0x4d8] sm:$0xff] }
  0x58   : > { %v804_v52 = vmul.f32 %v2588_v8, %v2127_v30  ;;  %2412 = vmatprep.mubr.msk.bf16.mxu1 %vm1403_vm0, %v1333_v37  ;;  %v632_v58 = vadd.f32 %v600_v33, %v531_v39  ;;  %v805_v59 = vmul.f32 %v2588_v8, %v2128_v35  ;;  %v905_v47 = vmul.f32 %v2593_v9, %v2161_v36  ;;  %v2147_v39 = vld [vmem:[%s2578_s14 + $0x4f4] sm:$0xff] }
  0x59   : > { %v1125_v46 = vadd.f32 %v1093_v14, %v1024_v38  ;;  %v1126_v56 = vadd.f32 %v1094_v15, %v1025_v44  ;;  %v633_v62 = vadd.f32 %v601_v34, %v532_v51  ;;  %v906_v63 = vmul.f32 %v2593_v9, %v2162_v43  ;;  %v2113_v34 = vld [vmem:[%s2578_s14 + $0x4e2] sm:$0xff]  ;;  %v2114_v38 = vld [vmem:[%s2578_s14 + $0x4ea] sm:$0xff] }
  0x5a   : > { %v1008_v57 = vmul.f32 %v2601_v13, %v2195_v41  ;;  %v735_v12 = vadd.f32 %v703_v40, %v632_v58  ;;  %v1009_v49 = vmul.f32 %v2601_v13, %v2196_v55  ;;  %v1109_v14 = vmul.f32 %v2612_v20, %v2229_v42  ;;  %v2148_v44 = vld [vmem:[%s2578_s14 + $0x4fc] sm:$0xff] }
  0x5b   : > { %v1226_v2 = vadd.f32 %v1194_v6, %v1125_v46  ;;  %v1227_v15 = vadd.f32 %v1195_v22, %v1126_v56  ;;  %v736_v17 = vadd.f32 %v704_v45, %v633_v62  ;;  %v1110_v11 = vmul.f32 %v2612_v20, %v2230_v61  ;;  %v2181_v51 = vld [vmem:[%s2578_s14 + $0x8c0] sm:$0xff]  ;;  %v2215_v46 = vld [vmem:[%s2578_s14 + $0x8d2] sm:$0xff] }
  0x5c   : > { %v1210_v10 = vmul.f32 %v2644_v50, %v2263_v48  ;;  %v836_v21 = vadd.f32 %v804_v52, %v735_v12  ;;  %v1211_v54 = vmul.f32 %v2644_v50, %v2264_v0  ;;  %v384_v23 = vmul.f32 %v2560_v3, %v347_v1  ;;  %v2249_v48 = vld [vmem:[%s2578_s14 + $0x8e4] sm:$0xff]  ;;  %v2250_v0 = vld [vmem:[%s2578_s14 + $0x8ec] sm:$0xff] }
  0x5d   : > { %v1265_v6 = vadd.f32 %v2698_v60, %v1226_v2  ;;  %v1266_v22 = vadd.f32 %v2698_v60, %v1227_v15  ;;  %v837_v25 = vadd.f32 %v805_v59, %v736_v17  ;;  %v385_v26 = vmul.f32 %v2560_v3, %v348_v16  ;;  %v363_v1 = vld [vmem:[%s2578_s14 + $0x2a0] sm:$0xff]  ;;  %v464_v16 = vld [vmem:[%s2578_s14 + $0x2b2] sm:$0xff] }
  0x5e   : > { %v485_v27 = vmul.f32 %v2565_v4, %v448_v53  ;;  %v937_v31 = vadd.f32 %v905_v47, %v836_v21  ;;  %v486_v32 = vmul.f32 %v2565_v4, %v449_v18  ;;  %v586_v33 = vmul.f32 %v2570_v5, %v549_v19  ;;  %v565_v18 = vld [vmem:[%s2578_s14 + $0x2c4] sm:$0xff] }
  0x5f   : > { %v1297_v30 = vmax.f32 %v1265_v6, 0.0  ;;  %v1298_v35 = vmax.f32 %v1266_v22, 0.0  ;;  %v938_v36 = vadd.f32 %v906_v63, %v837_v25  ;;  %v587_v3 = vmul.f32 %v2570_v5, %v550_v24  ;;  %v2182_v5 = vld [vmem:[%s2578_s14 + $0x8c8] sm:$0xff]  ;;  %v2095_v25 = vld [vmem:[%s2578_s14 + $0x690] sm:$0xff] }
  0x60   : > { %v517_v37 = vadd.f32 %v485_v27, %v384_v23  ;;  %v1040_v40 = vadd.f32 %v1008_v57, %v937_v31  ;;  %v518_v43 = vadd.f32 %v486_v32, %v385_v26  ;;  %v689_v41 = vmul.f32 %v2583_v7, %v2079_v28  ;;  %v2096_v26 = vld [vmem:[%s2578_s14 + $0x698] sm:$0xff]  ;;  %v2129_v32 = vld [vmem:[%s2578_s14 + $0x6a2] sm:$0xff] }
  0x61   : > { %v690_v4 = vmul.f32 %v2583_v7, %v2080_v29  ;;  %v1326_v45 = vpack.c.bf16 %v1298_v35, %v1297_v30  ;;  %v1041_v52 = vadd.f32 %v1009_v49, %v938_v36  ;;  %v790_v42 = vmul.f32 %v2588_v8, %v2113_v34  ;;  %v2216_v7 = vld [vmem:[%s2578_s14 + $0x8da] sm:$0xff]  ;;  %v2996_v30 = vld [vmem:[%s3479_s1 + $0x2] ss:$0 sm:$0xff] }
  0x62   : > { %v618_v55 = vadd.f32 %v586_v33, %v517_v37  ;;  %v1141_v58 = vadd.f32 %v1109_v14, %v1040_v40  ;;  %v619_v59 = vadd.f32 %v587_v3, %v518_v43  ;;  %v791_v47 = vmul.f32 %v2588_v8, %v2114_v38  ;;  %v364_v14 = vld [vmem:[%s2578_s14 + $0x2a8] sm:$0xff]  ;;  %v2163_v3 = vld [vmem:[%s2578_s14 + $0x6b4] sm:$0xff]  ;;  %v3006_v40 = vld [vmem:[%s3479_s1 + $0x4] ss:$0 sm:$0xff] }
  0x63   : > { %v891_v61 = vmul.f32 %v2593_v9, %v2147_v39  ;;  %2397 = vmatmul.mubr.msk.bf16.gmra.mrb[4].mxu0 %vm1403_vm0, %v1326_v45  ;;  %v1142_v56 = vadd.f32 %v1110_v11, %v1041_v52  ;;  %v892_v63 = vmul.f32 %v2593_v9, %v2148_v44  ;;  %v994_v57 = vmul.f32 %v2601_v13, %v2181_v51  ;;  %v465_v11 = vld [vmem:[%s2578_s14 + $0x2ba] sm:$0xff]  ;;  %v2130_v37 = vld [vmem:[%s2578_s14 + $0x6aa] sm:$0xff] }
  0x64   : > { %v721_v62 = vadd.f32 %v689_v41, %v618_v55  ;;  %v1242_v2 = vadd.f32 %v1210_v10, %v1141_v58  ;;  %v722_v12 = vadd.f32 %v690_v4, %v619_v59  ;;  %v995_v8 = vmul.f32 %v2601_v13, %v2182_v5  ;;  %v2978_v13 = vld [vmem:[%s3479_s1] ss:$0 sm:$0xff]  ;;  %v3015_v55 = vld [vmem:[%s3479_s1 + $0x5] ss:$0 sm:$0xff]  ;;  %v2198_v5 = vld [vmem:[%s2578_s14 + $0xa88] sm:$0xff] }
  0x65   : > { %v1095_v49 = vmul.f32 %v2612_v20, %v2215_v46  ;;  %v1243_v53 = vadd.f32 %v1211_v54, %v1142_v56  ;;  %v1096_v17 = vmul.f32 %v2612_v20, %v2216_v7  ;;  %v1196_v9 = vmul.f32 %v2644_v50, %v2249_v48  ;;  %v566_v54 = vld [vmem:[%s2578_s14 + $0x2cc] sm:$0xff]  ;;  %v2164_v4 = vld [vmem:[%s2578_s14 + $0x6bc] sm:$0xff]  ;;  %v2265_v56 = vld [vmem:[%s2578_s14 + $0xaa4] sm:$0xff] }
  0x66   : > { %v822_v15 = vadd.f32 %v790_v42, %v721_v62  ;;  %v1281_v10 = vadd.f32 %v2698_v60, %v1242_v2  ;;  %v823_v19 = vadd.f32 %v791_v47, %v722_v12  ;;  %v1197_v6 = vmul.f32 %v2644_v50, %v2250_v0  ;;  %v2987_v50 = vld [vmem:[%s3479_s1 + $0x1] ss:$0 sm:$0xff]  ;;  %v2231_v46 = vld [vmem:[%s2578_s14 + $0xa92] sm:$0xff]  ;;  %v3034_v0 = vld [vmem:[%s3479_s1 + $0x8] ss:$0 sm:$0xff] }
  0x67   : > { %v400_v21 = vmul.f32 %v2978_v13, %v363_v1  ;;  %v1282_v20 = vadd.f32 %v2698_v60, %v1243_v53  ;;  %v401_v24 = vmul.f32 %v2978_v13, %v364_v14  ;;  %v501_v22 = vmul.f32 %v2987_v50, %v464_v16  ;;  %v2197_v44 = vld [vmem:[%s2578_s14 + $0xa80] sm:$0xff]  ;;  %v2266_v2 = vld [vmem:[%s2578_s14 + $0xaac] sm:$0xff]  ;;  %v349_v12 = vld [vmem:[%s2578_s14 + $0x118] sm:$0xff] }
  0x68   : > { %v923_v23 = vadd.f32 %v891_v61, %v822_v15  ;;  %v1313_v27 = vmax.f32 %v1281_v10, 0.0  ;;  %v924_v28 = vadd.f32 %v892_v63, %v823_v19  ;;  %v502_v29 = vmul.f32 %v2987_v50, %v465_v11  ;;  %v3024_v61 = vld [vmem:[%s3479_s1 + $0x6] ss:$0 sm:$0xff]  ;;  %v2232_v48 = vld [vmem:[%s2578_s14 + $0xa9a] sm:$0xff]  ;;  %v3043_v16 = vld [vmem:[%s3479_s1 + $0x9] ss:$0 sm:$0xff] }
  0x69   : > { %v602_v31 = vmul.f32 %v2996_v30, %v565_v18  ;;  %v1314_v33 = vmax.f32 %v1282_v20, 0.0  ;;  %v533_v35 = vadd.f32 %v501_v22, %v400_v21  ;;  %v603_v36 = vmul.f32 %v2996_v30, %v566_v54  ;;  %v350_v15 = vld [vmem:[%s2578_s14 + $0x120] sm:$0xff]  ;;  %v3053_v10 = vld [vmem:[%s3479_s1 + $0xa] ss:$0 sm:$0xff] }
  0x6a   : > { %v1026_v34 = vadd.f32 %v994_v57, %v923_v23  ;;  %v1027_v38 = vadd.f32 %v995_v8, %v924_v28  ;;  %v534_v39 = vadd.f32 %v502_v29, %v401_v24  ;;  %v705_v43 = vmul.f32 %v3006_v40, %v2095_v25  ;;  %v551_v21 = vld [vmem:[%s2578_s14 + $0x13c] sm:$0xff]  ;;  %v552_v22 = vld [vmem:[%s2578_s14 + $0x144] sm:$0xff] }
  0x6b   : > { %v706_v41 = vmul.f32 %v3006_v40, %v2096_v26  ;;  %v1334_v51 = vpack.c.bf16 %v1314_v33, %v1313_v27  ;;  %v634_v52 = vadd.f32 %v602_v31, %v533_v35  ;;  %v806_v42 = vmul.f32 %v3015_v55, %v2129_v32  ;;  %v2081_v25 = vld [vmem:[%s2578_s14 + $0x508] sm:$0xff]  ;;  %v2082_v31 = vld [vmem:[%s2578_s14 + $0x510] sm:$0xff]  ;;  %v2115_v35 = vld [vmem:[%s2578_s14 + $0x51a] sm:$0xff] }
  0x6c   : > { %v1127_v45 = vadd.f32 %v1095_v49, %v1026_v34  ;;  %v1128_v58 = vadd.f32 %v1096_v17, %v1027_v38  ;;  %v635_v59 = vadd.f32 %v603_v36, %v534_v39  ;;  %v807_v47 = vmul.f32 %v3015_v55, %v2130_v37  ;;  %v450_v17 = vld [vmem:[%s2578_s14 + $0x12a] sm:$0xff]  ;;  %v2116_v36 = vld [vmem:[%s2578_s14 + $0x522] sm:$0xff] }
  0x6d   : > { %v907_v7 = vmul.f32 %v3024_v61, %v2163_v3  ;;  %2413 = vmatmul.mubr.msk.bf16.gmra.mrb[4].mxu1 %vm1403_vm0, %v1334_v51  ;;  %v737_v63 = vadd.f32 %v705_v43, %v634_v52  ;;  %v908_v57 = vmul.f32 %v3024_v61, %v2164_v4  ;;  %v1010_v1 = vmul.f32 %v3034_v0, %v2197_v44  ;;  %v2149_v43 = vld [vmem:[%s2578_s14 + $0x52c] sm:$0xff]  ;;  %v2183_v52 = vld [vmem:[%s2578_s14 + $0x8f8] sm:$0xff] }
  0x6e   : > { %v1228_v62 = vadd.f32 %v1196_v9, %v1127_v45  ;;  %v1229_v8 = vadd.f32 %v1197_v6, %v1128_v58  ;;  %v738_v49 = vadd.f32 %v706_v41, %v635_v59  ;;  %v1011_v14 = vmul.f32 %v3034_v0, %v2198_v5  ;;  %v451_v6 = vld [vmem:[%s2578_s14 + $0x132] sm:$0xff] }
  0x6f   : > { %v1111_v53 = vmul.f32 %v3043_v16, %v2231_v46  ;;  %v838_v11 = vadd.f32 %v806_v42, %v737_v63  ;;  %v1112_v18 = vmul.f32 %v3043_v16, %v2232_v48  ;;  %v1212_v19 = vmul.f32 %v3053_v10, %v2265_v56  ;;  %v2150_v41 = vld [vmem:[%s2578_s14 + $0x534] sm:$0xff]  ;;  %v2184_v42 = vld [vmem:[%s2578_s14 + $0x900] sm:$0xff] }
  0x70   : > { %v1267_v9 = vadd.f32 %v2698_v60, %v1228_v62  ;;  %v1268_v54 = vadd.f32 %v2698_v60, %v1229_v8  ;;  %v839_v20 = vadd.f32 %v807_v47, %v738_v49  ;;  %v1213_v23 = vmul.f32 %v3053_v10, %v2266_v2  ;;  %v2217_v47 = vld [vmem:[%s2578_s14 + $0x90a] sm:$0xff] }
  0x71   : > { %v386_v24 = vmul.f32 %v2978_v13, %v349_v12  ;;  %v939_v27 = vadd.f32 %v907_v7, %v838_v11  ;;  %v387_v28 = vmul.f32 %v2978_v13, %v350_v15  ;;  %v487_v29 = vmul.f32 %v2987_v50, %v450_v17  ;;  %v2218_v7 = vld [vmem:[%s2578_s14 + $0x912] sm:$0xff] }
  0x72   : > { %v1299_v26 = vmax.f32 %v1267_v9, 0.0  ;;  %v1300_v32 = vmax.f32 %v1268_v54, 0.0  ;;  %v940_v60 = vadd.f32 %v908_v57, %v839_v20  ;;  %v488_v33 = vmul.f32 %v2987_v50, %v451_v6  ;;  %v2251_v57 = vld [vmem:[%s2578_s14 + $0x91c] sm:$0xff]  ;;  %v467_v6 = vld [vmem:[%s2578_s14 + $0x2f2] sm:$0xff] }
  0x73   : > { %v588_v34 = vmul.f32 %v2996_v30, %v551_v21  ;;  %v1042_v37 = vadd.f32 %v1010_v1, %v939_v27  ;;  %v519_v3 = vadd.f32 %v487_v29, %v386_v24  ;;  %v589_v38 = vmul.f32 %v2996_v30, %v552_v22  ;;  %v2252_v1 = vld [vmem:[%s2578_s14 + $0x924] sm:$0xff]  ;;  %v567_v24 = vld [vmem:[%s2578_s14 + $0x2fc] sm:$0xff] }
  0x74   : > { %v691_v39 = vmul.f32 %v3006_v40, %v2081_v25  ;;  %v1327_v4 = vpack.c.bf16 %v1300_v32, %v1299_v26  ;;  %v1043_v44 = vadd.f32 %v1011_v14, %v940_v60  ;;  %v520_v51 = vadd.f32 %v488_v33, %v387_v28  ;;  %v365_v14 = vld [vmem:[%s2578_s14 + $0x2d8] sm:$0xff]  ;;  %v568_v22 = vld [vmem:[%s2578_s14 + $0x304] sm:$0xff] }
  0x75   : > { %v692_v45 = vmul.f32 %v3006_v40, %v2082_v31  ;;  %v1143_v5 = vadd.f32 %v1111_v53, %v1042_v37  ;;  %v620_v46 = vadd.f32 %v588_v34, %v519_v3  ;;  %v792_v58 = vmul.f32 %v3015_v55, %v2115_v35  ;;  %v366_v53 = vld [vmem:[%s2578_s14 + $0x2e0] sm:$0xff]  ;;  %v2097_v29 = vld [vmem:[%s2578_s14 + $0x6c8] sm:$0xff]  ;;  %v2098_v34 = vld [vmem:[%s2578_s14 + $0x6d0] sm:$0xff] }
  0x76   : > { %v793_v59 = vmul.f32 %v3015_v55, %v2116_v36  ;;  %2400 = vmatprep.mubr.msk.bf16.mxu0 %vm1403_vm0, %v1327_v4  ;;  %v1144_v48 = vadd.f32 %v1112_v18, %v1043_v44  ;;  %v621_v56 = vadd.f32 %v589_v38, %v520_v51  ;;  %v893_v62 = vmul.f32 %v3024_v61, %v2149_v43  ;;  %v466_v18 = vld [vmem:[%s2578_s14 + $0x2ea] sm:$0xff]  ;;  %v2131_v35 = vld [vmem:[%s2578_s14 + $0x6da] sm:$0xff] }
  0x77   : > { %v894_v63 = vmul.f32 %v3024_v61, %v2150_v41  ;;  %v1244_v2 = vadd.f32 %v1212_v19, %v1143_v5  ;;  %v723_v12 = vadd.f32 %v691_v39, %v620_v46  ;;  %v996_v8 = vmul.f32 %v3034_v0, %v2183_v52  ;;  %v3097_v19 = vld [vmem:[%s3480_s2] ss:$0 sm:$0xff]  ;;  %v2132_v39 = vld [vmem:[%s2578_s14 + $0x6e2] sm:$0xff]  ;;  %v2165_v51 = vld [vmem:[%s2578_s14 + $0x6ec] sm:$0xff] }
  0x78   : > { %v997_v49 = vmul.f32 %v3034_v0, %v2184_v42  ;;  %v1245_v15 = vadd.f32 %v1213_v23, %v1144_v48  ;;  %v724_v17 = vadd.f32 %v692_v45, %v621_v56  ;;  %v1097_v9 = vmul.f32 %v3043_v16, %v2217_v47  ;;  %v2166_v45 = vld [vmem:[%s2578_s14 + $0x6f4] sm:$0xff] }
  0x79   : > { %v1098_v11 = vmul.f32 %v3043_v16, %v2218_v7  ;;  %v1283_v21 = vadd.f32 %v3097_v19, %v1244_v2  ;;  %v824_v54 = vadd.f32 %v792_v58, %v723_v12  ;;  %v1198_v20 = vmul.f32 %v3053_v10, %v2251_v57  ;;  %v2199_v52 = vld [vmem:[%s2578_s14 + $0xab8] sm:$0xff] }
  0x7a   : > { %v1199_v23 = vmul.f32 %v3053_v10, %v2252_v1  ;;  %v1284_v25 = vadd.f32 %v3097_v19, %v1245_v15  ;;  %v825_v26 = vadd.f32 %v793_v59, %v724_v17  ;;  %v402_v27 = vmul.f32 %v2978_v13, %v365_v14  ;;  %v2200_v59 = vld [vmem:[%s2578_s14 + $0xac0] sm:$0xff] }
  0x7b   : > { %v403_v28 = vmul.f32 %v2978_v13, %v366_v53  ;;  %v1315_v31 = vmax.f32 %v1283_v21, 0.0  ;;  %v925_v32 = vadd.f32 %v893_v62, %v824_v54  ;;  %v503_v60 = vmul.f32 %v2987_v50, %v466_v18  ;;  %v2233_v62 = vld [vmem:[%s2578_s14 + $0xaca] sm:$0xff]  ;;  %v2267_v57 = vld [vmem:[%s2578_s14 + $0xadc] sm:$0xff] }
  0x7c   : > { %v504_v33 = vmul.f32 %v2987_v50, %v467_v6  ;;  %v1316_v36 = vmax.f32 %v1284_v25, 0.0  ;;  %v926_v37 = vadd.f32 %v894_v63, %v825_v26  ;;  %v604_v3 = vmul.f32 %v2996_v30, %v567_v24  ;;  %v2234_v63 = vld [vmem:[%s2578_s14 + $0xad2] sm:$0xff]  ;;  %v452_v6 = vld [vmem:[%s2578_s14 + $0x162] sm:$0xff] }
  0x7d   : > { %v605_v38 = vmul.f32 %v2996_v30, %v568_v22  ;;  %v1028_v43 = vadd.f32 %v996_v8, %v925_v32  ;;  %v535_v41 = vadd.f32 %v503_v60, %v402_v27  ;;  %v707_v44 = vmul.f32 %v3006_v40, %v2097_v29  ;;  %v352_v18 = vld [vmem:[%s2578_s14 + $0x158] sm:$0xff]  ;;  %v453_v22 = vld [vmem:[%s2578_s14 + $0x16a] sm:$0xff] }
  0x7e   : > { %v536_v4 = vadd.f32 %v504_v33, %v403_v28  ;;  %v1335_v42 = vpack.c.bf16 %v1316_v36, %v1315_v31  ;;  %v1029_v5 = vadd.f32 %v997_v49, %v926_v37  ;;  %v708_v46 = vmul.f32 %v3006_v40, %v2098_v34  ;;  %v2268_v49 = vld [vmem:[%s2578_s14 + $0xae4] sm:$0xff]  ;;  %v553_v28 = vld [vmem:[%s2578_s14 + $0x174] sm:$0xff]  ;;  %v554_v29 = vld [vmem:[%s2578_s14 + $0x17c] sm:$0xff] }
  0x7f   : > { %v808_v58 = vmul.f32 %v3015_v55, %v2131_v35  ;;  %v1129_v47 = vadd.f32 %v1097_v9, %v1028_v43  ;;  %v636_v7 = vadd.f32 %v604_v3, %v535_v41  ;;  %v809_v56 = vmul.f32 %v3015_v55, %v2132_v39  ;;  %v351_v9 = vld [vmem:[%s2578_s14 + $0x150] sm:$0xff]  ;;  %v2083_v33 = vld [vmem:[%s2578_s14 + $0x540] sm:$0xff]  ;;  %v2084_v3 = vld [vmem:[%s2578_s14 + $0x548] sm:$0xff] }
  0x80   : > { %v637_v48 = vadd.f32 %v605_v38, %v536_v4  ;;  %2416 = vmatprep.mubr.msk.bf16.mxu1 %vm1403_vm0, %v1335_v42  ;;  %v1130_v1 = vadd.f32 %v1098_v11, %v1029_v5  ;;  %v909_v2 = vmul.f32 %v3024_v61, %v2165_v51  ;;  %v910_v12 = vmul.f32 %v3024_v61, %v2166_v45  ;;  %v2117_v38 = vld [vmem:[%s2578_s14 + $0x552] sm:$0xff]  ;;  %v2151_v5 = vld [vmem:[%s2578_s14 + $0x564] sm:$0xff] }
  0x81   : > { %v1012_v8 = vmul.f32 %v3034_v0, %v2199_v52  ;;  %v1230_v14 = vadd.f32 %v1198_v20, %v1129_v47  ;;  %v739_v53 = vadd.f32 %v707_v44, %v636_v7  ;;  %v1013_v17 = vmul.f32 %v3034_v0, %v2200_v59  ;;  %v2118_v44 = vld [vmem:[%s2578_s14 + $0x55a] sm:$0xff] }
  0x82   : > { %v740_v15 = vadd.f32 %v708_v46, %v637_v48  ;;  %v1231_v11 = vadd.f32 %v1199_v23, %v1130_v1  ;;  %v1113_v21 = vmul.f32 %v3043_v16, %v2233_v62  ;;  %v1114_v54 = vmul.f32 %v3043_v16, %v2234_v63  ;;  %v2152_v46 = vld [vmem:[%s2578_s14 + $0x56c] sm:$0xff] }
  0x83   : > { %v1214_v24 = vmul.f32 %v3053_v10, %v2267_v57  ;;  %v1269_v20 = vadd.f32 %v3097_v19, %v1230_v14  ;;  %v840_v25 = vadd.f32 %v808_v58, %v739_v53  ;;  %v1215_v27 = vmul.f32 %v3053_v10, %v2268_v49  ;;  %v2185_v58 = vld [vmem:[%s2578_s14 + $0x930] sm:$0xff] }
  0x84   : > { %v841_v26 = vadd.f32 %v809_v56, %v740_v15  ;;  %v1270_v23 = vadd.f32 %v3097_v19, %v1231_v11  ;;  %v388_v31 = vmul.f32 %v2978_v13, %v351_v9  ;;  %v389_v32 = vmul.f32 %v2978_v13, %v352_v18  ;;  %v2186_v56 = vld [vmem:[%s2578_s14 + $0x938] sm:$0xff] }
  0x85   : > { %v489_v60 = vmul.f32 %v2987_v50, %v452_v6  ;;  %v1301_v34 = vmax.f32 %v1269_v20, 0.0  ;;  %v941_v35 = vadd.f32 %v909_v2, %v840_v25  ;;  %v490_v37 = vmul.f32 %v2987_v50, %v453_v22  ;;  %v2219_v2 = vld [vmem:[%s2578_s14 + $0x942] sm:$0xff] }
  0x86   : > { %v942_v36 = vadd.f32 %v910_v12, %v841_v26  ;;  %v1302_v39 = vmax.f32 %v1270_v23, 0.0  ;;  %v590_v41 = vmul.f32 %v2996_v30, %v553_v28  ;;  %v591_v4 = vmul.f32 %v2996_v30, %v554_v29  ;;  %v2220_v12 = vld [vmem:[%s2578_s14 + $0x94a] sm:$0xff]  ;;  %v468_v22 = vld [vmem:[%s2578_s14 + $0x322] sm:$0xff] }
  0x87   : > { %v521_v43 = vadd.f32 %v489_v60, %v388_v31  ;;  %v1044_v51 = vadd.f32 %v1012_v8, %v941_v35  ;;  %v522_v52 = vadd.f32 %v490_v37, %v389_v32  ;;  %v693_v42 = vmul.f32 %v3006_v40, %v2083_v33  ;;  %v2253_v8 = vld [vmem:[%s2578_s14 + $0x954] sm:$0xff]  ;;  %v469_v29 = vld [vmem:[%s2578_s14 + $0x32a] sm:$0xff]  ;;  %v570_v60 = vld [vmem:[%s2578_s14 + $0x33c] sm:$0xff] }
  0x88   : > { %v1045_v45 = vadd.f32 %v1013_v17, %v942_v36  ;;  %v1328_v59 = vpack.c.bf16 %v1302_v39, %v1301_v34  ;;  %v694_v7 = vmul.f32 %v3006_v40, %v2084_v3  ;;  %v794_v48 = vmul.f32 %v3015_v55, %v2117_v38  ;;  %v2254_v17 = vld [vmem:[%s2578_s14 + $0x95c] sm:$0xff]  ;;  %v569_v32 = vld [vmem:[%s2578_s14 + $0x334] sm:$0xff] }
  0x89   : > { %v622_v47 = vadd.f32 %v590_v41, %v521_v43  ;;  %v1145_v62 = vadd.f32 %v1113_v21, %v1044_v51  ;;  %v623_v57 = vadd.f32 %v591_v4, %v522_v52  ;;  %v795_v1 = vmul.f32 %v3015_v55, %v2118_v44  ;;  %v367_v21 = vld [vmem:[%s2578_s14 + $0x310] sm:$0xff]  ;;  %v2099_v37 = vld [vmem:[%s2578_s14 + $0x700] sm:$0xff]  ;;  %v2100_v41 = vld [vmem:[%s2578_s14 + $0x708] sm:$0xff] }
  0x8a   : > { %v1146_v63 = vadd.f32 %v1114_v54, %v1045_v45  ;;  %2401 = vmatmul.mubr.msk.bf16.gmra.mrb[8].mxu0 %vm1403_vm0, %v1328_v59  ;;  %v895_v14 = vmul.f32 %v3024_v61, %v2151_v5  ;;  %v896_v53 = vmul.f32 %v3024_v61, %v2152_v46  ;;  %v998_v15 = vmul.f32 %v3034_v0, %v2185_v58  ;;  %v368_v54 = vld [vmem:[%s2578_s14 + $0x318] sm:$0xff]  ;;  %v2167_v5 = vld [vmem:[%s2578_s14 + $0x724] sm:$0xff] }
  0x8b   : > { %v725_v49 = vadd.f32 %v693_v42, %v622_v47  ;;  %v1246_v9 = vadd.f32 %v1214_v24, %v1145_v62  ;;  %v726_v6 = vadd.f32 %v694_v7, %v623_v57  ;;  %v999_v11 = vmul.f32 %v3034_v0, %v2186_v56  ;;  %v2133_v4 = vld [vmem:[%s2578_s14 + $0x712] sm:$0xff]  ;;  %v2134_v42 = vld [vmem:[%s2578_s14 + $0x71a] sm:$0xff] }
  0x8c   : > { %v1247_v18 = vadd.f32 %v1215_v27, %v1146_v63  ;;  %v1099_v25 = vmul.f32 %v3043_v16, %v2219_v2  ;;  %v1100_v26 = vmul.f32 %v3043_v16, %v2220_v12  ;;  %v1200_v28 = vmul.f32 %v3053_v10, %v2253_v8  ;;  %v2168_v7 = vld [vmem:[%s2578_s14 + $0x72c] sm:$0xff]  ;;  %v2235_v2 = vld [vmem:[%s2578_s14 + $0xb02] sm:$0xff] }
  0x8d   : > { %v826_v20 = vadd.f32 %v794_v48, %v725_v49  ;;  %v1285_v24 = vadd.f32 %v3097_v19, %v1246_v9  ;;  %v827_v23 = vadd.f32 %v795_v1, %v726_v6  ;;  %v1201_v31 = vmul.f32 %v3053_v10, %v2254_v17  ;;  %v2201_v48 = vld [vmem:[%s2578_s14 + $0xaf0] sm:$0xff]  ;;  %v2202_v1 = vld [vmem:[%s2578_s14 + $0xaf8] sm:$0xff] }
  0x8e   : > { %v1286_v27 = vadd.f32 %v3097_v19, %v1247_v18  ;;  %v404_v34 = vmul.f32 %v2978_v13, %v367_v21  ;;  %v405_v35 = vmul.f32 %v2978_v13, %v368_v54  ;;  %v505_v36 = vmul.f32 %v2987_v50, %v468_v22  ;;  %v353_v21 = vld [vmem:[%s2578_s14 + $0x188] sm:$0xff] }
  0x8f   : > { %v927_v33 = vadd.f32 %v895_v14, %v826_v20  ;;  %v1317_v3 = vmax.f32 %v1285_v24, 0.0  ;;  %v928_v39 = vadd.f32 %v896_v53, %v827_v23  ;;  %v506_v43 = vmul.f32 %v2987_v50, %v469_v29  ;;  %v2236_v53 = vld [vmem:[%s2578_s14 + $0xb0a] sm:$0xff]  ;;  %v454_v29 = vld [vmem:[%s2578_s14 + $0x19a] sm:$0xff] }
  0x90   : > { %v1318_v38 = vmax.f32 %v1286_v27, 0.0  ;;  %v537_v51 = vadd.f32 %v505_v36, %v404_v34  ;;  %v606_v45 = vmul.f32 %v2996_v30, %v569_v32  ;;  %v607_v52 = vmul.f32 %v2996_v30, %v570_v60  ;;  %v455_v32 = vld [vmem:[%s2578_s14 + $0x1a2] sm:$0xff]  ;;  %v555_v60 = vld [vmem:[%s2578_s14 + $0x1ac] sm:$0xff]  ;;  %v556_v36 = vld [vmem:[%s2578_s14 + $0x1b4] sm:$0xff] }
  0x91   : > { %v1030_v44 = vadd.f32 %v998_v15, %v927_v33  ;;  %v1031_v58 = vadd.f32 %v999_v11, %v928_v39  ;;  %v538_v59 = vadd.f32 %v506_v43, %v405_v35  ;;  %v709_v47 = vmul.f32 %v3006_v40, %v2099_v37  ;;  %v2269_v15 = vld [vmem:[%s2578_s14 + $0xb14] sm:$0xff]  ;;  %v2270_v11 = vld [vmem:[%s2578_s14 + $0xb1c] sm:$0xff] }
  0x92   : > { %v1336_v46 = vpack.c.bf16 %v1318_v38, %v1317_v3  ;;  %v638_v62 = vadd.f32 %v606_v45, %v537_v51  ;;  %v710_v63 = vmul.f32 %v3006_v40, %v2100_v41  ;;  %v810_v57 = vmul.f32 %v3015_v55, %v2133_v4  ;;  %v2085_v37 = vld [vmem:[%s2578_s14 + $0x578] sm:$0xff]  ;;  %v2086_v41 = vld [vmem:[%s2578_s14 + $0x580] sm:$0xff] }
  0x93   : > { %v1131_v56 = vadd.f32 %v1099_v25, %v1030_v44  ;;  %v1132_v12 = vadd.f32 %v1100_v26, %v1031_v58  ;;  %v639_v8 = vadd.f32 %v607_v52, %v538_v59  ;;  %v811_v49 = vmul.f32 %v3015_v55, %v2134_v42  ;;  %v354_v26 = vld [vmem:[%s2578_s14 + $0x190] sm:$0xff] }
  0x94   : > { %2417 = vmatmul.mubr.msk.bf16.gmra.mrb[8].mxu1 %vm1403_vm0, %v1336_v46  ;;  %v911_v14 = vmul.f32 %v3024_v61, %v2167_v5  ;;  %v741_v9 = vadd.f32 %v709_v47, %v638_v62  ;;  %v912_v18 = vmul.f32 %v3024_v61, %v2168_v7  ;;  %v1014_v6 = vmul.f32 %v3034_v0, %v2201_v48  ;;  %v2119_v52 = vld [vmem:[%s2578_s14 + $0x58a] sm:$0xff]  ;;  %v2120_v42 = vld [vmem:[%s2578_s14 + $0x592] sm:$0xff]  ;;  %v2153_v47 = vld [vmem:[%s2578_s14 + $0x59c] sm:$0xff] }
  0x95   : > { %v1232_v17 = vadd.f32 %v1200_v28, %v1131_v56  ;;  %v1233_v54 = vadd.f32 %v1201_v31, %v1132_v12  ;;  %v742_v22 = vadd.f32 %v710_v63, %v639_v8  ;;  %v1015_v20 = vmul.f32 %v3034_v0, %v2202_v1  ;;  %v2154_v7 = vld [vmem:[%s2578_s14 + $0x5a4] sm:$0xff]  ;;  %v2188_v1 = vld [vmem:[%s2578_s14 + $0x970] sm:$0xff] }
  0x96   : > { %v1115_v25 = vmul.f32 %v3043_v16, %v2235_v2  ;;  %v842_v24 = vadd.f32 %v810_v57, %v741_v9  ;;  %v1116_v27 = vmul.f32 %v3043_v16, %v2236_v53  ;;  %v1216_v23 = vmul.f32 %v3053_v10, %v2269_v15  ;;  %v2187_v57 = vld [vmem:[%s2578_s14 + $0x968] sm:$0xff] }
  0x97   : > { %v1271_v28 = vadd.f32 %v3097_v19, %v1232_v17  ;;  %v1272_v31 = vadd.f32 %v3097_v19, %v1233_v54  ;;  %v843_v33 = vadd.f32 %v811_v49, %v742_v22  ;;  %v1217_v34 = vmul.f32 %v3053_v10, %v2270_v11  ;;  %v2222_v53 = vld [vmem:[%s2578_s14 + $0x982] sm:$0xff]  ;;  %v2256_v11 = vld [vmem:[%s2578_s14 + $0x994] sm:$0xff] }
  0x98   : > { %v390_v35 = vmul.f32 %v2978_v13, %v353_v21  ;;  %v943_v38 = vadd.f32 %v911_v14, %v842_v24  ;;  %v391_v39 = vmul.f32 %v2978_v13, %v354_v26  ;;  %v491_v43 = vmul.f32 %v2987_v50, %v454_v29  ;;  %v2221_v14 = vld [vmem:[%s2578_s14 + $0x97a] sm:$0xff]  ;;  %v370_v26 = vld [vmem:[%s2578_s14 + $0x350] sm:$0xff] }
  0x99   : > { %v1303_v3 = vmax.f32 %v1271_v28, 0.0  ;;  %v1304_v4 = vmax.f32 %v1272_v31, 0.0  ;;  %v944_v44 = vadd.f32 %v912_v18, %v843_v33  ;;  %v492_v51 = vmul.f32 %v2987_v50, %v455_v32  ;;  %v470_v32 = vld [vmem:[%s2578_s14 + $0x35a] sm:$0xff] }
  0x9a   : > { %v592_v45 = vmul.f32 %v2996_v30, %v555_v60  ;;  %v1046_v5 = vadd.f32 %v1014_v6, %v943_v38  ;;  %v523_v46 = vadd.f32 %v491_v43, %v390_v35  ;;  %v593_v58 = vmul.f32 %v2996_v30, %v556_v36  ;;  %v2255_v6 = vld [vmem:[%s2578_s14 + $0x98c] sm:$0xff]  ;;  %v471_v60 = vld [vmem:[%s2578_s14 + $0x362] sm:$0xff]  ;;  %v2101_v43 = vld [vmem:[%s2578_s14 + $0x738] sm:$0xff] }
  0x9b   : > { %v695_v59 = vmul.f32 %v3006_v40, %v2085_v37  ;;  %v1329_v48 = vpack.c.bf16 %v1304_v4, %v1303_v3  ;;  %v1047_v56 = vadd.f32 %v1015_v20, %v944_v44  ;;  %v524_v62 = vadd.f32 %v492_v51, %v391_v39  ;;  %v571_v36 = vld [vmem:[%s2578_s14 + $0x36c] sm:$0xff]  ;;  %v572_v37 = vld [vmem:[%s2578_s14 + $0x374] sm:$0xff] }
  0x9c   : > { %v696_v63 = vmul.f32 %v3006_v40, %v2086_v41  ;;  %v1147_v2 = vadd.f32 %v1115_v25, %v1046_v5  ;;  %v624_v12 = vadd.f32 %v592_v45, %v523_v46  ;;  %v796_v8 = vmul.f32 %v3015_v55, %v2119_v52  ;;  %v369_v25 = vld [vmem:[%s2578_s14 + $0x348] sm:$0xff]  ;;  %v2102_v45 = vld [vmem:[%s2578_s14 + $0x740] sm:$0xff] }
  0x9d   : > { %v797_v49 = vmul.f32 %v3015_v55, %v2120_v42  ;;  %2404 = vmatprep.mubr.msk.bf16.mxu0 %vm1403_vm0, %v1329_v48  ;;  %v1148_v15 = vadd.f32 %v1116_v27, %v1047_v56  ;;  %v625_v17 = vadd.f32 %v593_v58, %v524_v62  ;;  %v897_v9 = vmul.f32 %v3024_v61, %v2153_v47  ;;  %v2135_v52 = vld [vmem:[%s2578_s14 + $0x74a] sm:$0xff]  ;;  %v2169_v56 = vld [vmem:[%s2578_s14 + $0x75c] sm:$0xff] }
  0x9e   : > { %v898_v18 = vmul.f32 %v3024_v61, %v2154_v7  ;;  %v1248_v21 = vadd.f32 %v1216_v23, %v1147_v2  ;;  %v727_v54 = vadd.f32 %v695_v59, %v624_v12  ;;  %v1000_v22 = vmul.f32 %v3034_v0, %v2187_v57  ;;  %v2136_v59 = vld [vmem:[%s2578_s14 + $0x752] sm:$0xff] }
  0x9f   : > { %v1001_v20 = vmul.f32 %v3034_v0, %v2188_v1  ;;  %v1249_v29 = vadd.f32 %v1217_v34, %v1148_v15  ;;  %v728_v28 = vadd.f32 %v696_v63, %v625_v17  ;;  %v1101_v24 = vmul.f32 %v3043_v16, %v2221_v14  ;;  %v2170_v1 = vld [vmem:[%s2578_s14 + $0x764] sm:$0xff]  ;;  %v2204_v15 = vld [vmem:[%s2578_s14 + $0xb30] sm:$0xff] }
  0xa0   : > { %v1102_v27 = vmul.f32 %v3043_v16, %v2222_v53  ;;  %v1287_v23 = vadd.f32 %v3097_v19, %v1248_v21  ;;  %v828_v31 = vadd.f32 %v796_v8, %v727_v54  ;;  %v1202_v33 = vmul.f32 %v3053_v10, %v2255_v6  ;;  %v2237_v6 = vld [vmem:[%s2578_s14 + $0xb3a] sm:$0xff]  ;;  %v2238_v54 = vld [vmem:[%s2578_s14 + $0xb42] sm:$0xff] }
  0xa1   : > { %v1203_v35 = vmul.f32 %v3053_v10, %v2256_v11  ;;  %v1288_v34 = vadd.f32 %v3097_v19, %v1249_v29  ;;  %v829_v3 = vadd.f32 %v797_v49, %v728_v28  ;;  %v406_v38 = vmul.f32 %v2978_v13, %v369_v25  ;;  %v2203_v49 = vld [vmem:[%s2578_s14 + $0xb28] sm:$0xff] }
  0xa2   : > { %v407_v39 = vmul.f32 %v2978_v13, %v370_v26  ;;  %v1319_v41 = vmax.f32 %v1287_v23, 0.0  ;;  %v929_v4 = vadd.f32 %v897_v9, %v828_v31  ;;  %v507_v44 = vmul.f32 %v2987_v50, %v470_v32  ;;  %v2271_v28 = vld [vmem:[%s2578_s14 + $0xb4c] sm:$0xff] }
  0xa3   : > { %v508_v51 = vmul.f32 %v2987_v50, %v471_v60  ;;  %v1320_v42 = vmax.f32 %v1288_v34, 0.0  ;;  %v930_v5 = vadd.f32 %v898_v18, %v829_v3  ;;  %v608_v46 = vmul.f32 %v2996_v30, %v571_v36 }
  0xa4   : > { %v609_v58 = vmul.f32 %v2996_v30, %v572_v37  ;;  %v1032_v13 = vadd.f32 %v1000_v22, %v929_v4  ;;  %v539_v47 = vadd.f32 %v507_v44, %v406_v38  ;;  %v711_v48 = vmul.f32 %v3006_v40, %v2101_v43 }
  0xa5   : > { %v540_v7 = vadd.f32 %v508_v51, %v407_v39  ;;  %v1337_v62 = vpack.c.bf16 %v1320_v42, %v1319_v41  ;;  %v1033_v50 = vadd.f32 %v1001_v20, %v930_v5  ;;  %v712_v63 = vmul.f32 %v3006_v40, %v2102_v45 }
  0xa6   : > { %v812_v57 = vmul.f32 %v3015_v55, %v2135_v52  ;;  %v1133_v2 = vadd.f32 %v1101_v24, %v1032_v13  ;;  %v640_v30 = vadd.f32 %v608_v46, %v539_v47  ;;  %v813_v8 = vmul.f32 %v3015_v55, %v2136_v59  ;;  %v2272_v24 = vld [vmem:[%s2578_s14 + $0xb54] sm:$0xff] }
  0xa7   : > { %v641_v12 = vadd.f32 %v609_v58, %v540_v7  ;;  %2420 = vmatprep.mubr.msk.bf16.mxu1 %vm1403_vm0, %v1337_v62  ;;  %v1134_v14 = vadd.f32 %v1102_v27, %v1033_v50  ;;  %v913_v53 = vmul.f32 %v3024_v61, %v2169_v56  ;;  %v914_v18 = vmul.f32 %v3024_v61, %v2170_v1  ;;  %v3337_v7 = vld [vmem:[%s3482_s4] ss:$0 sm:$0xff] }
  0xa8   : > { %v1234_v40 = vadd.f32 %v1202_v33, %v1133_v2  ;;  %v743_v17 = vadd.f32 %v711_v48, %v640_v30  ;;  %v1016_v21 = vmul.f32 %v3034_v0, %v2203_v49  ;;  %v1017_v25 = vmul.f32 %v3034_v0, %v2204_v15 }
  0xa9   : > { %v744_v9 = vadd.f32 %v712_v63, %v641_v12  ;;  %v1235_v11 = vadd.f32 %v1203_v35, %v1134_v14  ;;  %v1117_v29 = vmul.f32 %v3043_v16, %v2237_v6  ;;  %v1118_v60 = vmul.f32 %v3043_v16, %v2238_v54 }
  0xaa   : > { %v1273_v55 = vadd.f32 %v3097_v19, %v1234_v40  ;;  %v844_v22 = vadd.f32 %v812_v57, %v743_v17  ;;  %v2496_v23 = vmov 0.0   ;;  %v1218_v33 = vmul.f32 %v3053_v10, %v2271_v28 }
  0xab   : > { %v845_v20 = vadd.f32 %v813_v8, %v744_v9  ;;  %v1274_v26 = vadd.f32 %v3097_v19, %v1235_v11  ;;  %309 = vst.msk [vmem:[#allocation2 + $0x10] sm:$0xff] %vm306_vm1, %v2496_v23  ;;  %307 = vst.msk [vmem:[#allocation2] sm:$0xff] %vm306_vm1, %v2496_v23  ;;  %v1219_v35 = vmul.f32 %v3053_v10, %v2272_v24 }
  0xac   : > { %v1305_v27 = vmax.f32 %v1273_v55, 0.0  ;;  %v945_v61 = vadd.f32 %v913_v53, %v844_v22  ;;  %308 = vst.msk [vmem:[#allocation2 + $0x8] sm:$0xff] %vm306_vm1, %v2496_v23  ;;  %310 = vst.msk [vmem:[#allocation2 + $0x18] sm:$0xff] %vm306_vm1, %v2496_v23 }
  0xad   : > { %v946_v32 = vadd.f32 %v914_v18, %v845_v20  ;;  %311 = vst.msk [vmem:[#allocation2 + $0x20] sm:$0xff] %vm306_vm1, %v2496_v23  ;;  %312 = vst.msk [vmem:[#allocation2 + $0x28] sm:$0xff] %vm306_vm1, %v2496_v23  ;;  %v1306_v0 = vmax.f32 %v1274_v26, 0.0 }
  0xae   : > { %313 = vst.msk [vmem:[#allocation2 + $0x30] sm:$0xff] %vm306_vm1, %v2496_v23  ;;  %314 = vst.msk [vmem:[#allocation2 + $0x38] sm:$0xff] %vm306_vm1, %v2496_v23  ;;  %v1048_v16 = vadd.f32 %v1016_v21, %v945_v61 }
  0xaf   : > { %315 = vst.msk [vmem:[#allocation2 + $0x40] sm:$0xff] %vm306_vm1, %v2496_v23  ;;  %316 = vst.msk [vmem:[#allocation2 + $0x48] sm:$0xff] %vm306_vm1, %v2496_v23  ;;  %v1049_v31 = vadd.f32 %v1017_v25, %v946_v32  ;;  %v1330_v36 = vpack.c.bf16 %v1306_v0, %v1305_v27 }
  0xb0   : > { %317 = vst.msk [vmem:[#allocation2 + $0x50] sm:$0xff] %vm306_vm1, %v2496_v23  ;;  %318 = vst.msk [vmem:[#allocation2 + $0x58] sm:$0xff] %vm306_vm1, %v2496_v23  ;;  %v1149_v37 = vadd.f32 %v1117_v29, %v1048_v16 }
  0xb1   : > { %319 = vst.msk [vmem:[#allocation2 + $0x60] sm:$0xff] %vm306_vm1, %v2496_v23  ;;  %320 = vst.msk [vmem:[#allocation2 + $0x68] sm:$0xff] %vm306_vm1, %v2496_v23  ;;  %v1150_v34 = vadd.f32 %v1118_v60, %v1049_v31  ;;  %2405 = vmatmul.mubr.msk.bf16.gmra.mrb[12].mxu0 %vm1403_vm0, %v1330_v36 }
  0xb2   : > { %321 = vst.msk [vmem:[#allocation2 + $0x70] sm:$0xff] %vm306_vm1, %v2496_v23  ;;  %322 = vst.msk [vmem:[#allocation2 + $0x78] sm:$0xff] %vm306_vm1, %v2496_v23  ;;  %v1250_v3 = vadd.f32 %v1218_v33, %v1149_v37  ;;  %v1341_v51 = vld [vmem:[#allocation2 + $0x10] sm:$0xff]  ;;  %v1339_v45 = vld [vmem:[#allocation2] sm:$0xff] }
  0xb3   : > { %323 = vst.msk [vmem:[#allocation2 + $0x80] sm:$0xff] %vm306_vm1, %v2496_v23  ;;  %324 = vst.msk [vmem:[#allocation2 + $0x88] sm:$0xff] %vm306_vm1, %v2496_v23  ;;  %v1251_v38 = vadd.f32 %v1219_v35, %v1150_v34  ;;  %v1342_v10 = vld [vmem:[#allocation2 + $0x18] sm:$0xff]  ;;  %v1340_v46 = vld [vmem:[#allocation2 + $0x8] sm:$0xff] }
  0xb4   : > { %325 = vst.msk [vmem:[#allocation2 + $0x90] sm:$0xff] %vm306_vm1, %v2496_v23  ;;  %326 = vst.msk [vmem:[#allocation2 + $0x98] sm:$0xff] %vm306_vm1, %v2496_v23  ;;  %v1289_v39 = vadd.f32 %v3097_v19, %v1250_v3 }
  0xb5   : > { %327 = vst.msk [vmem:[#allocation2 + $0xa0] sm:$0xff] %vm306_vm1, %v2496_v23  ;;  %328 = vst.msk [vmem:[#allocation2 + $0xa8] sm:$0xff] %vm306_vm1, %v2496_v23  ;;  %v1290_v43 = vadd.f32 %v3097_v19, %v1251_v38  ;;  %v1345_v3 = vld [vmem:[#allocation2 + $0x30] sm:$0xff]  ;;  %v1343_v38 = vld [vmem:[#allocation2 + $0x20] sm:$0xff] }
  0xb6   : > { %329 = vst.msk [vmem:[#allocation2 + $0xb0] sm:$0xff] %vm306_vm1, %v2496_v23  ;;  %330 = vst.msk [vmem:[#allocation2 + $0xb8] sm:$0xff] %vm306_vm1, %v2496_v23  ;;  %v1321_v41 = vmax.f32 %v1289_v39, 0.0 }
  0xb7   : > { %331 = vst.msk [vmem:[#allocation2 + $0xc0] sm:$0xff] %vm306_vm1, %v2496_v23  ;;  %332 = vst.msk [vmem:[#allocation2 + $0xc8] sm:$0xff] %vm306_vm1, %v2496_v23  ;;  %v1322_v4 = vmax.f32 %v1290_v43, 0.0  ;;  %v1346_v43 = vld [vmem:[#allocation2 + $0x38] sm:$0xff] }
  0xb8   : > { %333 = vst.msk [vmem:[#allocation2 + $0xd0] sm:$0xff] %vm306_vm1, %v2496_v23  ;;  %334 = vst.msk [vmem:[#allocation2 + $0xd8] sm:$0xff] %vm306_vm1, %v2496_v23 }
  0xb9   : > { %335 = vst.msk [vmem:[#allocation2 + $0xe0] sm:$0xff] %vm306_vm1, %v2496_v23  ;;  %336 = vst.msk [vmem:[#allocation2 + $0xe8] sm:$0xff] %vm306_vm1, %v2496_v23  ;;  %v1338_v44 = vpack.c.bf16 %v1322_v4, %v1321_v41 }
  0xba   : > { %337 = vst.msk [vmem:[#allocation2 + $0xf0] sm:$0xff] %vm306_vm1, %v2496_v23  ;;  %338 = vst.msk [vmem:[#allocation2 + $0xf8] sm:$0xff] %vm306_vm1, %v2496_v23  ;;  %v1355_v63 = vld [vmem:[#allocation2 + $0x80] sm:$0xff]  ;;  %v1356_v15 = vld [vmem:[#allocation2 + $0x88] sm:$0xff] }
  0xbb   : > { %2421 = vmatmul.mubr.msk.bf16.gmra.mrb[12].mxu1 %vm1403_vm0, %v1338_v44  ;;  %v1357_v56 = vld [vmem:[#allocation2 + $0x90] sm:$0xff]  ;;  %v1358_v30 = vld [vmem:[#allocation2 + $0x98] sm:$0xff]  ;;  %v1344_v44 = vld [vmem:[#allocation2 + $0x28] sm:$0xff] }
 0x10d   : > { %v2394_v52 = vpop.f32.mrb[0].mxu0 }
 0x10e   : > { %v1615_v42 = vadd.f32 %v2394_v52, %v1341_v51  ;;  %v1486_v5 = vpop.f32.mrb[1].mxu0 }
 0x10f   : > { %v1613_v58 = vadd.f32 %v1486_v5, %v1339_v45  ;;  %v2395_v59 = vpop.f32.mrb[2].mxu0  ;;  %v1361_v5 = vld [vmem:[#allocation2 + $0xb0] sm:$0xff] }
 0x110   : > { %1648 = vst.msk [vmem:[#allocation2 + $0x10] sm:$0xff] %vm306_vm1, %v1615_v42  ;;  %v1616_v13 = vadd.f32 %v2395_v59, %v1342_v10  ;;  %v1489_v47 = vpop.f32.mrb[3].mxu0 }
 0x111   : > { %1646 = vst.msk [vmem:[#allocation2] sm:$0xff] %vm306_vm1, %v1613_v58  ;;  %v1614_v19 = vadd.f32 %v1489_v47, %v1340_v46  ;;  %v1359_v46 = vld [vmem:[#allocation2 + $0xa0] sm:$0xff] }
 0x112   : > { %1649 = vst.msk [vmem:[#allocation2 + $0x18] sm:$0xff] %vm306_vm1, %v1616_v13  ;;  %v1362_v13 = vld [vmem:[#allocation2 + $0xb8] sm:$0xff] }
 0x113   : > { %1647 = vst.msk [vmem:[#allocation2 + $0x8] sm:$0xff] %vm306_vm1, %v1614_v19 }
 0x117   : > { %v1683_v48 = vld [vmem:[#allocation2 + $0x10] sm:$0xff] }
 0x118   : > { %v1722_v62 = vadd.f32 %v3337_v7, %v1683_v48  ;;  %v1681_v50 = vld [vmem:[#allocation2] sm:$0xff] }
 0x119   : > { %v1720_v1 = vadd.f32 %v3337_v7, %v1681_v50  ;;  %v1684_v2 = vld [vmem:[#allocation2 + $0x18] sm:$0xff] }
 0x11a   : > { %v2410_v57 = vpop.f32.mrb[0].mxu1  ;;  %v1754_v12 = vmax.f32 %v1722_v62, 0.0  ;;  %v1723_v14 = vadd.f32 %v3337_v7, %v1684_v2  ;;  %v1682_v53 = vld [vmem:[#allocation2 + $0x8] sm:$0xff] }
 0x11b   : > { %v1631_v8 = vadd.f32 %v2410_v57, %v1357_v56  ;;  %v1550_v49 = vpop.f32.mrb[1].mxu1  ;;  %v1752_v40 = vmax.f32 %v1720_v1, 0.0  ;;  %v1721_v18 = vadd.f32 %v3337_v7, %v1682_v53  ;;  %v1360_v62 = vld [vmem:[#allocation2 + $0xa8] sm:$0xff] }
 0x11c   : > { %v1629_v17 = vadd.f32 %v1550_v49, %v1355_v63  ;;  %v2411_v9 = vpop.f32.mrb[2].mxu1  ;;  %v2334_v6 = vpack.c.bf16 %v1754_v12, %v1754_v12  ;;  %v1755_v11 = vmax.f32 %v1723_v14, 0.0 }
 0x11d   : > { %1664 = vst.msk [vmem:[#allocation2 + $0x90] sm:$0xff] %vm306_vm1, %v1631_v8  ;;  %v1632_v21 = vadd.f32 %v2411_v9, %v1358_v30  ;;  %v1553_v54 = vpop.f32.mrb[3].mxu1  ;;  %v2332_v55 = vpack.c.bf16 %v1752_v40, %v1752_v40  ;;  %v1753_v22 = vmax.f32 %v1721_v18, 0.0 }
 0x11e   : > { %1662 = vst.msk [vmem:[#allocation2 + $0x80] sm:$0xff] %vm306_vm1, %v1629_v17  ;;  %v1630_v20 = vadd.f32 %v1553_v54, %v1356_v15  ;;  %v2335_v25 = vpack.c.bf16 %v1755_v11, %v1755_v11 }
 0x11f   : > { %1915 = vst.msk [vmem:[%s3346_s18 + $0x8] sm:$0xf] %vm1912_vm2, %v2334_v6  ;;  %1913 = vst.msk [vmem:[%s3346_s18] sm:$0xf] %vm1912_vm2, %v2332_v55  ;;  %v2333_v26 = vpack.c.bf16 %v1753_v22, %v1753_v22 }
 0x120   : > { %1665 = vst.msk [vmem:[#allocation2 + $0x98] sm:$0xff] %vm306_vm1, %v1632_v21  ;;  %1663 = vst.msk [vmem:[#allocation2 + $0x88] sm:$0xff] %vm306_vm1, %v1630_v20 }
 0x121   : > { %1916 = vst.msk [vmem:[%s3346_s18 + $0xc] sm:$0xf] %vm1912_vm2, %v2335_v25  ;;  %1914 = vst.msk [vmem:[%s3346_s18 + $0x4] sm:$0xf] %vm1912_vm2, %v2333_v26 }
 0x124   : > { %v1699_v29 = vld [vmem:[#allocation2 + $0x90] sm:$0xff] }
 0x125   : > { %v1738_v28 = vadd.f32 %v3337_v7, %v1699_v29  ;;  %v1697_v24 = vld [vmem:[#allocation2 + $0x80] sm:$0xff] }
 0x126   : > { %v1736_v27 = vadd.f32 %v3337_v7, %v1697_v24 }
 0x127   : > { %v1700_v61 = vld [vmem:[#allocation2 + $0x98] sm:$0xff]  ;;  %v1770_v32 = vmax.f32 %v1738_v28, 0.0  ;;  %v1698_v23 = vld [vmem:[#allocation2 + $0x88] sm:$0xff] }
 0x128   : > { %v1739_v60 = vadd.f32 %v3337_v7, %v1700_v61  ;;  %v1768_v0 = vmax.f32 %v1736_v27, 0.0  ;;  %v1737_v16 = vadd.f32 %v3337_v7, %v1698_v23 }
 0x129   : > { %v2350_v31 = vpack.c.bf16 %v1770_v32, %v1770_v32 }
 0x12a   : > { %v1771_v33 = vmax.f32 %v1739_v60, 0.0  ;;  %v2348_v35 = vpack.c.bf16 %v1768_v0, %v1768_v0  ;;  %v1769_v36 = vmax.f32 %v1737_v16, 0.0  ;;  %v1349_v16 = vld [vmem:[#allocation2 + $0x50] sm:$0xff] }
 0x12b   : > { %1931 = vst.msk [vmem:[%s3346_s18 + $0x48] sm:$0xf] %vm1912_vm2, %v2350_v31  ;;  %v1347_v31 = vld [vmem:[#allocation2 + $0x40] sm:$0xff] }
 0x12c   : > { %v2351_v37 = vpack.c.bf16 %v1771_v33, %v1771_v33  ;;  %1929 = vst.msk [vmem:[%s3346_s18 + $0x40] sm:$0xf] %vm1912_vm2, %v2348_v35  ;;  %v2349_v34 = vpack.c.bf16 %v1769_v36, %v1769_v36  ;;  %v1350_v35 = vld [vmem:[#allocation2 + $0x58] sm:$0xff] }
 0x12e   : > { %1932 = vst.msk [vmem:[%s3346_s18 + $0x4c] sm:$0xf] %vm1912_vm2, %v2351_v37  ;;  %1930 = vst.msk [vmem:[%s3346_s18 + $0x44] sm:$0xf] %vm1912_vm2, %v2349_v34  ;;  %v1348_v34 = vld [vmem:[#allocation2 + $0x48] sm:$0xff] }
 0x136   : > { %v2398_v39 = vpop.f32.mrb[4].mxu0 }
 0x137   : > { %v1619_v41 = vadd.f32 %v2398_v39, %v1345_v3  ;;  %v1502_v4 = vpop.f32.mrb[5].mxu0 }
 0x138   : > { %v1617_v51 = vadd.f32 %v1502_v4, %v1343_v38  ;;  %v2399_v45 = vpop.f32.mrb[6].mxu0  ;;  %v1365_v4 = vld [vmem:[#allocation2 + $0xd0] sm:$0xff] }
 0x139   : > { %1652 = vst.msk [vmem:[#allocation2 + $0x30] sm:$0xff] %vm306_vm1, %v1619_v41  ;;  %v1620_v52 = vadd.f32 %v2399_v45, %v1346_v43  ;;  %v1505_v10 = vpop.f32.mrb[7].mxu0  ;;  %v1366_v45 = vld [vmem:[#allocation2 + $0xd8] sm:$0xff] }
 0x13a   : > { %1650 = vst.msk [vmem:[#allocation2 + $0x20] sm:$0xff] %vm306_vm1, %v1617_v51  ;;  %v1618_v42 = vadd.f32 %v1505_v10, %v1344_v44  ;;  %v1363_v44 = vld [vmem:[#allocation2 + $0xc0] sm:$0xff] }
 0x13b   : > { %1653 = vst.msk [vmem:[#allocation2 + $0x38] sm:$0xff] %vm306_vm1, %v1620_v52 }
 0x13c   : > { %1651 = vst.msk [vmem:[#allocation2 + $0x28] sm:$0xff] %vm306_vm1, %v1618_v42 }
 0x140   : > { %v1687_v58 = vld [vmem:[#allocation2 + $0x30] sm:$0xff]  ;;  %v2414_v59 = vpop.f32.mrb[4].mxu1 }
 0x141   : > { %v1726_v47 = vadd.f32 %v3337_v7, %v1687_v58  ;;  %v1635_v19 = vadd.f32 %v2414_v59, %v1361_v5  ;;  %v1685_v48 = vld [vmem:[#allocation2 + $0x20] sm:$0xff]  ;;  %v1566_v56 = vpop.f32.mrb[5].mxu1  ;;  %v1364_v5 = vld [vmem:[#allocation2 + $0xc8] sm:$0xff] }
 0x142   : > { %v1724_v50 = vadd.f32 %v3337_v7, %v1685_v48  ;;  %v1633_v63 = vadd.f32 %v1566_v56, %v1359_v46  ;;  %v1688_v57 = vld [vmem:[#allocation2 + $0x38] sm:$0xff]  ;;  %v2415_v1 = vpop.f32.mrb[6].mxu1 }
 0x143   : > { %v1758_v2 = vmax.f32 %v1726_v47, 0.0  ;;  %1668 = vst.msk [vmem:[#allocation2 + $0xb0] sm:$0xff] %vm306_vm1, %v1635_v19  ;;  %v1727_v30 = vadd.f32 %v3337_v7, %v1688_v57  ;;  %v1636_v12 = vadd.f32 %v2415_v1, %v1362_v13  ;;  %v1686_v8 = vld [vmem:[#allocation2 + $0x28] sm:$0xff]  ;;  %v1569_v49 = vpop.f32.mrb[7].mxu1 }
 0x144   : > { %v1756_v14 = vmax.f32 %v1724_v50, 0.0  ;;  %1666 = vst.msk [vmem:[#allocation2 + $0xa0] sm:$0xff] %vm306_vm1, %v1633_v63  ;;  %v1725_v53 = vadd.f32 %v3337_v7, %v1686_v8  ;;  %v1634_v15 = vadd.f32 %v1569_v49, %v1360_v62 }
 0x145   : > { %v2338_v40 = vpack.c.bf16 %v1758_v2, %v1758_v2  ;;  %v1759_v17 = vmax.f32 %v1727_v30, 0.0  ;;  %1669 = vst.msk [vmem:[#allocation2 + $0xb8] sm:$0xff] %vm306_vm1, %v1636_v12 }
 0x146   : > { %v2336_v9 = vpack.c.bf16 %v1756_v14, %v1756_v14  ;;  %v1757_v18 = vmax.f32 %v1725_v53, 0.0  ;;  %1667 = vst.msk [vmem:[#allocation2 + $0xa8] sm:$0xff] %vm306_vm1, %v1634_v15 }
 0x147   : > { %1919 = vst.msk [vmem:[%s3346_s18 + $0x18] sm:$0xf] %vm1912_vm2, %v2338_v40  ;;  %v2339_v6 = vpack.c.bf16 %v1759_v17, %v1759_v17 }
 0x148   : > { %1917 = vst.msk [vmem:[%s3346_s18 + $0x10] sm:$0xf] %vm1912_vm2, %v2336_v9  ;;  %v2337_v11 = vpack.c.bf16 %v1757_v18, %v1757_v18 }
 0x149   : > { %1920 = vst.msk [vmem:[%s3346_s18 + $0x1c] sm:$0xf] %vm1912_vm2, %v2339_v6 }
 0x14a   : > { %v1703_v21 = vld [vmem:[#allocation2 + $0xb0] sm:$0xff]  ;;  %1918 = vst.msk [vmem:[%s3346_s18 + $0x14] sm:$0xf] %vm1912_vm2, %v2337_v11 }
 0x14b   : > { %v1742_v54 = vadd.f32 %v3337_v7, %v1703_v21  ;;  %v1701_v55 = vld [vmem:[#allocation2 + $0xa0] sm:$0xff] }
 0x14c   : > { %v1740_v22 = vadd.f32 %v3337_v7, %v1701_v55  ;;  %v1704_v20 = vld [vmem:[#allocation2 + $0xb8] sm:$0xff] }
 0x14d   : > { %v1774_v25 = vmax.f32 %v1742_v54, 0.0  ;;  %v1743_v26 = vadd.f32 %v3337_v7, %v1704_v20  ;;  %v1702_v29 = vld [vmem:[#allocation2 + $0xa8] sm:$0xff] }
 0x14e   : > { %v1772_v28 = vmax.f32 %v1740_v22, 0.0  ;;  %v1741_v24 = vadd.f32 %v3337_v7, %v1702_v29 }
 0x14f   : > { %v2354_v27 = vpack.c.bf16 %v1774_v25, %v1774_v25  ;;  %v1775_v61 = vmax.f32 %v1743_v26, 0.0 }
 0x150   : > { %v2352_v32 = vpack.c.bf16 %v1772_v28, %v1772_v28  ;;  %v1773_v60 = vmax.f32 %v1741_v24, 0.0  ;;  %v1353_v24 = vld [vmem:[#allocation2 + $0x70] sm:$0xff] }
 0x151   : > { %1935 = vst.msk [vmem:[%s3346_s18 + $0x58] sm:$0xf] %vm1912_vm2, %v2354_v27  ;;  %v2355_v23 = vpack.c.bf16 %v1775_v61, %v1775_v61  ;;  %v1351_v27 = vld [vmem:[#allocation2 + $0x60] sm:$0xff] }
 0x152   : > { %1933 = vst.msk [vmem:[%s3346_s18 + $0x50] sm:$0xf] %vm1912_vm2, %v2352_v32  ;;  %v2353_v0 = vpack.c.bf16 %v1773_v60, %v1773_v60  ;;  %v1354_v32 = vld [vmem:[#allocation2 + $0x78] sm:$0xff] }
 0x153   : > { %1936 = vst.msk [vmem:[%s3346_s18 + $0x5c] sm:$0xf] %vm1912_vm2, %v2355_v23 }
 0x154   : > { %1934 = vst.msk [vmem:[%s3346_s18 + $0x54] sm:$0xf] %vm1912_vm2, %v2353_v0  ;;  %v1352_v0 = vld [vmem:[#allocation2 + $0x68] sm:$0xff] }
 0x15d   : > { %v2402_v33 = vpop.f32.mrb[8].mxu0 }
 0x15e   : > { %v1623_v36 = vadd.f32 %v2402_v33, %v1349_v16  ;;  %v1518_v37 = vpop.f32.mrb[9].mxu0 }
 0x15f   : > { %v1621_v3 = vadd.f32 %v1518_v37, %v1347_v31  ;;  %v2403_v38 = vpop.f32.mrb[10].mxu0  ;;  %v1369_v37 = vld [vmem:[#allocation2 + $0xf0] sm:$0xff] }
 0x160   : > { %1656 = vst.msk [vmem:[#allocation2 + $0x50] sm:$0xff] %vm306_vm1, %v1623_v36  ;;  %v1624_v39 = vadd.f32 %v2403_v38, %v1350_v35  ;;  %v1521_v43 = vpop.f32.mrb[11].mxu0  ;;  %v1370_v38 = vld [vmem:[#allocation2 + $0xf8] sm:$0xff] }
 0x161   : > { %1654 = vst.msk [vmem:[#allocation2 + $0x40] sm:$0xff] %vm306_vm1, %v1621_v3  ;;  %v1622_v41 = vadd.f32 %v1521_v43, %v1348_v34  ;;  %v1367_v34 = vld [vmem:[#allocation2 + $0xe0] sm:$0xff] }
 0x162   : > { %1657 = vst.msk [vmem:[#allocation2 + $0x58] sm:$0xff] %vm306_vm1, %v1624_v39 }
 0x163   : > { %1655 = vst.msk [vmem:[#allocation2 + $0x48] sm:$0xff] %vm306_vm1, %v1622_v41 }
 0x167   : > { %v2418_v51 = vpop.f32.mrb[8].mxu1  ;;  %v1691_v52 = vld [vmem:[#allocation2 + $0x50] sm:$0xff] }
 0x168   : > { %v1639_v10 = vadd.f32 %v2418_v51, %v1365_v4  ;;  %v1582_v42 = vpop.f32.mrb[9].mxu1  ;;  %v1730_v46 = vadd.f32 %v3337_v7, %v1691_v52  ;;  %v1689_v58 = vld [vmem:[#allocation2 + $0x40] sm:$0xff]  ;;  %v1368_v4 = vld [vmem:[#allocation2 + $0xe8] sm:$0xff] }
 0x169   : > { %v1637_v59 = vadd.f32 %v1582_v42, %v1363_v44  ;;  %v2419_v13 = vpop.f32.mrb[10].mxu1  ;;  %v1728_v47 = vadd.f32 %v3337_v7, %v1689_v58  ;;  %v1692_v19 = vld [vmem:[#allocation2 + $0x58] sm:$0xff] }
 0x16a   : > { %1672 = vst.msk [vmem:[#allocation2 + $0xd0] sm:$0xff] %vm306_vm1, %v1639_v10  ;;  %v1640_v48 = vadd.f32 %v2419_v13, %v1366_v45  ;;  %v1585_v56 = vpop.f32.mrb[11].mxu1  ;;  %v1762_v62 = vmax.f32 %v1730_v46, 0.0  ;;  %v1731_v50 = vadd.f32 %v3337_v7, %v1692_v19  ;;  %v1690_v63 = vld [vmem:[#allocation2 + $0x48] sm:$0xff] }
 0x16b   : > { %1670 = vst.msk [vmem:[#allocation2 + $0xc0] sm:$0xff] %vm306_vm1, %v1637_v59  ;;  %v1638_v57 = vadd.f32 %v1585_v56, %v1364_v5  ;;  %v1760_v1 = vmax.f32 %v1728_v47, 0.0  ;;  %v1729_v2 = vadd.f32 %v3337_v7, %v1690_v63 }
 0x16c   : > { %1673 = vst.msk [vmem:[#allocation2 + $0xd8] sm:$0xff] %vm306_vm1, %v1640_v48  ;;  %v2342_v30 = vpack.c.bf16 %v1762_v62, %v1762_v62  ;;  %v1763_v12 = vmax.f32 %v1731_v50, 0.0 }
 0x16d   : > { %1671 = vst.msk [vmem:[#allocation2 + $0xc8] sm:$0xff] %vm306_vm1, %v1638_v57  ;;  %v2340_v8 = vpack.c.bf16 %v1760_v1, %v1760_v1  ;;  %v1761_v49 = vmax.f32 %v1729_v2, 0.0 }
 0x16e   : > { %1923 = vst.msk [vmem:[%s3346_s18 + $0x28] sm:$0xf] %vm1912_vm2, %v2342_v30  ;;  %v2343_v14 = vpack.c.bf16 %v1763_v12, %v1763_v12 }
 0x16f   : > { %1921 = vst.msk [vmem:[%s3346_s18 + $0x20] sm:$0xf] %vm1912_vm2, %v2340_v8  ;;  %v2341_v53 = vpack.c.bf16 %v1761_v49, %v1761_v49 }
 0x170   : > { %1924 = vst.msk [vmem:[%s3346_s18 + $0x2c] sm:$0xf] %vm1912_vm2, %v2343_v14 }
 0x171   : > { %v1707_v15 = vld [vmem:[#allocation2 + $0xd0] sm:$0xff]  ;;  %1922 = vst.msk [vmem:[%s3346_s18 + $0x24] sm:$0xf] %vm1912_vm2, %v2341_v53 }
 0x172   : > { %v1746_v40 = vadd.f32 %v3337_v7, %v1707_v15  ;;  %v1705_v17 = vld [vmem:[#allocation2 + $0xc0] sm:$0xff] }
 0x173   : > { %v1744_v9 = vadd.f32 %v3337_v7, %v1705_v17  ;;  %v1708_v18 = vld [vmem:[#allocation2 + $0xd8] sm:$0xff] }
 0x174   : > { %v1778_v6 = vmax.f32 %v1746_v40, 0.0  ;;  %v1747_v11 = vadd.f32 %v3337_v7, %v1708_v18  ;;  %v1706_v21 = vld [vmem:[#allocation2 + $0xc8] sm:$0xff] }
 0x175   : > { %v1776_v54 = vmax.f32 %v1744_v9, 0.0  ;;  %v1745_v55 = vadd.f32 %v3337_v7, %v1706_v21 }
 0x176   : > { %v2358_v22 = vpack.c.bf16 %v1778_v6, %v1778_v6  ;;  %v1779_v20 = vmax.f32 %v1747_v11, 0.0 }
 0x177   : > { %v2356_v25 = vpack.c.bf16 %v1776_v54, %v1776_v54  ;;  %v1777_v26 = vmax.f32 %v1745_v55, 0.0 }
 0x178   : > { %1939 = vst.msk [vmem:[%s3346_s18 + $0x68] sm:$0xf] %vm1912_vm2, %v2358_v22  ;;  %v2359_v29 = vpack.c.bf16 %v1779_v20, %v1779_v20 }
 0x179   : > { %1937 = vst.msk [vmem:[%s3346_s18 + $0x60] sm:$0xf] %vm1912_vm2, %v2356_v25  ;;  %v2357_v28 = vpack.c.bf16 %v1777_v26, %v1777_v26 }
 0x17a   : > { %1940 = vst.msk [vmem:[%s3346_s18 + $0x6c] sm:$0xf] %vm1912_vm2, %v2359_v29 }
 0x17b   : > { %1938 = vst.msk [vmem:[%s3346_s18 + $0x64] sm:$0xf] %vm1912_vm2, %v2357_v28 }
 0x184   : > { %v2406_v61 = vpop.f32.mrb[12].mxu0 }
 0x185   : > { %v1627_v60 = vadd.f32 %v2406_v61, %v1353_v24  ;;  %v1534_v23 = vpop.f32.mrb[13].mxu0 }
 0x186   : > { %v1625_v16 = vadd.f32 %v1534_v23, %v1351_v27  ;;  %v2407_v31 = vpop.f32.mrb[14].mxu0 }
 0x187   : > { %1660 = vst.msk [vmem:[#allocation2 + $0x70] sm:$0xff] %vm306_vm1, %v1627_v60  ;;  %v1628_v33 = vadd.f32 %v2407_v31, %v1354_v32  ;;  %v1537_v35 = vpop.f32.mrb[15].mxu0 }
 0x188   : > { %1658 = vst.msk [vmem:[#allocation2 + $0x60] sm:$0xff] %vm306_vm1, %v1625_v16  ;;  %v1626_v36 = vadd.f32 %v1537_v35, %v1352_v0 }
 0x189   : > { %1661 = vst.msk [vmem:[#allocation2 + $0x78] sm:$0xff] %vm306_vm1, %v1628_v33 }
 0x18a   : > { %1659 = vst.msk [vmem:[#allocation2 + $0x68] sm:$0xff] %vm306_vm1, %v1626_v36 }
 0x18e   : > { %v2422_v3 = vpop.f32.mrb[12].mxu1  ;;  %v1695_v39 = vld [vmem:[#allocation2 + $0x70] sm:$0xff] }
 0x18f   : > { %v1643_v43 = vadd.f32 %v2422_v3, %v1369_v37  ;;  %v1598_v41 = vpop.f32.mrb[13].mxu1  ;;  %v1734_v44 = vadd.f32 %v3337_v7, %v1695_v39  ;;  %v1693_v51 = vld [vmem:[#allocation2 + $0x60] sm:$0xff] }
 0x190   : > { %v1641_v45 = vadd.f32 %v1598_v41, %v1367_v34  ;;  %v2423_v52 = vpop.f32.mrb[14].mxu1  ;;  %v1732_v10 = vadd.f32 %v3337_v7, %v1693_v51  ;;  %v1696_v42 = vld [vmem:[#allocation2 + $0x78] sm:$0xff] }
 0x191   : > { %1676 = vst.msk [vmem:[#allocation2 + $0xf0] sm:$0xff] %vm306_vm1, %v1643_v43  ;;  %v1644_v5 = vadd.f32 %v2423_v52, %v1370_v38  ;;  %v1601_v46 = vpop.f32.mrb[15].mxu1  ;;  %v1766_v58 = vmax.f32 %v1734_v44, 0.0  ;;  %v1735_v59 = vadd.f32 %v3337_v7, %v1696_v42  ;;  %v1694_v13 = vld [vmem:[#allocation2 + $0x68] sm:$0xff] }
 0x192   : > { %1674 = vst.msk [vmem:[#allocation2 + $0xe0] sm:$0xff] %vm306_vm1, %v1641_v45  ;;  %v1642_v47 = vadd.f32 %v1601_v46, %v1368_v4  ;;  %v1764_v19 = vmax.f32 %v1732_v10, 0.0  ;;  %v1733_v48 = vadd.f32 %v3337_v7, %v1694_v13 }
 0x193   : > { %1677 = vst.msk [vmem:[#allocation2 + $0xf8] sm:$0xff] %vm306_vm1, %v1644_v5  ;;  %v2346_v56 = vpack.c.bf16 %v1766_v58, %v1766_v58  ;;  %v1767_v62 = vmax.f32 %v1735_v59, 0.0 }
 0x194   : > { %1675 = vst.msk [vmem:[#allocation2 + $0xe8] sm:$0xff] %vm306_vm1, %v1642_v47  ;;  %v2344_v50 = vpack.c.bf16 %v1764_v19, %v1764_v19  ;;  %v1765_v63 = vmax.f32 %v1733_v48, 0.0 }
 0x195   : > { %1927 = vst.msk [vmem:[%s3346_s18 + $0x38] sm:$0xf] %vm1912_vm2, %v2346_v56  ;;  %v2347_v57 = vpack.c.bf16 %v1767_v62, %v1767_v62 }
 0x196   : > { %1925 = vst.msk [vmem:[%s3346_s18 + $0x30] sm:$0xf] %vm1912_vm2, %v2344_v50  ;;  %v2345_v1 = vpack.c.bf16 %v1765_v63, %v1765_v63 }
 0x197   : > { %1928 = vst.msk [vmem:[%s3346_s18 + $0x3c] sm:$0xf] %vm1912_vm2, %v2347_v57 }
 0x198   : > { %v1711_v2 = vld [vmem:[#allocation2 + $0xf0] sm:$0xff]  ;;  %1926 = vst.msk [vmem:[%s3346_s18 + $0x34] sm:$0xf] %vm1912_vm2, %v2345_v1 }
 0x199   : > { %v1750_v30 = vadd.f32 %v3337_v7, %v1711_v2  ;;  %v1709_v12 = vld [vmem:[#allocation2 + $0xe0] sm:$0xff] }
 0x19a   : > { %v1748_v8 = vadd.f32 %v3337_v7, %v1709_v12  ;;  %v1712_v49 = vld [vmem:[#allocation2 + $0xf8] sm:$0xff] }
 0x19b   : > { %v1782_v14 = vmax.f32 %v1750_v30, 0.0  ;;  %v1751_v53 = vadd.f32 %v3337_v7, %v1712_v49  ;;  %v1710_v15 = vld [vmem:[#allocation2 + $0xe8] sm:$0xff] }
 0x19c   : > { %v1780_v40 = vmax.f32 %v1748_v8, 0.0  ;;  %v1749_v17 = vadd.f32 %v3337_v7, %v1710_v15 }
 0x19d   : > { %v2362_v9 = vpack.c.bf16 %v1782_v14, %v1782_v14  ;;  %v1783_v18 = vmax.f32 %v1751_v53, 0.0 }
 0x19e   : > { %v2360_v6 = vpack.c.bf16 %v1780_v40, %v1780_v40  ;;  %v1781_v11 = vmax.f32 %v1749_v17, 0.0 }
 0x19f   : > { %1943 = vst.msk [vmem:[%s3346_s18 + $0x78] sm:$0xf] %vm1912_vm2, %v2362_v9  ;;  %v2363_v21 = vpack.c.bf16 %v1783_v18, %v1783_v18 }
 0x1a0   : > { %1941 = vst.msk [vmem:[%s3346_s18 + $0x70] sm:$0xf] %vm1912_vm2, %v2360_v6  ;;  %v2361_v54 = vpack.c.bf16 %v1781_v11, %v1781_v11 }
 0x1a1   : > { %1944 = vst.msk [vmem:[%s3346_s18 + $0x7c] sm:$0xf] %vm1912_vm2, %v2363_v21 }
 0x1a2   : > { %1942 = vst.msk [vmem:[%s3346_s18 + $0x74] sm:$0xf] %vm1912_vm2, %v2361_v54 }
 0x1a3 PF: > { %s15_s20 = sadd.s32 1, %s2494_s20   ;;  %s3484_s18 = smov %s2490_s19 }
 0x1a4   : > { %p12_p5 = scmp.ge.s32.totalorder %s15_s20, 4   ;;  %s3485_s19 = smov %s3487_s21 }
 0x1a6   :  { %14 = sbr.rel (!%p12_p5) target bundleno = 2 (0x2), region = 91 }

// kernel: aspp_forward.9
= control target key start
LH: loop header
LB: loop body
LE: loop exit
PB: predicated region body
PF: predicated region fallthrough
CT: control target
= control target key end

     0   :  { %s3517_s0 = inlined_call_operand.vmem [shape: f32[2,1,32], index: 0, kind: input, shape index: {}]   ;;  %s3518_s1 = inlined_call_operand.vmem [shape: bf16[2,256,32], index: 1, kind: input, shape index: {}]   ;;  %s3519_s2 = inlined_call_operand.vmem [shape: bf16[2,256,32], index: 2, kind: input, shape index: {}]   ;;  %s3520_s3 = inlined_call_operand.vmem [shape: bf16[2,256,32], index: 3, kind: input, shape index: {}]   ;;  %s3521_s4 = inlined_call_operand.vmem [shape: bf16[2,256,32], index: 4, kind: input, shape index: {}]   ;;  %s3522_s5 = inlined_call_operand.vmem [shape: bf16[32,32], index: 5, kind: input, shape index: {}]   ;;  %s3523_s6 = inlined_call_operand.vmem [shape: bf16[32,32], index: 6, kind: input, shape index: {}]   ;;  %s3524_s7 = inlined_call_operand.vmem [shape: bf16[32,32], index: 7, kind: input, shape index: {}]   ;;  %s3525_s8 = inlined_call_operand.vmem [shape: bf16[32,32], index: 8, kind: input, shape index: {}]   ;;  %s3526_s9 = inlined_call_operand.vmem [shape: bf16[32,32], index: 9, kind: input, shape index: {}]   ;;  %s3527_s10 = inlined_call_operand.vmem [shape: f32[1,32], index: 10, kind: input, shape index: {}]   ;;  %s3528_s11 = inlined_call_operand.hbm [shape: f32[2,256,32], index: 11, kind: output, shape index: {}]  }
   0x1   :  { %3530 = sst [smem:[#allocation6_spill]] %s3522_s5 }
   0x2   :  { %16 = vsyncpa [#allocation3], 0 }
   0x3   :  { %18 = vsyncpa [#allocation3 + $0x1], 0  ;;  %s3075_s17 = smov 0   ;;  %s3077_s18 = smov 0  }
   0x4   :  { %s3079_s19 = smov 0   ;;  %s3081_s20 = smov 0  }
   0x5   :  { %s3083_s21 = smov 0   ;;  %s3085_s22 = smov 0  }
   0x6 LB: > { %s2310_s23 = sadd.s32 4294967295, %s3008_s22   ;;  %s2311_s24 = sadd.s32 4294967294, %s3008_s22   ;;  %s3008_s22 = sphi %s3085_s22, %s24_s22   ;;  %s3004_s21 = sphi %s3083_s21, %s3540_s21   ;;  %s3000_s20 = sphi %s3081_s20, %s3539_s20   ;;  %s2996_s19 = sphi %s3079_s19, %s3538_s19   ;;  %s2992_s18 = sphi %s3077_s18, %s3537_s18   ;;  %s2988_s17 = sphi %s3075_s17, %s3536_s17  }
   0x7   : > { %s36_s25 = sadd.s32 1, %s3004_s21  ;;  %s309_s26 = sadd.s32 1, %s2996_s19 }
   0x8   : > { %p38_p0 = scmp.ge.s32.totalorder %s36_s25, 2  ;;  %p319_p1 = scmp.ne.s32.totalorder %s2996_s19, %s2992_s18 }
   0x9   : > { %p320_p2 = scmp.eq.s32.totalorder %s2310_s23, 1  ;;  %p325_p3 = scmp.ne.s32.totalorder %s2992_s18, %s2988_s17 }
   0xa   : > { %s3542_s25 = smov (%p38_p0, %s36_s25), 0  ;;  %p326_p5 = scmp.eq.s32.totalorder %s2311_s24, 1 }
   0xb   : > { %3531 = sst [smem:[#allocation5_spill]] %s3542_s25  ;;  %p3115_p4 = por %p320_p2, %p319_p1 }
   0xc   : > { %s304_s28 = ssub.s32 %s3004_s21, %s3542_s25  ;;  %p2314_p6 = scmp.ge.s32.totalorder %s3008_s22, 1 }
   0xd   : > { %p307_p7 = scmp.eq.s32.totalorder %s304_s28, 0  ;;  %p3122_p8 = por %p326_p5, %p325_p3 }
   0xe   : > { %p420_p9 = scmp.lt.s32.totalorder %s3008_s22, 3 }
   0xf   : > { %s3128_s30 = scalar_select %p307_p7, %s2996_s19, %s309_s26  }
  0x10   : > { %p421_p10 = pnand %p2314_p6, %p420_p9 }
  0x11   : > { %s3534_s5 = sld [smem:[#allocation6_spill]] (!%p421_p10)  ;;  %v3010_v1 = vmov (!%p421_p10), 0.0   ;;  %v2857_v2 = vld [vmem:[%s3525_s8] sm:$0xff] (!%p421_p10)   ;;  %vm3011_vm0 = vmmov (!%p421_p10), 0   ;;  %p494_p11 = scmp.lt.s32.totalorder (!%p421_p10), %s3000_s20, 1  ;;  %v2859_v4 = vld [vmem:[%s3525_s8 + $0x8] sm:$0xff] (!%p421_p10)  }
  0x12   : > { %424 = sbr.rel (%p421_p10) target bundleno = 397 (0x18d), region = 64  ;;  %2549 = vmatprep.subr.bf16.mxu0 (!%p421_p10), %v3010_v1  ;;  %2553 = vmatprep.mubr.msk.bf16.mxu0 (!%p421_p10), %vm3011_vm0, %v3010_v1  ;;  %v2860_v5 = vld [vmem:[%s3524_s7] sm:$0xff] (!%p421_p10)   ;;  %vm557_vm1 = vcmask (!%p421_p10), 261120   ;;  %v2863_v6 = vld [vmem:[%s3524_s7 + $0x8] sm:$0xff] (!%p421_p10)  }
  0x13   : > { %2629 = vmatprep.subr.bf16.mxu1 (!%p421_p10), %v2857_v2  ;;  %v2866_v12 = vld [vmem:[%s3523_s6] sm:$0xff] (!%p421_p10)   ;;  %v2884_v24 = vld [vmem:[%s3523_s6 + $0x8] sm:$0xff] (!%p421_p10)  }
  0x14   : > { %2630 = vmatpush3.bf16.msra.mxu1 (!%p421_p10), %v2857_v2  ;;  %v2868_v14 = vld [vmem:[%s3526_s9] sm:$0xff] (!%p421_p10)   ;;  %v2886_v26 = vld [vmem:[%s3526_s9 + $0x8] sm:$0xff] (!%p421_p10)  }
  0x15   : > { %2631 = vmatprep.subr.bf16.mxu1 (!%p421_p10), %v2859_v4 }
  0x17   : > { %v2856_v0 = vld [vmem:[%s3534_s5] sm:$0xff] (!%p421_p10)   ;;  %v2858_v3 = vld [vmem:[%s3534_s5 + $0x8] sm:$0xff] (!%p421_p10)   ;;  %s2473_s5 = sshll.u32 (!%p421_p10), %s3000_s20, 12 }
  0x18   : > { %2550 = vmatpush3.bf16.msra.mxu0 (!%p421_p10), %v2856_v0  ;;  %2632 = vmatpush3.bf16.msra.mxu1 (!%p421_p10), %v2859_v4  ;;  %s3459_s24 = scalar_lea.hbm (!%p421_p10), %s3528_s11, %s2473_s5 }
  0x19   : > { %2551 = vmatprep.subr.bf16.mxu0 %v3010_v1  ;;  %s495_s28 = scalar_select %p494_p11, %s3000_s20, 1  ;;  %2665 = vmatprep.subr.bf16.mxu1 %v2868_v14 }
  0x1b   : > { %s496_s16 = scalar_lea.vmem %s3517_s0, %s495_s28  ;;  %s3150_s23 = sshll.u32 %s495_s28, 7 }
  0x1c   : > { %2552 = vmatpush3.bf16.msra.mxu0 %v2858_v3  ;;  %s3159_s12 = scalar_lea.vmem %s3519_s2, %s3150_s23  ;;  %v539_v7 = vld [vmem:[%s496_s16] sm:$0x1]  ;;  %s3165_s28 = scalar_lea.vmem %s3520_s3, %s3150_s23 }
  0x1d   : > { %2557 = vmatprep.subr.bf16.mxu0 %v2860_v5  ;;  %v540_v8 = vpack.c.bf16 %v539_v7, %v539_v7  ;;  %v2864_v9 = vld [vmem:[%s3159_s12] sm:$0xff]   ;;  %v2862_v11 = vld [vmem:[%s3165_s28 + $0x8] sm:$0xff]   ;;  %v2867_v13 = vld [vmem:[%s3165_s28 + $0x10] sm:$0xff]   ;;  %s3219_s15 = scalar_lea.vmem %s3521_s4, %s3150_s23  ;;  %s3227_s26 = scalar_lea.vmem %s3518_s1, %s3150_s23 }
  0x1e   : > { %v2861_v10 = vld [vmem:[%s3165_s28] sm:$0xff]   ;;  %v2865_v15 = vld [vmem:[%s3159_s12 + $0x8] sm:$0xff]   ;;  %v2870_v16 = vld [vmem:[%s3159_s12 + $0x10] sm:$0xff]   ;;  %s491_s23 = sand.u32 1, %s2992_s18  }
  0x1f   : > { %2554 = vmatmul.mubr.msk.bf16.vlgmr.msra.gmra.mrb[0].mxu0 %vm557_vm1, %v540_v8  ;;  %2633 = vmatprep.mubr.msk.bf16.mxu1 %vm557_vm1, %v2861_v10  ;;  %v2869_v17 = vld [vmem:[%s3165_s28 + $0x18] sm:$0xff]   ;;  %v2872_v18 = vld [vmem:[%s3165_s28 + $0x20] sm:$0xff]   ;;  %v2873_v21 = vld [vmem:[%s3165_s28 + $0x28] sm:$0xff]   ;;  %s2315_s13 = sshll.u32 %s491_s23, 8  ;;  %s3471_s20 = scalar_lea.sflag [#allocation3], %s491_s23 }
  0x20   : > { %2558 = vmatpush3.bf16.msra.mxu0 %v2860_v5  ;;  %2634 = vmatmul.mubr.msk.bf16.vlgmr.msra.gmra.mrb[0].mxu1 %vm557_vm1, %v2862_v11  ;;  %v2871_v19 = vld [vmem:[%s3159_s12 + $0x18] sm:$0xff]   ;;  %v2874_v20 = vld [vmem:[%s3159_s12 + $0x20] sm:$0xff]   ;;  %v2876_v22 = vld [vmem:[%s3165_s28 + $0x30] sm:$0xff]   ;;  %s3338_s14 = scalar_lea.vmem [#allocation2], %s2315_s13 }
  0x21   : > { %2559 = vmatprep.subr.bf16.mxu0 %v2863_v6  ;;  %2561 = vmatprep.mubr.msk.bf16.mxu0 %vm557_vm1, %v2864_v9  ;;  %v2875_v23 = vld [vmem:[%s3159_s12 + $0x28] sm:$0xff]   ;;  %v2878_v25 = vld [vmem:[%s3159_s12 + $0x30] sm:$0xff]   ;;  %v2877_v27 = vld [vmem:[%s3165_s28 + $0x38] sm:$0xff]   ;;  %s2168_s25 = sshll.u32 %s3338_s14, 4  ;;  %s3461_s25 = int_to_ptr.vmem [resolvable:$true] %s2168_s25 }
  0x22   : > { %2637 = vmatprep.mubr.msk.bf16.mxu1 %vm557_vm1, %v2867_v13  ;;  %2666 = vmatpush3.bf16.msra.mxu1 %v2868_v14  ;;  %v2880_v28 = vld [vmem:[%s3165_s28 + $0x40] sm:$0xff]   ;;  %v2879_v29 = vld [vmem:[%s3159_s12 + $0x38] sm:$0xff]   ;;  %v2881_v31 = vld [vmem:[%s3165_s28 + $0x48] sm:$0xff]  }
  0x23   : > { %2667 = vmatprep.subr.bf16.mxu1 %v2886_v26  ;;  %v2882_v30 = vld [vmem:[%s3159_s12 + $0x40] sm:$0xff]   ;;  %v2885_v32 = vld [vmem:[%s3165_s28 + $0x50] sm:$0xff]   ;;  %v2883_v33 = vld [vmem:[%s3159_s12 + $0x48] sm:$0xff]  }
  0x24   : > { %2560 = vmatpush3.bf16.msra.mxu0 %v2863_v6  ;;  %v2888_v34 = vld [vmem:[%s3159_s12 + $0x50] sm:$0xff]   ;;  %v2887_v35 = vld [vmem:[%s3165_s28 + $0x58] sm:$0xff]   ;;  %v2890_v36 = vld [vmem:[%s3165_s28 + $0x60] sm:$0xff]  }
  0x25   : > { %2593 = vmatprep.subr.bf16.mxu0 %v2866_v12  ;;  %v2889_v37 = vld [vmem:[%s3159_s12 + $0x58] sm:$0xff]   ;;  %v2892_v38 = vld [vmem:[%s3159_s12 + $0x60] sm:$0xff]   ;;  %v2891_v39 = vld [vmem:[%s3165_s28 + $0x68] sm:$0xff]  }
  0x26   : > { %2668 = vmatpush3.bf16.msra.mxu1 %v2886_v26  ;;  %v2894_v40 = vld [vmem:[%s3165_s28 + $0x70] sm:$0xff]   ;;  %v2893_v41 = vld [vmem:[%s3159_s12 + $0x68] sm:$0xff]   ;;  %v2895_v43 = vld [vmem:[%s3165_s28 + $0x78] sm:$0xff]  }
  0x27   : > { %2562 = vmatmul.mubr.msk.bf16.vlgmr.msra.gmra.mrb[4].mxu0 %vm557_vm1, %v2865_v15  ;;  %v2896_v42 = vld [vmem:[%s3159_s12 + $0x70] sm:$0xff]   ;;  %v2898_v44 = vld [vmem:[%s3219_s15] sm:$0xff]   ;;  %v2897_v45 = vld [vmem:[%s3159_s12 + $0x78] sm:$0xff]   ;;  %s3012_s12 = smov [#allocation2]  }
  0x28   : > { %2594 = vmatpush3.bf16.msra.mxu0 %v2866_v12  ;;  %2565 = vmatprep.mubr.msk.bf16.mxu0 %vm557_vm1, %v2870_v16  ;;  %v2900_v46 = vld [vmem:[%s3227_s26] sm:$0xff]   ;;  %v2899_v47 = vld [vmem:[%s3219_s15 + $0x8] sm:$0xff]   ;;  %v2902_v48 = vld [vmem:[%s3219_s15 + $0x10] sm:$0xff]   ;;  %s2934_s28 = sshll.u32 %s3012_s12, 4  ;;  %s2935_s28 = int_to_ptr.vmem [resolvable:$false] %s2934_s28 }
  0x29   : > { %2638 = vmatmul.mubr.msk.bf16.gmra.mrb[4].mxu1 %vm557_vm1, %v2869_v17  ;;  %2595 = vmatprep.subr.bf16.mxu0 %v2884_v24  ;;  %v2901_v49 = vld [vmem:[%s3227_s26 + $0x8] sm:$0xff]   ;;  %v2904_v50 = vld [vmem:[%s3227_s26 + $0x10] sm:$0xff]   ;;  %v2903_v51 = vld [vmem:[%s3219_s15 + $0x18] sm:$0xff]   ;;  %v2013_v17 = vlaneseq  ;;  %s2936_s13 = scalar_lea.vmem %s2935_s28, 8192  ;;  %p2937_p1 = scmp.lt.s32.totalorder %s3461_s25, %s2935_s28 }
  0x2a   : > { %2641 = vmatprep.mubr.msk.bf16.mxu1 %vm557_vm1, %v2872_v18  ;;  %v2906_v52 = vld [vmem:[%s3219_s15 + $0x20] sm:$0xff]   ;;  %v2905_v53 = vld [vmem:[%s3227_s26 + $0x18] sm:$0xff]   ;;  %v2907_v55 = vld [vmem:[%s3219_s15 + $0x28] sm:$0xff]  }
  0x2b   : > { %v2908_v54 = vld [vmem:[%s3227_s26 + $0x20] sm:$0xff]   ;;  %v2910_v56 = vld [vmem:[%s3219_s15 + $0x30] sm:$0xff]   ;;  %v2909_v57 = vld [vmem:[%s3227_s26 + $0x28] sm:$0xff]   ;;  %v2014_v18 = vshrl.u32 %v2013_v17, 7 }
  0x2c   : > { %2596 = vmatpush3.bf16.msra.mxu0 %v2884_v24  ;;  %v2912_v58 = vld [vmem:[%s3227_s26 + $0x30] sm:$0xff]   ;;  %v2911_v59 = vld [vmem:[%s3219_s15 + $0x38] sm:$0xff]   ;;  %v2914_v60 = vld [vmem:[%s3219_s15 + $0x40] sm:$0xff]  }
  0x2d   : > { %v2913_v61 = vld [vmem:[%s3227_s26 + $0x38] sm:$0xff]   ;;  %v2916_v62 = vld [vmem:[%s3227_s26 + $0x40] sm:$0xff]   ;;  %v2915_v63 = vld [vmem:[%s3219_s15 + $0x48] sm:$0xff]  }
  0x2e   : > { %v2918_v0 = vld [vmem:[%s3219_s15 + $0x50] sm:$0xff]   ;;  %v2917_v1 = vld [vmem:[%s3227_s26 + $0x48] sm:$0xff]   ;;  %v2919_v3 = vld [vmem:[%s3219_s15 + $0x58] sm:$0xff]  }
  0x2f   : > { %2566 = vmatmul.mubr.msk.bf16.gmra.mrb[8].mxu0 %vm557_vm1, %v2871_v19  ;;  %v2920_v2 = vld [vmem:[%s3227_s26 + $0x50] sm:$0xff]   ;;  %v2922_v4 = vld [vmem:[%s3219_s15 + $0x60] sm:$0xff]   ;;  %v2921_v5 = vld [vmem:[%s3227_s26 + $0x58] sm:$0xff]  }
  0x30   : > { %2569 = vmatprep.mubr.msk.bf16.mxu0 %vm557_vm1, %v2874_v20  ;;  %v2924_v6 = vld [vmem:[%s3227_s26 + $0x60] sm:$0xff]   ;;  %v2923_v7 = vld [vmem:[%s3219_s15 + $0x68] sm:$0xff]   ;;  %v2926_v8 = vld [vmem:[%s3219_s15 + $0x70] sm:$0xff]  }
  0x31   : > { %2642 = vmatmul.mubr.msk.bf16.gmra.mrb[8].mxu1 %vm557_vm1, %v2873_v21  ;;  %v2925_v9 = vld [vmem:[%s3227_s26 + $0x68] sm:$0xff]   ;;  %v2928_v10 = vld [vmem:[%s3227_s26 + $0x70] sm:$0xff]   ;;  %v2927_v11 = vld [vmem:[%s3219_s15 + $0x78] sm:$0xff]  }
  0x32   : > { %2645 = vmatprep.mubr.msk.bf16.mxu1 %vm557_vm1, %v2876_v22  ;;  %v2929_v12 = vld [vmem:[%s3227_s26 + $0x78] sm:$0xff]   ;;  %v2015_v22 = vsub.s32 0, %v2014_v18  ;;  %s2930_s26 = scalar_lea.vmem %s3461_s25, 4096 }
  0x33   : > { %p2931_p12 = scmp.ne.s32.totalorder %s3461_s25, %s2930_s26  ;;  %p2938_p2 = scmp.lt.s32.totalorder %s2936_s13, %s2930_s26 }
  0x35   : > { %p2932_p13 = pnand %p2931_p12, %p3115_p4  ;;  %p2939_p3 = por %p2938_p2, %p2937_p1 }
  0x37   : > { %2570 = vmatmul.mubr.msk.bf16.gmra.mrb[12].mxu0 %vm557_vm1, %v2875_v23  ;;  %p2933_p0 = pneg %p2932_p13 }
  0x38   : > { %2573 = vmatprep.mubr.msk.bf16.mxu0 %vm557_vm1, %v2878_v25 }
  0x39   : > { %2646 = vmatmul.mubr.msk.bf16.gmra.mrb[12].mxu1 %vm557_vm1, %v2877_v27  ;;  %p2940_p5 = pnand %p2939_p3, %p2933_p0 }
  0x3a   : > { %2649 = vmatprep.mubr.msk.bf16.mxu1 %vm557_vm1, %v2880_v28  ;;  %v3326_v28 = vld [vmem:[%s3527_s10] ss:$0 sm:$0xff] }
  0x3f   : > { %2574 = vmatmul.mubr.msk.bf16.gmra.mrb[16].mxu0 %vm557_vm1, %v2879_v29 }
  0x40   : > { %2577 = vmatprep.mubr.msk.bf16.mxu0 %vm557_vm1, %v2882_v30 }
  0x41   : > { %2650 = vmatmul.mubr.msk.bf16.gmra.mrb[16].mxu1 %vm557_vm1, %v2881_v31 }
  0x42   : > { %2653 = vmatprep.mubr.msk.bf16.mxu1 %vm557_vm1, %v2885_v32 }
  0x47   : > { %2578 = vmatmul.mubr.msk.bf16.gmra.mrb[20].mxu0 %vm557_vm1, %v2883_v33 }
  0x48   : > { %2581 = vmatprep.mubr.msk.bf16.mxu0 %vm557_vm1, %v2888_v34 }
  0x49   : > { %2654 = vmatmul.mubr.msk.bf16.gmra.mrb[20].mxu1 %vm557_vm1, %v2887_v35 }
  0x4a   : > { %2657 = vmatprep.mubr.msk.bf16.mxu1 %vm557_vm1, %v2890_v36 }
  0x4f   : > { %2582 = vmatmul.mubr.msk.bf16.gmra.mrb[24].mxu0 %vm557_vm1, %v2889_v37 }
  0x50   : > { %2585 = vmatprep.mubr.msk.bf16.mxu0 %vm557_vm1, %v2892_v38 }
  0x51   : > { %2658 = vmatmul.mubr.msk.bf16.gmra.mrb[24].mxu1 %vm557_vm1, %v2891_v39 }
  0x52   : > { %2661 = vmatprep.mubr.msk.bf16.mxu1 %vm557_vm1, %v2894_v40 }
  0x57   : > { %2586 = vmatmul.mubr.msk.bf16.gmra.mrb[28].mxu0 %vm557_vm1, %v2893_v41 }
  0x58   : > { %2589 = vmatprep.mubr.msk.bf16.mxu0 %vm557_vm1, %v2896_v42 }
  0x59   : > { %2662 = vmatmul.mubr.msk.bf16.gmra.mrb[28].mxu1 %vm557_vm1, %v2895_v43 }
  0x5a   : > { %2669 = vmatprep.mubr.msk.bf16.mxu1 %vm557_vm1, %v2898_v44 }
  0x5f   : > { %2590 = vmatmul.mubr.msk.bf16.gmra.mrb[32].mxu0 %vm557_vm1, %v2897_v45 }
  0x60   : > { %2597 = vmatprep.mubr.msk.bf16.mxu0 %vm557_vm1, %v2900_v46 }
  0x61   : > { %2670 = vmatmul.mubr.msk.bf16.vlgmr.msra.gmra.mrb[0].mxu1 %vm557_vm1, %v2899_v47 }
  0x62   : > { %2673 = vmatprep.mubr.msk.bf16.mxu1 %vm557_vm1, %v2902_v48 }
  0x67   : > { %2598 = vmatmul.mubr.msk.bf16.vlgmr.msra.gmra.mrb[4].mxu0 %vm557_vm1, %v2901_v49 }
  0x68   : > { %2601 = vmatprep.mubr.msk.bf16.mxu0 %vm557_vm1, %v2904_v50 }
  0x69   : > { %2674 = vmatmul.mubr.msk.bf16.gmra.mrb[4].mxu1 %vm557_vm1, %v2903_v51 }
  0x6a   : > { %2677 = vmatprep.mubr.msk.bf16.mxu1 %vm557_vm1, %v2906_v52 }
  0x6f   : > { %2602 = vmatmul.mubr.msk.bf16.gmra.mrb[8].mxu0 %vm557_vm1, %v2905_v53 }
  0x70   : > { %2605 = vmatprep.mubr.msk.bf16.mxu0 %vm557_vm1, %v2908_v54 }
  0x71   : > { %2678 = vmatmul.mubr.msk.bf16.gmra.mrb[8].mxu1 %vm557_vm1, %v2907_v55 }
  0x72   : > { %2681 = vmatprep.mubr.msk.bf16.mxu1 %vm557_vm1, %v2910_v56 }
  0x77   : > { %2606 = vmatmul.mubr.msk.bf16.gmra.mrb[12].mxu0 %vm557_vm1, %v2909_v57 }
  0x78   : > { %2609 = vmatprep.mubr.msk.bf16.mxu0 %vm557_vm1, %v2912_v58 }
  0x79   : > { %2682 = vmatmul.mubr.msk.bf16.gmra.mrb[12].mxu1 %vm557_vm1, %v2911_v59 }
  0x7a   : > { %2685 = vmatprep.mubr.msk.bf16.mxu1 %vm557_vm1, %v2914_v60 }
  0x7f   : > { %2610 = vmatmul.mubr.msk.bf16.gmra.mrb[16].mxu0 %vm557_vm1, %v2913_v61 }
  0x80   : > { %2613 = vmatprep.mubr.msk.bf16.mxu0 %vm557_vm1, %v2916_v62 }
  0x81   : > { %2686 = vmatmul.mubr.msk.bf16.gmra.mrb[16].mxu1 %vm557_vm1, %v2915_v63 }
  0x82   : > { %2689 = vmatprep.mubr.msk.bf16.mxu1 %vm557_vm1, %v2918_v0 }
  0x87   : > { %2614 = vmatmul.mubr.msk.bf16.gmra.mrb[20].mxu0 %vm557_vm1, %v2917_v1 }
  0x88   : > { %2617 = vmatprep.mubr.msk.bf16.mxu0 %vm557_vm1, %v2920_v2 }
  0x89   : > { %2690 = vmatmul.mubr.msk.bf16.gmra.mrb[20].mxu1 %vm557_vm1, %v2919_v3 }
  0x8a   : > { %2693 = vmatprep.mubr.msk.bf16.mxu1 %vm557_vm1, %v2922_v4 }
  0x8f   : > { %2618 = vmatmul.mubr.msk.bf16.gmra.mrb[24].mxu0 %vm557_vm1, %v2921_v5 }
  0x90   : > { %2621 = vmatprep.mubr.msk.bf16.mxu0 %vm557_vm1, %v2924_v6 }
  0x91   : > { %2694 = vmatmul.mubr.msk.bf16.gmra.mrb[24].mxu1 %vm557_vm1, %v2923_v7 }
  0x92   : > { %2697 = vmatprep.mubr.msk.bf16.mxu1 %vm557_vm1, %v2926_v8 }
  0x97   : > { %2622 = vmatmul.mubr.msk.bf16.gmra.mrb[28].mxu0 %vm557_vm1, %v2925_v9 }
  0x98   : > { %2625 = vmatprep.mubr.msk.bf16.mxu0 %vm557_vm1, %v2928_v10 }
  0x99   : > { %2698 = vmatmul.mubr.msk.bf16.gmra.mrb[28].mxu1 %vm557_vm1, %v2927_v11 }
  0x9f   : > { %2626 = vmatmul.mubr.msk.bf16.gmra.mrb[32].mxu0 %vm557_vm1, %v2929_v12 }
  0xf2   : > { %v595_v13 = vpop.f32.mrb[0].mxu0 }
  0xf3   : > { %v2555_v14 = vpop.f32.mrb[1].mxu0  ;;  %v3321_v25 = vrot.slane %v595_v13, %v2015_v22 }
  0xf4   : > { %v598_v15 = vpop.f32.mrb[2].mxu0 }
  0xf5   : > { %v2556_v16 = vpop.f32.mrb[3].mxu0 }
 0x134   : > { %v2671_v19 = vpop.f32.mrb[0].mxu1 }
 0x135   : > { %v1854_v20 = vpop.f32.mrb[1].mxu1 }
 0x136   : > { %v2672_v21 = vpop.f32.mrb[2].mxu1 }
 0x137   : > { %v1857_v23 = vpop.f32.mrb[3].mxu1 }
 0x13a   : > { %v2599_v24 = vpop.f32.mrb[4].mxu0 }
 0x13b   : > { %v2701_v26 = vadd.f32 %v2671_v19, %v2599_v24  ;;  %v1148_v27 = vpop.f32.mrb[5].mxu0 }
 0x13c   : > { %v2702_v29 = vadd.f32 %v1854_v20, %v1148_v27  ;;  %v2675_v30 = vpop.f32.mrb[4].mxu1  ;;  %v2600_v31 = vpop.f32.mrb[6].mxu0 }
 0x13d   : > { %v2019_v32 = vadd.f32 %v2701_v26, %v3321_v25  ;;  %v2703_v33 = vadd.f32 %v2672_v21, %v2600_v31  ;;  %v1870_v34 = vpop.f32.mrb[5].mxu1  ;;  %v1151_v35 = vpop.f32.mrb[7].mxu0 }
 0x13e   : > { %v2017_v36 = vadd.f32 %v2702_v29, %v3321_v25  ;;  %v2704_v37 = vadd.f32 %v1857_v23, %v1151_v35  ;;  %v2676_v38 = vpop.f32.mrb[6].mxu1 }
 0x13f   : > { %v2058_v39 = vadd.f32 %v3326_v28, %v2019_v32  ;;  %v2020_v40 = vadd.f32 %v2703_v33, %v3321_v25  ;;  %v1873_v41 = vpop.f32.mrb[7].mxu1 }
 0x140   : > { %v2056_v42 = vadd.f32 %v3326_v28, %v2017_v36  ;;  %v2018_v43 = vadd.f32 %v2704_v37, %v3321_v25 }
 0x141   : > { %v2090_v44 = vmax.f32 %v2058_v39, 0.0  ;;  %v2059_v45 = vadd.f32 %v3326_v28, %v2020_v40 }
 0x142   : > { %v2088_v46 = vmax.f32 %v2056_v42, 0.0  ;;  %v2057_v47 = vadd.f32 %v3326_v28, %v2018_v43  ;;  %v2603_v48 = vpop.f32.mrb[8].mxu0 }
 0x143   : > { %2122 = vst.msk [vmem:[%s3338_s14 + $0x10] sm:$0xff] %vm557_vm1, %v2090_v44  ;;  %v2091_v49 = vmax.f32 %v2059_v45, 0.0  ;;  %v2705_v50 = vadd.f32 %v2675_v30, %v2603_v48  ;;  %v1164_v51 = vpop.f32.mrb[9].mxu0 }
 0x144   : > { %2120 = vst.msk [vmem:[%s3338_s14] sm:$0xff] %vm557_vm1, %v2088_v46  ;;  %v2089_v52 = vmax.f32 %v2057_v47, 0.0  ;;  %v2706_v53 = vadd.f32 %v1870_v34, %v1164_v51  ;;  %v2679_v54 = vpop.f32.mrb[8].mxu1  ;;  %v2604_v55 = vpop.f32.mrb[10].mxu0 }
 0x145   : > { %2123 = vst.msk [vmem:[%s3338_s14 + $0x18] sm:$0xff] %vm557_vm1, %v2091_v49  ;;  %v2023_v56 = vadd.f32 %v2705_v50, %v3321_v25  ;;  %v2707_v57 = vadd.f32 %v2676_v38, %v2604_v55  ;;  %v1886_v58 = vpop.f32.mrb[9].mxu1  ;;  %v1167_v59 = vpop.f32.mrb[11].mxu0 }
 0x146   : > { %2121 = vst.msk [vmem:[%s3338_s14 + $0x8] sm:$0xff] %vm557_vm1, %v2089_v52  ;;  %v2021_v60 = vadd.f32 %v2706_v53, %v3321_v25  ;;  %v2708_v61 = vadd.f32 %v1873_v41, %v1167_v59  ;;  %v2680_v62 = vpop.f32.mrb[10].mxu1 }
 0x147   : > { %v2062_v63 = vadd.f32 %v3326_v28, %v2023_v56  ;;  %v2024_v0 = vadd.f32 %v2707_v57, %v3321_v25  ;;  %v1889_v1 = vpop.f32.mrb[11].mxu1 }
 0x148   : > { %v2060_v2 = vadd.f32 %v3326_v28, %v2021_v60  ;;  %v2022_v3 = vadd.f32 %v2708_v61, %v3321_v25 }
 0x149   : > { %v2094_v4 = vmax.f32 %v2062_v63, 0.0  ;;  %v2063_v5 = vadd.f32 %v3326_v28, %v2024_v0 }
 0x14a   : > { %v2092_v6 = vmax.f32 %v2060_v2, 0.0  ;;  %v2061_v7 = vadd.f32 %v3326_v28, %v2022_v3  ;;  %v2607_v8 = vpop.f32.mrb[12].mxu0 }
 0x14b   : > { %2126 = vst.msk [vmem:[%s3338_s14 + $0x30] sm:$0xff] %vm557_vm1, %v2094_v4  ;;  %v2095_v9 = vmax.f32 %v2063_v5, 0.0  ;;  %v2709_v10 = vadd.f32 %v2679_v54, %v2607_v8  ;;  %v1180_v11 = vpop.f32.mrb[13].mxu0 }
 0x14c   : > { %2124 = vst.msk [vmem:[%s3338_s14 + $0x20] sm:$0xff] %vm557_vm1, %v2092_v6  ;;  %v2093_v12 = vmax.f32 %v2061_v7, 0.0  ;;  %v2710_v13 = vadd.f32 %v1886_v58, %v1180_v11  ;;  %v2683_v14 = vpop.f32.mrb[12].mxu1  ;;  %v2608_v15 = vpop.f32.mrb[14].mxu0 }
 0x14d   : > { %2127 = vst.msk [vmem:[%s3338_s14 + $0x38] sm:$0xff] %vm557_vm1, %v2095_v9  ;;  %v2027_v16 = vadd.f32 %v2709_v10, %v3321_v25  ;;  %v2711_v17 = vadd.f32 %v2680_v62, %v2608_v15  ;;  %v1902_v18 = vpop.f32.mrb[13].mxu1  ;;  %v1183_v19 = vpop.f32.mrb[15].mxu0 }
 0x14e   : > { %2125 = vst.msk [vmem:[%s3338_s14 + $0x28] sm:$0xff] %vm557_vm1, %v2093_v12  ;;  %v2025_v20 = vadd.f32 %v2710_v13, %v3321_v25  ;;  %v2712_v21 = vadd.f32 %v1889_v1, %v1183_v19  ;;  %v2684_v22 = vpop.f32.mrb[14].mxu1 }
 0x14f   : > { %v2066_v23 = vadd.f32 %v3326_v28, %v2027_v16  ;;  %v2028_v24 = vadd.f32 %v2711_v17, %v3321_v25  ;;  %v1905_v26 = vpop.f32.mrb[15].mxu1 }
 0x150   : > { %v2064_v27 = vadd.f32 %v3326_v28, %v2025_v20  ;;  %v2026_v29 = vadd.f32 %v2712_v21, %v3321_v25 }
 0x151   : > { %v2098_v30 = vmax.f32 %v2066_v23, 0.0  ;;  %v2067_v31 = vadd.f32 %v3326_v28, %v2028_v24 }
 0x152   : > { %v2096_v32 = vmax.f32 %v2064_v27, 0.0  ;;  %v2065_v33 = vadd.f32 %v3326_v28, %v2026_v29  ;;  %v2611_v34 = vpop.f32.mrb[16].mxu0 }
 0x153   : > { %2130 = vst.msk [vmem:[%s3338_s14 + $0x50] sm:$0xff] %vm557_vm1, %v2098_v30  ;;  %v2099_v35 = vmax.f32 %v2067_v31, 0.0  ;;  %v2713_v36 = vadd.f32 %v2683_v14, %v2611_v34  ;;  %v1196_v37 = vpop.f32.mrb[17].mxu0 }
 0x154   : > { %2128 = vst.msk [vmem:[%s3338_s14 + $0x40] sm:$0xff] %vm557_vm1, %v2096_v32  ;;  %v2097_v38 = vmax.f32 %v2065_v33, 0.0  ;;  %v2714_v39 = vadd.f32 %v1902_v18, %v1196_v37  ;;  %v2687_v40 = vpop.f32.mrb[16].mxu1  ;;  %v2612_v41 = vpop.f32.mrb[18].mxu0 }
 0x155   : > { %2131 = vst.msk [vmem:[%s3338_s14 + $0x58] sm:$0xff] %vm557_vm1, %v2099_v35  ;;  %v2031_v42 = vadd.f32 %v2713_v36, %v3321_v25  ;;  %v2715_v43 = vadd.f32 %v2684_v22, %v2612_v41  ;;  %v1918_v44 = vpop.f32.mrb[17].mxu1  ;;  %v1199_v45 = vpop.f32.mrb[19].mxu0 }
 0x156   : > { %2129 = vst.msk [vmem:[%s3338_s14 + $0x48] sm:$0xff] %vm557_vm1, %v2097_v38  ;;  %v2029_v46 = vadd.f32 %v2714_v39, %v3321_v25  ;;  %v2716_v47 = vadd.f32 %v1905_v26, %v1199_v45  ;;  %v2688_v48 = vpop.f32.mrb[18].mxu1 }
 0x157   : > { %v2070_v49 = vadd.f32 %v3326_v28, %v2031_v42  ;;  %v2032_v50 = vadd.f32 %v2715_v43, %v3321_v25  ;;  %v1921_v51 = vpop.f32.mrb[19].mxu1 }
 0x158   : > { %v2068_v52 = vadd.f32 %v3326_v28, %v2029_v46  ;;  %v2030_v53 = vadd.f32 %v2716_v47, %v3321_v25 }
 0x159   : > { %v2102_v54 = vmax.f32 %v2070_v49, 0.0  ;;  %v2071_v55 = vadd.f32 %v3326_v28, %v2032_v50 }
 0x15a   : > { %v2100_v56 = vmax.f32 %v2068_v52, 0.0  ;;  %v2069_v57 = vadd.f32 %v3326_v28, %v2030_v53  ;;  %v2615_v58 = vpop.f32.mrb[20].mxu0 }
 0x15b   : > { %2134 = vst.msk [vmem:[%s3338_s14 + $0x70] sm:$0xff] %vm557_vm1, %v2102_v54  ;;  %v2103_v59 = vmax.f32 %v2071_v55, 0.0  ;;  %v2717_v60 = vadd.f32 %v2687_v40, %v2615_v58  ;;  %v1212_v61 = vpop.f32.mrb[21].mxu0 }
 0x15c   : > { %2132 = vst.msk [vmem:[%s3338_s14 + $0x60] sm:$0xff] %vm557_vm1, %v2100_v56  ;;  %v2101_v62 = vmax.f32 %v2069_v57, 0.0  ;;  %v2718_v63 = vadd.f32 %v1918_v44, %v1212_v61  ;;  %v2691_v0 = vpop.f32.mrb[20].mxu1  ;;  %v2616_v1 = vpop.f32.mrb[22].mxu0 }
 0x15d   : > { %2135 = vst.msk [vmem:[%s3338_s14 + $0x78] sm:$0xff] %vm557_vm1, %v2103_v59  ;;  %v2035_v2 = vadd.f32 %v2717_v60, %v3321_v25  ;;  %v2719_v3 = vadd.f32 %v2688_v48, %v2616_v1  ;;  %v1934_v4 = vpop.f32.mrb[21].mxu1  ;;  %v1215_v5 = vpop.f32.mrb[23].mxu0 }
 0x15e   : > { %2133 = vst.msk [vmem:[%s3338_s14 + $0x68] sm:$0xff] %vm557_vm1, %v2101_v62  ;;  %v2033_v6 = vadd.f32 %v2718_v63, %v3321_v25  ;;  %v2720_v7 = vadd.f32 %v1921_v51, %v1215_v5  ;;  %v2692_v8 = vpop.f32.mrb[22].mxu1 }
 0x15f   : > { %v2074_v9 = vadd.f32 %v3326_v28, %v2035_v2  ;;  %v2036_v10 = vadd.f32 %v2719_v3, %v3321_v25  ;;  %v1937_v11 = vpop.f32.mrb[23].mxu1 }
 0x160   : > { %v2072_v12 = vadd.f32 %v3326_v28, %v2033_v6  ;;  %v2034_v13 = vadd.f32 %v2720_v7, %v3321_v25 }
 0x161   : > { %v2106_v14 = vmax.f32 %v2074_v9, 0.0  ;;  %v2075_v15 = vadd.f32 %v3326_v28, %v2036_v10 }
 0x162   : > { %v2104_v16 = vmax.f32 %v2072_v12, 0.0  ;;  %v2073_v17 = vadd.f32 %v3326_v28, %v2034_v13  ;;  %v2619_v18 = vpop.f32.mrb[24].mxu0 }
 0x163   : > { %2138 = vst.msk [vmem:[%s3338_s14 + $0x90] sm:$0xff] %vm557_vm1, %v2106_v14  ;;  %v2107_v19 = vmax.f32 %v2075_v15, 0.0  ;;  %v2721_v20 = vadd.f32 %v2691_v0, %v2619_v18  ;;  %v1228_v21 = vpop.f32.mrb[25].mxu0 }
 0x164   : > { %2136 = vst.msk [vmem:[%s3338_s14 + $0x80] sm:$0xff] %vm557_vm1, %v2104_v16  ;;  %v2105_v22 = vmax.f32 %v2073_v17, 0.0  ;;  %v2722_v23 = vadd.f32 %v1934_v4, %v1228_v21  ;;  %v2695_v24 = vpop.f32.mrb[24].mxu1  ;;  %v2620_v26 = vpop.f32.mrb[26].mxu0 }
 0x165   : > { %2139 = vst.msk [vmem:[%s3338_s14 + $0x98] sm:$0xff] %vm557_vm1, %v2107_v19  ;;  %v2039_v27 = vadd.f32 %v2721_v20, %v3321_v25  ;;  %v2723_v29 = vadd.f32 %v2692_v8, %v2620_v26  ;;  %v1950_v30 = vpop.f32.mrb[25].mxu1  ;;  %v1231_v31 = vpop.f32.mrb[27].mxu0 }
 0x166   : > { %2137 = vst.msk [vmem:[%s3338_s14 + $0x88] sm:$0xff] %vm557_vm1, %v2105_v22  ;;  %v2037_v32 = vadd.f32 %v2722_v23, %v3321_v25  ;;  %v2724_v33 = vadd.f32 %v1937_v11, %v1231_v31  ;;  %v2696_v34 = vpop.f32.mrb[26].mxu1 }
 0x167   : > { %v2078_v35 = vadd.f32 %v3326_v28, %v2039_v27  ;;  %v2040_v36 = vadd.f32 %v2723_v29, %v3321_v25  ;;  %v1953_v37 = vpop.f32.mrb[27].mxu1 }
 0x168   : > { %v2076_v38 = vadd.f32 %v3326_v28, %v2037_v32  ;;  %v2038_v39 = vadd.f32 %v2724_v33, %v3321_v25 }
 0x169   : > { %v2110_v40 = vmax.f32 %v2078_v35, 0.0  ;;  %v2079_v41 = vadd.f32 %v3326_v28, %v2040_v36 }
 0x16a   : > { %v2108_v42 = vmax.f32 %v2076_v38, 0.0  ;;  %v2077_v43 = vadd.f32 %v3326_v28, %v2038_v39  ;;  %v2623_v44 = vpop.f32.mrb[28].mxu0 }
 0x16b   : > { %2142 = vst.msk [vmem:[%s3338_s14 + $0xb0] sm:$0xff] %vm557_vm1, %v2110_v40  ;;  %v2111_v45 = vmax.f32 %v2079_v41, 0.0  ;;  %v2725_v46 = vadd.f32 %v2695_v24, %v2623_v44  ;;  %v1244_v47 = vpop.f32.mrb[29].mxu0 }
 0x16c   : > { %2140 = vst.msk [vmem:[%s3338_s14 + $0xa0] sm:$0xff] %vm557_vm1, %v2108_v42  ;;  %v2109_v48 = vmax.f32 %v2077_v43, 0.0  ;;  %v2726_v49 = vadd.f32 %v1950_v30, %v1244_v47  ;;  %v2699_v50 = vpop.f32.mrb[28].mxu1  ;;  %v2624_v51 = vpop.f32.mrb[30].mxu0 }
 0x16d   : > { %2143 = vst.msk [vmem:[%s3338_s14 + $0xb8] sm:$0xff] %vm557_vm1, %v2111_v45  ;;  %v2043_v52 = vadd.f32 %v2725_v46, %v3321_v25  ;;  %v2727_v53 = vadd.f32 %v2696_v34, %v2624_v51  ;;  %v1966_v54 = vpop.f32.mrb[29].mxu1  ;;  %v1247_v55 = vpop.f32.mrb[31].mxu0 }
 0x16e   : > { %2141 = vst.msk [vmem:[%s3338_s14 + $0xa8] sm:$0xff] %vm557_vm1, %v2109_v48  ;;  %v2041_v56 = vadd.f32 %v2726_v49, %v3321_v25  ;;  %v2728_v57 = vadd.f32 %v1953_v37, %v1247_v55  ;;  %v2700_v58 = vpop.f32.mrb[30].mxu1 }
 0x16f   : > { %v2082_v59 = vadd.f32 %v3326_v28, %v2043_v52  ;;  %v2044_v60 = vadd.f32 %v2727_v53, %v3321_v25  ;;  %v1969_v61 = vpop.f32.mrb[31].mxu1 }
 0x170   : > { %v2080_v62 = vadd.f32 %v3326_v28, %v2041_v56  ;;  %v2042_v63 = vadd.f32 %v2728_v57, %v3321_v25 }
 0x171   : > { %v2114_v0 = vmax.f32 %v2082_v59, 0.0  ;;  %v2083_v1 = vadd.f32 %v3326_v28, %v2044_v60 }
 0x172   : > { %v2112_v2 = vmax.f32 %v2080_v62, 0.0  ;;  %v2081_v3 = vadd.f32 %v3326_v28, %v2042_v63  ;;  %v2627_v4 = vpop.f32.mrb[32].mxu0 }
 0x173   : > { %2146 = vst.msk [vmem:[%s3338_s14 + $0xd0] sm:$0xff] %vm557_vm1, %v2114_v0  ;;  %v2115_v5 = vmax.f32 %v2083_v1, 0.0  ;;  %v2729_v6 = vadd.f32 %v2699_v50, %v2627_v4  ;;  %v1260_v7 = vpop.f32.mrb[33].mxu0 }
 0x174   : > { %2144 = vst.msk [vmem:[%s3338_s14 + $0xc0] sm:$0xff] %vm557_vm1, %v2112_v2  ;;  %v2113_v8 = vmax.f32 %v2081_v3, 0.0  ;;  %v2730_v9 = vadd.f32 %v1966_v54, %v1260_v7  ;;  %v2628_v10 = vpop.f32.mrb[34].mxu0 }
 0x175   : > { %2147 = vst.msk [vmem:[%s3338_s14 + $0xd8] sm:$0xff] %vm557_vm1, %v2115_v5  ;;  %v2047_v11 = vadd.f32 %v2729_v6, %v3321_v25  ;;  %v2731_v12 = vadd.f32 %v2700_v58, %v2628_v10  ;;  %v1263_v13 = vpop.f32.mrb[35].mxu0 }
 0x176   : > { %2145 = vst.msk [vmem:[%s3338_s14 + $0xc8] sm:$0xff] %vm557_vm1, %v2113_v8  ;;  %v2045_v14 = vadd.f32 %v2730_v9, %v3321_v25  ;;  %v2732_v15 = vadd.f32 %v1969_v61, %v1263_v13 }
 0x177   : > { %v2086_v16 = vadd.f32 %v3326_v28, %v2047_v11  ;;  %v2048_v17 = vadd.f32 %v2731_v12, %v3321_v25 }
 0x178   : > { %v2084_v18 = vadd.f32 %v3326_v28, %v2045_v14  ;;  %v2046_v19 = vadd.f32 %v2732_v15, %v3321_v25 }
 0x179   : > { %v2118_v20 = vmax.f32 %v2086_v16, 0.0  ;;  %v2087_v21 = vadd.f32 %v3326_v28, %v2048_v17 }
 0x17a   : > { %v2116_v22 = vmax.f32 %v2084_v18, 0.0  ;;  %v2085_v23 = vadd.f32 %v3326_v28, %v2046_v19 }
 0x17b   : > { %2150 = vst.msk [vmem:[%s3338_s14 + $0xf0] sm:$0xff] %vm557_vm1, %v2118_v20  ;;  %v2119_v24 = vmax.f32 %v2087_v21, 0.0 }
 0x17c   : > { %2148 = vst.msk [vmem:[%s3338_s14 + $0xe0] sm:$0xff] %vm557_vm1, %v2116_v22  ;;  %v2117_v25 = vmax.f32 %v2085_v23, 0.0 }
 0x17d   : > { %2151 = vst.msk [vmem:[%s3338_s14 + $0xf8] sm:$0xff] %vm557_vm1, %v2119_v24 }
 0x17e   : > { %2149 = vst.msk [vmem:[%s3338_s14 + $0xe8] sm:$0xff] %vm557_vm1, %v2117_v25 }
 0x17f   : > { %2943 = shalt.err (!%p2940_p5)
}
 0x180   : > { %s2944_s23 = scalar_lea.hbm %s3459_s24, 4096  ;;  %s2948_s15 = scalar_lea.hbm %s3528_s11, 8192 }
 0x181   : > { %p2945_p6 = scmp.ne.s32.totalorder %s3459_s24, %s2944_s23  ;;  %p2949_p10 = scmp.lt.u32.totalorder %s3459_s24, %s3528_s11 }
 0x182   : > { %p2950_p11 = scmp.lt.u32.totalorder %s2948_s15, %s2944_s23  ;;  %p2952_p13 = scmp.lt.u32.totalorder %s2944_s23, %s3459_s24 }
 0x183   : > { %p2946_p7 = pnand %p2945_p6, %p3115_p4 }
 0x184   : > { %p2951_p12 = por %p2950_p11, %p2949_p10 }
 0x185   : > { %p2947_p9 = pneg %p2946_p7 }
 0x186   : > { %p2953_p0 = por %p2952_p13, %p2951_p12 }
 0x188   : > { %p2954_p1 = pnand %p2953_p0, %p2947_p9 }
 0x18a   : > { %2957 = shalt.err (!%p2954_p1)
}
 0x18b   : > { %s3013_s26 = smov 128   ;;  %s3014_s28 = smov 8  }
 0x18c   : > { %2797 = dma.vmem_to_hbm [thread:$0]  (%p3115_p4), %s3461_s25, 4096, %s3459_s24, %s3471_s20, %s3013_s26, %s3013_s26, %s3014_s28  }
 0x18d PF: > { %p2803_p2 = scmp.ge.s32.totalorder %s3008_s22, 2  ;;  %s2183_s13 = sand.u32 1, %s2988_s17  }
 0x18e   : > { %s2184_s23 = scalar_lea.sflag [#allocation3], %s2183_s13 }
 0x18f   : > { %p2800_p3 = pnand %p2803_p2, %p3122_p8 }
 0x191   : > { %2983 = dma.done.wait (!%p2800_p3), %s2184_s23, 4096  }
 0x192   : > { %2985 = vsyncadd (!%p2800_p3), %s2184_s23, 4294963200  ;;  %s24_s22 = sadd.s32 1, %s3008_s22   ;;  %s3535_s27 = sld [smem:[#allocation5_spill]] }
 0x193   : > { %p21_p5 = scmp.ge.s32.totalorder %s24_s22, 4   ;;  %s3536_s17 = smov %s2992_s18 }
 0x194   : > { %s3537_s18 = smov %s2996_s19  ;;  %s3538_s19 = smov %s3128_s30 }
 0x195   : > { %s3539_s20 = smov %s3004_s21  ;;  %23 = sbr.rel (!%p21_p5) target bundleno = 6 (0x6), region = 111 }
 0x198   : > { %s3540_s21 = smov %s3535_s27 }
 0x19c   :  { %2189 = vsyncpa [#allocation3], 1 }
 0x19d   :  { %2191 = vsyncpa [#allocation3 + $0x1], 1 }

</bundles_post_ra>
